<compile_context>
chip_gen: v7x
topology: tpu7x:2x2x1
jax: 0.10.0
libtpu: 0.0.40
codegen_flags: <defaults>
</compile_context>

<pallas_src>
import numpy as np

import jax
import jax.numpy as jnp
from jax.experimental import pallas as pl
from jax.experimental.pallas import tpu as pltpu


_N_ENC, _N_DEC, _N_SKIP = 6, 6, 5


# ----------------------------------------------------------------------------
# In-kernel helpers: row gathers expressed as tiny 0/1 matmuls (or unrolled
# static slices for the deepest levels), so the only heavy op per level is one
# big lane-dense matmul on the MXU.
# ----------------------------------------------------------------------------
def _select_rows(x, n_out, pred):
    """G (n_out, L) with G[i] = x[r] for the unique r with pred(i, r), else 0."""
    n_in, lanes = x.shape
    if n_out >= 8 and n_in >= 8:
        ii = jax.lax.broadcasted_iota(jnp.int32, (n_out, n_in), 0)
        rr = jax.lax.broadcasted_iota(jnp.int32, (n_out, n_in), 1)
        sel = jnp.where(pred(ii, rr), 1.0, 0.0).astype(x.dtype)
        g = jnp.dot(sel, x, preferred_element_type=jnp.float32)
        return g.astype(x.dtype)
    rows = []
    for i in range(n_out):
        src = [r for r in range(n_in) if pred(i, r)]
        if src:
            rows.append(x[src[0]:src[0] + 1, :])
        else:
            rows.append(jnp.zeros((1, lanes), x.dtype))
    return rows[0] if len(rows) == 1 else jnp.concatenate(rows, axis=0)


def _taps_conv_s2(x, n_out):
    """Row taps of Conv2d(k=4, s=2, p=1): tap ky reads input row 2*i + ky - 1."""
    return jnp.concatenate(
        [_select_rows(x, n_out, lambda i, r, ky=ky: r == 2 * i + ky - 1)
         for ky in range(4)], axis=-1)


def _taps_deconv_s2(x, n_out):
    """Row taps of ConvTranspose2d(k=4, s=2, p=1): out row i reads input row r
    with 2*r + ky - 1 == i."""
    return jnp.concatenate(
        [_select_rows(x, n_out, lambda i, r, ky=ky: 2 * r + ky - 1 == i)
         for ky in range(4)], axis=-1)


def _taps_conv_s1(x):
    """Row taps of Conv2d(k=3, s=1, p=1)."""
    n = x.shape[0]
    return jnp.concatenate(
        [_select_rows(x, n, lambda i, r, ky=ky: r == i + ky - 1)
         for ky in range(3)], axis=-1)


# ----------------------------------------------------------------------------
# The fused kernel: whole network per batch element.
# ----------------------------------------------------------------------------
def _hg_kernel(x_ref, *refs):
    out_ref = refs[-1]
    prm = refs[:-1]
    enc = [(prm[2 * i], prm[2 * i + 1]) for i in range(_N_ENC)]
    dec = [(prm[2 * _N_ENC + 2 * i], prm[2 * _N_ENC + 2 * i + 1])
           for i in range(_N_DEC)]
    skp = [(prm[2 * (_N_ENC + _N_DEC) + 2 * i],
            prm[2 * (_N_ENC + _N_DEC) + 2 * i + 1]) for i in range(_N_SKIP)]

    x = x_ref[...]                                    # (H, W*Cin) bf16
    encodings = []
    for w_ref, b_ref in enc:                          # Conv2d(4,2,1) + ReLU
        g = _taps_conv_s2(x, x.shape[0] // 2)
        a = jnp.dot(g, w_ref[...], preferred_element_type=jnp.float32)
        x = jnp.maximum(a + b_ref[...], 0.0).astype(jnp.bfloat16)
        encodings.append(x)

    for di in range(_N_DEC - 1):                      # skip(enc) + relu(deconv(x))
        wd_ref, bd_ref = dec[di]
        gd = _taps_deconv_s2(x, 2 * x.shape[0])
        d = jnp.dot(gd, wd_ref[...], preferred_element_type=jnp.float32)
        d = jnp.maximum(d + bd_ref[...], 0.0)

        e = encodings[_N_ENC - di - 2]
        ws_ref, bs_ref = skp[_N_ENC - di - 2]
        gs = _taps_conv_s1(e)
        s = jnp.dot(gs, ws_ref[...], preferred_element_type=jnp.float32) + bs_ref[...]
        x = (s + d).astype(jnp.bfloat16)

    wd_ref, bd_ref = dec[-1]                          # final deconv + sigmoid
    gd = _taps_deconv_s2(x, 2 * x.shape[0])
    logits = jnp.dot(gd, wd_ref[...], preferred_element_type=jnp.float32) + bd_ref[...]
    out_ref[...] = jax.nn.sigmoid(logits).astype(out_ref.dtype)


# ----------------------------------------------------------------------------
# pallas_call wrapper (one launch for the whole network).
# ----------------------------------------------------------------------------
def soft_gated_hg_forward(x_nchw, flat_params):
    n, c, h, w = x_nchw.shape
    assert h % 64 == 0 and w % 64 == 0, "spatial dims must be divisible by 2**6"
    out_c = flat_params[2 * (_N_ENC + _N_DEC) - 2].shape[1] // w
    x2d = jnp.transpose(x_nchw, (0, 2, 3, 1)).reshape(n, h, w * c).astype(jnp.bfloat16)

    in_specs = [pl.BlockSpec((None, h, w * c), lambda i: (i, 0, 0))]
    for a in flat_params:
        in_specs.append(pl.BlockSpec(a.shape, lambda i, _nd=a.ndim: (0,) * _nd))

    out = pl.pallas_call(
        _hg_kernel,
        out_shape=jax.ShapeDtypeStruct((n, h, w * out_c), jnp.float32),
        grid=(n,),
        in_specs=in_specs,
        out_specs=pl.BlockSpec((None, h, w * out_c), lambda i: (i, 0, 0)),
        compiler_params=pltpu.CompilerParams(
            dimension_semantics=("parallel",),
            vmem_limit_bytes=32 * 1024 * 1024),
    )(x2d, *flat_params)
    return jnp.transpose(out.reshape(n, h, w, out_c), (0, 3, 1, 2))


# ----------------------------------------------------------------------------
# Host-side weight rearrangement (done once): fold the conv's W dimension into
# block-banded (taps*W_in*Cin, W_out*Cout) bf16 matrices; biases -> lane rows.
# ----------------------------------------------------------------------------
def _enc_weight_mat(w, w_in):
    cout, cin = w.shape[0], w.shape[1]            # torch Conv2d (Cout,Cin,4,4)
    w_out = w_in // 2
    m = np.zeros((4, w_in, cin, w_out, cout), np.float32)
    for ky in range(4):
        for kx in range(4):
            for ox in range(w_out):
                j = 2 * ox + kx - 1
                if 0 <= j < w_in:
                    m[ky, j, :, ox, :] = w[:, :, ky, kx].T
    return m.reshape(4 * w_in * cin, w_out * cout)


def _dec_weight_mat(w, w_in):
    cin, cout = w.shape[0], w.shape[1]            # torch ConvTranspose2d (Cin,Cout,4,4)
    w_out = 2 * w_in
    m = np.zeros((4, w_in, cin, w_out, cout), np.float32)
    for ky in range(4):
        for kx in range(4):
            for x in range(w_in):
                j = 2 * x + kx - 1
                if 0 <= j < w_out:
                    m[ky, x, :, j, :] = w[:, :, ky, kx]
    return m.reshape(4 * w_in * cin, w_out * cout)


def _skip_weight_mat(w, width):
    cout, cin = w.shape[0], w.shape[1]            # torch Conv2d (C,C,3,3) pad 1
    m = np.zeros((3, width, cin, width, cout), np.float32)
    for ky in range(3):
        for kx in range(3):
            for ox in range(width):
                j = ox + kx - 1
                if 0 <= j < width:
                    m[ky, j, :, ox, :] = w[:, :, ky, kx].T
    return m.reshape(3 * width * cin, width * cout)


def prepare_params(params, width):
    """Rearrange torch-layout params into kernel-ready bf16 banded matrices."""
    flat = []
    w_cur = width
    for w, b in params["enc"]:
        flat.append(jnp.asarray(_enc_weight_mat(np.asarray(w, np.float32), w_cur),
                                jnp.bfloat16))
        flat.append(jnp.asarray(np.tile(np.asarray(b, np.float32), w_cur // 2)[None, :]))
        w_cur //= 2
    w_cur = width // (2 ** _N_ENC)
    for w, b in params["dec"]:
        flat.append(jnp.asarray(_dec_weight_mat(np.asarray(w, np.float32), w_cur),
                                jnp.bfloat16))
        flat.append(jnp.asarray(np.tile(np.asarray(b, np.float32), 2 * w_cur)[None, :]))
        w_cur *= 2
    w_cur = width // 2
    for w, b in params["skip"]:
        flat.append(jnp.asarray(_skip_weight_mat(np.asarray(w, np.float32), w_cur),
                                jnp.bfloat16))
        flat.append(jnp.asarray(np.tile(np.asarray(b, np.float32), w_cur)[None, :]))
        w_cur //= 2
    return flat


# ----------------------------------------------------------------------------
# Parameters (torch layout, deterministic init).
# ----------------------------------------------------------------------------
def init_params(key, in_channels, out_channels):
    enc_specs = [(in_channels, 8), (8, 16), (16, 32), (32, 64), (64, 64), (64, 64)]
    dec_specs = [(64, 64), (64, 64), (64, 32), (32, 16), (16, 8), (8, out_channels)]
    skip_ch = [8, 16, 32, 64, 64]
    keys = iter(jax.random.split(key, 2 * (len(enc_specs) + len(dec_specs) + len(skip_ch))))

    def w_init(k, shape, fan_in):
        return jax.random.normal(k, shape, jnp.float32) * (2.0 / fan_in) ** 0.5

    def b_init(k, n, fan_in):
        bound = 1.0 / fan_in ** 0.5
        return jax.random.uniform(k, (n,), jnp.float32, -bound, bound)

    enc = [(w_init(next(keys), (co, ci, 4, 4), ci * 16), b_init(next(keys), co, ci * 16))
           for ci, co in enc_specs]
    dec = [(w_init(next(keys), (ci, co, 4, 4), ci * 16), b_init(next(keys), co, ci * 16))
           for ci, co in dec_specs]
    skip = [(w_init(next(keys), (c, c, 3, 3), c * 9), b_init(next(keys), c, c * 9))
            for c in skip_ch]
    return {"enc": enc, "dec": dec, "skip": skip}


# ----------------------------------------------------------------------------
# Pure-lax reference (mirrors the kernel's bf16 quantization points).
# ----------------------------------------------------------------------------
def _ref_conv(x, w_oihw, b, stride, pad):
    y = jax.lax.conv_general_dilated(
        x.astype(jnp.bfloat16), w_oihw.astype(jnp.bfloat16),
        window_strides=(stride, stride), padding=[(pad, pad), (pad, pad)],
        dimension_numbers=("NCHW", "OIHW", "NCHW"),
        preferred_element_type=jnp.float32)
    return y + b.astype(jnp.float32)[None, :, None, None]


def _ref_deconv(x, w_iohw, b):
    w = jnp.transpose(jnp.flip(w_iohw, (2, 3)), (1, 0, 2, 3))
    y = jax.lax.conv_general_dilated(
        x.astype(jnp.bfloat16), w.astype(jnp.bfloat16),
        window_strides=(1, 1), padding=[(2, 2), (2, 2)], lhs_dilation=(2, 2),
        dimension_numbers=("NCHW", "OIHW", "NCHW"),
        preferred_element_type=jnp.float32)
    return y + b.astype(jnp.float32)[None, :, None, None]


def reference_forward(x_nchw, params):
    x = x_nchw
    encs = []
    for w, b in params["enc"]:
        x = jnp.maximum(_ref_conv(x, w, b, 2, 1), 0.0).astype(jnp.bfloat16)
        encs.append(x)
    n = len(encs)
    for i, (w, b) in enumerate(params["dec"][:-1]):
        sw, sb = params["skip"][n - i - 2]
        s = _ref_conv(encs[n - i - 2], sw, sb, 1, 1)
        d = jnp.maximum(_ref_deconv(x, w, b), 0.0)
        x = (s + d).astype(jnp.bfloat16)
    w, b = params["dec"][-1]
    return jax.nn.sigmoid(_ref_deconv(x, w, b)).astype(jnp.float32)


if __name__ == "__main__":
    key = jax.random.PRNGKey(0)
    kx, kp = jax.random.split(key)

    # smallest spatial size compatible with 6 stride-2 downsamples: 64x64
    N, C, H, W = 2, 3, 64, 64
    OUT_C = 1

    x = jax.random.normal(kx, (N, C, H, W), jnp.float32)
    params = init_params(kp, C, OUT_C)
    flat = prepare_params(params, W)

    fwd = jax.jit(soft_gated_hg_forward)
    out = jax.block_until_ready(fwd(x, flat))

    assert out.shape == (N, OUT_C, H, W), out.shape
    assert bool(jnp.all(jnp.isfinite(out)))
    assert bool(jnp.all((out >= 0.0) & (out <= 1.0)))   # final sigmoid

    ref = jax.block_until_ready(jax.jit(reference_forward)(x, params))
    max_diff = float(jnp.max(jnp.abs(out - ref)))
    assert max_diff < 3e-2, f"mismatch vs lax reference: max|diff|={max_diff}"

    print("KERNEL_OK")
</pallas_src>

<mosaic_0001>
module attributes {stable_mosaic.version = 11 : i64} {
  func.func @_hg_kernel(%arg0: i32, %arg1: memref<1x64x192xbf16, #tpu.memory_space<vmem>>, %arg2: memref<768x256xbf16, #tpu.memory_space<vmem>>, %arg3: memref<1x256xf32, #tpu.memory_space<vmem>>, %arg4: memref<1024x256xbf16, #tpu.memory_space<vmem>>, %arg5: memref<1x256xf32, #tpu.memory_space<vmem>>, %arg6: memref<1024x256xbf16, #tpu.memory_space<vmem>>, %arg7: memref<1x256xf32, #tpu.memory_space<vmem>>, %arg8: memref<1024x256xbf16, #tpu.memory_space<vmem>>, %arg9: memref<1x256xf32, #tpu.memory_space<vmem>>, %arg10: memref<1024x128xbf16, #tpu.memory_space<vmem>>, %arg11: memref<1x128xf32, #tpu.memory_space<vmem>>, %arg12: memref<512x64xbf16, #tpu.memory_space<vmem>>, %arg13: memref<1x64xf32, #tpu.memory_space<vmem>>, %arg14: memref<256x128xbf16, #tpu.memory_space<vmem>>, %arg15: memref<1x128xf32, #tpu.memory_space<vmem>>, %arg16: memref<512x256xbf16, #tpu.memory_space<vmem>>, %arg17: memref<1x256xf32, #tpu.memory_space<vmem>>, %arg18: memref<1024x256xbf16, #tpu.memory_space<vmem>>, %arg19: memref<1x256xf32, #tpu.memory_space<vmem>>, %arg20: memref<1024x256xbf16, #tpu.memory_space<vmem>>, %arg21: memref<1x256xf32, #tpu.memory_space<vmem>>, %arg22: memref<1024x256xbf16, #tpu.memory_space<vmem>>, %arg23: memref<1x256xf32, #tpu.memory_space<vmem>>, %arg24: memref<1024x64xbf16, #tpu.memory_space<vmem>>, %arg25: memref<1x64xf32, #tpu.memory_space<vmem>>, %arg26: memref<768x256xbf16, #tpu.memory_space<vmem>>, %arg27: memref<1x256xf32, #tpu.memory_space<vmem>>, %arg28: memref<768x256xbf16, #tpu.memory_space<vmem>>, %arg29: memref<1x256xf32, #tpu.memory_space<vmem>>, %arg30: memref<768x256xbf16, #tpu.memory_space<vmem>>, %arg31: memref<1x256xf32, #tpu.memory_space<vmem>>, %arg32: memref<768x256xbf16, #tpu.memory_space<vmem>>, %arg33: memref<1x256xf32, #tpu.memory_space<vmem>>, %arg34: memref<384x128xbf16, #tpu.memory_space<vmem>>, %arg35: memref<1x128xf32, #tpu.memory_space<vmem>>, %arg36: memref<1x64x64xf32, #tpu.memory_space<vmem>>) attributes {dimension_semantics = [#tpu.dimension_semantics<parallel>], iteration_bounds = array<i64: 2>, scalar_prefetch = 0 : i64, scratch_operands = 0 : i64, tpu.core_type = #tpu.core_type<tc>, window_params = [{transform_indices = @transform_0, window_bounds = array<i64: 1, 64, 192>}, {pipeline_mode = #tpu.pipeline_mode<synchronous>, transform_indices = @transform_1, window_bounds = array<i64: 768, 256>}, {pipeline_mode = #tpu.pipeline_mode<synchronous>, transform_indices = @transform_2, window_bounds = array<i64: 1, 256>}, {pipeline_mode = #tpu.pipeline_mode<synchronous>, transform_indices = @transform_3, window_bounds = array<i64: 1024, 256>}, {pipeline_mode = #tpu.pipeline_mode<synchronous>, transform_indices = @transform_4, window_bounds = array<i64: 1, 256>}, {pipeline_mode = #tpu.pipeline_mode<synchronous>, transform_indices = @transform_5, window_bounds = array<i64: 1024, 256>}, {pipeline_mode = #tpu.pipeline_mode<synchronous>, transform_indices = @transform_6, window_bounds = array<i64: 1, 256>}, {pipeline_mode = #tpu.pipeline_mode<synchronous>, transform_indices = @transform_7, window_bounds = array<i64: 1024, 256>}, {pipeline_mode = #tpu.pipeline_mode<synchronous>, transform_indices = @transform_8, window_bounds = array<i64: 1, 256>}, {pipeline_mode = #tpu.pipeline_mode<synchronous>, transform_indices = @transform_9, window_bounds = array<i64: 1024, 128>}, {pipeline_mode = #tpu.pipeline_mode<synchronous>, transform_indices = @transform_10, window_bounds = array<i64: 1, 128>}, {pipeline_mode = #tpu.pipeline_mode<synchronous>, transform_indices = @transform_11, window_bounds = array<i64: 512, 64>}, {pipeline_mode = #tpu.pipeline_mode<synchronous>, transform_indices = @transform_12, window_bounds = array<i64: 1, 64>}, {pipeline_mode = #tpu.pipeline_mode<synchronous>, transform_indices = @transform_13, window_bounds = array<i64: 256, 128>}, {pipeline_mode = #tpu.pipeline_mode<synchronous>, transform_indices = @transform_14, window_bounds = array<i64: 1, 128>}, {pipeline_mode = #tpu.pipeline_mode<synchronous>, transform_indices = @transform_15, window_bounds = array<i64: 512, 256>}, {pipeline_mode = #tpu.pipeline_mode<synchronous>, transform_indices = @transform_16, window_bounds = array<i64: 1, 256>}, {pipeline_mode = #tpu.pipeline_mode<synchronous>, transform_indices = @transform_17, window_bounds = array<i64: 1024, 256>}, {pipeline_mode = #tpu.pipeline_mode<synchronous>, transform_indices = @transform_18, window_bounds = array<i64: 1, 256>}, {pipeline_mode = #tpu.pipeline_mode<synchronous>, transform_indices = @transform_19, window_bounds = array<i64: 1024, 256>}, {pipeline_mode = #tpu.pipeline_mode<synchronous>, transform_indices = @transform_20, window_bounds = array<i64: 1, 256>}, {pipeline_mode = #tpu.pipeline_mode<synchronous>, transform_indices = @transform_21, window_bounds = array<i64: 1024, 256>}, {pipeline_mode = #tpu.pipeline_mode<synchronous>, transform_indices = @transform_22, window_bounds = array<i64: 1, 256>}, {pipeline_mode = #tpu.pipeline_mode<synchronous>, transform_indices = @transform_23, window_bounds = array<i64: 1024, 64>}, {pipeline_mode = #tpu.pipeline_mode<synchronous>, transform_indices = @transform_24, window_bounds = array<i64: 1, 64>}, {pipeline_mode = #tpu.pipeline_mode<synchronous>, transform_indices = @transform_25, window_bounds = array<i64: 768, 256>}, {pipeline_mode = #tpu.pipeline_mode<synchronous>, transform_indices = @transform_26, window_bounds = array<i64: 1, 256>}, {pipeline_mode = #tpu.pipeline_mode<synchronous>, transform_indices = @transform_27, window_bounds = array<i64: 768, 256>}, {pipeline_mode = #tpu.pipeline_mode<synchronous>, transform_indices = @transform_28, window_bounds = array<i64: 1, 256>}, {pipeline_mode = #tpu.pipeline_mode<synchronous>, transform_indices = @transform_29, window_bounds = array<i64: 768, 256>}, {pipeline_mode = #tpu.pipeline_mode<synchronous>, transform_indices = @transform_30, window_bounds = array<i64: 1, 256>}, {pipeline_mode = #tpu.pipeline_mode<synchronous>, transform_indices = @transform_31, window_bounds = array<i64: 768, 256>}, {pipeline_mode = #tpu.pipeline_mode<synchronous>, transform_indices = @transform_32, window_bounds = array<i64: 1, 256>}, {pipeline_mode = #tpu.pipeline_mode<synchronous>, transform_indices = @transform_33, window_bounds = array<i64: 384, 128>}, {pipeline_mode = #tpu.pipeline_mode<synchronous>, transform_indices = @transform_34, window_bounds = array<i64: 1, 128>}, {transform_indices = @transform_35, window_bounds = array<i64: 1, 64, 64>}]} {
    %c0 = arith.constant 0 : index
    %c0_0 = arith.constant 0 : index
    %c0_1 = arith.constant 0 : index
    %0 = vector.load %arg1[%c0, %c0_0, %c0_1] : memref<1x64x192xbf16, #tpu.memory_space<vmem>>, vector<1x64x192xbf16>
    %1 = vector.shape_cast %0 : vector<1x64x192xbf16> to vector<64x192xbf16>
    %2 = tpu.iota {dimensions = array<i32: 0>} : vector<32x64xi32>
    %3 = tpu.iota {dimensions = array<i32: 1>} : vector<32x64xi32>
    %c2_i32 = arith.constant 2 : i32
    %4 = vector.broadcast %c2_i32 : i32 to vector<32x64xi32>
    %5 = arith.muli %4, %2 : vector<32x64xi32>
    %c0_i32 = arith.constant 0 : i32
    %6 = vector.broadcast %c0_i32 : i32 to vector<32x64xi32>
    %7 = arith.addi %5, %6 : vector<32x64xi32>
    %c1_i32 = arith.constant 1 : i32
    %8 = vector.broadcast %c1_i32 : i32 to vector<32x64xi32>
    %9 = arith.subi %7, %8 : vector<32x64xi32>
    %10 = arith.cmpi eq, %3, %9 : vector<32x64xi32>
    %cst = arith.constant 1.000000e+00 : f32
    %cst_2 = arith.constant 0.000000e+00 : f32
    %11 = vector.broadcast %cst : f32 to vector<32x64xf32>
    %12 = vector.broadcast %cst_2 : f32 to vector<32x64xf32>
    %13 = arith.select %10, %11, %12 : vector<32x64xi1>, vector<32x64xf32>
    %14 = arith.truncf %13 : vector<32x64xf32> to vector<32x64xbf16>
    %cst_3 = arith.constant dense<0.000000e+00> : vector<32x192xf32>
    %15 = tpu.matmul %14, %1, %cst_3 {dimension_numbers = #tpu.dot_dimension_numbers<[1], [0], [0], [1], [0, 0, 1, 1], [], []>} : vector<32x64xbf16>, vector<64x192xbf16>, vector<32x192xf32> -> vector<32x192xf32>
    %16 = arith.truncf %15 : vector<32x192xf32> to vector<32x192xbf16>
    %17 = tpu.iota {dimensions = array<i32: 0>} : vector<32x64xi32>
    %18 = tpu.iota {dimensions = array<i32: 1>} : vector<32x64xi32>
    %c2_i32_4 = arith.constant 2 : i32
    %19 = vector.broadcast %c2_i32_4 : i32 to vector<32x64xi32>
    %20 = arith.muli %19, %17 : vector<32x64xi32>
    %c1_i32_5 = arith.constant 1 : i32
    %21 = vector.broadcast %c1_i32_5 : i32 to vector<32x64xi32>
    %22 = arith.addi %20, %21 : vector<32x64xi32>
    %c1_i32_6 = arith.constant 1 : i32
    %23 = vector.broadcast %c1_i32_6 : i32 to vector<32x64xi32>
    %24 = arith.subi %22, %23 : vector<32x64xi32>
    %25 = arith.cmpi eq, %18, %24 : vector<32x64xi32>
    %cst_7 = arith.constant 1.000000e+00 : f32
    %cst_8 = arith.constant 0.000000e+00 : f32
    %26 = vector.broadcast %cst_7 : f32 to vector<32x64xf32>
    %27 = vector.broadcast %cst_8 : f32 to vector<32x64xf32>
    %28 = arith.select %25, %26, %27 : vector<32x64xi1>, vector<32x64xf32>
    %29 = arith.truncf %28 : vector<32x64xf32> to vector<32x64xbf16>
    %cst_9 = arith.constant dense<0.000000e+00> : vector<32x192xf32>
    %30 = tpu.matmul %29, %1, %cst_9 {dimension_numbers = #tpu.dot_dimension_numbers<[1], [0], [0], [1], [0, 0, 1, 1], [], []>} : vector<32x64xbf16>, vector<64x192xbf16>, vector<32x192xf32> -> vector<32x192xf32>
    %31 = arith.truncf %30 : vector<32x192xf32> to vector<32x192xbf16>
    %32 = tpu.iota {dimensions = array<i32: 0>} : vector<32x64xi32>
    %33 = tpu.iota {dimensions = array<i32: 1>} : vector<32x64xi32>
    %c2_i32_10 = arith.constant 2 : i32
    %34 = vector.broadcast %c2_i32_10 : i32 to vector<32x64xi32>
    %35 = arith.muli %34, %32 : vector<32x64xi32>
    %c2_i32_11 = arith.constant 2 : i32
    %36 = vector.broadcast %c2_i32_11 : i32 to vector<32x64xi32>
    %37 = arith.addi %35, %36 : vector<32x64xi32>
    %c1_i32_12 = arith.constant 1 : i32
    %38 = vector.broadcast %c1_i32_12 : i32 to vector<32x64xi32>
    %39 = arith.subi %37, %38 : vector<32x64xi32>
    %40 = arith.cmpi eq, %33, %39 : vector<32x64xi32>
    %cst_13 = arith.constant 1.000000e+00 : f32
    %cst_14 = arith.constant 0.000000e+00 : f32
    %41 = vector.broadcast %cst_13 : f32 to vector<32x64xf32>
    %42 = vector.broadcast %cst_14 : f32 to vector<32x64xf32>
    %43 = arith.select %40, %41, %42 : vector<32x64xi1>, vector<32x64xf32>
    %44 = arith.truncf %43 : vector<32x64xf32> to vector<32x64xbf16>
    %cst_15 = arith.constant dense<0.000000e+00> : vector<32x192xf32>
    %45 = tpu.matmul %44, %1, %cst_15 {dimension_numbers = #tpu.dot_dimension_numbers<[1], [0], [0], [1], [0, 0, 1, 1], [], []>} : vector<32x64xbf16>, vector<64x192xbf16>, vector<32x192xf32> -> vector<32x192xf32>
    %46 = arith.truncf %45 : vector<32x192xf32> to vector<32x192xbf16>
    %47 = tpu.iota {dimensions = array<i32: 0>} : vector<32x64xi32>
    %48 = tpu.iota {dimensions = array<i32: 1>} : vector<32x64xi32>
    %c2_i32_16 = arith.constant 2 : i32
    %49 = vector.broadcast %c2_i32_16 : i32 to vector<32x64xi32>
    %50 = arith.muli %49, %47 : vector<32x64xi32>
    %c3_i32 = arith.constant 3 : i32
    %51 = vector.broadcast %c3_i32 : i32 to vector<32x64xi32>
    %52 = arith.addi %50, %51 : vector<32x64xi32>
    %c1_i32_17 = arith.constant 1 : i32
    %53 = vector.broadcast %c1_i32_17 : i32 to vector<32x64xi32>
    %54 = arith.subi %52, %53 : vector<32x64xi32>
    %55 = arith.cmpi eq, %48, %54 : vector<32x64xi32>
    %cst_18 = arith.constant 1.000000e+00 : f32
    %cst_19 = arith.constant 0.000000e+00 : f32
    %56 = vector.broadcast %cst_18 : f32 to vector<32x64xf32>
    %57 = vector.broadcast %cst_19 : f32 to vector<32x64xf32>
    %58 = arith.select %55, %56, %57 : vector<32x64xi1>, vector<32x64xf32>
    %59 = arith.truncf %58 : vector<32x64xf32> to vector<32x64xbf16>
    %cst_20 = arith.constant dense<0.000000e+00> : vector<32x192xf32>
    %60 = tpu.matmul %59, %1, %cst_20 {dimension_numbers = #tpu.dot_dimension_numbers<[1], [0], [0], [1], [0, 0, 1, 1], [], []>} : vector<32x64xbf16>, vector<64x192xbf16>, vector<32x192xf32> -> vector<32x192xf32>
    %61 = arith.truncf %60 : vector<32x192xf32> to vector<32x192xbf16>
    %62 = tpu.concatenate %16, %31, %46, %61 in 1 : vector<32x192xbf16>, vector<32x192xbf16>, vector<32x192xbf16>, vector<32x192xbf16> -> vector<32x768xbf16>
    %c0_21 = arith.constant 0 : index
    %c0_22 = arith.constant 0 : index
    %63 = vector.load %arg2[%c0_21, %c0_22] : memref<768x256xbf16, #tpu.memory_space<vmem>>, vector<768x256xbf16>
    %cst_23 = arith.constant dense<0.000000e+00> : vector<32x256xf32>
    %64 = tpu.matmul %62, %63, %cst_23 {dimension_numbers = #tpu.dot_dimension_numbers<[1], [0], [0], [1], [0, 0, 1, 1], [], []>} : vector<32x768xbf16>, vector<768x256xbf16>, vector<32x256xf32> -> vector<32x256xf32>
    %c0_24 = arith.constant 0 : index
    %c0_25 = arith.constant 0 : index
    %65 = vector.load %arg3[%c0_24, %c0_25] : memref<1x256xf32, #tpu.memory_space<vmem>>, vector<1x256xf32>
    %66 = vector.broadcast %65 : vector<1x256xf32> to vector<32x256xf32>
    %67 = arith.addf %64, %66 : vector<32x256xf32>
    %cst_26 = arith.constant 0.000000e+00 : f32
    %68 = vector.broadcast %cst_26 : f32 to vector<32x256xf32>
    %69 = arith.maximumf %67, %68 : vector<32x256xf32>
    %70 = arith.truncf %69 : vector<32x256xf32> to vector<32x256xbf16>
    %71 = tpu.iota {dimensions = array<i32: 0>} : vector<16x32xi32>
    %72 = tpu.iota {dimensions = array<i32: 1>} : vector<16x32xi32>
    %c2_i32_27 = arith.constant 2 : i32
    %73 = vector.broadcast %c2_i32_27 : i32 to vector<16x32xi32>
    %74 = arith.muli %73, %71 : vector<16x32xi32>
    %c0_i32_28 = arith.constant 0 : i32
    %75 = vector.broadcast %c0_i32_28 : i32 to vector<16x32xi32>
    %76 = arith.addi %74, %75 : vector<16x32xi32>
    %c1_i32_29 = arith.constant 1 : i32
    %77 = vector.broadcast %c1_i32_29 : i32 to vector<16x32xi32>
    %78 = arith.subi %76, %77 : vector<16x32xi32>
    %79 = arith.cmpi eq, %72, %78 : vector<16x32xi32>
    %cst_30 = arith.constant 1.000000e+00 : f32
    %cst_31 = arith.constant 0.000000e+00 : f32
    %80 = vector.broadcast %cst_30 : f32 to vector<16x32xf32>
    %81 = vector.broadcast %cst_31 : f32 to vector<16x32xf32>
    %82 = arith.select %79, %80, %81 : vector<16x32xi1>, vector<16x32xf32>
    %83 = arith.truncf %82 : vector<16x32xf32> to vector<16x32xbf16>
    %cst_32 = arith.constant dense<0.000000e+00> : vector<16x256xf32>
    %84 = tpu.matmul %83, %70, %cst_32 {dimension_numbers = #tpu.dot_dimension_numbers<[1], [0], [0], [1], [0, 0, 1, 1], [], []>} : vector<16x32xbf16>, vector<32x256xbf16>, vector<16x256xf32> -> vector<16x256xf32>
    %85 = arith.truncf %84 : vector<16x256xf32> to vector<16x256xbf16>
    %86 = tpu.iota {dimensions = array<i32: 0>} : vector<16x32xi32>
    %87 = tpu.iota {dimensions = array<i32: 1>} : vector<16x32xi32>
    %c2_i32_33 = arith.constant 2 : i32
    %88 = vector.broadcast %c2_i32_33 : i32 to vector<16x32xi32>
    %89 = arith.muli %88, %86 : vector<16x32xi32>
    %c1_i32_34 = arith.constant 1 : i32
    %90 = vector.broadcast %c1_i32_34 : i32 to vector<16x32xi32>
    %91 = arith.addi %89, %90 : vector<16x32xi32>
    %c1_i32_35 = arith.constant 1 : i32
    %92 = vector.broadcast %c1_i32_35 : i32 to vector<16x32xi32>
    %93 = arith.subi %91, %92 : vector<16x32xi32>
    %94 = arith.cmpi eq, %87, %93 : vector<16x32xi32>
    %cst_36 = arith.constant 1.000000e+00 : f32
    %cst_37 = arith.constant 0.000000e+00 : f32
    %95 = vector.broadcast %cst_36 : f32 to vector<16x32xf32>
    %96 = vector.broadcast %cst_37 : f32 to vector<16x32xf32>
    %97 = arith.select %94, %95, %96 : vector<16x32xi1>, vector<16x32xf32>
    %98 = arith.truncf %97 : vector<16x32xf32> to vector<16x32xbf16>
    %cst_38 = arith.constant dense<0.000000e+00> : vector<16x256xf32>
    %99 = tpu.matmul %98, %70, %cst_38 {dimension_numbers = #tpu.dot_dimension_numbers<[1], [0], [0], [1], [0, 0, 1, 1], [], []>} : vector<16x32xbf16>, vector<32x256xbf16>, vector<16x256xf32> -> vector<16x256xf32>
    %100 = arith.truncf %99 : vector<16x256xf32> to vector<16x256xbf16>
    %101 = tpu.iota {dimensions = array<i32: 0>} : vector<16x32xi32>
    %102 = tpu.iota {dimensions = array<i32: 1>} : vector<16x32xi32>
    %c2_i32_39 = arith.constant 2 : i32
    %103 = vector.broadcast %c2_i32_39 : i32 to vector<16x32xi32>
    %104 = arith.muli %103, %101 : vector<16x32xi32>
    %c2_i32_40 = arith.constant 2 : i32
    %105 = vector.broadcast %c2_i32_40 : i32 to vector<16x32xi32>
    %106 = arith.addi %104, %105 : vector<16x32xi32>
    %c1_i32_41 = arith.constant 1 : i32
    %107 = vector.broadcast %c1_i32_41 : i32 to vector<16x32xi32>
    %108 = arith.subi %106, %107 : vector<16x32xi32>
    %109 = arith.cmpi eq, %102, %108 : vector<16x32xi32>
    %cst_42 = arith.constant 1.000000e+00 : f32
    %cst_43 = arith.constant 0.000000e+00 : f32
    %110 = vector.broadcast %cst_42 : f32 to vector<16x32xf32>
    %111 = vector.broadcast %cst_43 : f32 to vector<16x32xf32>
    %112 = arith.select %109, %110, %111 : vector<16x32xi1>, vector<16x32xf32>
    %113 = arith.truncf %112 : vector<16x32xf32> to vector<16x32xbf16>
    %cst_44 = arith.constant dense<0.000000e+00> : vector<16x256xf32>
    %114 = tpu.matmul %113, %70, %cst_44 {dimension_numbers = #tpu.dot_dimension_numbers<[1], [0], [0], [1], [0, 0, 1, 1], [], []>} : vector<16x32xbf16>, vector<32x256xbf16>, vector<16x256xf32> -> vector<16x256xf32>
    %115 = arith.truncf %114 : vector<16x256xf32> to vector<16x256xbf16>
    %116 = tpu.iota {dimensions = array<i32: 0>} : vector<16x32xi32>
    %117 = tpu.iota {dimensions = array<i32: 1>} : vector<16x32xi32>
    %c2_i32_45 = arith.constant 2 : i32
    %118 = vector.broadcast %c2_i32_45 : i32 to vector<16x32xi32>
    %119 = arith.muli %118, %116 : vector<16x32xi32>
    %c3_i32_46 = arith.constant 3 : i32
    %120 = vector.broadcast %c3_i32_46 : i32 to vector<16x32xi32>
    %121 = arith.addi %119, %120 : vector<16x32xi32>
    %c1_i32_47 = arith.constant 1 : i32
    %122 = vector.broadcast %c1_i32_47 : i32 to vector<16x32xi32>
    %123 = arith.subi %121, %122 : vector<16x32xi32>
    %124 = arith.cmpi eq, %117, %123 : vector<16x32xi32>
    %cst_48 = arith.constant 1.000000e+00 : f32
    %cst_49 = arith.constant 0.000000e+00 : f32
    %125 = vector.broadcast %cst_48 : f32 to vector<16x32xf32>
    %126 = vector.broadcast %cst_49 : f32 to vector<16x32xf32>
    %127 = arith.select %124, %125, %126 : vector<16x32xi1>, vector<16x32xf32>
    %128 = arith.truncf %127 : vector<16x32xf32> to vector<16x32xbf16>
    %cst_50 = arith.constant dense<0.000000e+00> : vector<16x256xf32>
    %129 = tpu.matmul %128, %70, %cst_50 {dimension_numbers = #tpu.dot_dimension_numbers<[1], [0], [0], [1], [0, 0, 1, 1], [], []>} : vector<16x32xbf16>, vector<32x256xbf16>, vector<16x256xf32> -> vector<16x256xf32>
    %130 = arith.truncf %129 : vector<16x256xf32> to vector<16x256xbf16>
    %131 = tpu.concatenate %85, %100, %115, %130 in 1 : vector<16x256xbf16>, vector<16x256xbf16>, vector<16x256xbf16>, vector<16x256xbf16> -> vector<16x1024xbf16>
    %c0_51 = arith.constant 0 : index
    %c0_52 = arith.constant 0 : index
    %132 = vector.load %arg4[%c0_51, %c0_52] : memref<1024x256xbf16, #tpu.memory_space<vmem>>, vector<1024x256xbf16>
    %cst_53 = arith.constant dense<0.000000e+00> : vector<16x256xf32>
    %133 = tpu.matmul %131, %132, %cst_53 {dimension_numbers = #tpu.dot_dimension_numbers<[1], [0], [0], [1], [0, 0, 1, 1], [], []>} : vector<16x1024xbf16>, vector<1024x256xbf16>, vector<16x256xf32> -> vector<16x256xf32>
    %c0_54 = arith.constant 0 : index
    %c0_55 = arith.constant 0 : index
    %134 = vector.load %arg5[%c0_54, %c0_55] : memref<1x256xf32, #tpu.memory_space<vmem>>, vector<1x256xf32>
    %135 = vector.broadcast %134 : vector<1x256xf32> to vector<16x256xf32>
    %136 = arith.addf %133, %135 : vector<16x256xf32>
    %cst_56 = arith.constant 0.000000e+00 : f32
    %137 = vector.broadcast %cst_56 : f32 to vector<16x256xf32>
    %138 = arith.maximumf %136, %137 : vector<16x256xf32>
    %139 = arith.truncf %138 : vector<16x256xf32> to vector<16x256xbf16>
    %140 = tpu.iota {dimensions = array<i32: 0>} : vector<8x16xi32>
    %141 = tpu.iota {dimensions = array<i32: 1>} : vector<8x16xi32>
    %c2_i32_57 = arith.constant 2 : i32
    %142 = vector.broadcast %c2_i32_57 : i32 to vector<8x16xi32>
    %143 = arith.muli %142, %140 : vector<8x16xi32>
    %c0_i32_58 = arith.constant 0 : i32
    %144 = vector.broadcast %c0_i32_58 : i32 to vector<8x16xi32>
    %145 = arith.addi %143, %144 : vector<8x16xi32>
    %c1_i32_59 = arith.constant 1 : i32
    %146 = vector.broadcast %c1_i32_59 : i32 to vector<8x16xi32>
    %147 = arith.subi %145, %146 : vector<8x16xi32>
    %148 = arith.cmpi eq, %141, %147 : vector<8x16xi32>
    %cst_60 = arith.constant 1.000000e+00 : f32
    %cst_61 = arith.constant 0.000000e+00 : f32
    %149 = vector.broadcast %cst_60 : f32 to vector<8x16xf32>
    %150 = vector.broadcast %cst_61 : f32 to vector<8x16xf32>
    %151 = arith.select %148, %149, %150 : vector<8x16xi1>, vector<8x16xf32>
    %152 = arith.truncf %151 : vector<8x16xf32> to vector<8x16xbf16>
    %cst_62 = arith.constant dense<0.000000e+00> : vector<8x256xf32>
    %153 = tpu.matmul %152, %139, %cst_62 {dimension_numbers = #tpu.dot_dimension_numbers<[1], [0], [0], [1], [0, 0, 1, 1], [], []>} : vector<8x16xbf16>, vector<16x256xbf16>, vector<8x256xf32> -> vector<8x256xf32>
    %154 = arith.truncf %153 : vector<8x256xf32> to vector<8x256xbf16>
    %155 = tpu.iota {dimensions = array<i32: 0>} : vector<8x16xi32>
    %156 = tpu.iota {dimensions = array<i32: 1>} : vector<8x16xi32>
    %c2_i32_63 = arith.constant 2 : i32
    %157 = vector.broadcast %c2_i32_63 : i32 to vector<8x16xi32>
    %158 = arith.muli %157, %155 : vector<8x16xi32>
    %c1_i32_64 = arith.constant 1 : i32
    %159 = vector.broadcast %c1_i32_64 : i32 to vector<8x16xi32>
    %160 = arith.addi %158, %159 : vector<8x16xi32>
    %c1_i32_65 = arith.constant 1 : i32
    %161 = vector.broadcast %c1_i32_65 : i32 to vector<8x16xi32>
    %162 = arith.subi %160, %161 : vector<8x16xi32>
    %163 = arith.cmpi eq, %156, %162 : vector<8x16xi32>
    %cst_66 = arith.constant 1.000000e+00 : f32
    %cst_67 = arith.constant 0.000000e+00 : f32
    %164 = vector.broadcast %cst_66 : f32 to vector<8x16xf32>
    %165 = vector.broadcast %cst_67 : f32 to vector<8x16xf32>
    %166 = arith.select %163, %164, %165 : vector<8x16xi1>, vector<8x16xf32>
    %167 = arith.truncf %166 : vector<8x16xf32> to vector<8x16xbf16>
    %cst_68 = arith.constant dense<0.000000e+00> : vector<8x256xf32>
    %168 = tpu.matmul %167, %139, %cst_68 {dimension_numbers = #tpu.dot_dimension_numbers<[1], [0], [0], [1], [0, 0, 1, 1], [], []>} : vector<8x16xbf16>, vector<16x256xbf16>, vector<8x256xf32> -> vector<8x256xf32>
    %169 = arith.truncf %168 : vector<8x256xf32> to vector<8x256xbf16>
    %170 = tpu.iota {dimensions = array<i32: 0>} : vector<8x16xi32>
    %171 = tpu.iota {dimensions = array<i32: 1>} : vector<8x16xi32>
    %c2_i32_69 = arith.constant 2 : i32
    %172 = vector.broadcast %c2_i32_69 : i32 to vector<8x16xi32>
    %173 = arith.muli %172, %170 : vector<8x16xi32>
    %c2_i32_70 = arith.constant 2 : i32
    %174 = vector.broadcast %c2_i32_70 : i32 to vector<8x16xi32>
    %175 = arith.addi %173, %174 : vector<8x16xi32>
    %c1_i32_71 = arith.constant 1 : i32
    %176 = vector.broadcast %c1_i32_71 : i32 to vector<8x16xi32>
    %177 = arith.subi %175, %176 : vector<8x16xi32>
    %178 = arith.cmpi eq, %171, %177 : vector<8x16xi32>
    %cst_72 = arith.constant 1.000000e+00 : f32
    %cst_73 = arith.constant 0.000000e+00 : f32
    %179 = vector.broadcast %cst_72 : f32 to vector<8x16xf32>
    %180 = vector.broadcast %cst_73 : f32 to vector<8x16xf32>
    %181 = arith.select %178, %179, %180 : vector<8x16xi1>, vector<8x16xf32>
    %182 = arith.truncf %181 : vector<8x16xf32> to vector<8x16xbf16>
    %cst_74 = arith.constant dense<0.000000e+00> : vector<8x256xf32>
    %183 = tpu.matmul %182, %139, %cst_74 {dimension_numbers = #tpu.dot_dimension_numbers<[1], [0], [0], [1], [0, 0, 1, 1], [], []>} : vector<8x16xbf16>, vector<16x256xbf16>, vector<8x256xf32> -> vector<8x256xf32>
    %184 = arith.truncf %183 : vector<8x256xf32> to vector<8x256xbf16>
    %185 = tpu.iota {dimensions = array<i32: 0>} : vector<8x16xi32>
    %186 = tpu.iota {dimensions = array<i32: 1>} : vector<8x16xi32>
    %c2_i32_75 = arith.constant 2 : i32
    %187 = vector.broadcast %c2_i32_75 : i32 to vector<8x16xi32>
    %188 = arith.muli %187, %185 : vector<8x16xi32>
    %c3_i32_76 = arith.constant 3 : i32
    %189 = vector.broadcast %c3_i32_76 : i32 to vector<8x16xi32>
    %190 = arith.addi %188, %189 : vector<8x16xi32>
    %c1_i32_77 = arith.constant 1 : i32
    %191 = vector.broadcast %c1_i32_77 : i32 to vector<8x16xi32>
    %192 = arith.subi %190, %191 : vector<8x16xi32>
    %193 = arith.cmpi eq, %186, %192 : vector<8x16xi32>
    %cst_78 = arith.constant 1.000000e+00 : f32
    %cst_79 = arith.constant 0.000000e+00 : f32
    %194 = vector.broadcast %cst_78 : f32 to vector<8x16xf32>
    %195 = vector.broadcast %cst_79 : f32 to vector<8x16xf32>
    %196 = arith.select %193, %194, %195 : vector<8x16xi1>, vector<8x16xf32>
    %197 = arith.truncf %196 : vector<8x16xf32> to vector<8x16xbf16>
    %cst_80 = arith.constant dense<0.000000e+00> : vector<8x256xf32>
    %198 = tpu.matmul %197, %139, %cst_80 {dimension_numbers = #tpu.dot_dimension_numbers<[1], [0], [0], [1], [0, 0, 1, 1], [], []>} : vector<8x16xbf16>, vector<16x256xbf16>, vector<8x256xf32> -> vector<8x256xf32>
    %199 = arith.truncf %198 : vector<8x256xf32> to vector<8x256xbf16>
    %200 = tpu.concatenate %154, %169, %184, %199 in 1 : vector<8x256xbf16>, vector<8x256xbf16>, vector<8x256xbf16>, vector<8x256xbf16> -> vector<8x1024xbf16>
    %c0_81 = arith.constant 0 : index
    %c0_82 = arith.constant 0 : index
    %201 = vector.load %arg6[%c0_81, %c0_82] : memref<1024x256xbf16, #tpu.memory_space<vmem>>, vector<1024x256xbf16>
    %cst_83 = arith.constant dense<0.000000e+00> : vector<8x256xf32>
    %202 = tpu.matmul %200, %201, %cst_83 {dimension_numbers = #tpu.dot_dimension_numbers<[1], [0], [0], [1], [0, 0, 1, 1], [], []>} : vector<8x1024xbf16>, vector<1024x256xbf16>, vector<8x256xf32> -> vector<8x256xf32>
    %c0_84 = arith.constant 0 : index
    %c0_85 = arith.constant 0 : index
    %203 = vector.load %arg7[%c0_84, %c0_85] : memref<1x256xf32, #tpu.memory_space<vmem>>, vector<1x256xf32>
    %204 = vector.broadcast %203 : vector<1x256xf32> to vector<8x256xf32>
    %205 = arith.addf %202, %204 : vector<8x256xf32>
    %cst_86 = arith.constant 0.000000e+00 : f32
    %206 = vector.broadcast %cst_86 : f32 to vector<8x256xf32>
    %207 = arith.maximumf %205, %206 : vector<8x256xf32>
    %208 = arith.truncf %207 : vector<8x256xf32> to vector<8x256xbf16>
    %cst_87 = arith.constant 0.000000e+00 : bf16
    %209 = vector.broadcast %cst_87 : bf16 to vector<1x256xbf16>
    %210 = vector.extract_strided_slice %208 {offsets = [1, 0], sizes = [1, 256], strides = [1, 1]} : vector<8x256xbf16> to vector<1x256xbf16>
    %211 = vector.extract_strided_slice %208 {offsets = [3, 0], sizes = [1, 256], strides = [1, 1]} : vector<8x256xbf16> to vector<1x256xbf16>
    %212 = vector.extract_strided_slice %208 {offsets = [5, 0], sizes = [1, 256], strides = [1, 1]} : vector<8x256xbf16> to vector<1x256xbf16>
    %213 = tpu.concatenate %209, %210, %211, %212 in 0 : vector<1x256xbf16>, vector<1x256xbf16>, vector<1x256xbf16>, vector<1x256xbf16> -> vector<4x256xbf16>
    %214 = vector.extract_strided_slice %208 {offsets = [0, 0], sizes = [1, 256], strides = [1, 1]} : vector<8x256xbf16> to vector<1x256xbf16>
    %215 = vector.extract_strided_slice %208 {offsets = [2, 0], sizes = [1, 256], strides = [1, 1]} : vector<8x256xbf16> to vector<1x256xbf16>
    %216 = vector.extract_strided_slice %208 {offsets = [4, 0], sizes = [1, 256], strides = [1, 1]} : vector<8x256xbf16> to vector<1x256xbf16>
    %217 = vector.extract_strided_slice %208 {offsets = [6, 0], sizes = [1, 256], strides = [1, 1]} : vector<8x256xbf16> to vector<1x256xbf16>
    %218 = tpu.concatenate %214, %215, %216, %217 in 0 : vector<1x256xbf16>, vector<1x256xbf16>, vector<1x256xbf16>, vector<1x256xbf16> -> vector<4x256xbf16>
    %219 = vector.extract_strided_slice %208 {offsets = [1, 0], sizes = [1, 256], strides = [1, 1]} : vector<8x256xbf16> to vector<1x256xbf16>
    %220 = vector.extract_strided_slice %208 {offsets = [3, 0], sizes = [1, 256], strides = [1, 1]} : vector<8x256xbf16> to vector<1x256xbf16>
    %221 = vector.extract_strided_slice %208 {offsets = [5, 0], sizes = [1, 256], strides = [1, 1]} : vector<8x256xbf16> to vector<1x256xbf16>
    %222 = vector.extract_strided_slice %208 {offsets = [7, 0], sizes = [1, 256], strides = [1, 1]} : vector<8x256xbf16> to vector<1x256xbf16>
    %223 = tpu.concatenate %219, %220, %221, %222 in 0 : vector<1x256xbf16>, vector<1x256xbf16>, vector<1x256xbf16>, vector<1x256xbf16> -> vector<4x256xbf16>
    %224 = vector.extract_strided_slice %208 {offsets = [2, 0], sizes = [1, 256], strides = [1, 1]} : vector<8x256xbf16> to vector<1x256xbf16>
    %225 = vector.extract_strided_slice %208 {offsets = [4, 0], sizes = [1, 256], strides = [1, 1]} : vector<8x256xbf16> to vector<1x256xbf16>
    %226 = vector.extract_strided_slice %208 {offsets = [6, 0], sizes = [1, 256], strides = [1, 1]} : vector<8x256xbf16> to vector<1x256xbf16>
    %cst_88 = arith.constant 0.000000e+00 : bf16
    %227 = vector.broadcast %cst_88 : bf16 to vector<1x256xbf16>
    %228 = tpu.concatenate %224, %225, %226, %227 in 0 : vector<1x256xbf16>, vector<1x256xbf16>, vector<1x256xbf16>, vector<1x256xbf16> -> vector<4x256xbf16>
    %229 = tpu.concatenate %213, %218, %223, %228 in 1 : vector<4x256xbf16>, vector<4x256xbf16>, vector<4x256xbf16>, vector<4x256xbf16> -> vector<4x1024xbf16>
    %c0_89 = arith.constant 0 : index
    %c0_90 = arith.constant 0 : index
    %230 = vector.load %arg8[%c0_89, %c0_90] : memref<1024x256xbf16, #tpu.memory_space<vmem>>, vector<1024x256xbf16>
    %cst_91 = arith.constant dense<0.000000e+00> : vector<4x256xf32>
    %231 = tpu.matmul %229, %230, %cst_91 {dimension_numbers = #tpu.dot_dimension_numbers<[1], [0], [0], [1], [0, 0, 1, 1], [], []>} : vector<4x1024xbf16>, vector<1024x256xbf16>, vector<4x256xf32> -> vector<4x256xf32>
    %c0_92 = arith.constant 0 : index
    %c0_93 = arith.constant 0 : index
    %232 = vector.load %arg9[%c0_92, %c0_93] : memref<1x256xf32, #tpu.memory_space<vmem>>, vector<1x256xf32>
    %233 = vector.broadcast %232 : vector<1x256xf32> to vector<4x256xf32>
    %234 = arith.addf %231, %233 : vector<4x256xf32>
    %cst_94 = arith.constant 0.000000e+00 : f32
    %235 = vector.broadcast %cst_94 : f32 to vector<4x256xf32>
    %236 = arith.maximumf %234, %235 : vector<4x256xf32>
    %237 = arith.truncf %236 : vector<4x256xf32> to vector<4x256xbf16>
    %cst_95 = arith.constant 0.000000e+00 : bf16
    %238 = vector.broadcast %cst_95 : bf16 to vector<1x256xbf16>
    %239 = vector.extract_strided_slice %237 {offsets = [1, 0], sizes = [1, 256], strides = [1, 1]} : vector<4x256xbf16> to vector<1x256xbf16>
    %240 = tpu.concatenate %238, %239 in 0 : vector<1x256xbf16>, vector<1x256xbf16> -> vector<2x256xbf16>
    %241 = vector.extract_strided_slice %237 {offsets = [0, 0], sizes = [1, 256], strides = [1, 1]} : vector<4x256xbf16> to vector<1x256xbf16>
    %242 = vector.extract_strided_slice %237 {offsets = [2, 0], sizes = [1, 256], strides = [1, 1]} : vector<4x256xbf16> to vector<1x256xbf16>
    %243 = tpu.concatenate %241, %242 in 0 : vector<1x256xbf16>, vector<1x256xbf16> -> vector<2x256xbf16>
    %244 = vector.extract_strided_slice %237 {offsets = [1, 0], sizes = [1, 256], strides = [1, 1]} : vector<4x256xbf16> to vector<1x256xbf16>
    %245 = vector.extract_strided_slice %237 {offsets = [3, 0], sizes = [1, 256], strides = [1, 1]} : vector<4x256xbf16> to vector<1x256xbf16>
    %246 = tpu.concatenate %244, %245 in 0 : vector<1x256xbf16>, vector<1x256xbf16> -> vector<2x256xbf16>
    %247 = vector.extract_strided_slice %237 {offsets = [2, 0], sizes = [1, 256], strides = [1, 1]} : vector<4x256xbf16> to vector<1x256xbf16>
    %cst_96 = arith.constant 0.000000e+00 : bf16
    %248 = vector.broadcast %cst_96 : bf16 to vector<1x256xbf16>
    %249 = tpu.concatenate %247, %248 in 0 : vector<1x256xbf16>, vector<1x256xbf16> -> vector<2x256xbf16>
    %250 = tpu.concatenate %240, %243, %246, %249 in 1 : vector<2x256xbf16>, vector<2x256xbf16>, vector<2x256xbf16>, vector<2x256xbf16> -> vector<2x1024xbf16>
    %c0_97 = arith.constant 0 : index
    %c0_98 = arith.constant 0 : index
    %251 = vector.load %arg10[%c0_97, %c0_98] : memref<1024x128xbf16, #tpu.memory_space<vmem>>, vector<1024x128xbf16>
    %cst_99 = arith.constant dense<0.000000e+00> : vector<2x128xf32>
    %252 = tpu.matmul %250, %251, %cst_99 {dimension_numbers = #tpu.dot_dimension_numbers<[1], [0], [0], [1], [0, 0, 1, 1], [], []>} : vector<2x1024xbf16>, vector<1024x128xbf16>, vector<2x128xf32> -> vector<2x128xf32>
    %c0_100 = arith.constant 0 : index
    %c0_101 = arith.constant 0 : index
    %253 = vector.load %arg11[%c0_100, %c0_101] : memref<1x128xf32, #tpu.memory_space<vmem>>, vector<1x128xf32>
    %254 = vector.broadcast %253 : vector<1x128xf32> to vector<2x128xf32>
    %255 = arith.addf %252, %254 : vector<2x128xf32>
    %cst_102 = arith.constant 0.000000e+00 : f32
    %256 = vector.broadcast %cst_102 : f32 to vector<2x128xf32>
    %257 = arith.maximumf %255, %256 : vector<2x128xf32>
    %258 = arith.truncf %257 : vector<2x128xf32> to vector<2x128xbf16>
    %cst_103 = arith.constant 0.000000e+00 : bf16
    %259 = vector.broadcast %cst_103 : bf16 to vector<1x128xbf16>
    %260 = vector.extract_strided_slice %258 {offsets = [0, 0], sizes = [1, 128], strides = [1, 1]} : vector<2x128xbf16> to vector<1x128xbf16>
    %261 = vector.extract_strided_slice %258 {offsets = [1, 0], sizes = [1, 128], strides = [1, 1]} : vector<2x128xbf16> to vector<1x128xbf16>
    %cst_104 = arith.constant 0.000000e+00 : bf16
    %262 = vector.broadcast %cst_104 : bf16 to vector<1x128xbf16>
    %263 = tpu.concatenate %259, %260, %261, %262 in 1 : vector<1x128xbf16>, vector<1x128xbf16>, vector<1x128xbf16>, vector<1x128xbf16> -> vector<1x512xbf16>
    %c0_105 = arith.constant 0 : index
    %c0_106 = arith.constant 0 : index
    %264 = vector.load %arg12[%c0_105, %c0_106] : memref<512x64xbf16, #tpu.memory_space<vmem>>, vector<512x64xbf16>
    %cst_107 = arith.constant dense<0.000000e+00> : vector<1x64xf32>
    %265 = tpu.matmul %263, %264, %cst_107 {dimension_numbers = #tpu.dot_dimension_numbers<[1], [0], [0], [1], [0, 0, 1, 1], [], []>} : vector<1x512xbf16>, vector<512x64xbf16>, vector<1x64xf32> -> vector<1x64xf32>
    %c0_108 = arith.constant 0 : index
    %c0_109 = arith.constant 0 : index
    %266 = vector.load %arg13[%c0_108, %c0_109] : memref<1x64xf32, #tpu.memory_space<vmem>>, vector<1x64xf32>
    %267 = arith.addf %265, %266 : vector<1x64xf32>
    %cst_110 = arith.constant 0.000000e+00 : f32
    %268 = vector.broadcast %cst_110 : f32 to vector<1x64xf32>
    %269 = arith.maximumf %267, %268 : vector<1x64xf32>
    %270 = arith.truncf %269 : vector<1x64xf32> to vector<1x64xbf16>
    %cst_111 = arith.constant 0.000000e+00 : bf16
    %271 = vector.broadcast %cst_111 : bf16 to vector<1x64xbf16>
    %cst_112 = arith.constant 0.000000e+00 : bf16
    %272 = vector.broadcast %cst_112 : bf16 to vector<1x64xbf16>
    %273 = tpu.concatenate %271, %272 in 0 : vector<1x64xbf16>, vector<1x64xbf16> -> vector<2x64xbf16>
    %cst_113 = arith.constant 0.000000e+00 : bf16
    %274 = vector.broadcast %cst_113 : bf16 to vector<1x64xbf16>
    %275 = tpu.concatenate %270, %274 in 0 : vector<1x64xbf16>, vector<1x64xbf16> -> vector<2x64xbf16>
    %cst_114 = arith.constant 0.000000e+00 : bf16
    %276 = vector.broadcast %cst_114 : bf16 to vector<1x64xbf16>
    %277 = tpu.concatenate %276, %270 in 0 : vector<1x64xbf16>, vector<1x64xbf16> -> vector<2x64xbf16>
    %cst_115 = arith.constant 0.000000e+00 : bf16
    %278 = vector.broadcast %cst_115 : bf16 to vector<1x64xbf16>
    %cst_116 = arith.constant 0.000000e+00 : bf16
    %279 = vector.broadcast %cst_116 : bf16 to vector<1x64xbf16>
    %280 = tpu.concatenate %278, %279 in 0 : vector<1x64xbf16>, vector<1x64xbf16> -> vector<2x64xbf16>
    %281 = tpu.concatenate %273, %275, %277, %280 in 1 : vector<2x64xbf16>, vector<2x64xbf16>, vector<2x64xbf16>, vector<2x64xbf16> -> vector<2x256xbf16>
    %c0_117 = arith.constant 0 : index
    %c0_118 = arith.constant 0 : index
    %282 = vector.load %arg14[%c0_117, %c0_118] : memref<256x128xbf16, #tpu.memory_space<vmem>>, vector<256x128xbf16>
    %cst_119 = arith.constant dense<0.000000e+00> : vector<2x128xf32>
    %283 = tpu.matmul %281, %282, %cst_119 {dimension_numbers = #tpu.dot_dimension_numbers<[1], [0], [0], [1], [0, 0, 1, 1], [], []>} : vector<2x256xbf16>, vector<256x128xbf16>, vector<2x128xf32> -> vector<2x128xf32>
    %c0_120 = arith.constant 0 : index
    %c0_121 = arith.constant 0 : index
    %284 = vector.load %arg15[%c0_120, %c0_121] : memref<1x128xf32, #tpu.memory_space<vmem>>, vector<1x128xf32>
    %285 = vector.broadcast %284 : vector<1x128xf32> to vector<2x128xf32>
    %286 = arith.addf %283, %285 : vector<2x128xf32>
    %cst_122 = arith.constant 0.000000e+00 : f32
    %287 = vector.broadcast %cst_122 : f32 to vector<2x128xf32>
    %288 = arith.maximumf %286, %287 : vector<2x128xf32>
    %cst_123 = arith.constant 0.000000e+00 : bf16
    %289 = vector.broadcast %cst_123 : bf16 to vector<1x128xbf16>
    %290 = vector.extract_strided_slice %258 {offsets = [0, 0], sizes = [1, 128], strides = [1, 1]} : vector<2x128xbf16> to vector<1x128xbf16>
    %291 = tpu.concatenate %289, %290 in 0 : vector<1x128xbf16>, vector<1x128xbf16> -> vector<2x128xbf16>
    %292 = vector.extract_strided_slice %258 {offsets = [0, 0], sizes = [1, 128], strides = [1, 1]} : vector<2x128xbf16> to vector<1x128xbf16>
    %293 = vector.extract_strided_slice %258 {offsets = [1, 0], sizes = [1, 128], strides = [1, 1]} : vector<2x128xbf16> to vector<1x128xbf16>
    %294 = tpu.concatenate %292, %293 in 0 : vector<1x128xbf16>, vector<1x128xbf16> -> vector<2x128xbf16>
    %295 = vector.extract_strided_slice %258 {offsets = [1, 0], sizes = [1, 128], strides = [1, 1]} : vector<2x128xbf16> to vector<1x128xbf16>
    %cst_124 = arith.constant 0.000000e+00 : bf16
    %296 = vector.broadcast %cst_124 : bf16 to vector<1x128xbf16>
    %297 = tpu.concatenate %295, %296 in 0 : vector<1x128xbf16>, vector<1x128xbf16> -> vector<2x128xbf16>
    %298 = tpu.concatenate %291, %294, %297 in 1 : vector<2x128xbf16>, vector<2x128xbf16>, vector<2x128xbf16> -> vector<2x384xbf16>
    %c0_125 = arith.constant 0 : index
    %c0_126 = arith.constant 0 : index
    %299 = vector.load %arg34[%c0_125, %c0_126] : memref<384x128xbf16, #tpu.memory_space<vmem>>, vector<384x128xbf16>
    %cst_127 = arith.constant dense<0.000000e+00> : vector<2x128xf32>
    %300 = tpu.matmul %298, %299, %cst_127 {dimension_numbers = #tpu.dot_dimension_numbers<[1], [0], [0], [1], [0, 0, 1, 1], [], []>} : vector<2x384xbf16>, vector<384x128xbf16>, vector<2x128xf32> -> vector<2x128xf32>
    %c0_128 = arith.constant 0 : index
    %c0_129 = arith.constant 0 : index
    %301 = vector.load %arg35[%c0_128, %c0_129] : memref<1x128xf32, #tpu.memory_space<vmem>>, vector<1x128xf32>
    %302 = vector.broadcast %301 : vector<1x128xf32> to vector<2x128xf32>
    %303 = arith.addf %300, %302 : vector<2x128xf32>
    %304 = arith.addf %303, %288 : vector<2x128xf32>
    %305 = arith.truncf %304 : vector<2x128xf32> to vector<2x128xbf16>
    %cst_130 = arith.constant 0.000000e+00 : bf16
    %306 = vector.broadcast %cst_130 : bf16 to vector<1x128xbf16>
    %307 = vector.extract_strided_slice %305 {offsets = [1, 0], sizes = [1, 128], strides = [1, 1]} : vector<2x128xbf16> to vector<1x128xbf16>
    %cst_131 = arith.constant 0.000000e+00 : bf16
    %308 = vector.broadcast %cst_131 : bf16 to vector<1x128xbf16>
    %cst_132 = arith.constant 0.000000e+00 : bf16
    %309 = vector.broadcast %cst_132 : bf16 to vector<1x128xbf16>
    %310 = tpu.concatenate %306, %307, %308, %309 in 0 : vector<1x128xbf16>, vector<1x128xbf16>, vector<1x128xbf16>, vector<1x128xbf16> -> vector<4x128xbf16>
    %311 = vector.extract_strided_slice %305 {offsets = [0, 0], sizes = [1, 128], strides = [1, 1]} : vector<2x128xbf16> to vector<1x128xbf16>
    %cst_133 = arith.constant 0.000000e+00 : bf16
    %312 = vector.broadcast %cst_133 : bf16 to vector<1x128xbf16>
    %313 = vector.extract_strided_slice %305 {offsets = [1, 0], sizes = [1, 128], strides = [1, 1]} : vector<2x128xbf16> to vector<1x128xbf16>
    %cst_134 = arith.constant 0.000000e+00 : bf16
    %314 = vector.broadcast %cst_134 : bf16 to vector<1x128xbf16>
    %315 = tpu.concatenate %311, %312, %313, %314 in 0 : vector<1x128xbf16>, vector<1x128xbf16>, vector<1x128xbf16>, vector<1x128xbf16> -> vector<4x128xbf16>
    %cst_135 = arith.constant 0.000000e+00 : bf16
    %316 = vector.broadcast %cst_135 : bf16 to vector<1x128xbf16>
    %317 = vector.extract_strided_slice %305 {offsets = [0, 0], sizes = [1, 128], strides = [1, 1]} : vector<2x128xbf16> to vector<1x128xbf16>
    %cst_136 = arith.constant 0.000000e+00 : bf16
    %318 = vector.broadcast %cst_136 : bf16 to vector<1x128xbf16>
    %319 = vector.extract_strided_slice %305 {offsets = [1, 0], sizes = [1, 128], strides = [1, 1]} : vector<2x128xbf16> to vector<1x128xbf16>
    %320 = tpu.concatenate %316, %317, %318, %319 in 0 : vector<1x128xbf16>, vector<1x128xbf16>, vector<1x128xbf16>, vector<1x128xbf16> -> vector<4x128xbf16>
    %cst_137 = arith.constant 0.000000e+00 : bf16
    %321 = vector.broadcast %cst_137 : bf16 to vector<1x128xbf16>
    %cst_138 = arith.constant 0.000000e+00 : bf16
    %322 = vector.broadcast %cst_138 : bf16 to vector<1x128xbf16>
    %323 = vector.extract_strided_slice %305 {offsets = [0, 0], sizes = [1, 128], strides = [1, 1]} : vector<2x128xbf16> to vector<1x128xbf16>
    %cst_139 = arith.constant 0.000000e+00 : bf16
    %324 = vector.broadcast %cst_139 : bf16 to vector<1x128xbf16>
    %325 = tpu.concatenate %321, %322, %323, %324 in 0 : vector<1x128xbf16>, vector<1x128xbf16>, vector<1x128xbf16>, vector<1x128xbf16> -> vector<4x128xbf16>
    %326 = tpu.concatenate %310, %315, %320, %325 in 1 : vector<4x128xbf16>, vector<4x128xbf16>, vector<4x128xbf16>, vector<4x128xbf16> -> vector<4x512xbf16>
    %c0_140 = arith.constant 0 : index
    %c0_141 = arith.constant 0 : index
    %327 = vector.load %arg16[%c0_140, %c0_141] : memref<512x256xbf16, #tpu.memory_space<vmem>>, vector<512x256xbf16>
    %cst_142 = arith.constant dense<0.000000e+00> : vector<4x256xf32>
    %328 = tpu.matmul %326, %327, %cst_142 {dimension_numbers = #tpu.dot_dimension_numbers<[1], [0], [0], [1], [0, 0, 1, 1], [], []>} : vector<4x512xbf16>, vector<512x256xbf16>, vector<4x256xf32> -> vector<4x256xf32>
    %c0_143 = arith.constant 0 : index
    %c0_144 = arith.constant 0 : index
    %329 = vector.load %arg17[%c0_143, %c0_144] : memref<1x256xf32, #tpu.memory_space<vmem>>, vector<1x256xf32>
    %330 = vector.broadcast %329 : vector<1x256xf32> to vector<4x256xf32>
    %331 = arith.addf %328, %330 : vector<4x256xf32>
    %cst_145 = arith.constant 0.000000e+00 : f32
    %332 = vector.broadcast %cst_145 : f32 to vector<4x256xf32>
    %333 = arith.maximumf %331, %332 : vector<4x256xf32>
    %cst_146 = arith.constant 0.000000e+00 : bf16
    %334 = vector.broadcast %cst_146 : bf16 to vector<1x256xbf16>
    %335 = vector.extract_strided_slice %237 {offsets = [0, 0], sizes = [1, 256], strides = [1, 1]} : vector<4x256xbf16> to vector<1x256xbf16>
    %336 = vector.extract_strided_slice %237 {offsets = [1, 0], sizes = [1, 256], strides = [1, 1]} : vector<4x256xbf16> to vector<1x256xbf16>
    %337 = vector.extract_strided_slice %237 {offsets = [2, 0], sizes = [1, 256], strides = [1, 1]} : vector<4x256xbf16> to vector<1x256xbf16>
    %338 = tpu.concatenate %334, %335, %336, %337 in 0 : vector<1x256xbf16>, vector<1x256xbf16>, vector<1x256xbf16>, vector<1x256xbf16> -> vector<4x256xbf16>
    %339 = vector.extract_strided_slice %237 {offsets = [0, 0], sizes = [1, 256], strides = [1, 1]} : vector<4x256xbf16> to vector<1x256xbf16>
    %340 = vector.extract_strided_slice %237 {offsets = [1, 0], sizes = [1, 256], strides = [1, 1]} : vector<4x256xbf16> to vector<1x256xbf16>
    %341 = vector.extract_strided_slice %237 {offsets = [2, 0], sizes = [1, 256], strides = [1, 1]} : vector<4x256xbf16> to vector<1x256xbf16>
    %342 = vector.extract_strided_slice %237 {offsets = [3, 0], sizes = [1, 256], strides = [1, 1]} : vector<4x256xbf16> to vector<1x256xbf16>
    %343 = tpu.concatenate %339, %340, %341, %342 in 0 : vector<1x256xbf16>, vector<1x256xbf16>, vector<1x256xbf16>, vector<1x256xbf16> -> vector<4x256xbf16>
    %344 = vector.extract_strided_slice %237 {offsets = [1, 0], sizes = [1, 256], strides = [1, 1]} : vector<4x256xbf16> to vector<1x256xbf16>
    %345 = vector.extract_strided_slice %237 {offsets = [2, 0], sizes = [1, 256], strides = [1, 1]} : vector<4x256xbf16> to vector<1x256xbf16>
    %346 = vector.extract_strided_slice %237 {offsets = [3, 0], sizes = [1, 256], strides = [1, 1]} : vector<4x256xbf16> to vector<1x256xbf16>
    %cst_147 = arith.constant 0.000000e+00 : bf16
    %347 = vector.broadcast %cst_147 : bf16 to vector<1x256xbf16>
    %348 = tpu.concatenate %344, %345, %346, %347 in 0 : vector<1x256xbf16>, vector<1x256xbf16>, vector<1x256xbf16>, vector<1x256xbf16> -> vector<4x256xbf16>
    %349 = tpu.concatenate %338, %343, %348 in 1 : vector<4x256xbf16>, vector<4x256xbf16>, vector<4x256xbf16> -> vector<4x768xbf16>
    %c0_148 = arith.constant 0 : index
    %c0_149 = arith.constant 0 : index
    %350 = vector.load %arg32[%c0_148, %c0_149] : memref<768x256xbf16, #tpu.memory_space<vmem>>, vector<768x256xbf16>
    %cst_150 = arith.constant dense<0.000000e+00> : vector<4x256xf32>
    %351 = tpu.matmul %349, %350, %cst_150 {dimension_numbers = #tpu.dot_dimension_numbers<[1], [0], [0], [1], [0, 0, 1, 1], [], []>} : vector<4x768xbf16>, vector<768x256xbf16>, vector<4x256xf32> -> vector<4x256xf32>
    %c0_151 = arith.constant 0 : index
    %c0_152 = arith.constant 0 : index
    %352 = vector.load %arg33[%c0_151, %c0_152] : memref<1x256xf32, #tpu.memory_space<vmem>>, vector<1x256xf32>
    %353 = vector.broadcast %352 : vector<1x256xf32> to vector<4x256xf32>
    %354 = arith.addf %351, %353 : vector<4x256xf32>
    %355 = arith.addf %354, %333 : vector<4x256xf32>
    %356 = arith.truncf %355 : vector<4x256xf32> to vector<4x256xbf16>
    %cst_153 = arith.constant 0.000000e+00 : bf16
    %357 = vector.broadcast %cst_153 : bf16 to vector<1x256xbf16>
    %358 = vector.extract_strided_slice %356 {offsets = [1, 0], sizes = [1, 256], strides = [1, 1]} : vector<4x256xbf16> to vector<1x256xbf16>
    %cst_154 = arith.constant 0.000000e+00 : bf16
    %359 = vector.broadcast %cst_154 : bf16 to vector<1x256xbf16>
    %360 = vector.extract_strided_slice %356 {offsets = [2, 0], sizes = [1, 256], strides = [1, 1]} : vector<4x256xbf16> to vector<1x256xbf16>
    %cst_155 = arith.constant 0.000000e+00 : bf16
    %361 = vector.broadcast %cst_155 : bf16 to vector<1x256xbf16>
    %362 = vector.extract_strided_slice %356 {offsets = [3, 0], sizes = [1, 256], strides = [1, 1]} : vector<4x256xbf16> to vector<1x256xbf16>
    %cst_156 = arith.constant 0.000000e+00 : bf16
    %363 = vector.broadcast %cst_156 : bf16 to vector<1x256xbf16>
    %cst_157 = arith.constant 0.000000e+00 : bf16
    %364 = vector.broadcast %cst_157 : bf16 to vector<1x256xbf16>
    %365 = tpu.concatenate %357, %358, %359, %360, %361, %362, %363, %364 in 0 : vector<1x256xbf16>, vector<1x256xbf16>, vector<1x256xbf16>, vector<1x256xbf16>, vector<1x256xbf16>, vector<1x256xbf16>, vector<1x256xbf16>, vector<1x256xbf16> -> vector<8x256xbf16>
    %366 = vector.extract_strided_slice %356 {offsets = [0, 0], sizes = [1, 256], strides = [1, 1]} : vector<4x256xbf16> to vector<1x256xbf16>
    %cst_158 = arith.constant 0.000000e+00 : bf16
    %367 = vector.broadcast %cst_158 : bf16 to vector<1x256xbf16>
    %368 = vector.extract_strided_slice %356 {offsets = [1, 0], sizes = [1, 256], strides = [1, 1]} : vector<4x256xbf16> to vector<1x256xbf16>
    %cst_159 = arith.constant 0.000000e+00 : bf16
    %369 = vector.broadcast %cst_159 : bf16 to vector<1x256xbf16>
    %370 = vector.extract_strided_slice %356 {offsets = [2, 0], sizes = [1, 256], strides = [1, 1]} : vector<4x256xbf16> to vector<1x256xbf16>
    %cst_160 = arith.constant 0.000000e+00 : bf16
    %371 = vector.broadcast %cst_160 : bf16 to vector<1x256xbf16>
    %372 = vector.extract_strided_slice %356 {offsets = [3, 0], sizes = [1, 256], strides = [1, 1]} : vector<4x256xbf16> to vector<1x256xbf16>
    %cst_161 = arith.constant 0.000000e+00 : bf16
    %373 = vector.broadcast %cst_161 : bf16 to vector<1x256xbf16>
    %374 = tpu.concatenate %366, %367, %368, %369, %370, %371, %372, %373 in 0 : vector<1x256xbf16>, vector<1x256xbf16>, vector<1x256xbf16>, vector<1x256xbf16>, vector<1x256xbf16>, vector<1x256xbf16>, vector<1x256xbf16>, vector<1x256xbf16> -> vector<8x256xbf16>
    %cst_162 = arith.constant 0.000000e+00 : bf16
    %375 = vector.broadcast %cst_162 : bf16 to vector<1x256xbf16>
    %376 = vector.extract_strided_slice %356 {offsets = [0, 0], sizes = [1, 256], strides = [1, 1]} : vector<4x256xbf16> to vector<1x256xbf16>
    %cst_163 = arith.constant 0.000000e+00 : bf16
    %377 = vector.broadcast %cst_163 : bf16 to vector<1x256xbf16>
    %378 = vector.extract_strided_slice %356 {offsets = [1, 0], sizes = [1, 256], strides = [1, 1]} : vector<4x256xbf16> to vector<1x256xbf16>
    %cst_164 = arith.constant 0.000000e+00 : bf16
    %379 = vector.broadcast %cst_164 : bf16 to vector<1x256xbf16>
    %380 = vector.extract_strided_slice %356 {offsets = [2, 0], sizes = [1, 256], strides = [1, 1]} : vector<4x256xbf16> to vector<1x256xbf16>
    %cst_165 = arith.constant 0.000000e+00 : bf16
    %381 = vector.broadcast %cst_165 : bf16 to vector<1x256xbf16>
    %382 = vector.extract_strided_slice %356 {offsets = [3, 0], sizes = [1, 256], strides = [1, 1]} : vector<4x256xbf16> to vector<1x256xbf16>
    %383 = tpu.concatenate %375, %376, %377, %378, %379, %380, %381, %382 in 0 : vector<1x256xbf16>, vector<1x256xbf16>, vector<1x256xbf16>, vector<1x256xbf16>, vector<1x256xbf16>, vector<1x256xbf16>, vector<1x256xbf16>, vector<1x256xbf16> -> vector<8x256xbf16>
    %cst_166 = arith.constant 0.000000e+00 : bf16
    %384 = vector.broadcast %cst_166 : bf16 to vector<1x256xbf16>
    %cst_167 = arith.constant 0.000000e+00 : bf16
    %385 = vector.broadcast %cst_167 : bf16 to vector<1x256xbf16>
    %386 = vector.extract_strided_slice %356 {offsets = [0, 0], sizes = [1, 256], strides = [1, 1]} : vector<4x256xbf16> to vector<1x256xbf16>
    %cst_168 = arith.constant 0.000000e+00 : bf16
    %387 = vector.broadcast %cst_168 : bf16 to vector<1x256xbf16>
    %388 = vector.extract_strided_slice %356 {offsets = [1, 0], sizes = [1, 256], strides = [1, 1]} : vector<4x256xbf16> to vector<1x256xbf16>
    %cst_169 = arith.constant 0.000000e+00 : bf16
    %389 = vector.broadcast %cst_169 : bf16 to vector<1x256xbf16>
    %390 = vector.extract_strided_slice %356 {offsets = [2, 0], sizes = [1, 256], strides = [1, 1]} : vector<4x256xbf16> to vector<1x256xbf16>
    %cst_170 = arith.constant 0.000000e+00 : bf16
    %391 = vector.broadcast %cst_170 : bf16 to vector<1x256xbf16>
    %392 = tpu.concatenate %384, %385, %386, %387, %388, %389, %390, %391 in 0 : vector<1x256xbf16>, vector<1x256xbf16>, vector<1x256xbf16>, vector<1x256xbf16>, vector<1x256xbf16>, vector<1x256xbf16>, vector<1x256xbf16>, vector<1x256xbf16> -> vector<8x256xbf16>
    %393 = tpu.concatenate %365, %374, %383, %392 in 1 : vector<8x256xbf16>, vector<8x256xbf16>, vector<8x256xbf16>, vector<8x256xbf16> -> vector<8x1024xbf16>
    %c0_171 = arith.constant 0 : index
    %c0_172 = arith.constant 0 : index
    %394 = vector.load %arg18[%c0_171, %c0_172] : memref<1024x256xbf16, #tpu.memory_space<vmem>>, vector<1024x256xbf16>
    %cst_173 = arith.constant dense<0.000000e+00> : vector<8x256xf32>
    %395 = tpu.matmul %393, %394, %cst_173 {dimension_numbers = #tpu.dot_dimension_numbers<[1], [0], [0], [1], [0, 0, 1, 1], [], []>} : vector<8x1024xbf16>, vector<1024x256xbf16>, vector<8x256xf32> -> vector<8x256xf32>
    %c0_174 = arith.constant 0 : index
    %c0_175 = arith.constant 0 : index
    %396 = vector.load %arg19[%c0_174, %c0_175] : memref<1x256xf32, #tpu.memory_space<vmem>>, vector<1x256xf32>
    %397 = vector.broadcast %396 : vector<1x256xf32> to vector<8x256xf32>
    %398 = arith.addf %395, %397 : vector<8x256xf32>
    %cst_176 = arith.constant 0.000000e+00 : f32
    %399 = vector.broadcast %cst_176 : f32 to vector<8x256xf32>
    %400 = arith.maximumf %398, %399 : vector<8x256xf32>
    %401 = tpu.iota {dimensions = array<i32: 0>} : vector<8x8xi32>
    %402 = tpu.iota {dimensions = array<i32: 1>} : vector<8x8xi32>
    %c0_i32_177 = arith.constant 0 : i32
    %403 = vector.broadcast %c0_i32_177 : i32 to vector<8x8xi32>
    %404 = arith.addi %401, %403 : vector<8x8xi32>
    %c1_i32_178 = arith.constant 1 : i32
    %405 = vector.broadcast %c1_i32_178 : i32 to vector<8x8xi32>
    %406 = arith.subi %404, %405 : vector<8x8xi32>
    %407 = arith.cmpi eq, %402, %406 : vector<8x8xi32>
    %cst_179 = arith.constant 1.000000e+00 : f32
    %cst_180 = arith.constant 0.000000e+00 : f32
    %408 = vector.broadcast %cst_179 : f32 to vector<8x8xf32>
    %409 = vector.broadcast %cst_180 : f32 to vector<8x8xf32>
    %410 = arith.select %407, %408, %409 : vector<8x8xi1>, vector<8x8xf32>
    %411 = arith.truncf %410 : vector<8x8xf32> to vector<8x8xbf16>
    %cst_181 = arith.constant dense<0.000000e+00> : vector<8x256xf32>
    %412 = tpu.matmul %411, %208, %cst_181 {dimension_numbers = #tpu.dot_dimension_numbers<[1], [0], [0], [1], [0, 0, 1, 1], [], []>} : vector<8x8xbf16>, vector<8x256xbf16>, vector<8x256xf32> -> vector<8x256xf32>
    %413 = arith.truncf %412 : vector<8x256xf32> to vector<8x256xbf16>
    %414 = tpu.iota {dimensions = array<i32: 0>} : vector<8x8xi32>
    %415 = tpu.iota {dimensions = array<i32: 1>} : vector<8x8xi32>
    %c1_i32_182 = arith.constant 1 : i32
    %416 = vector.broadcast %c1_i32_182 : i32 to vector<8x8xi32>
    %417 = arith.addi %414, %416 : vector<8x8xi32>
    %c1_i32_183 = arith.constant 1 : i32
    %418 = vector.broadcast %c1_i32_183 : i32 to vector<8x8xi32>
    %419 = arith.subi %417, %418 : vector<8x8xi32>
    %420 = arith.cmpi eq, %415, %419 : vector<8x8xi32>
    %cst_184 = arith.constant 1.000000e+00 : f32
    %cst_185 = arith.constant 0.000000e+00 : f32
    %421 = vector.broadcast %cst_184 : f32 to vector<8x8xf32>
    %422 = vector.broadcast %cst_185 : f32 to vector<8x8xf32>
    %423 = arith.select %420, %421, %422 : vector<8x8xi1>, vector<8x8xf32>
    %424 = arith.truncf %423 : vector<8x8xf32> to vector<8x8xbf16>
    %cst_186 = arith.constant dense<0.000000e+00> : vector<8x256xf32>
    %425 = tpu.matmul %424, %208, %cst_186 {dimension_numbers = #tpu.dot_dimension_numbers<[1], [0], [0], [1], [0, 0, 1, 1], [], []>} : vector<8x8xbf16>, vector<8x256xbf16>, vector<8x256xf32> -> vector<8x256xf32>
    %426 = arith.truncf %425 : vector<8x256xf32> to vector<8x256xbf16>
    %427 = tpu.iota {dimensions = array<i32: 0>} : vector<8x8xi32>
    %428 = tpu.iota {dimensions = array<i32: 1>} : vector<8x8xi32>
    %c2_i32_187 = arith.constant 2 : i32
    %429 = vector.broadcast %c2_i32_187 : i32 to vector<8x8xi32>
    %430 = arith.addi %427, %429 : vector<8x8xi32>
    %c1_i32_188 = arith.constant 1 : i32
    %431 = vector.broadcast %c1_i32_188 : i32 to vector<8x8xi32>
    %432 = arith.subi %430, %431 : vector<8x8xi32>
    %433 = arith.cmpi eq, %428, %432 : vector<8x8xi32>
    %cst_189 = arith.constant 1.000000e+00 : f32
    %cst_190 = arith.constant 0.000000e+00 : f32
    %434 = vector.broadcast %cst_189 : f32 to vector<8x8xf32>
    %435 = vector.broadcast %cst_190 : f32 to vector<8x8xf32>
    %436 = arith.select %433, %434, %435 : vector<8x8xi1>, vector<8x8xf32>
    %437 = arith.truncf %436 : vector<8x8xf32> to vector<8x8xbf16>
    %cst_191 = arith.constant dense<0.000000e+00> : vector<8x256xf32>
    %438 = tpu.matmul %437, %208, %cst_191 {dimension_numbers = #tpu.dot_dimension_numbers<[1], [0], [0], [1], [0, 0, 1, 1], [], []>} : vector<8x8xbf16>, vector<8x256xbf16>, vector<8x256xf32> -> vector<8x256xf32>
    %439 = arith.truncf %438 : vector<8x256xf32> to vector<8x256xbf16>
    %440 = tpu.concatenate %413, %426, %439 in 1 : vector<8x256xbf16>, vector<8x256xbf16>, vector<8x256xbf16> -> vector<8x768xbf16>
    %c0_192 = arith.constant 0 : index
    %c0_193 = arith.constant 0 : index
    %441 = vector.load %arg30[%c0_192, %c0_193] : memref<768x256xbf16, #tpu.memory_space<vmem>>, vector<768x256xbf16>
    %cst_194 = arith.constant dense<0.000000e+00> : vector<8x256xf32>
    %442 = tpu.matmul %440, %441, %cst_194 {dimension_numbers = #tpu.dot_dimension_numbers<[1], [0], [0], [1], [0, 0, 1, 1], [], []>} : vector<8x768xbf16>, vector<768x256xbf16>, vector<8x256xf32> -> vector<8x256xf32>
    %c0_195 = arith.constant 0 : index
    %c0_196 = arith.constant 0 : index
    %443 = vector.load %arg31[%c0_195, %c0_196] : memref<1x256xf32, #tpu.memory_space<vmem>>, vector<1x256xf32>
    %444 = vector.broadcast %443 : vector<1x256xf32> to vector<8x256xf32>
    %445 = arith.addf %442, %444 : vector<8x256xf32>
    %446 = arith.addf %445, %400 : vector<8x256xf32>
    %447 = arith.truncf %446 : vector<8x256xf32> to vector<8x256xbf16>
    %448 = tpu.iota {dimensions = array<i32: 0>} : vector<16x8xi32>
    %449 = tpu.iota {dimensions = array<i32: 1>} : vector<16x8xi32>
    %c2_i32_197 = arith.constant 2 : i32
    %450 = vector.broadcast %c2_i32_197 : i32 to vector<16x8xi32>
    %451 = arith.muli %450, %449 : vector<16x8xi32>
    %c0_i32_198 = arith.constant 0 : i32
    %452 = vector.broadcast %c0_i32_198 : i32 to vector<16x8xi32>
    %453 = arith.addi %451, %452 : vector<16x8xi32>
    %c1_i32_199 = arith.constant 1 : i32
    %454 = vector.broadcast %c1_i32_199 : i32 to vector<16x8xi32>
    %455 = arith.subi %453, %454 : vector<16x8xi32>
    %456 = arith.cmpi eq, %455, %448 : vector<16x8xi32>
    %cst_200 = arith.constant 1.000000e+00 : f32
    %cst_201 = arith.constant 0.000000e+00 : f32
    %457 = vector.broadcast %cst_200 : f32 to vector<16x8xf32>
    %458 = vector.broadcast %cst_201 : f32 to vector<16x8xf32>
    %459 = arith.select %456, %457, %458 : vector<16x8xi1>, vector<16x8xf32>
    %460 = arith.truncf %459 : vector<16x8xf32> to vector<16x8xbf16>
    %cst_202 = arith.constant dense<0.000000e+00> : vector<16x256xf32>
    %461 = tpu.matmul %460, %447, %cst_202 {dimension_numbers = #tpu.dot_dimension_numbers<[1], [0], [0], [1], [0, 0, 1, 1], [], []>} : vector<16x8xbf16>, vector<8x256xbf16>, vector<16x256xf32> -> vector<16x256xf32>
    %462 = arith.truncf %461 : vector<16x256xf32> to vector<16x256xbf16>
    %463 = tpu.iota {dimensions = array<i32: 0>} : vector<16x8xi32>
    %464 = tpu.iota {dimensions = array<i32: 1>} : vector<16x8xi32>
    %c2_i32_203 = arith.constant 2 : i32
    %465 = vector.broadcast %c2_i32_203 : i32 to vector<16x8xi32>
    %466 = arith.muli %465, %464 : vector<16x8xi32>
    %c1_i32_204 = arith.constant 1 : i32
    %467 = vector.broadcast %c1_i32_204 : i32 to vector<16x8xi32>
    %468 = arith.addi %466, %467 : vector<16x8xi32>
    %c1_i32_205 = arith.constant 1 : i32
    %469 = vector.broadcast %c1_i32_205 : i32 to vector<16x8xi32>
    %470 = arith.subi %468, %469 : vector<16x8xi32>
    %471 = arith.cmpi eq, %470, %463 : vector<16x8xi32>
    %cst_206 = arith.constant 1.000000e+00 : f32
    %cst_207 = arith.constant 0.000000e+00 : f32
    %472 = vector.broadcast %cst_206 : f32 to vector<16x8xf32>
    %473 = vector.broadcast %cst_207 : f32 to vector<16x8xf32>
    %474 = arith.select %471, %472, %473 : vector<16x8xi1>, vector<16x8xf32>
    %475 = arith.truncf %474 : vector<16x8xf32> to vector<16x8xbf16>
    %cst_208 = arith.constant dense<0.000000e+00> : vector<16x256xf32>
    %476 = tpu.matmul %475, %447, %cst_208 {dimension_numbers = #tpu.dot_dimension_numbers<[1], [0], [0], [1], [0, 0, 1, 1], [], []>} : vector<16x8xbf16>, vector<8x256xbf16>, vector<16x256xf32> -> vector<16x256xf32>
    %477 = arith.truncf %476 : vector<16x256xf32> to vector<16x256xbf16>
    %478 = tpu.iota {dimensions = array<i32: 0>} : vector<16x8xi32>
    %479 = tpu.iota {dimensions = array<i32: 1>} : vector<16x8xi32>
    %c2_i32_209 = arith.constant 2 : i32
    %480 = vector.broadcast %c2_i32_209 : i32 to vector<16x8xi32>
    %481 = arith.muli %480, %479 : vector<16x8xi32>
    %c2_i32_210 = arith.constant 2 : i32
    %482 = vector.broadcast %c2_i32_210 : i32 to vector<16x8xi32>
    %483 = arith.addi %481, %482 : vector<16x8xi32>
    %c1_i32_211 = arith.constant 1 : i32
    %484 = vector.broadcast %c1_i32_211 : i32 to vector<16x8xi32>
    %485 = arith.subi %483, %484 : vector<16x8xi32>
    %486 = arith.cmpi eq, %485, %478 : vector<16x8xi32>
    %cst_212 = arith.constant 1.000000e+00 : f32
    %cst_213 = arith.constant 0.000000e+00 : f32
    %487 = vector.broadcast %cst_212 : f32 to vector<16x8xf32>
    %488 = vector.broadcast %cst_213 : f32 to vector<16x8xf32>
    %489 = arith.select %486, %487, %488 : vector<16x8xi1>, vector<16x8xf32>
    %490 = arith.truncf %489 : vector<16x8xf32> to vector<16x8xbf16>
    %cst_214 = arith.constant dense<0.000000e+00> : vector<16x256xf32>
    %491 = tpu.matmul %490, %447, %cst_214 {dimension_numbers = #tpu.dot_dimension_numbers<[1], [0], [0], [1], [0, 0, 1, 1], [], []>} : vector<16x8xbf16>, vector<8x256xbf16>, vector<16x256xf32> -> vector<16x256xf32>
    %492 = arith.truncf %491 : vector<16x256xf32> to vector<16x256xbf16>
    %493 = tpu.iota {dimensions = array<i32: 0>} : vector<16x8xi32>
    %494 = tpu.iota {dimensions = array<i32: 1>} : vector<16x8xi32>
    %c2_i32_215 = arith.constant 2 : i32
    %495 = vector.broadcast %c2_i32_215 : i32 to vector<16x8xi32>
    %496 = arith.muli %495, %494 : vector<16x8xi32>
    %c3_i32_216 = arith.constant 3 : i32
    %497 = vector.broadcast %c3_i32_216 : i32 to vector<16x8xi32>
    %498 = arith.addi %496, %497 : vector<16x8xi32>
    %c1_i32_217 = arith.constant 1 : i32
    %499 = vector.broadcast %c1_i32_217 : i32 to vector<16x8xi32>
    %500 = arith.subi %498, %499 : vector<16x8xi32>
    %501 = arith.cmpi eq, %500, %493 : vector<16x8xi32>
    %cst_218 = arith.constant 1.000000e+00 : f32
    %cst_219 = arith.constant 0.000000e+00 : f32
    %502 = vector.broadcast %cst_218 : f32 to vector<16x8xf32>
    %503 = vector.broadcast %cst_219 : f32 to vector<16x8xf32>
    %504 = arith.select %501, %502, %503 : vector<16x8xi1>, vector<16x8xf32>
    %505 = arith.truncf %504 : vector<16x8xf32> to vector<16x8xbf16>
    %cst_220 = arith.constant dense<0.000000e+00> : vector<16x256xf32>
    %506 = tpu.matmul %505, %447, %cst_220 {dimension_numbers = #tpu.dot_dimension_numbers<[1], [0], [0], [1], [0, 0, 1, 1], [], []>} : vector<16x8xbf16>, vector<8x256xbf16>, vector<16x256xf32> -> vector<16x256xf32>
    %507 = arith.truncf %506 : vector<16x256xf32> to vector<16x256xbf16>
    %508 = tpu.concatenate %462, %477, %492, %507 in 1 : vector<16x256xbf16>, vector<16x256xbf16>, vector<16x256xbf16>, vector<16x256xbf16> -> vector<16x1024xbf16>
    %c0_221 = arith.constant 0 : index
    %c0_222 = arith.constant 0 : index
    %509 = vector.load %arg20[%c0_221, %c0_222] : memref<1024x256xbf16, #tpu.memory_space<vmem>>, vector<1024x256xbf16>
    %cst_223 = arith.constant dense<0.000000e+00> : vector<16x256xf32>
    %510 = tpu.matmul %508, %509, %cst_223 {dimension_numbers = #tpu.dot_dimension_numbers<[1], [0], [0], [1], [0, 0, 1, 1], [], []>} : vector<16x1024xbf16>, vector<1024x256xbf16>, vector<16x256xf32> -> vector<16x256xf32>
    %c0_224 = arith.constant 0 : index
    %c0_225 = arith.constant 0 : index
    %511 = vector.load %arg21[%c0_224, %c0_225] : memref<1x256xf32, #tpu.memory_space<vmem>>, vector<1x256xf32>
    %512 = vector.broadcast %511 : vector<1x256xf32> to vector<16x256xf32>
    %513 = arith.addf %510, %512 : vector<16x256xf32>
    %cst_226 = arith.constant 0.000000e+00 : f32
    %514 = vector.broadcast %cst_226 : f32 to vector<16x256xf32>
    %515 = arith.maximumf %513, %514 : vector<16x256xf32>
    %516 = tpu.iota {dimensions = array<i32: 0>} : vector<16x16xi32>
    %517 = tpu.iota {dimensions = array<i32: 1>} : vector<16x16xi32>
    %c0_i32_227 = arith.constant 0 : i32
    %518 = vector.broadcast %c0_i32_227 : i32 to vector<16x16xi32>
    %519 = arith.addi %516, %518 : vector<16x16xi32>
    %c1_i32_228 = arith.constant 1 : i32
    %520 = vector.broadcast %c1_i32_228 : i32 to vector<16x16xi32>
    %521 = arith.subi %519, %520 : vector<16x16xi32>
    %522 = arith.cmpi eq, %517, %521 : vector<16x16xi32>
    %cst_229 = arith.constant 1.000000e+00 : f32
    %cst_230 = arith.constant 0.000000e+00 : f32
    %523 = vector.broadcast %cst_229 : f32 to vector<16x16xf32>
    %524 = vector.broadcast %cst_230 : f32 to vector<16x16xf32>
    %525 = arith.select %522, %523, %524 : vector<16x16xi1>, vector<16x16xf32>
    %526 = arith.truncf %525 : vector<16x16xf32> to vector<16x16xbf16>
    %cst_231 = arith.constant dense<0.000000e+00> : vector<16x256xf32>
    %527 = tpu.matmul %526, %139, %cst_231 {dimension_numbers = #tpu.dot_dimension_numbers<[1], [0], [0], [1], [0, 0, 1, 1], [], []>} : vector<16x16xbf16>, vector<16x256xbf16>, vector<16x256xf32> -> vector<16x256xf32>
    %528 = arith.truncf %527 : vector<16x256xf32> to vector<16x256xbf16>
    %529 = tpu.iota {dimensions = array<i32: 0>} : vector<16x16xi32>
    %530 = tpu.iota {dimensions = array<i32: 1>} : vector<16x16xi32>
    %c1_i32_232 = arith.constant 1 : i32
    %531 = vector.broadcast %c1_i32_232 : i32 to vector<16x16xi32>
    %532 = arith.addi %529, %531 : vector<16x16xi32>
    %c1_i32_233 = arith.constant 1 : i32
    %533 = vector.broadcast %c1_i32_233 : i32 to vector<16x16xi32>
    %534 = arith.subi %532, %533 : vector<16x16xi32>
    %535 = arith.cmpi eq, %530, %534 : vector<16x16xi32>
    %cst_234 = arith.constant 1.000000e+00 : f32
    %cst_235 = arith.constant 0.000000e+00 : f32
    %536 = vector.broadcast %cst_234 : f32 to vector<16x16xf32>
    %537 = vector.broadcast %cst_235 : f32 to vector<16x16xf32>
    %538 = arith.select %535, %536, %537 : vector<16x16xi1>, vector<16x16xf32>
    %539 = arith.truncf %538 : vector<16x16xf32> to vector<16x16xbf16>
    %cst_236 = arith.constant dense<0.000000e+00> : vector<16x256xf32>
    %540 = tpu.matmul %539, %139, %cst_236 {dimension_numbers = #tpu.dot_dimension_numbers<[1], [0], [0], [1], [0, 0, 1, 1], [], []>} : vector<16x16xbf16>, vector<16x256xbf16>, vector<16x256xf32> -> vector<16x256xf32>
    %541 = arith.truncf %540 : vector<16x256xf32> to vector<16x256xbf16>
    %542 = tpu.iota {dimensions = array<i32: 0>} : vector<16x16xi32>
    %543 = tpu.iota {dimensions = array<i32: 1>} : vector<16x16xi32>
    %c2_i32_237 = arith.constant 2 : i32
    %544 = vector.broadcast %c2_i32_237 : i32 to vector<16x16xi32>
    %545 = arith.addi %542, %544 : vector<16x16xi32>
    %c1_i32_238 = arith.constant 1 : i32
    %546 = vector.broadcast %c1_i32_238 : i32 to vector<16x16xi32>
    %547 = arith.subi %545, %546 : vector<16x16xi32>
    %548 = arith.cmpi eq, %543, %547 : vector<16x16xi32>
    %cst_239 = arith.constant 1.000000e+00 : f32
    %cst_240 = arith.constant 0.000000e+00 : f32
    %549 = vector.broadcast %cst_239 : f32 to vector<16x16xf32>
    %550 = vector.broadcast %cst_240 : f32 to vector<16x16xf32>
    %551 = arith.select %548, %549, %550 : vector<16x16xi1>, vector<16x16xf32>
    %552 = arith.truncf %551 : vector<16x16xf32> to vector<16x16xbf16>
    %cst_241 = arith.constant dense<0.000000e+00> : vector<16x256xf32>
    %553 = tpu.matmul %552, %139, %cst_241 {dimension_numbers = #tpu.dot_dimension_numbers<[1], [0], [0], [1], [0, 0, 1, 1], [], []>} : vector<16x16xbf16>, vector<16x256xbf16>, vector<16x256xf32> -> vector<16x256xf32>
    %554 = arith.truncf %553 : vector<16x256xf32> to vector<16x256xbf16>
    %555 = tpu.concatenate %528, %541, %554 in 1 : vector<16x256xbf16>, vector<16x256xbf16>, vector<16x256xbf16> -> vector<16x768xbf16>
    %c0_242 = arith.constant 0 : index
    %c0_243 = arith.constant 0 : index
    %556 = vector.load %arg28[%c0_242, %c0_243] : memref<768x256xbf16, #tpu.memory_space<vmem>>, vector<768x256xbf16>
    %cst_244 = arith.constant dense<0.000000e+00> : vector<16x256xf32>
    %557 = tpu.matmul %555, %556, %cst_244 {dimension_numbers = #tpu.dot_dimension_numbers<[1], [0], [0], [1], [0, 0, 1, 1], [], []>} : vector<16x768xbf16>, vector<768x256xbf16>, vector<16x256xf32> -> vector<16x256xf32>
    %c0_245 = arith.constant 0 : index
    %c0_246 = arith.constant 0 : index
    %558 = vector.load %arg29[%c0_245, %c0_246] : memref<1x256xf32, #tpu.memory_space<vmem>>, vector<1x256xf32>
    %559 = vector.broadcast %558 : vector<1x256xf32> to vector<16x256xf32>
    %560 = arith.addf %557, %559 : vector<16x256xf32>
    %561 = arith.addf %560, %515 : vector<16x256xf32>
    %562 = arith.truncf %561 : vector<16x256xf32> to vector<16x256xbf16>
    %563 = tpu.iota {dimensions = array<i32: 0>} : vector<32x16xi32>
    %564 = tpu.iota {dimensions = array<i32: 1>} : vector<32x16xi32>
    %c2_i32_247 = arith.constant 2 : i32
    %565 = vector.broadcast %c2_i32_247 : i32 to vector<32x16xi32>
    %566 = arith.muli %565, %564 : vector<32x16xi32>
    %c0_i32_248 = arith.constant 0 : i32
    %567 = vector.broadcast %c0_i32_248 : i32 to vector<32x16xi32>
    %568 = arith.addi %566, %567 : vector<32x16xi32>
    %c1_i32_249 = arith.constant 1 : i32
    %569 = vector.broadcast %c1_i32_249 : i32 to vector<32x16xi32>
    %570 = arith.subi %568, %569 : vector<32x16xi32>
    %571 = arith.cmpi eq, %570, %563 : vector<32x16xi32>
    %cst_250 = arith.constant 1.000000e+00 : f32
    %cst_251 = arith.constant 0.000000e+00 : f32
    %572 = vector.broadcast %cst_250 : f32 to vector<32x16xf32>
    %573 = vector.broadcast %cst_251 : f32 to vector<32x16xf32>
    %574 = arith.select %571, %572, %573 : vector<32x16xi1>, vector<32x16xf32>
    %575 = arith.truncf %574 : vector<32x16xf32> to vector<32x16xbf16>
    %cst_252 = arith.constant dense<0.000000e+00> : vector<32x256xf32>
    %576 = tpu.matmul %575, %562, %cst_252 {dimension_numbers = #tpu.dot_dimension_numbers<[1], [0], [0], [1], [0, 0, 1, 1], [], []>} : vector<32x16xbf16>, vector<16x256xbf16>, vector<32x256xf32> -> vector<32x256xf32>
    %577 = arith.truncf %576 : vector<32x256xf32> to vector<32x256xbf16>
    %578 = tpu.iota {dimensions = array<i32: 0>} : vector<32x16xi32>
    %579 = tpu.iota {dimensions = array<i32: 1>} : vector<32x16xi32>
    %c2_i32_253 = arith.constant 2 : i32
    %580 = vector.broadcast %c2_i32_253 : i32 to vector<32x16xi32>
    %581 = arith.muli %580, %579 : vector<32x16xi32>
    %c1_i32_254 = arith.constant 1 : i32
    %582 = vector.broadcast %c1_i32_254 : i32 to vector<32x16xi32>
    %583 = arith.addi %581, %582 : vector<32x16xi32>
    %c1_i32_255 = arith.constant 1 : i32
    %584 = vector.broadcast %c1_i32_255 : i32 to vector<32x16xi32>
    %585 = arith.subi %583, %584 : vector<32x16xi32>
    %586 = arith.cmpi eq, %585, %578 : vector<32x16xi32>
    %cst_256 = arith.constant 1.000000e+00 : f32
    %cst_257 = arith.constant 0.000000e+00 : f32
    %587 = vector.broadcast %cst_256 : f32 to vector<32x16xf32>
    %588 = vector.broadcast %cst_257 : f32 to vector<32x16xf32>
    %589 = arith.select %586, %587, %588 : vector<32x16xi1>, vector<32x16xf32>
    %590 = arith.truncf %589 : vector<32x16xf32> to vector<32x16xbf16>
    %cst_258 = arith.constant dense<0.000000e+00> : vector<32x256xf32>
    %591 = tpu.matmul %590, %562, %cst_258 {dimension_numbers = #tpu.dot_dimension_numbers<[1], [0], [0], [1], [0, 0, 1, 1], [], []>} : vector<32x16xbf16>, vector<16x256xbf16>, vector<32x256xf32> -> vector<32x256xf32>
    %592 = arith.truncf %591 : vector<32x256xf32> to vector<32x256xbf16>
    %593 = tpu.iota {dimensions = array<i32: 0>} : vector<32x16xi32>
    %594 = tpu.iota {dimensions = array<i32: 1>} : vector<32x16xi32>
    %c2_i32_259 = arith.constant 2 : i32
    %595 = vector.broadcast %c2_i32_259 : i32 to vector<32x16xi32>
    %596 = arith.muli %595, %594 : vector<32x16xi32>
    %c2_i32_260 = arith.constant 2 : i32
    %597 = vector.broadcast %c2_i32_260 : i32 to vector<32x16xi32>
    %598 = arith.addi %596, %597 : vector<32x16xi32>
    %c1_i32_261 = arith.constant 1 : i32
    %599 = vector.broadcast %c1_i32_261 : i32 to vector<32x16xi32>
    %600 = arith.subi %598, %599 : vector<32x16xi32>
    %601 = arith.cmpi eq, %600, %593 : vector<32x16xi32>
    %cst_262 = arith.constant 1.000000e+00 : f32
    %cst_263 = arith.constant 0.000000e+00 : f32
    %602 = vector.broadcast %cst_262 : f32 to vector<32x16xf32>
    %603 = vector.broadcast %cst_263 : f32 to vector<32x16xf32>
    %604 = arith.select %601, %602, %603 : vector<32x16xi1>, vector<32x16xf32>
    %605 = arith.truncf %604 : vector<32x16xf32> to vector<32x16xbf16>
    %cst_264 = arith.constant dense<0.000000e+00> : vector<32x256xf32>
    %606 = tpu.matmul %605, %562, %cst_264 {dimension_numbers = #tpu.dot_dimension_numbers<[1], [0], [0], [1], [0, 0, 1, 1], [], []>} : vector<32x16xbf16>, vector<16x256xbf16>, vector<32x256xf32> -> vector<32x256xf32>
    %607 = arith.truncf %606 : vector<32x256xf32> to vector<32x256xbf16>
    %608 = tpu.iota {dimensions = array<i32: 0>} : vector<32x16xi32>
    %609 = tpu.iota {dimensions = array<i32: 1>} : vector<32x16xi32>
    %c2_i32_265 = arith.constant 2 : i32
    %610 = vector.broadcast %c2_i32_265 : i32 to vector<32x16xi32>
    %611 = arith.muli %610, %609 : vector<32x16xi32>
    %c3_i32_266 = arith.constant 3 : i32
    %612 = vector.broadcast %c3_i32_266 : i32 to vector<32x16xi32>
    %613 = arith.addi %611, %612 : vector<32x16xi32>
    %c1_i32_267 = arith.constant 1 : i32
    %614 = vector.broadcast %c1_i32_267 : i32 to vector<32x16xi32>
    %615 = arith.subi %613, %614 : vector<32x16xi32>
    %616 = arith.cmpi eq, %615, %608 : vector<32x16xi32>
    %cst_268 = arith.constant 1.000000e+00 : f32
    %cst_269 = arith.constant 0.000000e+00 : f32
    %617 = vector.broadcast %cst_268 : f32 to vector<32x16xf32>
    %618 = vector.broadcast %cst_269 : f32 to vector<32x16xf32>
    %619 = arith.select %616, %617, %618 : vector<32x16xi1>, vector<32x16xf32>
    %620 = arith.truncf %619 : vector<32x16xf32> to vector<32x16xbf16>
    %cst_270 = arith.constant dense<0.000000e+00> : vector<32x256xf32>
    %621 = tpu.matmul %620, %562, %cst_270 {dimension_numbers = #tpu.dot_dimension_numbers<[1], [0], [0], [1], [0, 0, 1, 1], [], []>} : vector<32x16xbf16>, vector<16x256xbf16>, vector<32x256xf32> -> vector<32x256xf32>
    %622 = arith.truncf %621 : vector<32x256xf32> to vector<32x256xbf16>
    %623 = tpu.concatenate %577, %592, %607, %622 in 1 : vector<32x256xbf16>, vector<32x256xbf16>, vector<32x256xbf16>, vector<32x256xbf16> -> vector<32x1024xbf16>
    %c0_271 = arith.constant 0 : index
    %c0_272 = arith.constant 0 : index
    %624 = vector.load %arg22[%c0_271, %c0_272] : memref<1024x256xbf16, #tpu.memory_space<vmem>>, vector<1024x256xbf16>
    %cst_273 = arith.constant dense<0.000000e+00> : vector<32x256xf32>
    %625 = tpu.matmul %623, %624, %cst_273 {dimension_numbers = #tpu.dot_dimension_numbers<[1], [0], [0], [1], [0, 0, 1, 1], [], []>} : vector<32x1024xbf16>, vector<1024x256xbf16>, vector<32x256xf32> -> vector<32x256xf32>
    %c0_274 = arith.constant 0 : index
    %c0_275 = arith.constant 0 : index
    %626 = vector.load %arg23[%c0_274, %c0_275] : memref<1x256xf32, #tpu.memory_space<vmem>>, vector<1x256xf32>
    %627 = vector.broadcast %626 : vector<1x256xf32> to vector<32x256xf32>
    %628 = arith.addf %625, %627 : vector<32x256xf32>
    %cst_276 = arith.constant 0.000000e+00 : f32
    %629 = vector.broadcast %cst_276 : f32 to vector<32x256xf32>
    %630 = arith.maximumf %628, %629 : vector<32x256xf32>
    %631 = tpu.iota {dimensions = array<i32: 0>} : vector<32x32xi32>
    %632 = tpu.iota {dimensions = array<i32: 1>} : vector<32x32xi32>
    %c0_i32_277 = arith.constant 0 : i32
    %633 = vector.broadcast %c0_i32_277 : i32 to vector<32x32xi32>
    %634 = arith.addi %631, %633 : vector<32x32xi32>
    %c1_i32_278 = arith.constant 1 : i32
    %635 = vector.broadcast %c1_i32_278 : i32 to vector<32x32xi32>
    %636 = arith.subi %634, %635 : vector<32x32xi32>
    %637 = arith.cmpi eq, %632, %636 : vector<32x32xi32>
    %cst_279 = arith.constant 1.000000e+00 : f32
    %cst_280 = arith.constant 0.000000e+00 : f32
    %638 = vector.broadcast %cst_279 : f32 to vector<32x32xf32>
    %639 = vector.broadcast %cst_280 : f32 to vector<32x32xf32>
    %640 = arith.select %637, %638, %639 : vector<32x32xi1>, vector<32x32xf32>
    %641 = arith.truncf %640 : vector<32x32xf32> to vector<32x32xbf16>
    %cst_281 = arith.constant dense<0.000000e+00> : vector<32x256xf32>
    %642 = tpu.matmul %641, %70, %cst_281 {dimension_numbers = #tpu.dot_dimension_numbers<[1], [0], [0], [1], [0, 0, 1, 1], [], []>} : vector<32x32xbf16>, vector<32x256xbf16>, vector<32x256xf32> -> vector<32x256xf32>
    %643 = arith.truncf %642 : vector<32x256xf32> to vector<32x256xbf16>
    %644 = tpu.iota {dimensions = array<i32: 0>} : vector<32x32xi32>
    %645 = tpu.iota {dimensions = array<i32: 1>} : vector<32x32xi32>
    %c1_i32_282 = arith.constant 1 : i32
    %646 = vector.broadcast %c1_i32_282 : i32 to vector<32x32xi32>
    %647 = arith.addi %644, %646 : vector<32x32xi32>
    %c1_i32_283 = arith.constant 1 : i32
    %648 = vector.broadcast %c1_i32_283 : i32 to vector<32x32xi32>
    %649 = arith.subi %647, %648 : vector<32x32xi32>
    %650 = arith.cmpi eq, %645, %649 : vector<32x32xi32>
    %cst_284 = arith.constant 1.000000e+00 : f32
    %cst_285 = arith.constant 0.000000e+00 : f32
    %651 = vector.broadcast %cst_284 : f32 to vector<32x32xf32>
    %652 = vector.broadcast %cst_285 : f32 to vector<32x32xf32>
    %653 = arith.select %650, %651, %652 : vector<32x32xi1>, vector<32x32xf32>
    %654 = arith.truncf %653 : vector<32x32xf32> to vector<32x32xbf16>
    %cst_286 = arith.constant dense<0.000000e+00> : vector<32x256xf32>
    %655 = tpu.matmul %654, %70, %cst_286 {dimension_numbers = #tpu.dot_dimension_numbers<[1], [0], [0], [1], [0, 0, 1, 1], [], []>} : vector<32x32xbf16>, vector<32x256xbf16>, vector<32x256xf32> -> vector<32x256xf32>
    %656 = arith.truncf %655 : vector<32x256xf32> to vector<32x256xbf16>
    %657 = tpu.iota {dimensions = array<i32: 0>} : vector<32x32xi32>
    %658 = tpu.iota {dimensions = array<i32: 1>} : vector<32x32xi32>
    %c2_i32_287 = arith.constant 2 : i32
    %659 = vector.broadcast %c2_i32_287 : i32 to vector<32x32xi32>
    %660 = arith.addi %657, %659 : vector<32x32xi32>
    %c1_i32_288 = arith.constant 1 : i32
    %661 = vector.broadcast %c1_i32_288 : i32 to vector<32x32xi32>
    %662 = arith.subi %660, %661 : vector<32x32xi32>
    %663 = arith.cmpi eq, %658, %662 : vector<32x32xi32>
    %cst_289 = arith.constant 1.000000e+00 : f32
    %cst_290 = arith.constant 0.000000e+00 : f32
    %664 = vector.broadcast %cst_289 : f32 to vector<32x32xf32>
    %665 = vector.broadcast %cst_290 : f32 to vector<32x32xf32>
    %666 = arith.select %663, %664, %665 : vector<32x32xi1>, vector<32x32xf32>
    %667 = arith.truncf %666 : vector<32x32xf32> to vector<32x32xbf16>
    %cst_291 = arith.constant dense<0.000000e+00> : vector<32x256xf32>
    %668 = tpu.matmul %667, %70, %cst_291 {dimension_numbers = #tpu.dot_dimension_numbers<[1], [0], [0], [1], [0, 0, 1, 1], [], []>} : vector<32x32xbf16>, vector<32x256xbf16>, vector<32x256xf32> -> vector<32x256xf32>
    %669 = arith.truncf %668 : vector<32x256xf32> to vector<32x256xbf16>
    %670 = tpu.concatenate %643, %656, %669 in 1 : vector<32x256xbf16>, vector<32x256xbf16>, vector<32x256xbf16> -> vector<32x768xbf16>
    %c0_292 = arith.constant 0 : index
    %c0_293 = arith.constant 0 : index
    %671 = vector.load %arg26[%c0_292, %c0_293] : memref<768x256xbf16, #tpu.memory_space<vmem>>, vector<768x256xbf16>
    %cst_294 = arith.constant dense<0.000000e+00> : vector<32x256xf32>
    %672 = tpu.matmul %670, %671, %cst_294 {dimension_numbers = #tpu.dot_dimension_numbers<[1], [0], [0], [1], [0, 0, 1, 1], [], []>} : vector<32x768xbf16>, vector<768x256xbf16>, vector<32x256xf32> -> vector<32x256xf32>
    %c0_295 = arith.constant 0 : index
    %c0_296 = arith.constant 0 : index
    %673 = vector.load %arg27[%c0_295, %c0_296] : memref<1x256xf32, #tpu.memory_space<vmem>>, vector<1x256xf32>
    %674 = vector.broadcast %673 : vector<1x256xf32> to vector<32x256xf32>
    %675 = arith.addf %672, %674 : vector<32x256xf32>
    %676 = arith.addf %675, %630 : vector<32x256xf32>
    %677 = arith.truncf %676 : vector<32x256xf32> to vector<32x256xbf16>
    %678 = tpu.iota {dimensions = array<i32: 0>} : vector<64x32xi32>
    %679 = tpu.iota {dimensions = array<i32: 1>} : vector<64x32xi32>
    %c2_i32_297 = arith.constant 2 : i32
    %680 = vector.broadcast %c2_i32_297 : i32 to vector<64x32xi32>
    %681 = arith.muli %680, %679 : vector<64x32xi32>
    %c0_i32_298 = arith.constant 0 : i32
    %682 = vector.broadcast %c0_i32_298 : i32 to vector<64x32xi32>
    %683 = arith.addi %681, %682 : vector<64x32xi32>
    %c1_i32_299 = arith.constant 1 : i32
    %684 = vector.broadcast %c1_i32_299 : i32 to vector<64x32xi32>
    %685 = arith.subi %683, %684 : vector<64x32xi32>
    %686 = arith.cmpi eq, %685, %678 : vector<64x32xi32>
    %cst_300 = arith.constant 1.000000e+00 : f32
    %cst_301 = arith.constant 0.000000e+00 : f32
    %687 = vector.broadcast %cst_300 : f32 to vector<64x32xf32>
    %688 = vector.broadcast %cst_301 : f32 to vector<64x32xf32>
    %689 = arith.select %686, %687, %688 : vector<64x32xi1>, vector<64x32xf32>
    %690 = arith.truncf %689 : vector<64x32xf32> to vector<64x32xbf16>
    %cst_302 = arith.constant dense<0.000000e+00> : vector<64x256xf32>
    %691 = tpu.matmul %690, %677, %cst_302 {dimension_numbers = #tpu.dot_dimension_numbers<[1], [0], [0], [1], [0, 0, 1, 1], [], []>} : vector<64x32xbf16>, vector<32x256xbf16>, vector<64x256xf32> -> vector<64x256xf32>
    %692 = arith.truncf %691 : vector<64x256xf32> to vector<64x256xbf16>
    %693 = tpu.iota {dimensions = array<i32: 0>} : vector<64x32xi32>
    %694 = tpu.iota {dimensions = array<i32: 1>} : vector<64x32xi32>
    %c2_i32_303 = arith.constant 2 : i32
    %695 = vector.broadcast %c2_i32_303 : i32 to vector<64x32xi32>
    %696 = arith.muli %695, %694 : vector<64x32xi32>
    %c1_i32_304 = arith.constant 1 : i32
    %697 = vector.broadcast %c1_i32_304 : i32 to vector<64x32xi32>
    %698 = arith.addi %696, %697 : vector<64x32xi32>
    %c1_i32_305 = arith.constant 1 : i32
    %699 = vector.broadcast %c1_i32_305 : i32 to vector<64x32xi32>
    %700 = arith.subi %698, %699 : vector<64x32xi32>
    %701 = arith.cmpi eq, %700, %693 : vector<64x32xi32>
    %cst_306 = arith.constant 1.000000e+00 : f32
    %cst_307 = arith.constant 0.000000e+00 : f32
    %702 = vector.broadcast %cst_306 : f32 to vector<64x32xf32>
    %703 = vector.broadcast %cst_307 : f32 to vector<64x32xf32>
    %704 = arith.select %701, %702, %703 : vector<64x32xi1>, vector<64x32xf32>
    %705 = arith.truncf %704 : vector<64x32xf32> to vector<64x32xbf16>
    %cst_308 = arith.constant dense<0.000000e+00> : vector<64x256xf32>
    %706 = tpu.matmul %705, %677, %cst_308 {dimension_numbers = #tpu.dot_dimension_numbers<[1], [0], [0], [1], [0, 0, 1, 1], [], []>} : vector<64x32xbf16>, vector<32x256xbf16>, vector<64x256xf32> -> vector<64x256xf32>
    %707 = arith.truncf %706 : vector<64x256xf32> to vector<64x256xbf16>
    %708 = tpu.iota {dimensions = array<i32: 0>} : vector<64x32xi32>
    %709 = tpu.iota {dimensions = array<i32: 1>} : vector<64x32xi32>
    %c2_i32_309 = arith.constant 2 : i32
    %710 = vector.broadcast %c2_i32_309 : i32 to vector<64x32xi32>
    %711 = arith.muli %710, %709 : vector<64x32xi32>
    %c2_i32_310 = arith.constant 2 : i32
    %712 = vector.broadcast %c2_i32_310 : i32 to vector<64x32xi32>
    %713 = arith.addi %711, %712 : vector<64x32xi32>
    %c1_i32_311 = arith.constant 1 : i32
    %714 = vector.broadcast %c1_i32_311 : i32 to vector<64x32xi32>
    %715 = arith.subi %713, %714 : vector<64x32xi32>
    %716 = arith.cmpi eq, %715, %708 : vector<64x32xi32>
    %cst_312 = arith.constant 1.000000e+00 : f32
    %cst_313 = arith.constant 0.000000e+00 : f32
    %717 = vector.broadcast %cst_312 : f32 to vector<64x32xf32>
    %718 = vector.broadcast %cst_313 : f32 to vector<64x32xf32>
    %719 = arith.select %716, %717, %718 : vector<64x32xi1>, vector<64x32xf32>
    %720 = arith.truncf %719 : vector<64x32xf32> to vector<64x32xbf16>
    %cst_314 = arith.constant dense<0.000000e+00> : vector<64x256xf32>
    %721 = tpu.matmul %720, %677, %cst_314 {dimension_numbers = #tpu.dot_dimension_numbers<[1], [0], [0], [1], [0, 0, 1, 1], [], []>} : vector<64x32xbf16>, vector<32x256xbf16>, vector<64x256xf32> -> vector<64x256xf32>
    %722 = arith.truncf %721 : vector<64x256xf32> to vector<64x256xbf16>
    %723 = tpu.iota {dimensions = array<i32: 0>} : vector<64x32xi32>
    %724 = tpu.iota {dimensions = array<i32: 1>} : vector<64x32xi32>
    %c2_i32_315 = arith.constant 2 : i32
    %725 = vector.broadcast %c2_i32_315 : i32 to vector<64x32xi32>
    %726 = arith.muli %725, %724 : vector<64x32xi32>
    %c3_i32_316 = arith.constant 3 : i32
    %727 = vector.broadcast %c3_i32_316 : i32 to vector<64x32xi32>
    %728 = arith.addi %726, %727 : vector<64x32xi32>
    %c1_i32_317 = arith.constant 1 : i32
    %729 = vector.broadcast %c1_i32_317 : i32 to vector<64x32xi32>
    %730 = arith.subi %728, %729 : vector<64x32xi32>
    %731 = arith.cmpi eq, %730, %723 : vector<64x32xi32>
    %cst_318 = arith.constant 1.000000e+00 : f32
    %cst_319 = arith.constant 0.000000e+00 : f32
    %732 = vector.broadcast %cst_318 : f32 to vector<64x32xf32>
    %733 = vector.broadcast %cst_319 : f32 to vector<64x32xf32>
    %734 = arith.select %731, %732, %733 : vector<64x32xi1>, vector<64x32xf32>
    %735 = arith.truncf %734 : vector<64x32xf32> to vector<64x32xbf16>
    %cst_320 = arith.constant dense<0.000000e+00> : vector<64x256xf32>
    %736 = tpu.matmul %735, %677, %cst_320 {dimension_numbers = #tpu.dot_dimension_numbers<[1], [0], [0], [1], [0, 0, 1, 1], [], []>} : vector<64x32xbf16>, vector<32x256xbf16>, vector<64x256xf32> -> vector<64x256xf32>
    %737 = arith.truncf %736 : vector<64x256xf32> to vector<64x256xbf16>
    %738 = tpu.concatenate %692, %707, %722, %737 in 1 : vector<64x256xbf16>, vector<64x256xbf16>, vector<64x256xbf16>, vector<64x256xbf16> -> vector<64x1024xbf16>
    %c0_321 = arith.constant 0 : index
    %c0_322 = arith.constant 0 : index
    %739 = vector.load %arg24[%c0_321, %c0_322] : memref<1024x64xbf16, #tpu.memory_space<vmem>>, vector<1024x64xbf16>
    %cst_323 = arith.constant dense<0.000000e+00> : vector<64x64xf32>
    %740 = tpu.matmul %738, %739, %cst_323 {dimension_numbers = #tpu.dot_dimension_numbers<[1], [0], [0], [1], [0, 0, 1, 1], [], []>} : vector<64x1024xbf16>, vector<1024x64xbf16>, vector<64x64xf32> -> vector<64x64xf32>
    %c0_324 = arith.constant 0 : index
    %c0_325 = arith.constant 0 : index
    %741 = vector.load %arg25[%c0_324, %c0_325] : memref<1x64xf32, #tpu.memory_space<vmem>>, vector<1x64xf32>
    %742 = vector.broadcast %741 : vector<1x64xf32> to vector<64x64xf32>
    %743 = arith.addf %740, %742 : vector<64x64xf32>
    %744 = arith.negf %743 : vector<64x64xf32>
    %745 = math.exp %744 : vector<64x64xf32>
    %cst_326 = arith.constant 1.000000e+00 : f32
    %746 = vector.broadcast %cst_326 : f32 to vector<64x64xf32>
    %747 = arith.addf %746, %745 : vector<64x64xf32>
    %748 = arith.divf %746, %747 : vector<64x64xf32>
    %c0_327 = arith.constant 0 : index
    %c0_328 = arith.constant 0 : index
    %c0_329 = arith.constant 0 : index
    %749 = vector.load %arg36[%c0_327, %c0_328, %c0_329] : memref<1x64x64xf32, #tpu.memory_space<vmem>>, vector<1x64x64xf32>
    %750 = vector.shape_cast %749 : vector<1x64x64xf32> to vector<64x64xf32>
    %751 = vector.shape_cast %748 : vector<64x64xf32> to vector<1x64x64xf32>
    tpu.vector_store %arg36[%c0_327, %c0_328, %c0_329], %751 {strides = array<i32>} : memref<1x64x64xf32, #tpu.memory_space<vmem>>, vector<1x64x64xf32>,
    return
  }
  func.func @transform_0(%arg0: i32) -> (i32, i32, i32) {
    %c0_i32 = arith.constant 0 : i32
    %c0_i32_0 = arith.constant 0 : i32
    %c0_i32_1 = arith.constant 0 : i32
    return %arg0, %c0_i32, %c0_i32_0 : i32, i32, i32
  }
  func.func @transform_1(%arg0: i32) -> (i32, i32) {
    %c0_i32 = arith.constant 0 : i32
    %c0_i32_0 = arith.constant 0 : i32
    %c0_i32_1 = arith.constant 0 : i32
    return %c0_i32, %c0_i32_0 : i32, i32
  }
  func.func @transform_2(%arg0: i32) -> (i32, i32) {
    %c0_i32 = arith.constant 0 : i32
    %c0_i32_0 = arith.constant 0 : i32
    %c0_i32_1 = arith.constant 0 : i32
    return %c0_i32, %c0_i32_0 : i32, i32
  }
  func.func @transform_3(%arg0: i32) -> (i32, i32) {
    %c0_i32 = arith.constant 0 : i32
    %c0_i32_0 = arith.constant 0 : i32
    %c0_i32_1 = arith.constant 0 : i32
    return %c0_i32, %c0_i32_0 : i32, i32
  }
  func.func @transform_4(%arg0: i32) -> (i32, i32) {
    %c0_i32 = arith.constant 0 : i32
    %c0_i32_0 = arith.constant 0 : i32
    %c0_i32_1 = arith.constant 0 : i32
    return %c0_i32, %c0_i32_0 : i32, i32
  }
  func.func @transform_5(%arg0: i32) -> (i32, i32) {
    %c0_i32 = arith.constant 0 : i32
    %c0_i32_0 = arith.constant 0 : i32
    %c0_i32_1 = arith.constant 0 : i32
    return %c0_i32, %c0_i32_0 : i32, i32
  }
  func.func @transform_6(%arg0: i32) -> (i32, i32) {
    %c0_i32 = arith.constant 0 : i32
    %c0_i32_0 = arith.constant 0 : i32
    %c0_i32_1 = arith.constant 0 : i32
    return %c0_i32, %c0_i32_0 : i32, i32
  }
  func.func @transform_7(%arg0: i32) -> (i32, i32) {
    %c0_i32 = arith.constant 0 : i32
    %c0_i32_0 = arith.constant 0 : i32
    %c0_i32_1 = arith.constant 0 : i32
    return %c0_i32, %c0_i32_0 : i32, i32
  }
  func.func @transform_8(%arg0: i32) -> (i32, i32) {
    %c0_i32 = arith.constant 0 : i32
    %c0_i32_0 = arith.constant 0 : i32
    %c0_i32_1 = arith.constant 0 : i32
    return %c0_i32, %c0_i32_0 : i32, i32
  }
  func.func @transform_9(%arg0: i32) -> (i32, i32) {
    %c0_i32 = arith.constant 0 : i32
    %c0_i32_0 = arith.constant 0 : i32
    %c0_i32_1 = arith.constant 0 : i32
    return %c0_i32, %c0_i32_0 : i32, i32
  }
  func.func @transform_10(%arg0: i32) -> (i32, i32) {
    %c0_i32 = arith.constant 0 : i32
    %c0_i32_0 = arith.constant 0 : i32
    %c0_i32_1 = arith.constant 0 : i32
    return %c0_i32, %c0_i32_0 : i32, i32
  }
  func.func @transform_11(%arg0: i32) -> (i32, i32) {
    %c0_i32 = arith.constant 0 : i32
    %c0_i32_0 = arith.constant 0 : i32
    %c0_i32_1 = arith.constant 0 : i32
    return %c0_i32, %c0_i32_0 : i32, i32
  }
  func.func @transform_12(%arg0: i32) -> (i32, i32) {
    %c0_i32 = arith.constant 0 : i32
    %c0_i32_0 = arith.constant 0 : i32
    %c0_i32_1 = arith.constant 0 : i32
    return %c0_i32, %c0_i32_0 : i32, i32
  }
  func.func @transform_13(%arg0: i32) -> (i32, i32) {
    %c0_i32 = arith.constant 0 : i32
    %c0_i32_0 = arith.constant 0 : i32
    %c0_i32_1 = arith.constant 0 : i32
    return %c0_i32, %c0_i32_0 : i32, i32
  }
  func.func @transform_14(%arg0: i32) -> (i32, i32) {
    %c0_i32 = arith.constant 0 : i32
    %c0_i32_0 = arith.constant 0 : i32
    %c0_i32_1 = arith.constant 0 : i32
    return %c0_i32, %c0_i32_0 : i32, i32
  }
  func.func @transform_15(%arg0: i32) -> (i32, i32) {
    %c0_i32 = arith.constant 0 : i32
    %c0_i32_0 = arith.constant 0 : i32
    %c0_i32_1 = arith.constant 0 : i32
    return %c0_i32, %c0_i32_0 : i32, i32
  }
  func.func @transform_16(%arg0: i32) -> (i32, i32) {
    %c0_i32 = arith.constant 0 : i32
    %c0_i32_0 = arith.constant 0 : i32
    %c0_i32_1 = arith.constant 0 : i32
    return %c0_i32, %c0_i32_0 : i32, i32
  }
  func.func @transform_17(%arg0: i32) -> (i32, i32) {
    %c0_i32 = arith.constant 0 : i32
    %c0_i32_0 = arith.constant 0 : i32
    %c0_i32_1 = arith.constant 0 : i32
    return %c0_i32, %c0_i32_0 : i32, i32
  }
  func.func @transform_18(%arg0: i32) -> (i32, i32) {
    %c0_i32 = arith.constant 0 : i32
    %c0_i32_0 = arith.constant 0 : i32
    %c0_i32_1 = arith.constant 0 : i32
    return %c0_i32, %c0_i32_0 : i32, i32
  }
  func.func @transform_19(%arg0: i32) -> (i32, i32) {
    %c0_i32 = arith.constant 0 : i32
    %c0_i32_0 = arith.constant 0 : i32
    %c0_i32_1 = arith.constant 0 : i32
    return %c0_i32, %c0_i32_0 : i32, i32
  }
  func.func @transform_20(%arg0: i32) -> (i32, i32) {
    %c0_i32 = arith.constant 0 : i32
    %c0_i32_0 = arith.constant 0 : i32
    %c0_i32_1 = arith.constant 0 : i32
    return %c0_i32, %c0_i32_0 : i32, i32
  }
  func.func @transform_21(%arg0: i32) -> (i32, i32) {
    %c0_i32 = arith.constant 0 : i32
    %c0_i32_0 = arith.constant 0 : i32
    %c0_i32_1 = arith.constant 0 : i32
    return %c0_i32, %c0_i32_0 : i32, i32
  }
  func.func @transform_22(%arg0: i32) -> (i32, i32) {
    %c0_i32 = arith.constant 0 : i32
    %c0_i32_0 = arith.constant 0 : i32
    %c0_i32_1 = arith.constant 0 : i32
    return %c0_i32, %c0_i32_0 : i32, i32
  }
  func.func @transform_23(%arg0: i32) -> (i32, i32) {
    %c0_i32 = arith.constant 0 : i32
    %c0_i32_0 = arith.constant 0 : i32
    %c0_i32_1 = arith.constant 0 : i32
    return %c0_i32, %c0_i32_0 : i32, i32
  }
  func.func @transform_24(%arg0: i32) -> (i32, i32) {
    %c0_i32 = arith.constant 0 : i32
    %c0_i32_0 = arith.constant 0 : i32
    %c0_i32_1 = arith.constant 0 : i32
    return %c0_i32, %c0_i32_0 : i32, i32
  }
  func.func @transform_25(%arg0: i32) -> (i32, i32) {
    %c0_i32 = arith.constant 0 : i32
    %c0_i32_0 = arith.constant 0 : i32
    %c0_i32_1 = arith.constant 0 : i32
    return %c0_i32, %c0_i32_0 : i32, i32
  }
  func.func @transform_26(%arg0: i32) -> (i32, i32) {
    %c0_i32 = arith.constant 0 : i32
    %c0_i32_0 = arith.constant 0 : i32
    %c0_i32_1 = arith.constant 0 : i32
    return %c0_i32, %c0_i32_0 : i32, i32
  }
  func.func @transform_27(%arg0: i32) -> (i32, i32) {
    %c0_i32 = arith.constant 0 : i32
    %c0_i32_0 = arith.constant 0 : i32
    %c0_i32_1 = arith.constant 0 : i32
    return %c0_i32, %c0_i32_0 : i32, i32
  }
  func.func @transform_28(%arg0: i32) -> (i32, i32) {
    %c0_i32 = arith.constant 0 : i32
    %c0_i32_0 = arith.constant 0 : i32
    %c0_i32_1 = arith.constant 0 : i32
    return %c0_i32, %c0_i32_0 : i32, i32
  }
  func.func @transform_29(%arg0: i32) -> (i32, i32) {
    %c0_i32 = arith.constant 0 : i32
    %c0_i32_0 = arith.constant 0 : i32
    %c0_i32_1 = arith.constant 0 : i32
    return %c0_i32, %c0_i32_0 : i32, i32
  }
  func.func @transform_30(%arg0: i32) -> (i32, i32) {
    %c0_i32 = arith.constant 0 : i32
    %c0_i32_0 = arith.constant 0 : i32
    %c0_i32_1 = arith.constant 0 : i32
    return %c0_i32, %c0_i32_0 : i32, i32
  }
  func.func @transform_31(%arg0: i32) -> (i32, i32) {
    %c0_i32 = arith.constant 0 : i32
    %c0_i32_0 = arith.constant 0 : i32
    %c0_i32_1 = arith.constant 0 : i32
    return %c0_i32, %c0_i32_0 : i32, i32
  }
  func.func @transform_32(%arg0: i32) -> (i32, i32) {
    %c0_i32 = arith.constant 0 : i32
    %c0_i32_0 = arith.constant 0 : i32
    %c0_i32_1 = arith.constant 0 : i32
    return %c0_i32, %c0_i32_0 : i32, i32
  }
  func.func @transform_33(%arg0: i32) -> (i32, i32) {
    %c0_i32 = arith.constant 0 : i32
    %c0_i32_0 = arith.constant 0 : i32
    %c0_i32_1 = arith.constant 0 : i32
    return %c0_i32, %c0_i32_0 : i32, i32
  }
  func.func @transform_34(%arg0: i32) -> (i32, i32) {
    %c0_i32 = arith.constant 0 : i32
    %c0_i32_0 = arith.constant 0 : i32
    %c0_i32_1 = arith.constant 0 : i32
    return %c0_i32, %c0_i32_0 : i32, i32
  }
  func.func @transform_35(%arg0: i32) -> (i32, i32, i32) {
    %c0_i32 = arith.constant 0 : i32
    %c0_i32_0 = arith.constant 0 : i32
    %c0_i32_1 = arith.constant 0 : i32
    return %arg0, %c0_i32, %c0_i32_0 : i32, i32, i32
  }
}

</mosaic_0001>

<bundles_post_ra>
// kernel: soft_gated_hg_forward.1
= control target key start
LH: loop header
LB: loop body
LE: loop exit
PB: predicated region body
PF: predicated region fallthrough
CT: control target
= control target key end

     0   :  { %s21493_s6 = smov 1   ;;  %s21494_s10 = smov 2   ;;  %s23890_s0 = inlined_call_operand.smem [shape: u32[36], index: -1, kind: input, shape index: {}] }
   0x1   :  { %s21562_s5 = sld [smem:[%s23890_s0]]   ;;  %s21495_s14 = smov 3  }
   0x2   :  { %s21567_s9 = sld [smem:[%s23890_s0 + %s21493_s6]]   ;;  %s21496_s18 = smov 4  }
   0x3   :  { %s21572_s13 = sld [smem:[%s23890_s0 + %s21494_s10]]   ;;  %s21497_s22 = smov 5  }
   0x4   :  { %s21577_s17 = sld [smem:[%s23890_s0 + %s21495_s14]]   ;;  %s21498_s26 = smov 6  }
   0x5   :  { %s21582_s21 = sld [smem:[%s23890_s0 + %s21496_s18]]   ;;  %s21499_s30 = smov 7  }
   0x6   :  { %s21587_s25 = sld [smem:[%s23890_s0 + %s21497_s22]]   ;;  %s21500_s4 = smov 8  }
   0x7   :  { %23921 = sst [smem:[#allocation36_spill]] %s21562_s5  ;;  %s21501_s10 = smov 9  }
   0x8   :  { %s21592_s29 = sld [smem:[%s23890_s0 + %s21498_s26]]   ;;  %s21502_s15 = smov 10  }
   0x9   :  { %23922 = sst [smem:[#allocation37_spill]] %s21572_s13  ;;  %s21503_s20 = smov 11  }
   0xa   :  { %23923 = sst [smem:[#allocation38_spill]] %s21577_s17  ;;  %s21504_s26 = smov 12  }
   0xb   :  { %23924 = sst [smem:[#allocation39_spill]] %s21582_s21  ;;  %s21505_s1 = smov 13  }
   0xc   :  { %23925 = sst [smem:[#allocation40_spill]] %s21587_s25  ;;  %s21506_s7 = smov 14  }
   0xd   :  { %s21597_s3 = sld [smem:[%s23890_s0 + %s21499_s30]]   ;;  %s21508_s22 = smov 16  }
   0xe   :  { %23926 = sst [smem:[#allocation41_spill]] %s21592_s29  ;;  %s21509_s28 = smov 17  }
   0xf   :  { %s21602_s8 = sld [smem:[%s23890_s0 + %s21500_s4]]  }
  0x10   :  { %s21607_s14 = sld [smem:[%s23890_s0 + %s21501_s10]]  }
  0x11   :  { %s21612_s19 = sld [smem:[%s23890_s0 + %s21502_s15]]   ;;  %s21507_s15 = smov 15  }
  0x12   :  { %s21617_s24 = sld [smem:[%s23890_s0 + %s21503_s20]]  }
  0x13   :  { %23927 = sst [smem:[#allocation42_spill]] %s21597_s3 }
  0x14   :  { %s21622_s30 = sld [smem:[%s23890_s0 + %s21504_s26]]  }
  0x15   :  { %23928 = sst [smem:[#allocation43_spill]] %s21602_s8 }
  0x16   :  { %s21627_s6 = sld [smem:[%s23890_s0 + %s21505_s1]]  }
  0x17   :  { %23929 = sst [smem:[#allocation44_spill]] %s21612_s19 }
  0x18   :  { %23930 = sst [smem:[#allocation45_spill]] %s21617_s24 }
  0x19   :  { %s21632_s12 = sld [smem:[%s23890_s0 + %s21506_s7]]   ;;  %s21510_s7 = smov 18  }
  0x1a   :  { %s21637_s20 = sld [smem:[%s23890_s0 + %s21507_s15]]   ;;  %s21511_s15 = smov 19  }
  0x1b   :  { %s21642_s27 = sld [smem:[%s23890_s0 + %s21508_s22]]   ;;  %s21512_s22 = smov 20  }
  0x1c   :  { %s21647_s4 = sld [smem:[%s23890_s0 + %s21509_s28]]   ;;  %s21513_s28 = smov 21  }
  0x1d   :  { %s21652_s19 = sld [smem:[%s23890_s0 + %s21510_s7]]   ;;  %s21514_s7 = smov 22  }
  0x1e   :  { %s21657_s24 = sld [smem:[%s23890_s0 + %s21511_s15]]   ;;  %s21515_s15 = smov 23  }
  0x1f   :  { %s21667_s8 = sld [smem:[%s23890_s0 + %s21513_s28]]   ;;  %s21517_s28 = smov 25  }
  0x20   :  { %s21677_s29 = sld [smem:[%s23890_s0 + %s21515_s15]]   ;;  %s21519_s15 = smov 27  }
  0x21   :  { %23931 = sst [smem:[#allocation46_spill]] %s21642_s27 }
  0x22   :  { %23932 = sst [smem:[#allocation47_spill]] %s21647_s4 }
  0x23   :  { %23933 = sst [smem:[#allocation48_spill]] %s21652_s19 }
  0x24   :  { %s21662_s27 = sld [smem:[%s23890_s0 + %s21512_s22]]   ;;  %s21516_s22 = smov 24  }
  0x25   :  { %23935 = sst [smem:[#allocation50_spill]] %s21667_s8 }
  0x26   :  { %s21672_s19 = sld [smem:[%s23890_s0 + %s21514_s7]]   ;;  %s21518_s7 = smov 26  }
  0x27   :  { %23937 = sst [smem:[#allocation52_spill]] %s21677_s29 }
  0x28   :  { %s21687_s25 = sld [smem:[%s23890_s0 + %s21517_s28]]   ;;  %s21521_s28 = smov 29  }
  0x29   :  { %s21697_s29 = sld [smem:[%s23890_s0 + %s21519_s15]]   ;;  %s21523_s15 = smov 31  }
  0x2a   :  { %23934 = sst [smem:[#allocation49_spill]] %s21662_s27 }
  0x2b   :  { %s21682_s27 = sld [smem:[%s23890_s0 + %s21516_s22]]   ;;  %s21520_s22 = smov 28  }
  0x2c   :  { %23936 = sst [smem:[#allocation51_spill]] %s21672_s19 }
  0x2d   :  { %s21692_s19 = sld [smem:[%s23890_s0 + %s21518_s7]]   ;;  %s21522_s7 = smov 30  }
  0x2e   :  { %s21702_s21 = sld [smem:[%s23890_s0 + %s21520_s22]]   ;;  %s21524_s22 = smov 32  }
  0x2f   :  { %s21707_s17 = sld [smem:[%s23890_s0 + %s21521_s28]]   ;;  %s21525_s28 = smov 33  }
  0x30   :  { %s21717_s13 = sld [smem:[%s23890_s0 + %s21523_s15]]   ;;  %s21527_s15 = smov 35  }
  0x31   :  { %s21727_s5 = sld [smem:[%s23890_s0 + %s21525_s28]]  }
  0x33   :  { %23938 = sst [smem:[#allocation53_spill]] %s21692_s19 }
  0x34   :  { %23939 = sst [smem:[#allocation54_spill]] %s21702_s21 }
  0x35   :  { %s21712_s19 = sld [smem:[%s23890_s0 + %s21522_s7]]   ;;  %s21526_s7 = smov 34  }
  0x36   :  { %23941 = sst [smem:[#allocation56_spill]] %s21717_s13 }
  0x37   :  { %s21722_s21 = sld [smem:[%s23890_s0 + %s21524_s22]]  }
  0x38   :  { %s21737_s13 = sld [smem:[%s23890_s0 + %s21527_s15]]  }
  0x3b   :  { %23940 = sst [smem:[#allocation55_spill]] %s21712_s19 }
  0x3c   :  { %s21732_s19 = sld [smem:[%s23890_s0 + %s21526_s7]]  }
  0x3d   :  { %76 = vsyncpa [#allocation3], 0 }
  0x3e   :  { %77 = vsyncpa [#allocation6], 0 }
  0x3f   :  { %78 = vsyncpa [#allocation9], 0 }
  0x40   :  { %79 = vsyncpa [#allocation12], 0 }
  0x41   :  { %80 = vsyncpa [#allocation15], 0 }
  0x42   :  { %81 = vsyncpa [#allocation18], 0 }
  0x43   :  { %82 = vsyncpa [#allocation21], 0 }
  0x44   :  { %83 = vsyncpa [#allocation24], 0 }
  0x45   :  { %84 = vsyncpa [#allocation4], 0 }
  0x46   :  { %86 = vsyncpa [#allocation4 + $0x1], 0  ;;  %s21739_s22 = smov 0   ;;  %s21741_s23 = smov 0  }
  0x47   :  { %s21743_s26 = smov 0   ;;  %s21745_s28 = smov 0  }
  0x48 LB: > { %s23942_s8 = sld [smem:[#allocation50_spill]]  ;;  %s23943_s4 = sld [smem:[#allocation47_spill]]  ;;  %s21487_s26 = sphi %s21743_s26, %s24033_s26   ;;  %s21483_s23 = sphi %s21741_s23, %s24035_s23   ;;  %s21479_s22 = sphi %s21739_s22, %s24034_s22   ;;  %s21491_s28 = sphi %s21745_s28, %s24031_s28  }
  0x49   : > { %s23944_s3 = sld [smem:[#allocation42_spill]]  ;;  %23945 = sst [smem:[#allocation57_spill]] %s21479_s22 }
  0x4a   : > { %23946 = sst [smem:[#allocation58_spill]] %s21487_s26  ;;  %s21760_s0 = sadd.s32 4294967295, %s21491_s28  }
  0x4b   : > { %23947 = sst [smem:[#allocation59_spill]] %s21491_s28  ;;  %s16329_s1 = sadd.s32 4294967294, %s21491_s28  }
  0x4c   : > { %s21764_s2 = sadd.s32 1, %s21491_s28   ;;  %s839_s7 = sadd.s32 1, %s21487_s26 }
  0x4d   : > { %23948 = sst [smem:[#allocation60_spill]] %s21764_s2  ;;  %s836_s10 = ssub.s32 %s21491_s28, %s21764_s2 }
  0x4e   : > { %p849_p0 = scmp.ne.s32.totalorder %s21487_s26, %s21483_s23  ;;  %p837_p1 = scmp.eq.s32.totalorder %s836_s10, 0 }
  0x4f   : > { %p850_p2 = scmp.eq.s32.totalorder %s21760_s0, 1  ;;  %p855_p3 = scmp.ne.s32.totalorder %s21483_s23, %s21479_s22 }
  0x50   : > { %p856_p4 = scmp.eq.s32.totalorder %s16329_s1, 1  ;;  %p16330_p7 = scmp.ge.s32.totalorder %s21491_s28, 1 }
  0x51   : > { %s21775_s11 = scalar_select %p837_p1, %s21487_s26, %s839_s7  }
  0x52   : > { %p21777_p5 = por %p850_p2, %p849_p0  ;;  %p21781_p6 = por %p856_p4, %p855_p3 }
  0x53   : > { %23949 = sst [smem:[#allocation61_spill]] %s21775_s11  ;;  %p863_p8 = scmp.lt.s32.totalorder %s21491_s28, 3 }
  0x54   : > { %s23950_s15 = scalar_select %p21777_p5, 1, 0 }
  0x55   : > { %s23952_s16 = scalar_select %p21781_p6, 1, 0 }
  0x56   : > { %23951 = sst [smem:[#allocation62_spill]] %s23950_s15  ;;  %p23901_p9 = scmp.eq.s32.totalorder %s21760_s0, 0 }
  0x57   : > { %23953 = sst [smem:[#allocation63_spill]] %s23952_s16  ;;  %p21788_p10 = pnand %p16330_p7, %p863_p8 }
  0x58   : > { %s21528_s1 = smov [#allocation5]   ;;  %s21529_s11 = smov [#allocation8]  }
  0x59   : > { %s23954_s18 = scalar_select %p21788_p10, 1, 0 }
  0x5a   : > { %p18592_p11 = pneg %p21788_p10  ;;  %s903_s7 = sshll.u32 %s21528_s1, 4  ;;  %s21794_s7 = int_to_ptr.vmem [resolvable:$true] %s903_s7 }
  0x5b   : > { %s939_s26 = sshll.u32 %s21529_s11, 4  ;;  %s21530_s2 = smov [#allocation11]   ;;  %s21802_s26 = int_to_ptr.vmem [resolvable:$true] %s939_s26 }
  0x5c   : > { %p21798_p12 = pnand %p23901_p9, %p18592_p11  ;;  %s21804_s16 = sshll.u32 %s21530_s2, 4  ;;  %s964_s16 = int_to_ptr.vmem [resolvable:$true] %s21804_s16 }
  0x5d   : > { %s20977_s22 = scalar_lea.hbm %s23944_s3, 16384 }
  0x5e   : > { %p20978_p13 = scmp.ne.s32.totalorder %s23944_s3, %s20977_s22  ;;  %p21810_p0 = pneg %p21798_p12 }
  0x5f   : > { %p20984_p3 = scmp.lt.u32.totalorder %s20977_s22, %s23944_s3 }
  0x60   : > { %p20980_p1 = pnand %p21810_p0, %p20978_p13 }
  0x62   : > { %p20981_p2 = pneg %p20980_p1 }
  0x64   : > { %p20986_p4 = pnand %p20984_p3, %p20981_p2 }
  0x66   : > { %20989 = shalt.err (!%p20986_p4)
}
  0x67   : > { %s20990_s2 = scalar_lea.vmem %s21794_s7, 16384  ;;  %p20998_p9 = scmp.lt.s32.totalorder %s21794_s7, %s21794_s7 }
  0x68   : > { %p20991_p7 = scmp.ne.s32.totalorder %s21794_s7, %s20990_s2  ;;  %p20999_p6 = scmp.lt.s32.totalorder %s20990_s2, %s20990_s2 }
  0x6a   : > { %p20993_p8 = pnand %p20991_p7, %p21810_p0  ;;  %p21000_p5 = por %p20999_p6, %p20998_p9 }
  0x6c   : > { %p20994_p11 = pneg %p20993_p8 }
  0x6e   : > { %p21001_p10 = pnand %p21000_p5, %p20994_p11 }
  0x70   : > { %21004 = shalt.err (!%p21001_p10)
}
  0x71   : > { %s23907_s11 = smov 128   ;;  %s23909_s22 = smov 8  }
  0x72   : > { %18598 = dma.hbm_to_vmem [thread:$0]  (!%p21798_p12), %s23944_s3, 16384, %s21794_s7, [#allocation6], %s23907_s11, %s23907_s11, %s23909_s22  }
  0x73   : > { %s21005_s28 = scalar_lea.hbm %s21622_s30, 16 }
  0x74   : > { %p21006_p13 = scmp.ne.s32.totalorder %s21622_s30, %s21005_s28  ;;  %p21012_p9 = scmp.lt.u32.totalorder %s21005_s28, %s21622_s30 }
  0x76   : > { %p21008_p6 = pnand %p21006_p13, %p21810_p0 }
  0x78   : > { %p21009_p5 = pneg %p21008_p6 }
  0x7a   : > { %p21014_p10 = pnand %p21012_p9, %p21009_p5 }
  0x7c   : > { %21017 = shalt.err (!%p21014_p10)
}
  0x7d   : > { %s21018_s2 = scalar_lea.vmem %s21802_s26, 16  ;;  %s21025_s15 = scalar_lea.vmem %s21802_s26, 32 }
  0x7e   : > { %p21019_p1 = scmp.ne.s32.totalorder %s21802_s26, %s21018_s2  ;;  %p21026_p4 = scmp.lt.s32.totalorder %s21802_s26, %s21802_s26 }
  0x7f   : > { %p21027_p7 = scmp.lt.s32.totalorder %s21025_s15, %s21018_s2 }
  0x80   : > { %p21021_p2 = pnand %p21019_p1, %p21810_p0 }
  0x81   : > { %p21028_p8 = por %p21027_p7, %p21026_p4 }
  0x82   : > { %p21022_p3 = pneg %p21021_p2 }
  0x84   : > { %p21029_p11 = pnand %p21028_p8, %p21022_p3 }
  0x86   : > { %21032 = shalt.err (!%p21029_p11)
}
  0x87   : > { %18604 = dma.hbm_to_vmem [thread:$0]  (!%p21798_p12), %s21622_s30, 16, %s21802_s26, [#allocation9]  }
  0x88   : > { %s21033_s28 = scalar_lea.hbm %s21632_s12, 16 }
  0x89   : > { %p21034_p13 = scmp.ne.s32.totalorder %s21632_s12, %s21033_s28  ;;  %p21040_p9 = scmp.lt.u32.totalorder %s21033_s28, %s21632_s12 }
  0x8b   : > { %p21036_p6 = pnand %p21034_p13, %p21810_p0 }
  0x8d   : > { %p21037_p5 = pneg %p21036_p6 }
  0x8f   : > { %p21042_p10 = pnand %p21040_p9, %p21037_p5 }
  0x91   : > { %21045 = shalt.err (!%p21042_p10)
}
  0x92   : > { %s21046_s15 = scalar_lea.vmem %s964_s16, 16  ;;  %s21053_s7 = scalar_lea.vmem %s964_s16, 32 }
  0x93   : > { %p21047_p1 = scmp.ne.s32.totalorder %s964_s16, %s21046_s15  ;;  %p21054_p4 = scmp.lt.s32.totalorder %s964_s16, %s964_s16 }
  0x94   : > { %p21055_p7 = scmp.lt.s32.totalorder %s21053_s7, %s21046_s15 }
  0x95   : > { %p21049_p2 = pnand %p21047_p1, %p21810_p0 }
  0x96   : > { %p21056_p8 = por %p21055_p7, %p21054_p4 }
  0x97   : > { %p21050_p3 = pneg %p21049_p2 }
  0x99   : > { %p21057_p11 = pnand %p21056_p8, %p21050_p3 }
  0x9b   : > { %21060 = shalt.err (!%p21057_p11)
}
  0x9c   : > { %18610 = dma.hbm_to_vmem [thread:$0]  (!%p21798_p12), %s21632_s12, 16, %s964_s16, [#allocation12]  }
  0x9d   : > { %s21533_s26 = smov [#allocation14]   ;;  %s21534_s28 = smov [#allocation17]  }
  0x9e   : > { %s989_s2 = sshll.u32 %s21533_s26, 4  ;;  %s1021_s11 = sshll.u32 %s21534_s28, 4  ;;  %s990_s2 = int_to_ptr.vmem [resolvable:$true] %s989_s2  ;;  %s1022_s11 = int_to_ptr.vmem [resolvable:$true] %s1021_s11 }
  0x9f   : > { %s21061_s22 = scalar_lea.hbm %s23943_s4, 16384 }
  0xa0   : > { %p21062_p13 = scmp.ne.s32.totalorder %s23943_s4, %s21061_s22  ;;  %p21068_p9 = scmp.lt.u32.totalorder %s21061_s22, %s23943_s4 }
  0xa2   : > { %p21064_p6 = pnand %p21062_p13, %p21810_p0 }
  0xa4   : > { %p21065_p5 = pneg %p21064_p6 }
  0xa6   : > { %p21070_p10 = pnand %p21068_p9, %p21065_p5 }
  0xa8   : > { %21073 = shalt.err (!%p21070_p10)
}
  0xa9   : > { %s21074_s15 = scalar_lea.vmem %s990_s2, 16384  ;;  %p21082_p4 = scmp.lt.s32.totalorder %s990_s2, %s990_s2 }
  0xaa   : > { %p21075_p1 = scmp.ne.s32.totalorder %s990_s2, %s21074_s15  ;;  %p21083_p7 = scmp.lt.s32.totalorder %s21074_s15, %s21074_s15 }
  0xac   : > { %p21077_p2 = pnand %p21075_p1, %p21810_p0  ;;  %p21084_p8 = por %p21083_p7, %p21082_p4 }
  0xae   : > { %p21078_p3 = pneg %p21077_p2 }
  0xb0   : > { %p21085_p11 = pnand %p21084_p8, %p21078_p3 }
  0xb2   : > { %21088 = shalt.err (!%p21085_p11)
}
  0xb3   : > { %s23957_s16 = smov 8   ;;  %s23958_s7 = smov 128  }
  0xb4   : > { %18616 = dma.hbm_to_vmem [thread:$0]  (!%p21798_p12), %s23943_s4, 16384, %s990_s2, [#allocation15], %s23958_s7, %s23958_s7, %s23957_s16  }
  0xb5   : > { %s21089_s22 = scalar_lea.hbm %s23942_s8, 16384 }
  0xb6   : > { %p21090_p13 = scmp.ne.s32.totalorder %s23942_s8, %s21089_s22  ;;  %p21096_p9 = scmp.lt.u32.totalorder %s21089_s22, %s23942_s8 }
  0xb8   : > { %p21092_p6 = pnand %p21090_p13, %p21810_p0 }
  0xba   : > { %p21093_p5 = pneg %p21092_p6 }
  0xbc   : > { %p21098_p10 = pnand %p21096_p9, %p21093_p5 }
  0xbe   : > { %21101 = shalt.err (!%p21098_p10)
}
  0xbf   : > { %s21102_s26 = scalar_lea.vmem %s1022_s11, 16384  ;;  %p21110_p4 = scmp.lt.s32.totalorder %s1022_s11, %s1022_s11 }
  0xc0   : > { %p21103_p1 = scmp.ne.s32.totalorder %s1022_s11, %s21102_s26  ;;  %p21111_p7 = scmp.lt.s32.totalorder %s21102_s26, %s21102_s26 }
  0xc2   : > { %p21105_p2 = pnand %p21103_p1, %p21810_p0  ;;  %p21112_p8 = por %p21111_p7, %p21110_p4 }
  0xc4   : > { %p21106_p3 = pneg %p21105_p2 }
  0xc6   : > { %p21113_p11 = pnand %p21112_p8, %p21106_p3 }
  0xc8   : > { %21116 = shalt.err (!%p21113_p11)
}
  0xc9   : > { %18622 = dma.hbm_to_vmem [thread:$0]  (!%p21798_p12), %s23942_s8, 16384, %s1022_s11, [#allocation18], %s23958_s7, %s23958_s7, %s23957_s16  }
  0xca   : > { %s21535_s2 = smov [#allocation20]   ;;  %s21536_s15 = smov [#allocation23]  }
  0xcb   : > { %s1051_s28 = sshll.u32 %s21535_s2, 4  ;;  %s1083_s22 = sshll.u32 %s21536_s15, 4  ;;  %s1052_s28 = int_to_ptr.vmem [resolvable:$true] %s1051_s28  ;;  %s1084_s22 = int_to_ptr.vmem [resolvable:$true] %s1083_s22 }
  0xcc   : > { %s21117_s26 = scalar_lea.hbm %s21687_s25, 12288 }
  0xcd   : > { %p21118_p13 = scmp.ne.s32.totalorder %s21687_s25, %s21117_s26  ;;  %p21124_p9 = scmp.lt.u32.totalorder %s21117_s26, %s21687_s25 }
  0xcf   : > { %p21120_p6 = pnand %p21118_p13, %p21810_p0 }
  0xd1   : > { %p21121_p5 = pneg %p21120_p6 }
  0xd3   : > { %p21126_p10 = pnand %p21124_p9, %p21121_p5 }
  0xd5   : > { %21129 = shalt.err (!%p21126_p10)
}
  0xd6   : > { %s21130_s3 = scalar_lea.vmem %s1052_s28, 12288  ;;  %p21138_p4 = scmp.lt.s32.totalorder %s1052_s28, %s1052_s28 }
  0xd7   : > { %p21131_p1 = scmp.ne.s32.totalorder %s1052_s28, %s21130_s3  ;;  %p21139_p7 = scmp.lt.s32.totalorder %s21130_s3, %s21130_s3 }
  0xd9   : > { %p21133_p2 = pnand %p21131_p1, %p21810_p0  ;;  %p21140_p8 = por %p21139_p7, %p21138_p4 }
  0xdb   : > { %p21134_p3 = pneg %p21133_p2 }
  0xdd   : > { %p21141_p11 = pnand %p21140_p8, %p21134_p3 }
  0xdf   : > { %21144 = shalt.err (!%p21141_p11)
}
  0xe0   : > { %18628 = dma.hbm_to_vmem [thread:$0]  (!%p21798_p12), %s21687_s25, 12288, %s1052_s28, [#allocation21], %s23958_s7, %s23958_s7, %s23957_s16  }
  0xe1   : > { %s21145_s11 = scalar_lea.hbm %s21707_s17, 12288 }
  0xe2   : > { %p21146_p13 = scmp.ne.s32.totalorder %s21707_s17, %s21145_s11  ;;  %p21152_p9 = scmp.lt.u32.totalorder %s21145_s11, %s21707_s17 }
  0xe4   : > { %p21148_p6 = pnand %p21146_p13, %p21810_p0 }
  0xe6   : > { %p21149_p5 = pneg %p21148_p6 }
  0xe8   : > { %p21154_p10 = pnand %p21152_p9, %p21149_p5 }
  0xea   : > { %21157 = shalt.err (!%p21154_p10)
}
  0xeb   : > { %s21158_s3 = scalar_lea.vmem %s1084_s22, 12288  ;;  %p21166_p4 = scmp.lt.s32.totalorder %s1084_s22, %s1084_s22 }
  0xec   : > { %p21159_p1 = scmp.ne.s32.totalorder %s1084_s22, %s21158_s3  ;;  %p21167_p7 = scmp.lt.s32.totalorder %s21158_s3, %s21158_s3 }
  0xee   : > { %p21161_p2 = pnand %p21159_p1, %p21810_p0  ;;  %p21168_p8 = por %p21167_p7, %p21166_p4 }
  0xf0   : > { %p21162_p3 = pneg %p21161_p2 }
  0xf2   : > { %p21169_p11 = pnand %p21168_p8, %p21162_p3 }
  0xf4   : > { %21172 = shalt.err (!%p21169_p11)
}
  0xf5   : > { %18634 = dma.hbm_to_vmem [thread:$0]  (!%p21798_p12), %s21707_s17, 12288, %s1084_s22, [#allocation24], %s23958_s7, %s23958_s7, %s23957_s16  }
  0xf6   : > { %s21537_s2 = smov [#allocation2]   ;;  %s21538_s15 = smov [#allocation7]  }
  0xf7   : > { %s875_s28 = sshll.u32 %s21537_s2, 4  ;;  %s919_s26 = sshll.u32 %s21538_s15, 4  ;;  %s876_s28 = int_to_ptr.vmem [resolvable:$true] %s875_s28  ;;  %s920_s26 = int_to_ptr.vmem [resolvable:$true] %s919_s26 }
  0xf8   : > { %s21173_s11 = scalar_lea.hbm %s21567_s9, 12288 }
  0xf9   : > { %p21174_p13 = scmp.ne.s32.totalorder %s21567_s9, %s21173_s11  ;;  %p21180_p9 = scmp.lt.u32.totalorder %s21173_s11, %s21567_s9 }
  0xfb   : > { %p21176_p6 = pnand %p21174_p13, %p21810_p0 }
  0xfd   : > { %p21177_p5 = pneg %p21176_p6 }
  0xff   : > { %p21182_p10 = pnand %p21180_p9, %p21177_p5 }
 0x101   : > { %21185 = shalt.err (!%p21182_p10)
}
 0x102   : > { %s21186_s3 = scalar_lea.vmem %s876_s28, 12288  ;;  %p21194_p4 = scmp.lt.s32.totalorder %s876_s28, %s876_s28 }
 0x103   : > { %p21187_p1 = scmp.ne.s32.totalorder %s876_s28, %s21186_s3  ;;  %p21195_p7 = scmp.lt.s32.totalorder %s21186_s3, %s21186_s3 }
 0x105   : > { %p21189_p2 = pnand %p21187_p1, %p21810_p0  ;;  %p21196_p8 = por %p21195_p7, %p21194_p4 }
 0x107   : > { %p21190_p3 = pneg %p21189_p2 }
 0x109   : > { %p21197_p11 = pnand %p21196_p8, %p21190_p3 }
 0x10b   : > { %21200 = shalt.err (!%p21197_p11)
}
 0x10c   : > { %18595 = dma.hbm_to_vmem [thread:$0]  (!%p21798_p12), %s21567_s9, 12288, %s876_s28, [#allocation3], %s23958_s7, %s23958_s7, %s23957_s16  }
 0x10d   : > { %s21201_s22 = scalar_lea.hbm %s21607_s14, 8192 }
 0x10e   : > { %p21202_p13 = scmp.ne.s32.totalorder %s21607_s14, %s21201_s22  ;;  %p21208_p9 = scmp.lt.u32.totalorder %s21201_s22, %s21607_s14 }
 0x110   : > { %p21204_p6 = pnand %p21202_p13, %p21810_p0 }
 0x112   : > { %p21205_p5 = pneg %p21204_p6 }
 0x114   : > { %p21210_p10 = pnand %p21208_p9, %p21205_p5 }
 0x116   : > { %21213 = shalt.err (!%p21210_p10)
}
 0x117   : > { %s21214_s2 = scalar_lea.vmem %s920_s26, 8192  ;;  %p21222_p4 = scmp.lt.s32.totalorder %s920_s26, %s920_s26 }
 0x118   : > { %p21215_p1 = scmp.ne.s32.totalorder %s920_s26, %s21214_s2  ;;  %p21223_p7 = scmp.lt.s32.totalorder %s21214_s2, %s21214_s2 }
 0x11a   : > { %p21217_p2 = pnand %p21215_p1, %p21810_p0  ;;  %p21224_p8 = por %p21223_p7, %p21222_p4 }
 0x11c   : > { %p21218_p3 = pneg %p21217_p2 }
 0x11e   : > { %p21225_p11 = pnand %p21224_p8, %p21218_p3 }
 0x120   : > { %21228 = shalt.err (!%p21225_p11)
}
 0x121   : > { %s21539_s28 = smov 64   ;;  %s21540_s15 = smov 4  }
 0x122   : > { %18601 = dma.hbm_to_vmem [thread:$0]  (!%p21798_p12), %s21607_s14, 8192, %s920_s26, [#allocation6], %s21539_s28, %s21539_s28, %s21540_s15  }
 0x123   : > { %s21541_s11 = smov [#allocation10]   ;;  %s21542_s22 = smov [#allocation13]  }
 0x124   : > { %s949_s3 = sshll.u32 %s21541_s11, 4  ;;  %s973_s4 = sshll.u32 %s21542_s22, 4  ;;  %s950_s3 = int_to_ptr.vmem [resolvable:$true] %s949_s3  ;;  %s974_s4 = int_to_ptr.vmem [resolvable:$true] %s973_s4 }
 0x125   : > { %s21229_s8 = scalar_lea.hbm %s21627_s6, 2048 }
 0x126   : > { %p21230_p13 = scmp.ne.s32.totalorder %s21627_s6, %s21229_s8  ;;  %p21236_p9 = scmp.lt.u32.totalorder %s21229_s8, %s21627_s6 }
 0x128   : > { %p21232_p6 = pnand %p21230_p13, %p21810_p0 }
 0x12a   : > { %p21233_p5 = pneg %p21232_p6 }
 0x12c   : > { %p21238_p10 = pnand %p21236_p9, %p21233_p5 }
 0x12e   : > { %21241 = shalt.err (!%p21238_p10)
}
 0x12f   : > { %s21242_s2 = scalar_lea.vmem %s950_s3, 2048  ;;  %p21250_p4 = scmp.lt.s32.totalorder %s950_s3, %s950_s3 }
 0x130   : > { %p21243_p1 = scmp.ne.s32.totalorder %s950_s3, %s21242_s2  ;;  %p21251_p7 = scmp.lt.s32.totalorder %s21242_s2, %s21242_s2 }
 0x132   : > { %p21245_p2 = pnand %p21243_p1, %p21810_p0  ;;  %p21252_p8 = por %p21251_p7, %p21250_p4 }
 0x134   : > { %p21246_p3 = pneg %p21245_p2 }
 0x136   : > { %p21253_p11 = pnand %p21252_p8, %p21246_p3 }
 0x138   : > { %21256 = shalt.err (!%p21253_p11)
}
 0x139   : > { %18607 = dma.hbm_to_vmem [thread:$0]  (!%p21798_p12), %s21627_s6, 2048, %s950_s3, [#allocation9], %s21539_s28, %s21539_s28, %s21540_s15  }
 0x13a   : > { %s21257_s8 = scalar_lea.hbm %s21637_s20, 8192 }
 0x13b   : > { %p21258_p13 = scmp.ne.s32.totalorder %s21637_s20, %s21257_s8  ;;  %p21264_p9 = scmp.lt.u32.totalorder %s21257_s8, %s21637_s20 }
 0x13d   : > { %p21260_p6 = pnand %p21258_p13, %p21810_p0 }
 0x13f   : > { %p21261_p5 = pneg %p21260_p6 }
 0x141   : > { %p21266_p10 = pnand %p21264_p9, %p21261_p5 }
 0x143   : > { %21269 = shalt.err (!%p21266_p10)
}
 0x144   : > { %s21270_s26 = scalar_lea.vmem %s974_s4, 8192  ;;  %p21278_p4 = scmp.lt.s32.totalorder %s974_s4, %s974_s4 }
 0x145   : > { %p21271_p1 = scmp.ne.s32.totalorder %s974_s4, %s21270_s26  ;;  %p21279_p7 = scmp.lt.s32.totalorder %s21270_s26, %s21270_s26 }
 0x147   : > { %p21273_p2 = pnand %p21271_p1, %p21810_p0  ;;  %p21280_p8 = por %p21279_p7, %p21278_p4 }
 0x149   : > { %p21274_p3 = pneg %p21273_p2 }
 0x14b   : > { %p21281_p11 = pnand %p21280_p8, %p21274_p3 }
 0x14d   : > { %21284 = shalt.err (!%p21281_p11)
}
 0x14e   : > { %18613 = dma.hbm_to_vmem [thread:$0]  (!%p21798_p12), %s21637_s20, 8192, %s974_s4, [#allocation12], %s23958_s7, %s23958_s7, %s23957_s16  }
 0x14f   : > { %s21543_s28 = smov [#allocation16]   ;;  %s21544_s11 = smov [#allocation19]  }
 0x150   : > { %s1005_s15 = sshll.u32 %s21543_s28, 4  ;;  %s1041_s3 = sshll.u32 %s21544_s11, 4  ;;  %s1006_s15 = int_to_ptr.vmem [resolvable:$true] %s1005_s15  ;;  %s1042_s3 = int_to_ptr.vmem [resolvable:$true] %s1041_s3 }
 0x151   : > { %s21285_s22 = scalar_lea.hbm %s21657_s24, 16384 }
 0x152   : > { %p21286_p13 = scmp.ne.s32.totalorder %s21657_s24, %s21285_s22  ;;  %p21292_p9 = scmp.lt.u32.totalorder %s21285_s22, %s21657_s24 }
 0x154   : > { %p21288_p6 = pnand %p21286_p13, %p21810_p0 }
 0x156   : > { %p21289_p5 = pneg %p21288_p6 }
 0x158   : > { %p21294_p10 = pnand %p21292_p9, %p21289_p5 }
 0x15a   : > { %21297 = shalt.err (!%p21294_p10)
}
 0x15b   : > { %s21298_s2 = scalar_lea.vmem %s1006_s15, 16384  ;;  %p21306_p4 = scmp.lt.s32.totalorder %s1006_s15, %s1006_s15 }
 0x15c   : > { %p21299_p1 = scmp.ne.s32.totalorder %s1006_s15, %s21298_s2  ;;  %p21307_p7 = scmp.lt.s32.totalorder %s21298_s2, %s21298_s2 }
 0x15e   : > { %p21301_p2 = pnand %p21299_p1, %p21810_p0  ;;  %p21308_p8 = por %p21307_p7, %p21306_p4 }
 0x160   : > { %p21302_p3 = pneg %p21301_p2 }
 0x162   : > { %p21309_p11 = pnand %p21308_p8, %p21302_p3 }
 0x164   : > { %21312 = shalt.err (!%p21309_p11)
}
 0x165   : > { %18619 = dma.hbm_to_vmem [thread:$0]  (!%p21798_p12), %s21657_s24, 16384, %s1006_s15, [#allocation15], %s23958_s7, %s23958_s7, %s23957_s16  }
 0x166   : > { %s21313_s4 = scalar_lea.hbm %s21682_s27, 16 }
 0x167   : > { %p21314_p13 = scmp.ne.s32.totalorder %s21682_s27, %s21313_s4  ;;  %p21320_p9 = scmp.lt.u32.totalorder %s21313_s4, %s21682_s27 }
 0x169   : > { %p21316_p6 = pnand %p21314_p13, %p21810_p0 }
 0x16b   : > { %p21317_p5 = pneg %p21316_p6 }
 0x16d   : > { %p21322_p10 = pnand %p21320_p9, %p21317_p5 }
 0x16f   : > { %21325 = shalt.err (!%p21322_p10)
}
 0x170   : > { %s21326_s8 = scalar_lea.vmem %s1042_s3, 16  ;;  %s21333_s26 = scalar_lea.vmem %s1042_s3, 32 }
 0x171   : > { %p21327_p1 = scmp.ne.s32.totalorder %s1042_s3, %s21326_s8  ;;  %p21334_p4 = scmp.lt.s32.totalorder %s1042_s3, %s1042_s3 }
 0x172   : > { %p21335_p7 = scmp.lt.s32.totalorder %s21333_s26, %s21326_s8 }
 0x173   : > { %p21329_p2 = pnand %p21327_p1, %p21810_p0 }
 0x174   : > { %p21336_p8 = por %p21335_p7, %p21334_p4 }
 0x175   : > { %p21330_p3 = pneg %p21329_p2 }
 0x177   : > { %p21337_p11 = pnand %p21336_p8, %p21330_p3 }
 0x179   : > { %21340 = shalt.err (!%p21337_p11)
}
 0x17a   : > { %18625 = dma.hbm_to_vmem [thread:$0]  (!%p21798_p12), %s21682_s27, 16, %s1042_s3, [#allocation18]  }
 0x17b   : > { %s21545_s28 = smov [#allocation22]   ;;  %s21546_s11 = smov [#allocation25]  }
 0x17c   : > { %s1067_s15 = sshll.u32 %s21545_s28, 4  ;;  %s1099_s22 = sshll.u32 %s21546_s11, 4  ;;  %s1068_s15 = int_to_ptr.vmem [resolvable:$true] %s1067_s15  ;;  %s1100_s22 = int_to_ptr.vmem [resolvable:$true] %s1099_s22 }
 0x17d   : > { %s21341_s2 = scalar_lea.hbm %s21697_s29, 12288 }
 0x17e   : > { %p21342_p13 = scmp.ne.s32.totalorder %s21697_s29, %s21341_s2  ;;  %p21348_p9 = scmp.lt.u32.totalorder %s21341_s2, %s21697_s29 }
 0x180   : > { %p21344_p6 = pnand %p21342_p13, %p21810_p0 }
 0x182   : > { %p21345_p5 = pneg %p21344_p6 }
 0x184   : > { %p21350_p10 = pnand %p21348_p9, %p21345_p5 }
 0x186   : > { %21353 = shalt.err (!%p21350_p10)
}
 0x187   : > { %s21354_s4 = scalar_lea.vmem %s1068_s15, 12288  ;;  %p21362_p4 = scmp.lt.s32.totalorder %s1068_s15, %s1068_s15 }
 0x188   : > { %p21355_p1 = scmp.ne.s32.totalorder %s1068_s15, %s21354_s4  ;;  %p21363_p7 = scmp.lt.s32.totalorder %s21354_s4, %s21354_s4 }
 0x18a   : > { %p21357_p2 = pnand %p21355_p1, %p21810_p0  ;;  %p21364_p8 = por %p21363_p7, %p21362_p4 }
 0x18c   : > { %p21358_p3 = pneg %p21357_p2 }
 0x18e   : > { %p21365_p11 = pnand %p21364_p8, %p21358_p3 }
 0x190   : > { %21368 = shalt.err (!%p21365_p11)
}
 0x191   : > { %s23959_s3 = sld [smem:[#allocation56_spill]] }
 0x192   : > { %18631 = dma.hbm_to_vmem [thread:$0]  (!%p21798_p12), %s21697_s29, 12288, %s1068_s15, [#allocation21], %s23958_s7, %s23958_s7, %s23957_s16  }
 0x197   : > { %s21369_s8 = scalar_lea.hbm %s23959_s3, 12288 }
 0x198   : > { %p21370_p13 = scmp.ne.s32.totalorder %s23959_s3, %s21369_s8  ;;  %p21376_p9 = scmp.lt.u32.totalorder %s21369_s8, %s23959_s3 }
 0x19a   : > { %p21372_p6 = pnand %p21370_p13, %p21810_p0 }
 0x19c   : > { %p21373_p5 = pneg %p21372_p6 }
 0x19e   : > { %p21378_p10 = pnand %p21376_p9, %p21373_p5 }
 0x1a0   : > { %21381 = shalt.err (!%p21378_p10)
}
 0x1a1   : > { %s21382_s26 = scalar_lea.vmem %s1100_s22, 12288  ;;  %p21390_p4 = scmp.lt.s32.totalorder %s1100_s22, %s1100_s22 }
 0x1a2   : > { %p21383_p1 = scmp.ne.s32.totalorder %s1100_s22, %s21382_s26  ;;  %p21391_p7 = scmp.lt.s32.totalorder %s21382_s26, %s21382_s26 }
 0x1a4   : > { %p21385_p2 = pnand %p21383_p1, %p21810_p0  ;;  %p21392_p8 = por %p21391_p7, %p21390_p4 }
 0x1a6   : > { %p21386_p3 = pneg %p21385_p2 }
 0x1a8   : > { %p21393_p11 = pnand %p21392_p8, %p21386_p3 }
 0x1aa   : > { %21396 = shalt.err (!%p21393_p11)
}
 0x1ab   : > { %18637 = dma.hbm_to_vmem [thread:$0]  (!%p21798_p12), %s23959_s3, 12288, %s1100_s22, [#allocation24], %s23958_s7, %s23958_s7, %s23957_s16  }
 0x1ac   : > { %p23960_p13 = scmp.ne.s32.totalorder %s23954_s18, 0 }
 0x1ae   : > { %1132 = sbr.rel (%p23960_p13) target bundleno = 6334 (0x18be), region = 160 }
 0x1b5   : > { %p23961_p6 = scmp.eq.s32.totalorder %s21760_s0, 0 }
 0x1b7   : > { %21442 = dma.done.wait (%p23961_p6), [#allocation3], 12288   ;;  %p23962_p0 = pmov %p23961_p6 }
 0x1b9   : > { %21444 = vsyncadd (%p23962_p0), [#allocation3], 4294955008  ;;  %p23963_p5 = pmov %p23962_p0 }
 0x1ba   : > { %p23964_p9 = pmov %p23962_p0 }
 0x1bb   : > { %21446 = dma.done.wait (%p23963_p5), [#allocation6], 24576  }
 0x1bc   : > { %21448 = vsyncadd (%p23964_p9), [#allocation6], 4294942720  ;;  %p23965_p10 = pmov %p23962_p0 }
 0x1bd   : > { %p23966_p12 = pmov %p23962_p0 }
 0x1be   : > { %21450 = dma.done.wait (%p23965_p10), [#allocation9], 2064  }
 0x1bf   : > { %21452 = vsyncadd (%p23966_p12), [#allocation9], 4294965232  ;;  %p23967_p1 = pmov %p23962_p0 }
 0x1c0   : > { %p23968_p2 = pmov %p23962_p0 }
 0x1c1   : > { %21454 = dma.done.wait (%p23967_p1), [#allocation12], 8208  }
 0x1c2   : > { %21456 = vsyncadd (%p23968_p2), [#allocation12], 4294959088  ;;  %p23969_p3 = pmov %p23962_p0 }
 0x1c3   : > { %p23970_p4 = pmov %p23962_p0 }
 0x1c4   : > { %21458 = dma.done.wait (%p23969_p3), [#allocation15], 32768  }
 0x1c5   : > { %21460 = vsyncadd (%p23970_p4), [#allocation15], 4294934528  ;;  %p23971_p7 = pmov %p23962_p0 }
 0x1c6   : > { %p23972_p8 = pmov %p23962_p0 }
 0x1c7   : > { %21462 = dma.done.wait (%p23971_p7), [#allocation18], 16400  }
 0x1c8   : > { %21464 = vsyncadd (%p23972_p8), [#allocation18], 4294950896  ;;  %p23973_p11 = pmov %p23962_p0 }
 0x1c9   : > { %p23974_p13 = pmov %p23962_p0 }
 0x1ca   : > { %21466 = dma.done.wait (%p23973_p11), [#allocation21], 24576  }
 0x1cb   : > { %21468 = vsyncadd (%p23974_p13), [#allocation21], 4294942720  ;;  %p23975_p6 = pmov %p23962_p0 }
 0x1cd   : > { %21470 = dma.done.wait (%p23975_p6), [#allocation24], 24576  }
 0x1ce   : > { %21472 = vsyncadd (%p23962_p0), [#allocation24], 4294942720  ;;  %s23976_s18 = sld [smem:[#allocation36_spill]]  ;;  %p1276_p5 = scmp.lt.s32.totalorder %s21760_s0, 1  ;;  %v1290_v0 = vlaneseq  ;;  %v23916_v1 = vmov 0   ;;  %v23914_v19 = vmov 0.0  }
 0x1cf   : > { %1467 = vmatprep.mubr.bf16.mxu1 %v23916_v1  ;;  %1394 = vmatprep.mubr.bf16.mxu0 %v23916_v1  ;;  %vm1355_vm4 = vcmask 523264   ;;  %s21549_s7 = smov 64   ;;  %s23977_s28 = sld [smem:[#allocation37_spill]] }
 0x1d0   : > { %s1277_s10 = scalar_select %p1276_p5, %s21760_s0, 1  ;;  %v22042_v2 = vshrl.u32 %v1290_v0, 7  ;;  %v22055_v8 = vand.u32 127, %v1290_v0  ;;  %v18777_v0 = vld [vmem:[#allocation2] ss:$8 sps:$4 sm:$0xff]  }
 0x1d1   : > { %s23978_s15 = sld [smem:[#allocation38_spill]]  ;;  %s23979_s11 = sld [smem:[#allocation39_spill]] }
 0x1d2   : > { %s17991_s1 = sshll.u32 %s1277_s10, 6  ;;  %v22046_v3 = vadd.s32 8, %v22042_v2  ;;  %v1297_v9 = vmul.u32 2, %v22042_v2  ;;  %v22067_v15 = vadd.s32 16, %v22042_v2  ;;  %v22070_v16 = vadd.s32 24, %v22042_v2  ;;  %s23980_s22 = sld [smem:[#allocation40_spill]] }
 0x1d3   : > { %s23982_s4 = sld [smem:[#allocation41_spill]]  ;;  %s23987_s8 = sld [smem:[#allocation43_spill]] }
 0x1d4   : > { %s1280_s16 = scalar_lea.vmem %s23976_s18, %s17991_s1  ;;  %v1298_v10 = vmul.u32 2, %v22046_v3  ;;  %v16366_v13 = vadd.s32 4294967295, %v1297_v9  ;;  %vm1419_vm0 = vcmp.eq.s32.totalorder %v22055_v8, %v1297_v9  ;;  %v1299_v21 = vmul.u32 2, %v22067_v15  ;;  %s23988_s26 = sld [smem:[#allocation45_spill]] }
 0x1d5   : > { %v18765_v4 = vld [vmem:[%s1280_s16 + $0x4] ss:$8 sps:$4 sm:$0xff]   ;;  %v22048_v5 = vld [vmem:[%s1280_s16] ss:$8 sps:$4 sm:$0xff]   ;;  %v22050_v6 = vld [vmem:[%s1280_s16 + $0x14] ss:$8 sps:$4 sm:$0xff]  }
 0x1d6   : > { %1435 = vmatprep.subr.bf16.mxu1 %v18765_v4  ;;  %1362 = vmatprep.subr.bf16.mxu0 %v18765_v4  ;;  %v22053_v7 = vld [vmem:[%s1280_s16 + $0x10] ss:$8 sps:$4 sm:$0xff]   ;;  %v22061_v11 = vld [vmem:[%s1280_s16 + $0x24] ss:$8 sps:$4 sm:$0xff]   ;;  %v22064_v12 = vld [vmem:[%s1280_s16 + $0x20] ss:$8 sps:$4 sm:$0xff]   ;;  %vm1420_vm1 = vcmp.eq.s32.totalorder %v22055_v8, %v1298_v10  ;;  %vm1305_vm2 = vcmp.eq.s32.totalorder %v22055_v8, %v16366_v13  ;;  %vm1421_vm5 = vcmp.eq.s32.totalorder %v22055_v8, %v1299_v21 }
 0x1d7   : > { %1436 = vmatpush1.bf16.msra.mxu1 %v22048_v5  ;;  %1363 = vmatpush1.bf16.msra.mxu0 %v22048_v5  ;;  %v16367_v14 = vadd.s32 4294967295, %v1298_v10  ;;  %v22076_v17 = vld [vmem:[%s1280_s16 + $0x34] ss:$8 sps:$4 sm:$0xff]   ;;  %v22082_v18 = vld [vmem:[%s1280_s16 + $0x30] ss:$8 sps:$4 sm:$0xff]   ;;  %v22085_v20 = vsel %vm1419_vm0, 1.0, %v23914_v19 }
 0x1d8   : > { %1437 = vmatprep.subr.bf16.mxu1 %v22050_v6  ;;  %1364 = vmatprep.subr.bf16.mxu0 %v22050_v6  ;;  %v1300_v22 = vmul.u32 2, %v22070_v16  ;;  %v1424_v23 = vsel %vm1420_vm1, 1.0, %v23914_v19  ;;  %v22093_v24 = vsel %vm1305_vm2, 1.0, %v23914_v19  ;;  %v16368_v26 = vadd.s32 4294967295, %v1299_v21  ;;  %v18789_v13 = vld [vmem:[#allocation2 + $0x40] ss:$8 sps:$4 sm:$0xff]   ;;  %s23981_s2 = smov %s23980_s22 }
 0x1d9   : > { %vm1306_vm3 = vcmp.eq.s32.totalorder %v22055_v8, %v16367_v14  ;;  %v22099_v28 = vpack.c.bf16 %v1424_v23, %v22085_v20  ;;  %v1573_v30 = vadd.s32 3, %v1297_v9  ;;  %v1574_v31 = vadd.s32 3, %v1298_v10  ;;  %v18794_v14 = vld [vmem:[#allocation2 + $0x54] ss:$8 sps:$4 sm:$0xff]   ;;  %v18798_v23 = vld [vmem:[#allocation2 + $0x70] ss:$8 sps:$4 sm:$0xff]  }
 0x1da   : > { %v1310_v25 = vsel %vm1306_vm3, 1.0, %v23914_v19  ;;  %v16369_v27 = vadd.s32 4294967295, %v1300_v22  ;;  %vm1422_vm6 = vcmp.eq.s32.totalorder %v22055_v8, %v1300_v22  ;;  %vm1307_vm7 = vcmp.eq.s32.totalorder %v22055_v8, %v16368_v26  ;;  %v18801_v26 = vld [vmem:[#allocation2 + $0x80] ss:$8 sps:$4 sm:$0xff]   ;;  %s23989_s18 = smov %s23988_s26  ;;  %s23990_s10 = sld [smem:[#allocation44_spill]] }
 0x1db   : > { %1438 = vmatpush1.bf16.msra.mxu1 %v22053_v7  ;;  %1365 = vmatpush1.bf16.msra.mxu0 %v22053_v7  ;;  %v22102_v29 = vpack.c.bf16 %v1310_v25, %v22093_v24  ;;  %v1492_v32 = vadd.s32 2, %v1297_v9  ;;  %v1493_v33 = vadd.s32 2, %v1298_v10  ;;  %v1425_v34 = vsel %vm1421_vm5, 1.0, %v23914_v19  ;;  %v18785_v9 = vld [vmem:[#allocation2 + $0x24] ss:$8 sps:$4 sm:$0xff]   ;;  %s23991_s1 = sld [smem:[#allocation46_spill]] }
 0x1dc   : > { %1439 = vmatprep.subr.bf16.mxu1 %v22061_v11  ;;  %1366 = vmatprep.subr.bf16.mxu0 %v22061_v11  ;;  %vm1308_vm8 = vcmp.eq.s32.totalorder %v22055_v8, %v16369_v27  ;;  %v1426_v35 = vsel %vm1422_vm6, 1.0, %v23914_v19  ;;  %v1311_v36 = vsel %vm1307_vm7, 1.0, %v23914_v19  ;;  %v16388_v38 = vadd.s32 4294967295, %v1573_v30  ;;  %v18788_v10 = vld [vmem:[#allocation2 + $0x34] ss:$8 sps:$4 sm:$0xff]   ;;  %s23996_s16 = sld [smem:[#allocation55_spill]] }
 0x1dd   : > { %v1312_v37 = vsel %vm1308_vm8, 1.0, %v23914_v19  ;;  %v16389_v39 = vadd.s32 4294967295, %v1574_v31  ;;  %v16382_v40 = vadd.s32 4294967295, %v1492_v32  ;;  %v16383_v41 = vadd.s32 4294967295, %v1493_v33  ;;  %v18803_v25 = vld [vmem:[#allocation2 + $0x84] ss:$8 sps:$4 sm:$0xff]  }
 0x1de   : > { %v1428_v42 = vpack.c.bf16 %v1426_v35, %v1425_v34  ;;  %v1314_v43 = vpack.c.bf16 %v1312_v37, %v1311_v36  ;;  %v1575_v44 = vadd.s32 3, %v1299_v21  ;;  %vm1581_vm9 = vcmp.eq.s32.totalorder %v22055_v8, %v16388_v38  ;;  %v18806_v27 = vld [vmem:[#allocation2 + $0x94] ss:$8 sps:$4 sm:$0xff]   ;;  %v18804_v30 = vld [vmem:[#allocation2 + $0x90] ss:$8 sps:$4 sm:$0xff]  }
 0x1df   : > { %1440 = vmatpush1.bf16.msra.mxu1 %v22064_v12  ;;  %1367 = vmatpush1.bf16.msra.mxu0 %v22064_v12  ;;  %vm1582_vm10 = vcmp.eq.s32.totalorder %v22055_v8, %v16389_v39  ;;  %v1576_v45 = vadd.s32 3, %v1300_v22  ;;  %vm1500_vm11 = vcmp.eq.s32.totalorder %v22055_v8, %v16382_v40  ;;  %vm1501_vm12 = vcmp.eq.s32.totalorder %v22055_v8, %v16383_v41  ;;  %v18809_v31 = vld [vmem:[#allocation2 + $0xa4] ss:$8 sps:$4 sm:$0xff]   ;;  %v18807_v32 = vld [vmem:[#allocation2 + $0xa0] ss:$8 sps:$4 sm:$0xff]  }
 0x1e0   : > { %1441 = vmatprep.subr.bf16.mxu1 %v22076_v17  ;;  %1368 = vmatprep.subr.bf16.mxu0 %v22076_v17  ;;  %v1494_v46 = vadd.s32 2, %v1299_v21  ;;  %v1495_v47 = vadd.s32 2, %v1300_v22  ;;  %v22137_v48 = vsel %vm1581_vm9, 1.0, %v23914_v19  ;;  %v1586_v49 = vsel %vm1582_vm10, 1.0, %v23914_v19  ;;  %v18795_v21 = vld [vmem:[#allocation2 + $0x60] ss:$8 sps:$4 sm:$0xff]   ;;  %vm16996_vm10 = vmneg %vm1355_vm4 }
 0x1e1   : > { %v16390_v50 = vadd.s32 4294967295, %v1575_v44  ;;  %v16391_v51 = vadd.s32 4294967295, %v1576_v45  ;;  %v22143_v52 = vsel %vm1500_vm11, 1.0, %v23914_v19  ;;  %v1505_v53 = vsel %vm1501_vm12, 1.0, %v23914_v19  ;;  %v18800_v22 = vld [vmem:[#allocation2 + $0x74] ss:$8 sps:$4 sm:$0xff]  }
 0x1e2   : > { %v16384_v54 = vadd.s32 4294967295, %v1494_v46  ;;  %v16385_v55 = vadd.s32 4294967295, %v1495_v47  ;;  %v22149_v56 = vpack.c.bf16 %v1586_v49, %v22137_v48  ;;  %v22153_v57 = vpack.c.bf16 %v1505_v53, %v22143_v52  ;;  %v18812_v33 = vld [vmem:[#allocation2 + $0xb4] ss:$8 sps:$4 sm:$0xff]   ;;  %v18810_v34 = vld [vmem:[#allocation2 + $0xb0] ss:$8 sps:$4 sm:$0xff]  }
 0x1e3   : > { %1442 = vmatpush1.bf16.msra.mxu1 %v22082_v18  ;;  %1369 = vmatpush1.bf16.msra.mxu0 %v22082_v18  ;;  %vm1583_vm13 = vcmp.eq.s32.totalorder %v22055_v8, %v16390_v50  ;;  %vm1584_vm14 = vcmp.eq.s32.totalorder %v22055_v8, %v16391_v51  ;;  %v18815_v35 = vld [vmem:[#allocation2 + $0xc4] ss:$8 sps:$4 sm:$0xff]   ;;  %v18813_v36 = vld [vmem:[#allocation2 + $0xc0] ss:$8 sps:$4 sm:$0xff]   ;;  %v18818_v37 = vld [vmem:[#allocation2 + $0xd4] ss:$8 sps:$4 sm:$0xff]  }
 0x1e4   : > { %1597 = vmatprep.subr.bf16.mxu1 %v18765_v4  ;;  %1516 = vmatprep.subr.bf16.mxu0 %v18765_v4  ;;  %vm1502_vm15 = vcmp.eq.s32.totalorder %v22055_v8, %v16384_v54  ;;  %vm1503_vm0 = vcmp.eq.s32.totalorder %v22055_v8, %v16385_v55  ;;  %v1587_v58 = vsel %vm1583_vm13, 1.0, %v23914_v19  ;;  %v1588_v59 = vsel %vm1584_vm14, 1.0, %v23914_v19  ;;  %v18779_v4 = vld [vmem:[#allocation2 + $0x4] ss:$8 sps:$4 sm:$0xff]   ;;  %v18816_v38 = vld [vmem:[#allocation2 + $0xd0] ss:$8 sps:$4 sm:$0xff]  }
 0x1e5   : > { %v1506_v60 = vsel %vm1502_vm15, 1.0, %v23914_v19  ;;  %v1507_v61 = vsel %vm1503_vm0, 1.0, %v23914_v19  ;;  %v1590_v62 = vpack.c.bf16 %v1588_v59, %v1587_v58  ;;  %v18821_v39 = vld [vmem:[#allocation2 + $0xe4] ss:$8 sps:$4 sm:$0xff]   ;;  %v18819_v40 = vld [vmem:[#allocation2 + $0xe0] ss:$8 sps:$4 sm:$0xff]   ;;  %vm9722_vm15 = vcmp.eq.s32.totalorder %v22055_v8, %v22042_v2 }
 0x1e6   : > { %16380 = vmatmul.mubr.msk.bf16.vlgmr.msra.gmra.mrb[0].mxu1 %vm1355_vm4, %v22099_v28  ;;  %16378 = vmatmul.mubr.msk.bf16.vlgmr.msra.gmra.mrb[0].mxu0 %vm1355_vm4, %v22102_v29  ;;  %v1509_v63 = vpack.c.bf16 %v1507_v61, %v1506_v60  ;;  %v18824_v41 = vld [vmem:[#allocation2 + $0xf4] ss:$8 sps:$4 sm:$0xff]   ;;  %vm2462_vm1 = vcmask 261120   ;;  %vm3610_vm2 = vcmask 130048   ;;  %vm4758_vm3 = vcmask 1040384  }
 0x1e7   : > { %1598 = vmatpush1.bf16.msra.mxu1 %v22048_v5  ;;  %1477 = vmatprep.mubr.bf16.mxu1 %v23916_v1  ;;  %vm4759_vm5 = vsmask.f32 256  ;;  %vm4772_vm7 = vcmask 1041408   ;;  %vm4773_vm8 = vsmask.f32 1280  ;;  %vm21550_vm11 = vmmov 0  }
 0x1e8   : > { %1599 = vmatprep.subr.bf16.mxu1 %v22050_v6  ;;  %1517 = vmatpush1.bf16.msra.mxu0 %v22048_v5  ;;  %v18780_v5 = vld [vmem:[#allocation2 + $0x10] ss:$8 sps:$4 sm:$0xff]   ;;  %vm22630_vm6 = vmand %vm4758_vm3, %vm4759_vm5  ;;  %vm8617_vm12 = vcmask 1043456   ;;  %vm9670_vm14 = vcmask 64512   ;;  %vm8605_vm5 = vcmask 1042432  }
 0x1e9   : > { %1404 = vmatprep.mubr.bf16.mxu0 %v23916_v1  ;;  %1518 = vmatprep.subr.bf16.mxu0 %v22050_v6  ;;  %v18782_v6 = vld [vmem:[#allocation2 + $0x14] ss:$8 sps:$4 sm:$0xff]   ;;  %vm22639_vm9 = vmand %vm4772_vm7, %vm4773_vm8  ;;  %vm8606_vm8 = vsmask.f32 2304 }
 0x1eb   : > { %1600 = vmatpush1.bf16.msra.mxu1 %v22053_v7 }
 0x1ec   : > { %1601 = vmatprep.subr.bf16.mxu1 %v22061_v11  ;;  %1519 = vmatpush1.bf16.msra.mxu0 %v22053_v7  ;;  %v18783_v7 = vld [vmem:[#allocation2 + $0x20] ss:$8 sps:$4 sm:$0xff]  }
 0x1ed   : > { %1520 = vmatprep.subr.bf16.mxu0 %v22061_v11  ;;  %v18786_v11 = vld [vmem:[#allocation2 + $0x30] ss:$8 sps:$4 sm:$0xff]  }
 0x1ee   : > { %16381 = vmatmul.mubr.msk.bf16.gmra.mrb[4].mxu1 %vm1355_vm4, %v1428_v42  ;;  %16379 = vmatmul.mubr.msk.bf16.gmra.mrb[4].mxu0 %vm1355_vm4, %v1314_v43  ;;  %v18822_v42 = vld [vmem:[#allocation2 + $0xf0] ss:$8 sps:$4 sm:$0xff]   ;;  %v18827_v43 = vld [vmem:[#allocation2 + $0x104] ss:$8 sps:$4 sm:$0xff]  }
 0x1ef   : > { %1602 = vmatpush1.bf16.msra.mxu1 %v22064_v12  ;;  %1629 = vmatprep.mubr.bf16.mxu1 %v23916_v1 }
 0x1f0   : > { %1603 = vmatprep.subr.bf16.mxu1 %v22076_v17  ;;  %1521 = vmatpush1.bf16.msra.mxu0 %v22064_v12  ;;  %v18791_v12 = vld [vmem:[#allocation2 + $0x44] ss:$8 sps:$4 sm:$0xff]  }
 0x1f1   : > { %1522 = vmatprep.subr.bf16.mxu0 %v22076_v17  ;;  %1548 = vmatprep.mubr.bf16.mxu0 %v23916_v1  ;;  %v18792_v17 = vld [vmem:[#allocation2 + $0x50] ss:$8 sps:$4 sm:$0xff]  }
 0x1f3   : > { %1604 = vmatpush1.bf16.msra.mxu1 %v22082_v18 }
 0x1f4   : > { %1523 = vmatpush1.bf16.msra.mxu0 %v22082_v18  ;;  %v18797_v18 = vld [vmem:[#allocation2 + $0x64] ss:$8 sps:$4 sm:$0xff]  }
 0x1f5   : > { %2291 = vmatprep.subr.bf16.mxu0 %v18779_v4 }
 0x1f6   : > { %16392 = vmatmul.mubr.msk.bf16.vlgmr.msra.gmra.mrb[8].mxu1 %vm1355_vm4, %v22149_v56 }
 0x1f7   : > { %1639 = vmatprep.mubr.bf16.mxu1 %v23916_v1  ;;  %16386 = vmatmul.mubr.msk.bf16.vlgmr.msra.gmra.mrb[8].mxu0 %vm1355_vm4, %v22153_v57 }
 0x1f8   : > { %1558 = vmatprep.mubr.bf16.mxu0 %v23916_v1  ;;  %2292 = vmatpush1.bf16.msra.mxu0 %v18777_v0 }
 0x1f9   : > { %2293 = vmatprep.subr.bf16.mxu0 %v18782_v6 }
 0x1fc   : > { %2294 = vmatpush1.bf16.msra.mxu0 %v18780_v5 }
 0x1fd   : > { %2295 = vmatprep.subr.bf16.mxu0 %v18785_v9 }
 0x1fe   : > { %16393 = vmatmul.mubr.msk.bf16.gmra.mrb[12].mxu1 %vm1355_vm4, %v1590_v62 }
 0x1ff   : > { %16387 = vmatmul.mubr.msk.bf16.gmra.mrb[12].mxu0 %vm1355_vm4, %v1509_v63  ;;  %2497 = vmatprep.mubr.bf16.mxu1 %v23916_v1 }
 0x200   : > { %2296 = vmatpush1.bf16.msra.mxu0 %v18783_v7 }
 0x201   : > { %2297 = vmatprep.subr.bf16.mxu0 %v18788_v10 }
 0x204   : > { %2298 = vmatpush1.bf16.msra.mxu0 %v18786_v11 }
 0x205   : > { %2299 = vmatprep.subr.bf16.mxu0 %v18791_v12 }
 0x208   : > { %2300 = vmatpush1.bf16.msra.mxu0 %v18789_v13 }
 0x209   : > { %2301 = vmatprep.subr.bf16.mxu0 %v18794_v14 }
 0x20c   : > { %2302 = vmatpush1.bf16.msra.mxu0 %v18792_v17 }
 0x20d   : > { %2303 = vmatprep.subr.bf16.mxu0 %v18797_v18 }
 0x210   : > { %2304 = vmatpush1.bf16.msra.mxu0 %v18795_v21 }
 0x211   : > { %2305 = vmatprep.subr.bf16.mxu0 %v18800_v22 }
 0x214   : > { %2306 = vmatpush1.bf16.msra.mxu0 %v18798_v23 }
 0x215   : > { %2307 = vmatprep.subr.bf16.mxu0 %v18803_v25 }
 0x218   : > { %2308 = vmatpush1.bf16.msra.mxu0 %v18801_v26 }
 0x219   : > { %2309 = vmatprep.subr.bf16.mxu0 %v18806_v27 }
 0x21c   : > { %2310 = vmatpush1.bf16.msra.mxu0 %v18804_v30 }
 0x21d   : > { %2311 = vmatprep.subr.bf16.mxu0 %v18809_v31 }
 0x220   : > { %2312 = vmatpush1.bf16.msra.mxu0 %v18807_v32 }
 0x221   : > { %2313 = vmatprep.subr.bf16.mxu0 %v18812_v33 }
 0x224   : > { %2314 = vmatpush1.bf16.msra.mxu0 %v18810_v34 }
 0x225   : > { %2315 = vmatprep.subr.bf16.mxu0 %v18815_v35 }
 0x228   : > { %2316 = vmatpush1.bf16.msra.mxu0 %v18813_v36 }
 0x229   : > { %2317 = vmatprep.subr.bf16.mxu0 %v18818_v37 }
 0x22c   : > { %2318 = vmatpush1.bf16.msra.mxu0 %v18816_v38 }
 0x22d   : > { %2319 = vmatprep.subr.bf16.mxu0 %v18821_v39 }
 0x230   : > { %2320 = vmatpush1.bf16.msra.mxu0 %v18819_v40 }
 0x231   : > { %2321 = vmatprep.subr.bf16.mxu0 %v18824_v41 }
 0x234   : > { %2322 = vmatpush1.bf16.msra.mxu0 %v18822_v42 }
 0x235   : > { %2344 = vmatprep.subr.bf16.mxu0 %v18827_v43  ;;  %v18825_v43 = vld [vmem:[#allocation2 + $0x100] ss:$8 sps:$4 sm:$0xff]  }
 0x2b9   : > { %v1469_v44 = vpop.f32.mrb[0].mxu1  ;;  %v22173_v45 = vpop.f32.mrb[0].mxu0 }
 0x2ba   : > { %v1471_v46 = vpop.f32.mrb[1].mxu1  ;;  %v1398_v47 = vpop.f32.mrb[1].mxu0 }
 0x2bb   : > { %v1473_v49 = vpop.f32.mrb[2].mxu1  ;;  %v1400_v50 = vpop.f32.mrb[2].mxu0 }
 0x2bc   : > { %v1488_v51 = vpack.c.bf16 %v1473_v49, %v1469_v44  ;;  %v1475_v53 = vpop.f32.mrb[3].mxu1  ;;  %v1415_v54 = vpack.c.bf16 %v1400_v50, %v22173_v45  ;;  %v1402_v55 = vpop.f32.mrb[3].mxu0  ;;  %v18830_v44 = vld [vmem:[#allocation2 + $0x114] ss:$8 sps:$4 sm:$0xff]   ;;  %v18833_v49 = vld [vmem:[#allocation2 + $0x124] ss:$8 sps:$4 sm:$0xff]  }
 0x2bd   : > { %v1489_v58 = vpack.c.bf16 %v1475_v53, %v1471_v46  ;;  %v1416_v59 = vpack.c.bf16 %v1402_v55, %v1398_v47  ;;  %v18828_v47 = vld [vmem:[#allocation2 + $0x110] ss:$8 sps:$4 sm:$0xff]   ;;  %v18831_v50 = vld [vmem:[#allocation2 + $0x120] ss:$8 sps:$4 sm:$0xff]  }
 0x2be   : > { %1658 = vrot.lane.b32.xlu0 %v1488_v51, %s21549_s7  ;;  %v18836_v51 = vld [vmem:[#allocation2 + $0x134] ss:$8 sps:$4 sm:$0xff]  }
 0x2bf   : > { %1660 = vrot.lane.b32.xlu1 %v1489_v58, %s21549_s7  ;;  %v18834_v58 = vld [vmem:[#allocation2 + $0x130] ss:$8 sps:$4 sm:$0xff]  }
 0x2c1   : > { %v1479_v60 = vpop.f32.mrb[4].mxu1  ;;  %v1406_v22 = vpop.f32.mrb[4].mxu0 }
 0x2c2   : > { %v1481_v61 = vpop.f32.mrb[5].mxu1  ;;  %v1408_v23 = vpop.f32.mrb[5].mxu0 }
 0x2c3   : > { %v1483_v62 = vpop.f32.mrb[6].mxu1  ;;  %v1410_v25 = vpop.f32.mrb[6].mxu0 }
 0x2c4   : > { %v1490_v63 = vpack.c.bf16 %v1483_v62, %v1479_v60  ;;  %v1485_v0 = vpop.f32.mrb[7].mxu1  ;;  %v1417_v26 = vpack.c.bf16 %v1410_v25, %v1406_v22  ;;  %v1412_v27 = vpop.f32.mrb[7].mxu0  ;;  %v18839_v60 = vld [vmem:[#allocation2 + $0x144] ss:$8 sps:$4 sm:$0xff]   ;;  %v18872_v25 = vld [vmem:[#allocation2 + $0x1f4] ss:$8 sps:$4 sm:$0xff]  }
 0x2c5   : > { %v1491_v4 = vpack.c.bf16 %v1485_v0, %v1481_v61  ;;  %v1418_v30 = vpack.c.bf16 %v1412_v27, %v1408_v23  ;;  %v18840_v61 = vld [vmem:[#allocation2 + $0x150] ss:$8 sps:$4 sm:$0xff]   ;;  %v18845_v62 = vld [vmem:[#allocation2 + $0x164] ss:$8 sps:$4 sm:$0xff]   ;;  %v18848_v0 = vld [vmem:[#allocation2 + $0x174] ss:$8 sps:$4 sm:$0xff]  }
 0x2c6   : > { %1662 = vrot.lane.b32.xlu0 %v1490_v63, %s21549_s7  ;;  %v18843_v63 = vld [vmem:[#allocation2 + $0x160] ss:$8 sps:$4 sm:$0xff]   ;;  %v18869_v22 = vld [vmem:[#allocation2 + $0x1e4] ss:$8 sps:$4 sm:$0xff]  }
 0x2c7   : > { %1664 = vrot.lane.b32.xlu1 %v1491_v4, %s21549_s7  ;;  %v18846_v4 = vld [vmem:[#allocation2 + $0x170] ss:$8 sps:$4 sm:$0xff]   ;;  %v18867_v23 = vld [vmem:[#allocation2 + $0x1e0] ss:$8 sps:$4 sm:$0xff]   ;;  %v18875_v27 = vld [vmem:[#allocation2 + $0x204] ss:$8 sps:$4 sm:$0xff]  }
 0x2c9   : > { %v1631_v5 = vpop.f32.mrb[8].mxu1 }
 0x2ca   : > { %v1633_v6 = vpop.f32.mrb[9].mxu1  ;;  %v1550_v31 = vpop.f32.mrb[8].mxu0 }
 0x2cb   : > { %v1635_v7 = vpop.f32.mrb[10].mxu1  ;;  %v22186_v32 = vpop.f32.mrb[9].mxu0 }
 0x2cc   : > { %v1650_v9 = vpack.c.bf16 %v1635_v7, %v1631_v5  ;;  %v1637_v10 = vpop.f32.mrb[11].mxu1  ;;  %v1554_v33 = vpop.f32.mrb[10].mxu0  ;;  %v18851_v5 = vld [vmem:[#allocation2 + $0x184] ss:$8 sps:$4 sm:$0xff]   ;;  %v18854_v7 = vld [vmem:[#allocation2 + $0x194] ss:$8 sps:$4 sm:$0xff]  }
 0x2cd   : > { %v1651_v11 = vpack.c.bf16 %v1637_v10, %v1633_v6  ;;  %v1569_v34 = vpack.c.bf16 %v1554_v33, %v1550_v31  ;;  %v22188_v35 = vpop.f32.mrb[11].mxu0  ;;  %v18849_v6 = vld [vmem:[#allocation2 + $0x180] ss:$8 sps:$4 sm:$0xff]   ;;  %v18857_v10 = vld [vmem:[#allocation2 + $0x1a4] ss:$8 sps:$4 sm:$0xff]  }
 0x2ce   : > { %1675 = vrot.lane.b32.xlu0 %v1650_v9, %s21549_s7  ;;  %v1570_v36 = vpack.c.bf16 %v22188_v35, %v22186_v32  ;;  %v18852_v9 = vld [vmem:[#allocation2 + $0x190] ss:$8 sps:$4 sm:$0xff]   ;;  %v18873_v31 = vld [vmem:[#allocation2 + $0x200] ss:$8 sps:$4 sm:$0xff]   ;;  %v18878_v33 = vld [vmem:[#allocation2 + $0x214] ss:$8 sps:$4 sm:$0xff]  }
 0x2cf   : > { %1677 = vrot.lane.b32.xlu1 %v1651_v11, %s21549_s7  ;;  %v18855_v11 = vld [vmem:[#allocation2 + $0x1a0] ss:$8 sps:$4 sm:$0xff]  }
 0x2d1   : > { %v1641_v12 = vpop.f32.mrb[12].mxu1 }
 0x2d2   : > { %v1643_v13 = vpop.f32.mrb[13].mxu1  ;;  %v22192_v37 = vpop.f32.mrb[12].mxu0 }
 0x2d3   : > { %v1645_v14 = vpop.f32.mrb[14].mxu1  ;;  %v22194_v38 = vpop.f32.mrb[13].mxu0 }
 0x2d4   : > { %v1652_v17 = vpack.c.bf16 %v1645_v14, %v1641_v12  ;;  %v1647_v18 = vpop.f32.mrb[15].mxu1  ;;  %v22196_v39 = vpop.f32.mrb[14].mxu0  ;;  %v18860_v12 = vld [vmem:[#allocation2 + $0x1b4] ss:$8 sps:$4 sm:$0xff]   ;;  %v18863_v14 = vld [vmem:[#allocation2 + $0x1c4] ss:$8 sps:$4 sm:$0xff]  }
 0x2d5   : > { %v1653_v21 = vpack.c.bf16 %v1647_v18, %v1643_v13  ;;  %v1571_v40 = vpack.c.bf16 %v22196_v39, %v22192_v37  ;;  %v22200_v41 = vpop.f32.mrb[15].mxu0  ;;  %v18858_v13 = vld [vmem:[#allocation2 + $0x1b0] ss:$8 sps:$4 sm:$0xff]   ;;  %v18866_v18 = vld [vmem:[#allocation2 + $0x1d4] ss:$8 sps:$4 sm:$0xff]  }
 0x2d6   : > { %1679 = vrot.lane.b32.xlu0 %v1652_v17, %s21549_s7  ;;  %v1572_v42 = vpack.c.bf16 %v22200_v41, %v22194_v38  ;;  %v18861_v17 = vld [vmem:[#allocation2 + $0x1c0] ss:$8 sps:$4 sm:$0xff]   ;;  %v18890_v39 = vld [vmem:[#allocation2 + $0x254] ss:$8 sps:$4 sm:$0xff]  }
 0x2d7   : > { %1681 = vrot.lane.b32.xlu1 %v1653_v21, %s21549_s7  ;;  %v18864_v21 = vld [vmem:[#allocation2 + $0x1d0] ss:$8 sps:$4 sm:$0xff]   ;;  %v18885_v37 = vld [vmem:[#allocation2 + $0x240] ss:$8 sps:$4 sm:$0xff]  }
 0x2da   : > { %6845 = vrot.lane.b32.xlu0 %v23916_v1, %s21549_s7 }
 0x330   : > { %v22204_v45 = vpop.permute.xlu0 %1658 }
 0x331   : > { %v1689_v46 = vsel %vm1355_vm4, %v1416_v59, %v22204_v45  ;;  %v18842_v59 = vld [vmem:[#allocation2 + $0x154] ss:$8 sps:$4 sm:$0xff]  }
 0x332   : > { %2323 = vmatprep.mubr.bf16.mxu0 %v1689_v46  ;;  %v18881_v46 = vld [vmem:[#allocation2 + $0x224] ss:$8 sps:$4 sm:$0xff]  }
 0x333   : > { %2324 = vmatmul.mubr.bf16.vlgmr.msra.gmra.mrb[16].mxu0 %v1415_v54  ;;  %v18837_v54 = vld [vmem:[#allocation2 + $0x140] ss:$8 sps:$4 sm:$0xff]  }
 0x334   : > { %2345 = vmatpush1.bf16.msra.mxu0 %v18825_v43 }
 0x335   : > { %2346 = vmatprep.subr.bf16.mxu0 %v18830_v44  ;;  %v18876_v44 = vld [vmem:[#allocation2 + $0x210] ss:$8 sps:$4 sm:$0xff]  }
 0x338   : > { %2347 = vmatpush1.bf16.msra.mxu0 %v18828_v47  ;;  %v22208_v53 = vpop.permute.xlu0 %1662  ;;  %v18879_v47 = vld [vmem:[#allocation2 + $0x220] ss:$8 sps:$4 sm:$0xff]  }
 0x339   : > { %2348 = vmatprep.subr.bf16.mxu0 %v18833_v49  ;;  %v1693_v55 = vsel %vm1355_vm4, %v1418_v30, %v22208_v53  ;;  %v1661_v30 = vpop.permute.xlu1 %1660 }
 0x33a   : > { %2333 = vmatprep.mubr.bf16.mxu0 %v1693_v55 }
 0x33b   : > { %2334 = vmatmul.mubr.bf16.gmra.mrb[20].mxu0 %v1417_v26  ;;  %v18870_v26 = vld [vmem:[#allocation2 + $0x1f0] ss:$8 sps:$4 sm:$0xff]  }
 0x33c   : > { %2349 = vmatpush1.bf16.msra.mxu0 %v18831_v50  ;;  %2376 = vmatprep.mubr.bf16.mxu0 %v1569_v34  ;;  %v1667_v34 = vsel %vm1355_vm4, %v22204_v45, %v1661_v30  ;;  %v18884_v50 = vld [vmem:[#allocation2 + $0x234] ss:$8 sps:$4 sm:$0xff]   ;;  %v22235_v30 = vsub.s32 0, %v22042_v2 }
 0x33d   : > { %2350 = vmatprep.subr.bf16.mxu0 %v18836_v51  ;;  %v1665_v43 = vpop.permute.xlu1 %1664 }
 0x33e   : > { %v1668_v55 = vsel %vm1355_vm4, %v22208_v53, %v1665_v43  ;;  %v18899_v53 = vld [vmem:[#allocation2 + $0x284] ss:$8 sps:$4 sm:$0xff]  }
 0x340   : > { %2351 = vmatpush1.bf16.msra.mxu0 %v18834_v58  ;;  %v22217_v51 = vpop.permute.xlu0 %1675  ;;  %v18882_v58 = vld [vmem:[#allocation2 + $0x230] ss:$8 sps:$4 sm:$0xff]  }
 0x341   : > { %2352 = vmatprep.subr.bf16.mxu0 %v18839_v60  ;;  %v1678_v49 = vpop.permute.xlu1 %1677  ;;  %v18887_v60 = vld [vmem:[#allocation2 + $0x244] ss:$8 sps:$4 sm:$0xff]  }
 0x342   : > { %v1683_v45 = vsel %vm1355_vm4, %v22217_v51, %v1678_v49 }
 0x344   : > { %2353 = vmatpush1.bf16.msra.mxu0 %v18837_v54  ;;  %v18893_v54 = vld [vmem:[#allocation2 + $0x264] ss:$8 sps:$4 sm:$0xff]  }
 0x345   : > { %2354 = vmatprep.subr.bf16.mxu0 %v18842_v59  ;;  %v18891_v59 = vld [vmem:[#allocation2 + $0x260] ss:$8 sps:$4 sm:$0xff]  }
 0x348   : > { %2355 = vmatpush1.bf16.msra.mxu0 %v18840_v61  ;;  %v18896_v61 = vld [vmem:[#allocation2 + $0x274] ss:$8 sps:$4 sm:$0xff]  }
 0x349   : > { %2356 = vmatprep.subr.bf16.mxu0 %v18845_v62  ;;  %v18894_v62 = vld [vmem:[#allocation2 + $0x270] ss:$8 sps:$4 sm:$0xff]  }
 0x34c   : > { %2357 = vmatpush1.bf16.msra.mxu0 %v18843_v63  ;;  %v18897_v63 = vld [vmem:[#allocation2 + $0x280] ss:$8 sps:$4 sm:$0xff]  }
 0x34d   : > { %2358 = vmatprep.subr.bf16.mxu0 %v18848_v0  ;;  %v18902_v0 = vld [vmem:[#allocation2 + $0x294] ss:$8 sps:$4 sm:$0xff]  }
 0x350   : > { %2359 = vmatpush1.bf16.msra.mxu0 %v18846_v4  ;;  %v18900_v4 = vld [vmem:[#allocation2 + $0x290] ss:$8 sps:$4 sm:$0xff]  }
 0x351   : > { %2360 = vmatprep.subr.bf16.mxu0 %v18851_v5  ;;  %v18905_v5 = vld [vmem:[#allocation2 + $0x2a4] ss:$8 sps:$4 sm:$0xff]  }
 0x354   : > { %2361 = vmatpush1.bf16.msra.mxu0 %v18849_v6  ;;  %v18903_v6 = vld [vmem:[#allocation2 + $0x2a0] ss:$8 sps:$4 sm:$0xff]  }
 0x355   : > { %2362 = vmatprep.subr.bf16.mxu0 %v18854_v7  ;;  %v18908_v7 = vld [vmem:[#allocation2 + $0x2b4] ss:$8 sps:$4 sm:$0xff]  }
 0x358   : > { %2363 = vmatpush1.bf16.msra.mxu0 %v18852_v9  ;;  %v18906_v9 = vld [vmem:[#allocation2 + $0x2b0] ss:$8 sps:$4 sm:$0xff]  }
 0x359   : > { %2364 = vmatprep.subr.bf16.mxu0 %v18857_v10  ;;  %v18911_v10 = vld [vmem:[#allocation2 + $0x2c4] ss:$8 sps:$4 sm:$0xff]  }
 0x35c   : > { %2365 = vmatpush1.bf16.msra.mxu0 %v18855_v11  ;;  %v18909_v11 = vld [vmem:[#allocation2 + $0x2c0] ss:$8 sps:$4 sm:$0xff]  }
 0x35d   : > { %2366 = vmatprep.subr.bf16.mxu0 %v18860_v12  ;;  %v18914_v12 = vld [vmem:[#allocation2 + $0x2d4] ss:$8 sps:$4 sm:$0xff]  }
 0x360   : > { %2367 = vmatpush1.bf16.msra.mxu0 %v18858_v13  ;;  %v18912_v13 = vld [vmem:[#allocation2 + $0x2d0] ss:$8 sps:$4 sm:$0xff]  }
 0x361   : > { %2368 = vmatprep.subr.bf16.mxu0 %v18863_v14  ;;  %v18917_v14 = vld [vmem:[#allocation2 + $0x2e4] ss:$8 sps:$4 sm:$0xff]  }
 0x364   : > { %2369 = vmatpush1.bf16.msra.mxu0 %v18861_v17  ;;  %v18915_v17 = vld [vmem:[#allocation2 + $0x2e0] ss:$8 sps:$4 sm:$0xff]  }
 0x365   : > { %2370 = vmatprep.subr.bf16.mxu0 %v18866_v18  ;;  %v18920_v18 = vld [vmem:[#allocation2 + $0x2f4] ss:$8 sps:$4 sm:$0xff]  }
 0x368   : > { %2371 = vmatpush1.bf16.msra.mxu0 %v18864_v21  ;;  %v18918_v21 = vld [vmem:[#allocation2 + $0x2f0] ss:$8 sps:$4 sm:$0xff]  }
 0x369   : > { %2372 = vmatprep.subr.bf16.mxu0 %v18869_v22  ;;  %v1682_v22 = vpop.permute.xlu1 %1681 }
 0x36c   : > { %2373 = vmatpush1.bf16.msra.mxu0 %v18867_v23  ;;  %v1680_v23 = vpop.permute.xlu0 %1679 }
 0x36d   : > { %2374 = vmatprep.subr.bf16.mxu0 %v18872_v25  ;;  %v1684_v25 = vsel %vm1355_vm4, %v1680_v23, %v1682_v22  ;;  %v18942_v22 = vld [vmem:[%s23978_s15 + $0x70] ss:$8 sps:$4 sm:$0xff]  }
 0x370   : > { %2375 = vmatpush1.bf16.msra.mxu0 %v18870_v26  ;;  %v1697_v26 = vsel %vm1355_vm4, %v1570_v36, %v22217_v51 }
 0x371   : > { %2397 = vmatprep.subr.bf16.mxu0 %v18875_v27  ;;  %v1701_v27 = vsel %vm1355_vm4, %v1572_v42, %v1680_v23  ;;  %v18947_v23 = vld [vmem:[%s23978_s15 + $0x84] ss:$8 sps:$4 sm:$0xff]  }
 0x373   : > { %2377 = vmatmul.mubr.bf16.vlgmr.msra.gmra.mrb[16].mxu0 %v1667_v34 }
 0x374   : > { %2398 = vmatpush1.bf16.msra.mxu0 %v18873_v31  ;;  %2386 = vmatprep.mubr.bf16.mxu0 %v1571_v40  ;;  %v18888_v40 = vld [vmem:[#allocation2 + $0x250] ss:$8 sps:$4 sm:$0xff]   ;;  %v1799_v31 = vld [vmem:[%s23977_s28] sm:$0x3]  ;;  %s23998_s28 = sld [smem:[#allocation49_spill]] }
 0x375   : > { %2399 = vmatprep.subr.bf16.mxu0 %v18878_v33  ;;  %v22239_v33 = vsub.s32 1, %v22042_v2  ;;  %v1804_v32 = vrot.slane %v1799_v31, %v22235_v30 }
 0x377   : > { %v1808_v35 = vrot.slane %v1799_v31, %v22239_v33  ;;  %v18953_v31 = vld [vmem:[%s23978_s15 + $0xa4] ss:$8 sps:$4 sm:$0xff]  }
 0x378   : > { %2400 = vmatpush1.bf16.msra.mxu0 %v18876_v44 }
 0x379   : > { %2401 = vmatprep.subr.bf16.mxu0 %v18881_v46 }
 0x37b   : > { %2387 = vmatmul.mubr.bf16.gmra.mrb[20].mxu0 %v1668_v55 }
 0x37c   : > { %2402 = vmatpush1.bf16.msra.mxu0 %v18879_v47  ;;  %2429 = vmatprep.mubr.bf16.mxu0 %v1683_v45 }
 0x37d   : > { %2403 = vmatprep.subr.bf16.mxu0 %v18884_v50 }
 0x380   : > { %2404 = vmatpush1.bf16.msra.mxu0 %v18882_v58 }
 0x381   : > { %2405 = vmatprep.subr.bf16.mxu0 %v18887_v60 }
 0x384   : > { %2406 = vmatpush1.bf16.msra.mxu0 %v18885_v37 }
 0x385   : > { %2407 = vmatprep.subr.bf16.mxu0 %v18890_v39 }
 0x388   : > { %2408 = vmatpush1.bf16.msra.mxu0 %v18888_v40 }
 0x389   : > { %2409 = vmatprep.subr.bf16.mxu0 %v18893_v54 }
 0x38c   : > { %2410 = vmatpush1.bf16.msra.mxu0 %v18891_v59 }
 0x38d   : > { %2411 = vmatprep.subr.bf16.mxu0 %v18896_v61 }
 0x390   : > { %2412 = vmatpush1.bf16.msra.mxu0 %v18894_v62 }
 0x391   : > { %2413 = vmatprep.subr.bf16.mxu0 %v18899_v53 }
 0x394   : > { %2414 = vmatpush1.bf16.msra.mxu0 %v18897_v63 }
 0x395   : > { %2415 = vmatprep.subr.bf16.mxu0 %v18902_v0 }
 0x398   : > { %2416 = vmatpush1.bf16.msra.mxu0 %v18900_v4 }
 0x399   : > { %2417 = vmatprep.subr.bf16.mxu0 %v18905_v5 }
 0x39c   : > { %2418 = vmatpush1.bf16.msra.mxu0 %v18903_v6  ;;  %v18926_v6 = vld [vmem:[%s23978_s15 + $0x14] ss:$8 sps:$4 sm:$0xff]  }
 0x39d   : > { %2419 = vmatprep.subr.bf16.mxu0 %v18908_v7  ;;  %v18929_v7 = vld [vmem:[%s23978_s15 + $0x24] ss:$8 sps:$4 sm:$0xff]  }
 0x3a0   : > { %2420 = vmatpush1.bf16.msra.mxu0 %v18906_v9  ;;  %v18927_v9 = vld [vmem:[%s23978_s15 + $0x20] ss:$8 sps:$4 sm:$0xff]  }
 0x3a1   : > { %2421 = vmatprep.subr.bf16.mxu0 %v18911_v10  ;;  %v18932_v10 = vld [vmem:[%s23978_s15 + $0x34] ss:$8 sps:$4 sm:$0xff]  }
 0x3a4   : > { %2422 = vmatpush1.bf16.msra.mxu0 %v18909_v11  ;;  %v18930_v11 = vld [vmem:[%s23978_s15 + $0x30] ss:$8 sps:$4 sm:$0xff]  }
 0x3a5   : > { %2423 = vmatprep.subr.bf16.mxu0 %v18914_v12  ;;  %v18935_v12 = vld [vmem:[%s23978_s15 + $0x44] ss:$8 sps:$4 sm:$0xff]  }
 0x3a8   : > { %2424 = vmatpush1.bf16.msra.mxu0 %v18912_v13  ;;  %v18938_v13 = vld [vmem:[%s23978_s15 + $0x54] ss:$8 sps:$4 sm:$0xff]  }
 0x3a9   : > { %2425 = vmatprep.subr.bf16.mxu0 %v18917_v14  ;;  %v18936_v14 = vld [vmem:[%s23978_s15 + $0x50] ss:$8 sps:$4 sm:$0xff]  }
 0x3ac   : > { %2426 = vmatpush1.bf16.msra.mxu0 %v18915_v17  ;;  %v18941_v17 = vld [vmem:[%s23978_s15 + $0x64] ss:$8 sps:$4 sm:$0xff]  }
 0x3ad   : > { %2427 = vmatprep.subr.bf16.mxu0 %v18920_v18  ;;  %v18939_v18 = vld [vmem:[%s23978_s15 + $0x60] ss:$8 sps:$4 sm:$0xff]  }
 0x3b0   : > { %2428 = vmatpush1.bf16.msra.mxu0 %v18918_v21  ;;  %v18944_v21 = vld [vmem:[%s23978_s15 + $0x74] ss:$8 sps:$4 sm:$0xff]  }
 0x3b3   : > { %2430 = vmatmul.mubr.bf16.vlgmr.msra.gmra.mrb[16].mxu0 %v1697_v26  ;;  %v18950_v26 = vld [vmem:[%s23978_s15 + $0x94] ss:$8 sps:$4 sm:$0xff]  }
 0x3b4   : > { %2439 = vmatprep.mubr.bf16.mxu0 %v1684_v25  ;;  %v18945_v25 = vld [vmem:[%s23978_s15 + $0x80] ss:$8 sps:$4 sm:$0xff]  }
 0x3bb   : > { %2440 = vmatmul.mubr.bf16.gmra.mrb[20].mxu0 %v1701_v27  ;;  %v18948_v27 = vld [vmem:[%s23978_s15 + $0x90] ss:$8 sps:$4 sm:$0xff]  }
 0x3bc   : > { %3693 = vmatprep.mubr.bf16.mxu0 %v23916_v1 }
 0x486   : > { %v2431_v36 = vpop.f32.mrb[16].mxu0 }
 0x487   : > { %v18358_v34 = vadd.f32 %v2431_v36, %v1804_v32  ;;  %v2433_v43 = vpop.f32.mrb[17].mxu0  ;;  %v18954_v36 = vld [vmem:[%s23978_s15 + $0xb0] ss:$8 sps:$4 sm:$0xff]  }
 0x488   : > { %v18359_v38 = vadd.f32 %v2433_v43, %v1808_v35  ;;  %v2435_v41 = vpop.f32.mrb[18].mxu0  ;;  %v18957_v43 = vld [vmem:[%s23978_s15 + $0xc0] ss:$8 sps:$4 sm:$0xff]  }
 0x489   : > { %v18360_v42 = vadd.f32 %v2435_v41, %v1804_v32  ;;  %v2437_v44 = vpop.f32.mrb[19].mxu0  ;;  %v2450_v47 = vmax.f32 %v18358_v34, 0.0  ;;  %v18959_v34 = vld [vmem:[%s23978_s15 + $0xc4] ss:$8 sps:$4 sm:$0xff]   ;;  %v18960_v41 = vld [vmem:[%s23978_s15 + $0xd0] ss:$8 sps:$4 sm:$0xff]  }
 0x48a   : > { %v18361_v46 = vadd.f32 %v2437_v44, %v1808_v35  ;;  %v2451_v50 = vmax.f32 %v18359_v38, 0.0  ;;  %v18962_v38 = vld [vmem:[%s23978_s15 + $0xd4] ss:$8 sps:$4 sm:$0xff]   ;;  %v18963_v44 = vld [vmem:[%s23978_s15 + $0xe0] ss:$8 sps:$4 sm:$0xff]  }
 0x48b   : > { %v2452_v49 = vmax.f32 %v18360_v42, 0.0  ;;  %v18965_v42 = vld [vmem:[%s23978_s15 + $0xe4] ss:$8 sps:$4 sm:$0xff]  }
 0x48c   : > { %v2453_v51 = vmax.f32 %v18361_v46, 0.0  ;;  %v18968_v46 = vld [vmem:[%s23978_s15 + $0xf4] ss:$8 sps:$4 sm:$0xff]  }
 0x48d   : > { %v22243_v45 = vpack.c.bf16 %v2452_v49, %v2450_v47  ;;  %v18966_v47 = vld [vmem:[%s23978_s15 + $0xf0] ss:$8 sps:$4 sm:$0xff]   ;;  %v18971_v49 = vld [vmem:[%s23978_s15 + $0x104] ss:$8 sps:$4 sm:$0xff]  }
 0x48e   : > { %v22245_v55 = vpack.c.bf16 %v2453_v51, %v2451_v50  ;;  %v2441_v58 = vpop.f32.mrb[20].mxu0 }
 0x48f   : > { %v18362_v60 = vadd.f32 %v2441_v58, %v1804_v32  ;;  %v2443_v37 = vpop.f32.mrb[21].mxu0 }
 0x490   : > { %v18363_v39 = vadd.f32 %v2443_v37, %v1808_v35  ;;  %v2445_v40 = vpop.f32.mrb[22].mxu0  ;;  %2465 = vmatprep.subr.bf16.mxu1 %v22245_v55 }
 0x491   : > { %v18364_v54 = vadd.f32 %v2445_v40, %v1804_v32  ;;  %v2447_v59 = vpop.f32.mrb[23].mxu0  ;;  %2466 = vmatpush1.bf16.msra.mxu1 %v22243_v45  ;;  %v2454_v62 = vmax.f32 %v18362_v60, 0.0  ;;  %v18951_v32 = vld [vmem:[%s23978_s15 + $0xa0] ss:$8 sps:$4 sm:$0xff]  }
 0x492   : > { %v18365_v61 = vadd.f32 %v2447_v59, %v1808_v35  ;;  %v2455_v63 = vmax.f32 %v18363_v39, 0.0  ;;  %v18956_v35 = vld [vmem:[%s23978_s15 + $0xb4] ss:$8 sps:$4 sm:$0xff]   ;;  %v18969_v40 = vld [vmem:[%s23978_s15 + $0x100] ss:$8 sps:$4 sm:$0xff]  }
 0x493   : > { %v2456_v53 = vmax.f32 %v18364_v54, 0.0  ;;  %v18974_v54 = vld [vmem:[%s23978_s15 + $0x114] ss:$8 sps:$4 sm:$0xff]   ;;  %v18972_v59 = vld [vmem:[%s23978_s15 + $0x110] ss:$8 sps:$4 sm:$0xff]  }
 0x494   : > { %v2457_v0 = vmax.f32 %v18365_v61, 0.0 }
 0x495   : > { %v22249_v4 = vpack.c.bf16 %v2456_v53, %v2454_v62  ;;  %v18977_v62 = vld [vmem:[%s23978_s15 + $0x124] ss:$8 sps:$4 sm:$0xff]  }
 0x496   : > { %v22251_v5 = vpack.c.bf16 %v2457_v0, %v2455_v63 }
 0x498   : > { %2467 = vmatprep.subr.bf16.mxu1 %v22251_v5 }
 0x499   : > { %2468 = vmatpush1.bf16.msra.mxu1 %v22249_v4 }
 0x49a   : > { %2512 = vmatprep.subr.bf16.mxu1 %v22245_v55 }
 0x49c   : > { %16490 = vmatmul.mubr.msk.bf16.vlgmr.msra.gmra.mrb[16].mxu1 %vm2462_vm1, %v22102_v29  ;;  %v18921_v29 = vld [vmem:[%s23978_s15] ss:$8 sps:$4 sm:$0xff]  }
 0x49d   : > { %2513 = vmatpush1.bf16.msra.mxu1 %v22243_v45  ;;  %2544 = vmatprep.mubr.bf16.mxu1 %v23916_v1 }
 0x49e   : > { %2514 = vmatprep.subr.bf16.mxu1 %v22251_v5 }
 0x4a1   : > { %2515 = vmatpush1.bf16.msra.mxu1 %v22249_v4 }
 0x4a2   : > { %2559 = vmatprep.subr.bf16.mxu1 %v22245_v55 }
 0x4a4   : > { %16491 = vmatmul.mubr.msk.bf16.vlgmr.msra.gmra.mrb[20].mxu1 %vm2462_vm1, %v22099_v28  ;;  %v18923_v28 = vld [vmem:[%s23978_s15 + $0x4] ss:$8 sps:$4 sm:$0xff]  }
 0x4a5   : > { %2560 = vmatpush1.bf16.msra.mxu1 %v22243_v45  ;;  %2591 = vmatprep.mubr.bf16.mxu1 %v23916_v1 }
 0x4a6   : > { %2561 = vmatprep.subr.bf16.mxu1 %v22251_v5 }
 0x4a9   : > { %2562 = vmatpush1.bf16.msra.mxu1 %v22249_v4 }
 0x4aa   : > { %2606 = vmatprep.subr.bf16.mxu1 %v22245_v55 }
 0x4ac   : > { %16492 = vmatmul.mubr.msk.bf16.vlgmr.msra.gmra.mrb[24].mxu1 %vm2462_vm1, %v22153_v57  ;;  %v18924_v57 = vld [vmem:[%s23978_s15 + $0x10] ss:$8 sps:$4 sm:$0xff]  }
 0x4ad   : > { %2607 = vmatpush1.bf16.msra.mxu1 %v22243_v45  ;;  %2638 = vmatprep.mubr.bf16.mxu1 %v23916_v1 }
 0x4ae   : > { %2608 = vmatprep.subr.bf16.mxu1 %v22251_v5 }
 0x4b1   : > { %2609 = vmatpush1.bf16.msra.mxu1 %v22249_v4 }
 0x4b2   : > { %3431 = vmatprep.subr.bf16.mxu1 %v18923_v28 }
 0x4b4   : > { %16493 = vmatmul.mubr.msk.bf16.vlgmr.msra.gmra.mrb[28].mxu1 %vm2462_vm1, %v22149_v56  ;;  %v18933_v56 = vld [vmem:[%s23978_s15 + $0x40] ss:$8 sps:$4 sm:$0xff]  }
 0x4b5   : > { %3432 = vmatpush1.bf16.msra.mxu1 %v18921_v29  ;;  %v18975_v29 = vld [vmem:[%s23978_s15 + $0x120] ss:$8 sps:$4 sm:$0xff]  }
 0x4b6   : > { %3433 = vmatprep.subr.bf16.mxu1 %v18926_v6 }
 0x4b9   : > { %3434 = vmatpush1.bf16.msra.mxu1 %v18924_v57  ;;  %v18980_v57 = vld [vmem:[%s23978_s15 + $0x134] ss:$8 sps:$4 sm:$0xff]  }
 0x4ba   : > { %3435 = vmatprep.subr.bf16.mxu1 %v18929_v7  ;;  %v18978_v7 = vld [vmem:[%s23978_s15 + $0x130] ss:$8 sps:$4 sm:$0xff]  }
 0x4bd   : > { %3436 = vmatpush1.bf16.msra.mxu1 %v18927_v9 }
 0x4be   : > { %3437 = vmatprep.subr.bf16.mxu1 %v18932_v10  ;;  %v18983_v10 = vld [vmem:[%s23978_s15 + $0x144] ss:$8 sps:$4 sm:$0xff]  }
 0x4c1   : > { %3438 = vmatpush1.bf16.msra.mxu1 %v18930_v11 }
 0x4c2   : > { %3439 = vmatprep.subr.bf16.mxu1 %v18935_v12 }
 0x4c5   : > { %3440 = vmatpush1.bf16.msra.mxu1 %v18933_v56 }
 0x4c6   : > { %3441 = vmatprep.subr.bf16.mxu1 %v18938_v13 }
 0x4c9   : > { %3442 = vmatpush1.bf16.msra.mxu1 %v18936_v14  ;;  %v18981_v14 = vld [vmem:[%s23978_s15 + $0x140] ss:$8 sps:$4 sm:$0xff]  }
 0x4ca   : > { %3443 = vmatprep.subr.bf16.mxu1 %v18941_v17 }
 0x4cd   : > { %3444 = vmatpush1.bf16.msra.mxu1 %v18939_v18  ;;  %v18986_v18 = vld [vmem:[%s23978_s15 + $0x154] ss:$8 sps:$4 sm:$0xff]  }
 0x4ce   : > { %3445 = vmatprep.subr.bf16.mxu1 %v18944_v21  ;;  %v18984_v21 = vld [vmem:[%s23978_s15 + $0x150] ss:$8 sps:$4 sm:$0xff]  }
 0x4d1   : > { %3446 = vmatpush1.bf16.msra.mxu1 %v18942_v22 }
 0x4d2   : > { %3447 = vmatprep.subr.bf16.mxu1 %v18947_v23  ;;  %v18989_v23 = vld [vmem:[%s23978_s15 + $0x164] ss:$8 sps:$4 sm:$0xff]  }
 0x4d5   : > { %3448 = vmatpush1.bf16.msra.mxu1 %v18945_v25 }
 0x4d6   : > { %3449 = vmatprep.subr.bf16.mxu1 %v18950_v26 }
 0x4d9   : > { %3450 = vmatpush1.bf16.msra.mxu1 %v18948_v27 }
 0x4da   : > { %3451 = vmatprep.subr.bf16.mxu1 %v18953_v31 }
 0x4dd   : > { %3452 = vmatpush1.bf16.msra.mxu1 %v18951_v32  ;;  %v18987_v32 = vld [vmem:[%s23978_s15 + $0x160] ss:$8 sps:$4 sm:$0xff]  }
 0x4de   : > { %3453 = vmatprep.subr.bf16.mxu1 %v18956_v35 }
 0x4e1   : > { %3454 = vmatpush1.bf16.msra.mxu1 %v18954_v36  ;;  %v18992_v36 = vld [vmem:[%s23978_s15 + $0x174] ss:$8 sps:$4 sm:$0xff]  }
 0x4e2   : > { %3455 = vmatprep.subr.bf16.mxu1 %v18959_v34  ;;  %v18990_v34 = vld [vmem:[%s23978_s15 + $0x170] ss:$8 sps:$4 sm:$0xff]  }
 0x4e5   : > { %3456 = vmatpush1.bf16.msra.mxu1 %v18957_v43  ;;  %v18995_v43 = vld [vmem:[%s23978_s15 + $0x184] ss:$8 sps:$4 sm:$0xff]  }
 0x4e6   : > { %3457 = vmatprep.subr.bf16.mxu1 %v18962_v38  ;;  %v18993_v38 = vld [vmem:[%s23978_s15 + $0x180] ss:$8 sps:$4 sm:$0xff]  }
 0x4e9   : > { %3458 = vmatpush1.bf16.msra.mxu1 %v18960_v41  ;;  %v18998_v41 = vld [vmem:[%s23978_s15 + $0x194] ss:$8 sps:$4 sm:$0xff]  }
 0x4ea   : > { %3459 = vmatprep.subr.bf16.mxu1 %v18965_v42  ;;  %v18996_v42 = vld [vmem:[%s23978_s15 + $0x190] ss:$8 sps:$4 sm:$0xff]  }
 0x4ed   : > { %3460 = vmatpush1.bf16.msra.mxu1 %v18963_v44  ;;  %v19001_v44 = vld [vmem:[%s23978_s15 + $0x1a4] ss:$8 sps:$4 sm:$0xff]  }
 0x4ee   : > { %3461 = vmatprep.subr.bf16.mxu1 %v18968_v46  ;;  %v18999_v46 = vld [vmem:[%s23978_s15 + $0x1a0] ss:$8 sps:$4 sm:$0xff]  }
 0x4f1   : > { %3462 = vmatpush1.bf16.msra.mxu1 %v18966_v47  ;;  %v19004_v47 = vld [vmem:[%s23978_s15 + $0x1b4] ss:$8 sps:$4 sm:$0xff]  }
 0x4f2   : > { %3474 = vmatprep.subr.bf16.mxu1 %v18971_v49  ;;  %v19002_v49 = vld [vmem:[%s23978_s15 + $0x1b0] ss:$8 sps:$4 sm:$0xff]  }
 0x56f   : > { %v2499_v50 = vpop.f32.mrb[16].mxu1 }
 0x570   : > { %v2501_v51 = vpop.f32.mrb[17].mxu1 }
 0x571   : > { %v2503_v58 = vpop.f32.mrb[18].mxu1 }
 0x572   : > { %v2508_v60 = vpack.c.bf16 %v2503_v58, %v2499_v50  ;;  %v2505_v37 = vpop.f32.mrb[19].mxu1  ;;  %v19007_v50 = vld [vmem:[%s23978_s15 + $0x1c4] ss:$8 sps:$4 sm:$0xff]   ;;  %v19010_v58 = vld [vmem:[%s23978_s15 + $0x1d4] ss:$8 sps:$4 sm:$0xff]  }
 0x573   : > { %v2509_v39 = vpack.c.bf16 %v2505_v37, %v2501_v51  ;;  %v19005_v51 = vld [vmem:[%s23978_s15 + $0x1c0] ss:$8 sps:$4 sm:$0xff]   ;;  %v19013_v37 = vld [vmem:[%s23978_s15 + $0x1e4] ss:$8 sps:$4 sm:$0xff]  }
 0x575   : > { %3463 = vmatprep.mubr.bf16.mxu1 %v2509_v39  ;;  %v19011_v39 = vld [vmem:[%s23978_s15 + $0x1e0] ss:$8 sps:$4 sm:$0xff]  }
 0x576   : > { %3464 = vmatmul.mubr.bf16.vlgmr.msra.gmra.mrb[32].mxu1 %v2508_v60  ;;  %v19008_v60 = vld [vmem:[%s23978_s15 + $0x1d0] ss:$8 sps:$4 sm:$0xff]  }
 0x577   : > { %3475 = vmatpush1.bf16.msra.mxu1 %v18969_v40  ;;  %v22314_v61 = vpop.f32.mrb[20].mxu1  ;;  %v19016_v40 = vld [vmem:[%s23978_s15 + $0x1f4] ss:$8 sps:$4 sm:$0xff]  }
 0x578   : > { %3476 = vmatprep.subr.bf16.mxu1 %v18974_v54  ;;  %v2548_v53 = vpop.f32.mrb[21].mxu1  ;;  %v19014_v54 = vld [vmem:[%s23978_s15 + $0x1f0] ss:$8 sps:$4 sm:$0xff]  }
 0x579   : > { %v22317_v63 = vpop.f32.mrb[22].mxu1 }
 0x57a   : > { %v2555_v0 = vpack.c.bf16 %v22317_v63, %v22314_v61  ;;  %v2552_v28 = vpop.f32.mrb[23].mxu1  ;;  %v19031_v61 = vld [vmem:[%s23978_s15 + $0x244] ss:$8 sps:$4 sm:$0xff]   ;;  %v19029_v63 = vld [vmem:[%s23978_s15 + $0x240] ss:$8 sps:$4 sm:$0xff]  }
 0x57b   : > { %3477 = vmatpush1.bf16.msra.mxu1 %v18972_v59  ;;  %v2556_v6 = vpack.c.bf16 %v2552_v28, %v2548_v53  ;;  %v19019_v59 = vld [vmem:[%s23978_s15 + $0x204] ss:$8 sps:$4 sm:$0xff]   ;;  %v19022_v53 = vld [vmem:[%s23978_s15 + $0x214] ss:$8 sps:$4 sm:$0xff]   ;;  %v19020_v28 = vld [vmem:[%s23978_s15 + $0x210] ss:$8 sps:$4 sm:$0xff]  }
 0x57c   : > { %3478 = vmatprep.subr.bf16.mxu1 %v18977_v62  ;;  %v19017_v62 = vld [vmem:[%s23978_s15 + $0x200] ss:$8 sps:$4 sm:$0xff]  }
 0x57d   : > { %3506 = vmatprep.mubr.bf16.mxu1 %v2556_v6  ;;  %v19023_v6 = vld [vmem:[%s23978_s15 + $0x220] ss:$8 sps:$4 sm:$0xff]  }
 0x57f   : > { %3479 = vmatpush1.bf16.msra.mxu1 %v18975_v29  ;;  %v22324_v9 = vpop.f32.mrb[24].mxu1  ;;  %v19025_v29 = vld [vmem:[%s23978_s15 + $0x224] ss:$8 sps:$4 sm:$0xff]  }
 0x580   : > { %3480 = vmatprep.subr.bf16.mxu1 %v18980_v57  ;;  %v22327_v11 = vpop.f32.mrb[25].mxu1  ;;  %v19028_v57 = vld [vmem:[%s23978_s15 + $0x234] ss:$8 sps:$4 sm:$0xff]  }
 0x581   : > { %v22329_v12 = vpop.f32.mrb[26].mxu1 }
 0x582   : > { %v2602_v56 = vpack.c.bf16 %v22329_v12, %v22324_v9  ;;  %v22333_v13 = vpop.f32.mrb[27].mxu1  ;;  %v19074_v9 = vld [vmem:[%s23978_s15 + $0x330] ss:$8 sps:$4 sm:$0xff]   ;;  %v19079_v12 = vld [vmem:[%s23978_s15 + $0x344] ss:$8 sps:$4 sm:$0xff]  }
 0x583   : > { %3481 = vmatpush1.bf16.msra.mxu1 %v18978_v7  ;;  %v2603_v17 = vpack.c.bf16 %v22333_v13, %v22327_v11  ;;  %v19026_v7 = vld [vmem:[%s23978_s15 + $0x230] ss:$8 sps:$4 sm:$0xff]   ;;  %v19037_v11 = vld [vmem:[%s23978_s15 + $0x264] ss:$8 sps:$4 sm:$0xff]   ;;  %v19035_v13 = vld [vmem:[%s23978_s15 + $0x260] ss:$8 sps:$4 sm:$0xff]  }
 0x584   : > { %3482 = vmatprep.subr.bf16.mxu1 %v18983_v10  ;;  %v19032_v10 = vld [vmem:[%s23978_s15 + $0x250] ss:$8 sps:$4 sm:$0xff]  }
 0x587   : > { %3483 = vmatpush1.bf16.msra.mxu1 %v18981_v14  ;;  %v22340_v22 = vpop.f32.mrb[28].mxu1  ;;  %v19040_v14 = vld [vmem:[%s23978_s15 + $0x274] ss:$8 sps:$4 sm:$0xff]  }
 0x588   : > { %3484 = vmatprep.subr.bf16.mxu1 %v18986_v18  ;;  %v22343_v25 = vpop.f32.mrb[29].mxu1  ;;  %v19043_v18 = vld [vmem:[%s23978_s15 + $0x284] ss:$8 sps:$4 sm:$0xff]  }
 0x589   : > { %v22345_v26 = vpop.f32.mrb[30].mxu1 }
 0x58a   : > { %v2649_v27 = vpack.c.bf16 %v22345_v26, %v22340_v22  ;;  %v22349_v31 = vpop.f32.mrb[31].mxu1 }
 0x58b   : > { %3485 = vmatpush1.bf16.msra.mxu1 %v18984_v21  ;;  %v2650_v35 = vpack.c.bf16 %v22349_v31, %v22343_v25  ;;  %v19041_v21 = vld [vmem:[%s23978_s15 + $0x280] ss:$8 sps:$4 sm:$0xff]   ;;  %v19082_v25 = vld [vmem:[%s23978_s15 + $0x354] ss:$8 sps:$4 sm:$0xff]   ;;  %v19080_v31 = vld [vmem:[%s23978_s15 + $0x350] ss:$8 sps:$4 sm:$0xff]  }
 0x58c   : > { %3486 = vmatprep.subr.bf16.mxu1 %v18989_v23  ;;  %v19046_v23 = vld [vmem:[%s23978_s15 + $0x294] ss:$8 sps:$4 sm:$0xff]  }
 0x58f   : > { %3487 = vmatpush1.bf16.msra.mxu1 %v18987_v32  ;;  %v19044_v32 = vld [vmem:[%s23978_s15 + $0x290] ss:$8 sps:$4 sm:$0xff]  }
 0x590   : > { %3488 = vmatprep.subr.bf16.mxu1 %v18992_v36  ;;  %v19049_v36 = vld [vmem:[%s23978_s15 + $0x2a4] ss:$8 sps:$4 sm:$0xff]  }
 0x593   : > { %3489 = vmatpush1.bf16.msra.mxu1 %v18990_v34  ;;  %v19047_v34 = vld [vmem:[%s23978_s15 + $0x2a0] ss:$8 sps:$4 sm:$0xff]  }
 0x594   : > { %3490 = vmatprep.subr.bf16.mxu1 %v18995_v43  ;;  %v19052_v43 = vld [vmem:[%s23978_s15 + $0x2b4] ss:$8 sps:$4 sm:$0xff]  }
 0x597   : > { %3491 = vmatpush1.bf16.msra.mxu1 %v18993_v38  ;;  %v19050_v38 = vld [vmem:[%s23978_s15 + $0x2b0] ss:$8 sps:$4 sm:$0xff]  }
 0x598   : > { %3492 = vmatprep.subr.bf16.mxu1 %v18998_v41  ;;  %v19055_v41 = vld [vmem:[%s23978_s15 + $0x2c4] ss:$8 sps:$4 sm:$0xff]  }
 0x59b   : > { %3493 = vmatpush1.bf16.msra.mxu1 %v18996_v42  ;;  %v19053_v42 = vld [vmem:[%s23978_s15 + $0x2c0] ss:$8 sps:$4 sm:$0xff]  }
 0x59c   : > { %3494 = vmatprep.subr.bf16.mxu1 %v19001_v44  ;;  %v19058_v44 = vld [vmem:[%s23978_s15 + $0x2d4] ss:$8 sps:$4 sm:$0xff]  }
 0x59f   : > { %3495 = vmatpush1.bf16.msra.mxu1 %v18999_v46  ;;  %v19056_v46 = vld [vmem:[%s23978_s15 + $0x2d0] ss:$8 sps:$4 sm:$0xff]  }
 0x5a0   : > { %3496 = vmatprep.subr.bf16.mxu1 %v19004_v47  ;;  %v19061_v47 = vld [vmem:[%s23978_s15 + $0x2e4] ss:$8 sps:$4 sm:$0xff]  }
 0x5a3   : > { %3497 = vmatpush1.bf16.msra.mxu1 %v19002_v49  ;;  %v19059_v49 = vld [vmem:[%s23978_s15 + $0x2e0] ss:$8 sps:$4 sm:$0xff]  }
 0x5a4   : > { %3498 = vmatprep.subr.bf16.mxu1 %v19007_v50  ;;  %v19064_v50 = vld [vmem:[%s23978_s15 + $0x2f4] ss:$8 sps:$4 sm:$0xff]  }
 0x5a7   : > { %3499 = vmatpush1.bf16.msra.mxu1 %v19005_v51  ;;  %v19062_v51 = vld [vmem:[%s23978_s15 + $0x2f0] ss:$8 sps:$4 sm:$0xff]  }
 0x5a8   : > { %3500 = vmatprep.subr.bf16.mxu1 %v19010_v58  ;;  %v19067_v58 = vld [vmem:[%s23978_s15 + $0x304] ss:$8 sps:$4 sm:$0xff]  }
 0x5ab   : > { %3501 = vmatpush1.bf16.msra.mxu1 %v19008_v60  ;;  %v19065_v60 = vld [vmem:[%s23978_s15 + $0x300] ss:$8 sps:$4 sm:$0xff]  }
 0x5ac   : > { %3502 = vmatprep.subr.bf16.mxu1 %v19013_v37  ;;  %v19070_v37 = vld [vmem:[%s23978_s15 + $0x314] ss:$8 sps:$4 sm:$0xff]  }
 0x5af   : > { %3503 = vmatpush1.bf16.msra.mxu1 %v19011_v39  ;;  %v19068_v39 = vld [vmem:[%s23978_s15 + $0x310] ss:$8 sps:$4 sm:$0xff]  }
 0x5b0   : > { %3504 = vmatprep.subr.bf16.mxu1 %v19016_v40  ;;  %v19073_v40 = vld [vmem:[%s23978_s15 + $0x324] ss:$8 sps:$4 sm:$0xff]  }
 0x5b3   : > { %3505 = vmatpush1.bf16.msra.mxu1 %v19014_v54  ;;  %v19071_v54 = vld [vmem:[%s23978_s15 + $0x320] ss:$8 sps:$4 sm:$0xff]  }
 0x5b4   : > { %3517 = vmatprep.subr.bf16.mxu1 %v19019_v59  ;;  %v19076_v59 = vld [vmem:[%s23978_s15 + $0x334] ss:$8 sps:$4 sm:$0xff]  }
 0x5b6   : > { %3507 = vmatmul.mubr.bf16.vlgmr.msra.gmra.mrb[32].mxu1 %v2555_v0  ;;  %v19034_v0 = vld [vmem:[%s23978_s15 + $0x254] ss:$8 sps:$4 sm:$0xff]  }
 0x5b7   : > { %3518 = vmatpush1.bf16.msra.mxu1 %v19017_v62  ;;  %3549 = vmatprep.mubr.bf16.mxu1 %v2603_v17  ;;  %v19038_v17 = vld [vmem:[%s23978_s15 + $0x270] ss:$8 sps:$4 sm:$0xff]   ;;  %v19083_v62 = vld [vmem:[%s23978_s15 + $0x360] ss:$8 sps:$4 sm:$0xff]  }
 0x5b8   : > { %3519 = vmatprep.subr.bf16.mxu1 %v19022_v53  ;;  %v19088_v53 = vld [vmem:[%s23978_s15 + $0x374] ss:$8 sps:$4 sm:$0xff]  }
 0x5bb   : > { %3520 = vmatpush1.bf16.msra.mxu1 %v19020_v28  ;;  %v19086_v28 = vld [vmem:[%s23978_s15 + $0x370] ss:$8 sps:$4 sm:$0xff]  }
 0x5bc   : > { %3521 = vmatprep.subr.bf16.mxu1 %v19025_v29  ;;  %v19091_v29 = vld [vmem:[%s23978_s15 + $0x384] ss:$8 sps:$4 sm:$0xff]  }
 0x5bf   : > { %3522 = vmatpush1.bf16.msra.mxu1 %v19023_v6  ;;  %v19089_v6 = vld [vmem:[%s23978_s15 + $0x380] ss:$8 sps:$4 sm:$0xff]  }
 0x5c0   : > { %3523 = vmatprep.subr.bf16.mxu1 %v19028_v57  ;;  %v19094_v57 = vld [vmem:[%s23978_s15 + $0x394] ss:$8 sps:$4 sm:$0xff]  }
 0x5c3   : > { %3524 = vmatpush1.bf16.msra.mxu1 %v19026_v7  ;;  %v19092_v7 = vld [vmem:[%s23978_s15 + $0x390] ss:$8 sps:$4 sm:$0xff]  }
 0x5c4   : > { %3525 = vmatprep.subr.bf16.mxu1 %v19031_v61  ;;  %v19097_v61 = vld [vmem:[%s23978_s15 + $0x3a4] ss:$8 sps:$4 sm:$0xff]  }
 0x5c7   : > { %3526 = vmatpush1.bf16.msra.mxu1 %v19029_v63  ;;  %v19095_v63 = vld [vmem:[%s23978_s15 + $0x3a0] ss:$8 sps:$4 sm:$0xff]  }
 0x5c8   : > { %3527 = vmatprep.subr.bf16.mxu1 %v19034_v0  ;;  %v19100_v0 = vld [vmem:[%s23978_s15 + $0x3b4] ss:$8 sps:$4 sm:$0xff]  }
 0x5cb   : > { %3528 = vmatpush1.bf16.msra.mxu1 %v19032_v10  ;;  %v19098_v10 = vld [vmem:[%s23978_s15 + $0x3b0] ss:$8 sps:$4 sm:$0xff]  }
 0x5cc   : > { %3529 = vmatprep.subr.bf16.mxu1 %v19037_v11  ;;  %v19103_v11 = vld [vmem:[%s23978_s15 + $0x3c4] ss:$8 sps:$4 sm:$0xff]  }
 0x5cf   : > { %3530 = vmatpush1.bf16.msra.mxu1 %v19035_v13  ;;  %v19101_v13 = vld [vmem:[%s23978_s15 + $0x3c0] ss:$8 sps:$4 sm:$0xff]  }
 0x5d0   : > { %3531 = vmatprep.subr.bf16.mxu1 %v19040_v14  ;;  %v19106_v14 = vld [vmem:[%s23978_s15 + $0x3d4] ss:$8 sps:$4 sm:$0xff]  }
 0x5d3   : > { %3532 = vmatpush1.bf16.msra.mxu1 %v19038_v17  ;;  %v19104_v17 = vld [vmem:[%s23978_s15 + $0x3d0] ss:$8 sps:$4 sm:$0xff]  }
 0x5d4   : > { %3533 = vmatprep.subr.bf16.mxu1 %v19043_v18  ;;  %v19109_v18 = vld [vmem:[%s23978_s15 + $0x3e4] ss:$8 sps:$4 sm:$0xff]  }
 0x5d7   : > { %3534 = vmatpush1.bf16.msra.mxu1 %v19041_v21  ;;  %v19107_v21 = vld [vmem:[%s23978_s15 + $0x3e0] ss:$8 sps:$4 sm:$0xff]  }
 0x5d8   : > { %3535 = vmatprep.subr.bf16.mxu1 %v19046_v23  ;;  %v19112_v23 = vld [vmem:[%s23978_s15 + $0x3f4] ss:$8 sps:$4 sm:$0xff]  }
 0x5db   : > { %3536 = vmatpush1.bf16.msra.mxu1 %v19044_v32  ;;  %v19110_v32 = vld [vmem:[%s23978_s15 + $0x3f0] ss:$8 sps:$4 sm:$0xff]  }
 0x5dc   : > { %3537 = vmatprep.subr.bf16.mxu1 %v19049_v36  ;;  %v2779_v36 = vld [vmem:[%s23979_s11] sm:$0x3]  ;;  %s23999_s11 = sld [smem:[#allocation54_spill]] }
 0x5df   : > { %3538 = vmatpush1.bf16.msra.mxu1 %v19047_v34  ;;  %v2784_v34 = vrot.slane %v2779_v36, %v22235_v30 }
 0x5e0   : > { %3539 = vmatprep.subr.bf16.mxu1 %v19052_v43  ;;  %v2788_v43 = vrot.slane %v2779_v36, %v22239_v33  ;;  %v19160_v36 = vld [vmem:[%s23981_s2 + $0xf4] ss:$8 sps:$4 sm:$0xff]  }
 0x5e3   : > { %3540 = vmatpush1.bf16.msra.mxu1 %v19050_v38 }
 0x5e4   : > { %3541 = vmatprep.subr.bf16.mxu1 %v19055_v41 }
 0x5e7   : > { %3542 = vmatpush1.bf16.msra.mxu1 %v19053_v42 }
 0x5e8   : > { %3543 = vmatprep.subr.bf16.mxu1 %v19058_v44 }
 0x5eb   : > { %3544 = vmatpush1.bf16.msra.mxu1 %v19056_v46 }
 0x5ec   : > { %3545 = vmatprep.subr.bf16.mxu1 %v19061_v47 }
 0x5ef   : > { %3546 = vmatpush1.bf16.msra.mxu1 %v19059_v49 }
 0x5f0   : > { %3547 = vmatprep.subr.bf16.mxu1 %v19064_v50 }
 0x5f3   : > { %3548 = vmatpush1.bf16.msra.mxu1 %v19062_v51 }
 0x5f4   : > { %3560 = vmatprep.subr.bf16.mxu1 %v19067_v58 }
 0x5f6   : > { %3550 = vmatmul.mubr.bf16.vlgmr.msra.gmra.mrb[32].mxu1 %v2602_v56  ;;  %v19077_v56 = vld [vmem:[%s23978_s15 + $0x340] ss:$8 sps:$4 sm:$0xff]  }
 0x5f7   : > { %3561 = vmatpush1.bf16.msra.mxu1 %v19065_v60  ;;  %3592 = vmatprep.mubr.bf16.mxu1 %v2650_v35  ;;  %v19085_v35 = vld [vmem:[%s23978_s15 + $0x364] ss:$8 sps:$4 sm:$0xff]  }
 0x5f8   : > { %3562 = vmatprep.subr.bf16.mxu1 %v19070_v37  ;;  %v3657_v37 = vpack.c.bf16 %v22085_v20, %v22085_v20  ;;  %v3704_v20 = vpack.c.bf16 %v22143_v52, %v22143_v52  ;;  %v19116_v52 = vld [vmem:[%s23981_s2 + $0x10] ss:$8 sps:$4 sm:$0xff]  }
 0x5fb   : > { %3563 = vmatpush1.bf16.msra.mxu1 %v19068_v39  ;;  %v3609_v39 = vpack.c.bf16 %v22093_v24, %v22093_v24  ;;  %v19115_v24 = vld [vmem:[%s23980_s22 + $0x4] ss:$8 sps:$4 sm:$0xff]   ;;  %s24017_s22 = sld [smem:[#allocation51_spill]] }
 0x5fc   : > { %3564 = vmatprep.subr.bf16.mxu1 %v19073_v40  ;;  %v3751_v40 = vpack.c.bf16 %v22137_v48, %v22137_v48  ;;  %v19122_v48 = vld [vmem:[%s23981_s2 + $0x30] ss:$8 sps:$4 sm:$0xff]  }
 0x5ff   : > { %3565 = vmatpush1.bf16.msra.mxu1 %v19071_v54  ;;  %v19113_v54 = vld [vmem:[%s23981_s2] ss:$8 sps:$4 sm:$0xff]  }
 0x600   : > { %3566 = vmatprep.subr.bf16.mxu1 %v19076_v59  ;;  %v19118_v59 = vld [vmem:[%s23981_s2 + $0x14] ss:$8 sps:$4 sm:$0xff]  }
 0x603   : > { %3567 = vmatpush1.bf16.msra.mxu1 %v19074_v9  ;;  %v19121_v9 = vld [vmem:[%s23981_s2 + $0x24] ss:$8 sps:$4 sm:$0xff]  }
 0x604   : > { %3568 = vmatprep.subr.bf16.mxu1 %v19079_v12  ;;  %v19119_v12 = vld [vmem:[%s23981_s2 + $0x20] ss:$8 sps:$4 sm:$0xff]  }
 0x607   : > { %3569 = vmatpush1.bf16.msra.mxu1 %v19077_v56  ;;  %v19124_v56 = vld [vmem:[%s23981_s2 + $0x34] ss:$8 sps:$4 sm:$0xff]  }
 0x608   : > { %3570 = vmatprep.subr.bf16.mxu1 %v19082_v25  ;;  %v19127_v25 = vld [vmem:[%s23981_s2 + $0x44] ss:$8 sps:$4 sm:$0xff]  }
 0x60b   : > { %3571 = vmatpush1.bf16.msra.mxu1 %v19080_v31  ;;  %v19125_v31 = vld [vmem:[%s23981_s2 + $0x40] ss:$8 sps:$4 sm:$0xff]  }
 0x60c   : > { %3572 = vmatprep.subr.bf16.mxu1 %v19085_v35  ;;  %v19130_v35 = vld [vmem:[%s23981_s2 + $0x54] ss:$8 sps:$4 sm:$0xff]  }
 0x60f   : > { %3573 = vmatpush1.bf16.msra.mxu1 %v19083_v62  ;;  %v19128_v62 = vld [vmem:[%s23981_s2 + $0x50] ss:$8 sps:$4 sm:$0xff]  }
 0x610   : > { %3574 = vmatprep.subr.bf16.mxu1 %v19088_v53  ;;  %v19133_v53 = vld [vmem:[%s23981_s2 + $0x64] ss:$8 sps:$4 sm:$0xff]  }
 0x613   : > { %3575 = vmatpush1.bf16.msra.mxu1 %v19086_v28  ;;  %v19131_v28 = vld [vmem:[%s23981_s2 + $0x60] ss:$8 sps:$4 sm:$0xff]  }
 0x614   : > { %3576 = vmatprep.subr.bf16.mxu1 %v19091_v29  ;;  %v19136_v29 = vld [vmem:[%s23981_s2 + $0x74] ss:$8 sps:$4 sm:$0xff]  }
 0x617   : > { %3577 = vmatpush1.bf16.msra.mxu1 %v19089_v6  ;;  %v19134_v6 = vld [vmem:[%s23981_s2 + $0x70] ss:$8 sps:$4 sm:$0xff]  }
 0x618   : > { %3578 = vmatprep.subr.bf16.mxu1 %v19094_v57  ;;  %v19139_v57 = vld [vmem:[%s23981_s2 + $0x84] ss:$8 sps:$4 sm:$0xff]  }
 0x61b   : > { %3579 = vmatpush1.bf16.msra.mxu1 %v19092_v7  ;;  %v19137_v7 = vld [vmem:[%s23981_s2 + $0x80] ss:$8 sps:$4 sm:$0xff]  }
 0x61c   : > { %3580 = vmatprep.subr.bf16.mxu1 %v19097_v61  ;;  %v19142_v61 = vld [vmem:[%s23981_s2 + $0x94] ss:$8 sps:$4 sm:$0xff]  }
 0x61f   : > { %3581 = vmatpush1.bf16.msra.mxu1 %v19095_v63  ;;  %v19140_v63 = vld [vmem:[%s23981_s2 + $0x90] ss:$8 sps:$4 sm:$0xff]  }
 0x620   : > { %3582 = vmatprep.subr.bf16.mxu1 %v19100_v0  ;;  %v19145_v0 = vld [vmem:[%s23981_s2 + $0xa4] ss:$8 sps:$4 sm:$0xff]  }
 0x623   : > { %3583 = vmatpush1.bf16.msra.mxu1 %v19098_v10  ;;  %v19143_v10 = vld [vmem:[%s23981_s2 + $0xa0] ss:$8 sps:$4 sm:$0xff]  }
 0x624   : > { %3584 = vmatprep.subr.bf16.mxu1 %v19103_v11  ;;  %v19148_v11 = vld [vmem:[%s23981_s2 + $0xb4] ss:$8 sps:$4 sm:$0xff]  }
 0x627   : > { %3585 = vmatpush1.bf16.msra.mxu1 %v19101_v13  ;;  %v19146_v13 = vld [vmem:[%s23981_s2 + $0xb0] ss:$8 sps:$4 sm:$0xff]  }
 0x628   : > { %3586 = vmatprep.subr.bf16.mxu1 %v19106_v14  ;;  %v19151_v14 = vld [vmem:[%s23981_s2 + $0xc4] ss:$8 sps:$4 sm:$0xff]  }
 0x62b   : > { %3587 = vmatpush1.bf16.msra.mxu1 %v19104_v17  ;;  %v19149_v17 = vld [vmem:[%s23981_s2 + $0xc0] ss:$8 sps:$4 sm:$0xff]  }
 0x62c   : > { %3588 = vmatprep.subr.bf16.mxu1 %v19109_v18  ;;  %v19154_v18 = vld [vmem:[%s23981_s2 + $0xd4] ss:$8 sps:$4 sm:$0xff]  }
 0x62f   : > { %3589 = vmatpush1.bf16.msra.mxu1 %v19107_v21  ;;  %v19152_v21 = vld [vmem:[%s23981_s2 + $0xd0] ss:$8 sps:$4 sm:$0xff]  }
 0x630   : > { %3590 = vmatprep.subr.bf16.mxu1 %v19112_v23  ;;  %v19157_v23 = vld [vmem:[%s23981_s2 + $0xe4] ss:$8 sps:$4 sm:$0xff]  }
 0x633   : > { %3591 = vmatpush1.bf16.msra.mxu1 %v19110_v32  ;;  %v19155_v32 = vld [vmem:[%s23981_s2 + $0xe0] ss:$8 sps:$4 sm:$0xff]  }
 0x636   : > { %3593 = vmatmul.mubr.bf16.vlgmr.msra.gmra.mrb[32].mxu1 %v2649_v27 }
 0x637   : > { %3646 = vmatprep.mubr.bf16.mxu1 %v23916_v1 }
 0x709   : > { %v3594_v38 = vpop.f32.mrb[32].mxu1 }
 0x70a   : > { %v18366_v41 = vadd.f32 %v3594_v38, %v2784_v34  ;;  %v3596_v42 = vpop.f32.mrb[33].mxu1 }
 0x70b   : > { %v18367_v44 = vadd.f32 %v3596_v42, %v2788_v43  ;;  %v3598_v46 = vpop.f32.mrb[34].mxu1 }
 0x70c   : > { %v18368_v47 = vadd.f32 %v3598_v46, %v2784_v34  ;;  %v3600_v49 = vpop.f32.mrb[35].mxu1  ;;  %v3603_v51 = vmax.f32 %v18366_v41, 0.0  ;;  %v19158_v34 = vld [vmem:[%s23981_s2 + $0xf0] ss:$8 sps:$4 sm:$0xff]  }
 0x70d   : > { %v18369_v50 = vadd.f32 %v3600_v49, %v2788_v43  ;;  %v3604_v60 = vmax.f32 %v18367_v44, 0.0  ;;  %v19163_v43 = vld [vmem:[%s23981_s2 + $0x104] ss:$8 sps:$4 sm:$0xff]   ;;  %v19161_v49 = vld [vmem:[%s23981_s2 + $0x100] ss:$8 sps:$4 sm:$0xff]  }
 0x70e   : > { %v3605_v58 = vmax.f32 %v18368_v47, 0.0 }
 0x70f   : > { %v3606_v22 = vmax.f32 %v18369_v50, 0.0 }
 0x710   : > { %v22452_v26 = vpack.c.bf16 %v3605_v58, %v3603_v51 }
 0x711   : > { %v22454_v27 = vpack.c.bf16 %v3606_v22, %v3604_v60  ;;  %v19166_v22 = vld [vmem:[%s23981_s2 + $0x114] ss:$8 sps:$4 sm:$0xff]  }
 0x713   : > { %3614 = vmatprep.subr.bf16.mxu1 %v22454_v27  ;;  %3661 = vmatprep.subr.bf16.mxu0 %v22454_v27 }
 0x714   : > { %3615 = vmatpush1.bf16.msra.mxu1 %v22452_v26  ;;  %3662 = vmatpush1.bf16.msra.mxu0 %v22452_v26 }
 0x715   : > { %3708 = vmatprep.subr.bf16.mxu0 %v22454_v27 }
 0x717   : > { %16622 = vmatmul.mubr.msk.bf16.vlgmr.msra.gmra.mrb[36].mxu1 %vm3610_vm2, %v3609_v39  ;;  %16623 = vmatmul.mubr.msk.bf16.vlgmr.msra.gmra.mrb[24].mxu0 %vm3610_vm2, %v3657_v37  ;;  %v19164_v39 = vld [vmem:[%s23981_s2 + $0x110] ss:$8 sps:$4 sm:$0xff]  }
 0x718   : > { %3709 = vmatpush1.bf16.msra.mxu0 %v22452_v26  ;;  %3740 = vmatprep.mubr.bf16.mxu0 %v23916_v1 }
 0x719   : > { %3755 = vmatprep.subr.bf16.mxu0 %v22454_v27 }
 0x71f   : > { %16624 = vmatmul.mubr.msk.bf16.vlgmr.msra.gmra.mrb[28].mxu0 %vm3610_vm2, %v3704_v20  ;;  %v19169_v20 = vld [vmem:[%s23981_s2 + $0x124] ss:$8 sps:$4 sm:$0xff]  }
 0x720   : > { %3756 = vmatpush1.bf16.msra.mxu0 %v22452_v26  ;;  %3787 = vmatprep.mubr.bf16.mxu0 %v23916_v1 }
 0x721   : > { %4578 = vmatprep.subr.bf16.mxu0 %v19115_v24 }
 0x727   : > { %16625 = vmatmul.mubr.msk.bf16.vlgmr.msra.gmra.mrb[32].mxu0 %vm3610_vm2, %v3751_v40 }
 0x728   : > { %4579 = vmatpush1.bf16.msra.mxu0 %v19113_v54  ;;  %v19167_v54 = vld [vmem:[%s23981_s2 + $0x120] ss:$8 sps:$4 sm:$0xff]  }
 0x729   : > { %4580 = vmatprep.subr.bf16.mxu0 %v19118_v59 }
 0x72c   : > { %4581 = vmatpush1.bf16.msra.mxu0 %v19116_v52  ;;  %v19172_v52 = vld [vmem:[%s23981_s2 + $0x134] ss:$8 sps:$4 sm:$0xff]  }
 0x72d   : > { %4582 = vmatprep.subr.bf16.mxu0 %v19121_v9 }
 0x730   : > { %4583 = vmatpush1.bf16.msra.mxu0 %v19119_v12  ;;  %v19170_v12 = vld [vmem:[%s23981_s2 + $0x130] ss:$8 sps:$4 sm:$0xff]  }
 0x731   : > { %4584 = vmatprep.subr.bf16.mxu0 %v19124_v56  ;;  %v19175_v56 = vld [vmem:[%s23981_s2 + $0x144] ss:$8 sps:$4 sm:$0xff]  }
 0x734   : > { %4585 = vmatpush1.bf16.msra.mxu0 %v19122_v48  ;;  %v19173_v48 = vld [vmem:[%s23981_s2 + $0x140] ss:$8 sps:$4 sm:$0xff]  }
 0x735   : > { %4586 = vmatprep.subr.bf16.mxu0 %v19127_v25  ;;  %v19178_v25 = vld [vmem:[%s23981_s2 + $0x154] ss:$8 sps:$4 sm:$0xff]  }
 0x738   : > { %4587 = vmatpush1.bf16.msra.mxu0 %v19125_v31 }
 0x739   : > { %4588 = vmatprep.subr.bf16.mxu0 %v19130_v35  ;;  %v19176_v35 = vld [vmem:[%s23981_s2 + $0x150] ss:$8 sps:$4 sm:$0xff]  }
 0x73c   : > { %4589 = vmatpush1.bf16.msra.mxu0 %v19128_v62 }
 0x73d   : > { %4590 = vmatprep.subr.bf16.mxu0 %v19133_v53  ;;  %v19181_v53 = vld [vmem:[%s23981_s2 + $0x164] ss:$8 sps:$4 sm:$0xff]  }
 0x740   : > { %4591 = vmatpush1.bf16.msra.mxu0 %v19131_v28 }
 0x741   : > { %4592 = vmatprep.subr.bf16.mxu0 %v19136_v29 }
 0x744   : > { %4593 = vmatpush1.bf16.msra.mxu0 %v19134_v6  ;;  %v19179_v6 = vld [vmem:[%s23981_s2 + $0x160] ss:$8 sps:$4 sm:$0xff]  }
 0x745   : > { %4594 = vmatprep.subr.bf16.mxu0 %v19139_v57  ;;  %v19184_v57 = vld [vmem:[%s23981_s2 + $0x174] ss:$8 sps:$4 sm:$0xff]  }
 0x748   : > { %4595 = vmatpush1.bf16.msra.mxu0 %v19137_v7  ;;  %v19182_v7 = vld [vmem:[%s23981_s2 + $0x170] ss:$8 sps:$4 sm:$0xff]  }
 0x749   : > { %4596 = vmatprep.subr.bf16.mxu0 %v19142_v61  ;;  %v19187_v61 = vld [vmem:[%s23981_s2 + $0x184] ss:$8 sps:$4 sm:$0xff]  }
 0x74c   : > { %4597 = vmatpush1.bf16.msra.mxu0 %v19140_v63  ;;  %v19185_v63 = vld [vmem:[%s23981_s2 + $0x180] ss:$8 sps:$4 sm:$0xff]  }
 0x74d   : > { %4598 = vmatprep.subr.bf16.mxu0 %v19145_v0  ;;  %v19190_v0 = vld [vmem:[%s23981_s2 + $0x194] ss:$8 sps:$4 sm:$0xff]  }
 0x750   : > { %4599 = vmatpush1.bf16.msra.mxu0 %v19143_v10  ;;  %v19188_v10 = vld [vmem:[%s23981_s2 + $0x190] ss:$8 sps:$4 sm:$0xff]  }
 0x751   : > { %4600 = vmatprep.subr.bf16.mxu0 %v19148_v11  ;;  %v19193_v11 = vld [vmem:[%s23981_s2 + $0x1a4] ss:$8 sps:$4 sm:$0xff]  }
 0x754   : > { %4601 = vmatpush1.bf16.msra.mxu0 %v19146_v13  ;;  %v19191_v13 = vld [vmem:[%s23981_s2 + $0x1a0] ss:$8 sps:$4 sm:$0xff]  }
 0x755   : > { %4602 = vmatprep.subr.bf16.mxu0 %v19151_v14  ;;  %v19196_v14 = vld [vmem:[%s23981_s2 + $0x1b4] ss:$8 sps:$4 sm:$0xff]  }
 0x758   : > { %4603 = vmatpush1.bf16.msra.mxu0 %v19149_v17  ;;  %v19194_v17 = vld [vmem:[%s23981_s2 + $0x1b0] ss:$8 sps:$4 sm:$0xff]  }
 0x759   : > { %4604 = vmatprep.subr.bf16.mxu0 %v19154_v18  ;;  %v19199_v18 = vld [vmem:[%s23981_s2 + $0x1c4] ss:$8 sps:$4 sm:$0xff]  }
 0x75c   : > { %4605 = vmatpush1.bf16.msra.mxu0 %v19152_v21  ;;  %v19197_v21 = vld [vmem:[%s23981_s2 + $0x1c0] ss:$8 sps:$4 sm:$0xff]  }
 0x75d   : > { %4606 = vmatprep.subr.bf16.mxu0 %v19157_v23  ;;  %v19202_v23 = vld [vmem:[%s23981_s2 + $0x1d4] ss:$8 sps:$4 sm:$0xff]  }
 0x760   : > { %4607 = vmatpush1.bf16.msra.mxu0 %v19155_v32  ;;  %v19200_v32 = vld [vmem:[%s23981_s2 + $0x1d0] ss:$8 sps:$4 sm:$0xff]  }
 0x761   : > { %4608 = vmatprep.subr.bf16.mxu0 %v19160_v36  ;;  %v19205_v36 = vld [vmem:[%s23981_s2 + $0x1e4] ss:$8 sps:$4 sm:$0xff]  }
 0x764   : > { %4609 = vmatpush1.bf16.msra.mxu0 %v19158_v34  ;;  %v19203_v34 = vld [vmem:[%s23981_s2 + $0x1e0] ss:$8 sps:$4 sm:$0xff]  }
 0x765   : > { %4619 = vmatprep.subr.bf16.mxu0 %v19163_v43  ;;  %v19208_v43 = vld [vmem:[%s23981_s2 + $0x1f4] ss:$8 sps:$4 sm:$0xff]  }
 0x7ea   : > { %v3648_v38 = vpop.f32.mrb[36].mxu1  ;;  %v22511_v41 = vpop.f32.mrb[24].mxu0 }
 0x7eb   : > { %v3650_v42 = vpop.f32.mrb[37].mxu1  ;;  %v3697_v44 = vpop.f32.mrb[25].mxu0  ;;  %v3655_v58 = vpack.c.bf16 %v3648_v38, %v3648_v38  ;;  %v19206_v38 = vld [vmem:[%s23981_s2 + $0x1f0] ss:$8 sps:$4 sm:$0xff]  }
 0x7ec   : > { %v3656_v46 = vpack.c.bf16 %v3650_v42, %v3650_v42  ;;  %v3652_v47 = vpop.f32.mrb[38].mxu1  ;;  %v3703_v50 = vpack.c.bf16 %v3697_v44, %v3697_v44  ;;  %v3699_v51 = vpop.f32.mrb[26].mxu0  ;;  %v19211_v42 = vld [vmem:[%s23981_s2 + $0x204] ss:$8 sps:$4 sm:$0xff]   ;;  %v3702_v44 = vpack.c.bf16 %v22511_v41, %v22511_v41  ;;  %v19308_v41 = vld [vmem:[#allocation5 + $0x10] ss:$8 sps:$4 sm:$0xff]  }
 0x7ed   : > { %v3653_v60 = vpop.f32.mrb[39].mxu1  ;;  %v3700_v37 = vpop.f32.mrb[27].mxu0  ;;  %v19307_v51 = vld [vmem:[#allocation5 + $0x4] ss:$8 sps:$4 sm:$0xff]  }
 0x7ee   : > { %4610 = vmatprep.mubr.bf16.mxu0 %v3656_v46  ;;  %v19209_v46 = vld [vmem:[%s23981_s2 + $0x200] ss:$8 sps:$4 sm:$0xff]   ;;  %v19310_v60 = vld [vmem:[#allocation5 + $0x14] ss:$8 sps:$4 sm:$0xff]   ;;  %5613 = vmatprep.subr.bf16.mxu1 %v19307_v51  ;;  %v19313_v37 = vld [vmem:[#allocation5 + $0x24] ss:$8 sps:$4 sm:$0xff]  }
 0x7ef   : > { %4611 = vmatmul.mubr.bf16.vlgmr.msra.gmra.mrb[36].mxu0 %v3655_v58  ;;  %v19212_v58 = vld [vmem:[%s23981_s2 + $0x210] ss:$8 sps:$4 sm:$0xff]   ;;  %v19245_v51 = vld [vmem:[%s23981_s2 + $0x2c0] ss:$8 sps:$4 sm:$0xff]  }
 0x7f0   : > { %4620 = vmatpush1.bf16.msra.mxu0 %v19161_v49  ;;  %4651 = vmatprep.mubr.bf16.mxu0 %v3703_v50  ;;  %v19214_v49 = vld [vmem:[%s23981_s2 + $0x214] ss:$8 sps:$4 sm:$0xff]   ;;  %v19305_v50 = vld [vmem:[#allocation5] ss:$8 sps:$4 sm:$0xff]  }
 0x7f1   : > { %4621 = vmatprep.subr.bf16.mxu0 %v19166_v22  ;;  %v19217_v22 = vld [vmem:[%s23981_s2 + $0x224] ss:$8 sps:$4 sm:$0xff]   ;;  %5614 = vmatpush1.bf16.msra.mxu1 %v19305_v50 }
 0x7f2   : > { %v22517_v24 = vpop.f32.mrb[28].mxu0  ;;  %5615 = vmatprep.subr.bf16.mxu1 %v19310_v60  ;;  %v19343_v50 = vld [vmem:[#allocation5 + $0xc4] ss:$8 sps:$4 sm:$0xff]   ;;  %v19341_v60 = vld [vmem:[#allocation5 + $0xc0] ss:$8 sps:$4 sm:$0xff]  }
 0x7f3   : > { %v22519_v40 = vpop.f32.mrb[29].mxu0 }
 0x7f4   : > { %4622 = vmatpush1.bf16.msra.mxu0 %v19164_v39  ;;  %v3746_v59 = vpop.f32.mrb[30].mxu0  ;;  %v3750_v47 = vpack.c.bf16 %v22519_v40, %v22519_v40  ;;  %v19215_v39 = vld [vmem:[%s23981_s2 + $0x220] ss:$8 sps:$4 sm:$0xff]  }
 0x7f5   : > { %4623 = vmatprep.subr.bf16.mxu0 %v19169_v20  ;;  %v3747_v9 = vpop.f32.mrb[31].mxu0  ;;  %v19220_v20 = vld [vmem:[%s23981_s2 + $0x234] ss:$8 sps:$4 sm:$0xff]   ;;  %5616 = vmatpush1.bf16.msra.mxu1 %v19308_v41  ;;  %v19311_v40 = vld [vmem:[#allocation5 + $0x20] ss:$8 sps:$4 sm:$0xff]  }
 0x7f6   : > { %5617 = vmatprep.subr.bf16.mxu1 %v19313_v37  ;;  %v19218_v59 = vld [vmem:[%s23981_s2 + $0x230] ss:$8 sps:$4 sm:$0xff]   ;;  %v19253_v41 = vld [vmem:[%s23981_s2 + $0x2e4] ss:$8 sps:$4 sm:$0xff]   ;;  %v19251_v37 = vld [vmem:[%s23981_s2 + $0x2e0] ss:$8 sps:$4 sm:$0xff]  }
 0x7f7   : > { %v19314_v9 = vld [vmem:[#allocation5 + $0x30] ss:$8 sps:$4 sm:$0xff]  }
 0x7f8   : > { %4624 = vmatpush1.bf16.msra.mxu0 %v19167_v54  ;;  %v19316_v54 = vld [vmem:[#allocation5 + $0x34] ss:$8 sps:$4 sm:$0xff]  }
 0x7f9   : > { %4625 = vmatprep.subr.bf16.mxu0 %v19172_v52  ;;  %v19223_v52 = vld [vmem:[%s23981_s2 + $0x244] ss:$8 sps:$4 sm:$0xff]   ;;  %5618 = vmatpush1.bf16.msra.mxu1 %v19311_v40 }
 0x7fa   : > { %v22527_v31 = vpop.f32.mrb[32].mxu0  ;;  %5619 = vmatprep.subr.bf16.mxu1 %v19316_v54  ;;  %v19259_v40 = vld [vmem:[%s23981_s2 + $0x304] ss:$8 sps:$4 sm:$0xff]   ;;  %v3749_v54 = vpack.c.bf16 %v22517_v24, %v22517_v24  ;;  %v19263_v24 = vld [vmem:[%s23981_s2 + $0x320] ss:$8 sps:$4 sm:$0xff]  }
 0x7fb   : > { %v22530_v62 = vpop.f32.mrb[33].mxu0 }
 0x7fc   : > { %4626 = vmatpush1.bf16.msra.mxu0 %v19170_v12  ;;  %v3793_v28 = vpop.f32.mrb[34].mxu0  ;;  %v19319_v12 = vld [vmem:[#allocation5 + $0x44] ss:$8 sps:$4 sm:$0xff]  }
 0x7fd   : > { %4627 = vmatprep.subr.bf16.mxu0 %v19175_v56  ;;  %v3794_v29 = vpop.f32.mrb[35].mxu0  ;;  %v19221_v56 = vld [vmem:[%s23981_s2 + $0x240] ss:$8 sps:$4 sm:$0xff]   ;;  %5620 = vmatpush1.bf16.msra.mxu1 %v19314_v9  ;;  %v19229_v28 = vld [vmem:[%s23981_s2 + $0x264] ss:$8 sps:$4 sm:$0xff]  }
 0x7fe   : > { %5621 = vmatprep.subr.bf16.mxu1 %v19319_v12  ;;  %v19320_v29 = vld [vmem:[#allocation5 + $0x50] ss:$8 sps:$4 sm:$0xff]   ;;  %v19262_v9 = vld [vmem:[%s23981_s2 + $0x314] ss:$8 sps:$4 sm:$0xff]  }
 0x7ff   : > { %v19260_v12 = vld [vmem:[%s23981_s2 + $0x310] ss:$8 sps:$4 sm:$0xff]  }
 0x800   : > { %4628 = vmatpush1.bf16.msra.mxu0 %v19173_v48  ;;  %v19226_v48 = vld [vmem:[%s23981_s2 + $0x254] ss:$8 sps:$4 sm:$0xff]  }
 0x801   : > { %4629 = vmatprep.subr.bf16.mxu0 %v19178_v25  ;;  %v19317_v25 = vld [vmem:[#allocation5 + $0x40] ss:$8 sps:$4 sm:$0xff]  }
 0x802   : > { %5622 = vmatpush1.bf16.msra.mxu1 %v19317_v25  ;;  %v19271_v25 = vld [vmem:[%s23981_s2 + $0x344] ss:$8 sps:$4 sm:$0xff]  }
 0x804   : > { %4630 = vmatpush1.bf16.msra.mxu0 %v19176_v35  ;;  %v19322_v35 = vld [vmem:[#allocation5 + $0x54] ss:$8 sps:$4 sm:$0xff]  }
 0x805   : > { %4631 = vmatprep.subr.bf16.mxu0 %v19181_v53  ;;  %v19224_v53 = vld [vmem:[%s23981_s2 + $0x250] ss:$8 sps:$4 sm:$0xff]   ;;  %5623 = vmatprep.subr.bf16.mxu1 %v19322_v35  ;;  %v19269_v35 = vld [vmem:[%s23981_s2 + $0x340] ss:$8 sps:$4 sm:$0xff]  }
 0x806   : > { %5624 = vmatpush1.bf16.msra.mxu1 %v19320_v29  ;;  %v19277_v29 = vld [vmem:[%s23981_s2 + $0x364] ss:$8 sps:$4 sm:$0xff]  }
 0x808   : > { %4632 = vmatpush1.bf16.msra.mxu0 %v19179_v6  ;;  %v19325_v6 = vld [vmem:[#allocation5 + $0x64] ss:$8 sps:$4 sm:$0xff]  }
 0x809   : > { %4633 = vmatprep.subr.bf16.mxu0 %v19184_v57  ;;  %v19227_v57 = vld [vmem:[%s23981_s2 + $0x260] ss:$8 sps:$4 sm:$0xff]   ;;  %5625 = vmatprep.subr.bf16.mxu1 %v19325_v6 }
 0x80a   : > { %v19275_v6 = vld [vmem:[%s23981_s2 + $0x360] ss:$8 sps:$4 sm:$0xff]  }
 0x80c   : > { %4634 = vmatpush1.bf16.msra.mxu0 %v19182_v7  ;;  %v19232_v7 = vld [vmem:[%s23981_s2 + $0x274] ss:$8 sps:$4 sm:$0xff]  }
 0x80d   : > { %4635 = vmatprep.subr.bf16.mxu0 %v19187_v61  ;;  %v19323_v61 = vld [vmem:[#allocation5 + $0x60] ss:$8 sps:$4 sm:$0xff]  }
 0x80e   : > { %5626 = vmatpush1.bf16.msra.mxu1 %v19323_v61  ;;  %v19283_v61 = vld [vmem:[%s23981_s2 + $0x384] ss:$8 sps:$4 sm:$0xff]  }
 0x810   : > { %4636 = vmatpush1.bf16.msra.mxu0 %v19185_v63  ;;  %v19328_v63 = vld [vmem:[#allocation5 + $0x74] ss:$8 sps:$4 sm:$0xff]  }
 0x811   : > { %4637 = vmatprep.subr.bf16.mxu0 %v19190_v0  ;;  %v19230_v0 = vld [vmem:[%s23981_s2 + $0x270] ss:$8 sps:$4 sm:$0xff]   ;;  %5627 = vmatprep.subr.bf16.mxu1 %v19328_v63  ;;  %v19281_v63 = vld [vmem:[%s23981_s2 + $0x380] ss:$8 sps:$4 sm:$0xff]  }
 0x814   : > { %4638 = vmatpush1.bf16.msra.mxu0 %v19188_v10  ;;  %v19235_v10 = vld [vmem:[%s23981_s2 + $0x284] ss:$8 sps:$4 sm:$0xff]  }
 0x815   : > { %4639 = vmatprep.subr.bf16.mxu0 %v19193_v11  ;;  %v19326_v11 = vld [vmem:[#allocation5 + $0x70] ss:$8 sps:$4 sm:$0xff]  }
 0x816   : > { %5628 = vmatpush1.bf16.msra.mxu1 %v19326_v11  ;;  %v19289_v11 = vld [vmem:[%s23981_s2 + $0x3a4] ss:$8 sps:$4 sm:$0xff]  }
 0x818   : > { %4640 = vmatpush1.bf16.msra.mxu0 %v19191_v13  ;;  %v19331_v13 = vld [vmem:[#allocation5 + $0x84] ss:$8 sps:$4 sm:$0xff]  }
 0x819   : > { %4641 = vmatprep.subr.bf16.mxu0 %v19196_v14  ;;  %v19233_v14 = vld [vmem:[%s23981_s2 + $0x280] ss:$8 sps:$4 sm:$0xff]   ;;  %5629 = vmatprep.subr.bf16.mxu1 %v19331_v13 }
 0x81a   : > { %v19287_v13 = vld [vmem:[%s23981_s2 + $0x3a0] ss:$8 sps:$4 sm:$0xff]  }
 0x81c   : > { %4642 = vmatpush1.bf16.msra.mxu0 %v19194_v17  ;;  %v19238_v17 = vld [vmem:[%s23981_s2 + $0x294] ss:$8 sps:$4 sm:$0xff]  }
 0x81d   : > { %4643 = vmatprep.subr.bf16.mxu0 %v19199_v18  ;;  %v19329_v18 = vld [vmem:[#allocation5 + $0x80] ss:$8 sps:$4 sm:$0xff]  }
 0x81e   : > { %5630 = vmatpush1.bf16.msra.mxu1 %v19329_v18  ;;  %v19295_v18 = vld [vmem:[%s23981_s2 + $0x3c4] ss:$8 sps:$4 sm:$0xff]  }
 0x820   : > { %4644 = vmatpush1.bf16.msra.mxu0 %v19197_v21  ;;  %v19334_v21 = vld [vmem:[#allocation5 + $0x94] ss:$8 sps:$4 sm:$0xff]  }
 0x821   : > { %4645 = vmatprep.subr.bf16.mxu0 %v19202_v23  ;;  %v19236_v23 = vld [vmem:[%s23981_s2 + $0x290] ss:$8 sps:$4 sm:$0xff]   ;;  %5631 = vmatprep.subr.bf16.mxu1 %v19334_v21  ;;  %v19293_v21 = vld [vmem:[%s23981_s2 + $0x3c0] ss:$8 sps:$4 sm:$0xff]  }
 0x824   : > { %4646 = vmatpush1.bf16.msra.mxu0 %v19200_v32  ;;  %v19241_v32 = vld [vmem:[%s23981_s2 + $0x2a4] ss:$8 sps:$4 sm:$0xff]  }
 0x825   : > { %4647 = vmatprep.subr.bf16.mxu0 %v19205_v36  ;;  %v19332_v36 = vld [vmem:[#allocation5 + $0x90] ss:$8 sps:$4 sm:$0xff]  }
 0x826   : > { %5632 = vmatpush1.bf16.msra.mxu1 %v19332_v36  ;;  %v19301_v36 = vld [vmem:[%s23981_s2 + $0x3e4] ss:$8 sps:$4 sm:$0xff]  }
 0x828   : > { %4648 = vmatpush1.bf16.msra.mxu0 %v19203_v34  ;;  %v19337_v34 = vld [vmem:[#allocation5 + $0xa4] ss:$8 sps:$4 sm:$0xff]  }
 0x829   : > { %4649 = vmatprep.subr.bf16.mxu0 %v19208_v43  ;;  %v19239_v43 = vld [vmem:[%s23981_s2 + $0x2a0] ss:$8 sps:$4 sm:$0xff]   ;;  %5633 = vmatprep.subr.bf16.mxu1 %v19337_v34 }
 0x82a   : > { %v19299_v34 = vld [vmem:[%s23981_s2 + $0x3e0] ss:$8 sps:$4 sm:$0xff]  }
 0x82c   : > { %4650 = vmatpush1.bf16.msra.mxu0 %v19206_v38  ;;  %v19244_v38 = vld [vmem:[%s23981_s2 + $0x2b4] ss:$8 sps:$4 sm:$0xff]  }
 0x82d   : > { %4660 = vmatprep.subr.bf16.mxu0 %v19211_v42  ;;  %v19335_v42 = vld [vmem:[#allocation5 + $0xa0] ss:$8 sps:$4 sm:$0xff]  }
 0x82e   : > { %5634 = vmatpush1.bf16.msra.mxu1 %v19335_v42  ;;  %v3796_v42 = vpack.c.bf16 %v22527_v31, %v22527_v31 }
 0x82f   : > { %4652 = vmatmul.mubr.bf16.vlgmr.msra.gmra.mrb[36].mxu0 %v3702_v44  ;;  %v19340_v44 = vld [vmem:[#allocation5 + $0xb4] ss:$8 sps:$4 sm:$0xff]  }
 0x830   : > { %4661 = vmatpush1.bf16.msra.mxu0 %v19209_v46  ;;  %4692 = vmatprep.mubr.bf16.mxu0 %v3750_v47  ;;  %v19242_v46 = vld [vmem:[%s23981_s2 + $0x2b0] ss:$8 sps:$4 sm:$0xff]   ;;  %v19247_v47 = vld [vmem:[%s23981_s2 + $0x2c4] ss:$8 sps:$4 sm:$0xff]  }
 0x831   : > { %4662 = vmatprep.subr.bf16.mxu0 %v19214_v49  ;;  %v19338_v49 = vld [vmem:[#allocation5 + $0xb0] ss:$8 sps:$4 sm:$0xff]   ;;  %5635 = vmatprep.subr.bf16.mxu1 %v19340_v44  ;;  %v19346_v44 = vld [vmem:[#allocation5 + $0xd4] ss:$8 sps:$4 sm:$0xff]  }
 0x832   : > { %5636 = vmatpush1.bf16.msra.mxu1 %v19338_v49  ;;  %v19347_v49 = vld [vmem:[#allocation5 + $0xe0] ss:$8 sps:$4 sm:$0xff]  }
 0x833   : > { %5637 = vmatprep.subr.bf16.mxu1 %v19343_v50  ;;  %v19350_v50 = vld [vmem:[#allocation5 + $0xf0] ss:$8 sps:$4 sm:$0xff]  }
 0x834   : > { %4663 = vmatpush1.bf16.msra.mxu0 %v19212_v58  ;;  %v19250_v58 = vld [vmem:[%s23981_s2 + $0x2d4] ss:$8 sps:$4 sm:$0xff]  }
 0x835   : > { %4664 = vmatprep.subr.bf16.mxu0 %v19217_v22  ;;  %v19248_v22 = vld [vmem:[%s23981_s2 + $0x2d0] ss:$8 sps:$4 sm:$0xff]  }
 0x836   : > { %5638 = vmatpush1.bf16.msra.mxu1 %v19341_v60  ;;  %v3926_v60 = vld [vmem:[%s23982_s4] sm:$0x3]  ;;  %s24018_s4 = sld [smem:[#allocation53_spill]] }
 0x837   : > { %5639 = vmatprep.subr.bf16.mxu1 %v19346_v44  ;;  %v3935_v31 = vrot.slane %v3926_v60, %v22239_v33 }
 0x838   : > { %4665 = vmatpush1.bf16.msra.mxu0 %v19215_v39  ;;  %v19256_v39 = vld [vmem:[%s23981_s2 + $0x2f4] ss:$8 sps:$4 sm:$0xff]  }
 0x839   : > { %4666 = vmatprep.subr.bf16.mxu0 %v19220_v20  ;;  %v19254_v20 = vld [vmem:[%s23981_s2 + $0x2f0] ss:$8 sps:$4 sm:$0xff]  }
 0x83c   : > { %4667 = vmatpush1.bf16.msra.mxu0 %v19218_v59  ;;  %v19257_v59 = vld [vmem:[%s23981_s2 + $0x300] ss:$8 sps:$4 sm:$0xff]  }
 0x83d   : > { %4668 = vmatprep.subr.bf16.mxu0 %v19223_v52  ;;  %v3797_v52 = vpack.c.bf16 %v22530_v62, %v22530_v62  ;;  %v19266_v62 = vld [vmem:[%s23981_s2 + $0x330] ss:$8 sps:$4 sm:$0xff]  }
 0x840   : > { %4669 = vmatpush1.bf16.msra.mxu0 %v19221_v56  ;;  %v19265_v56 = vld [vmem:[%s23981_s2 + $0x324] ss:$8 sps:$4 sm:$0xff]  }
 0x841   : > { %4670 = vmatprep.subr.bf16.mxu0 %v19226_v48  ;;  %v19268_v48 = vld [vmem:[%s23981_s2 + $0x334] ss:$8 sps:$4 sm:$0xff]  }
 0x844   : > { %4671 = vmatpush1.bf16.msra.mxu0 %v19224_v53  ;;  %v19274_v53 = vld [vmem:[%s23981_s2 + $0x354] ss:$8 sps:$4 sm:$0xff]  }
 0x845   : > { %4672 = vmatprep.subr.bf16.mxu0 %v19229_v28  ;;  %v19272_v28 = vld [vmem:[%s23981_s2 + $0x350] ss:$8 sps:$4 sm:$0xff]  }
 0x848   : > { %4673 = vmatpush1.bf16.msra.mxu0 %v19227_v57  ;;  %v19280_v57 = vld [vmem:[%s23981_s2 + $0x374] ss:$8 sps:$4 sm:$0xff]  }
 0x849   : > { %4674 = vmatprep.subr.bf16.mxu0 %v19232_v7  ;;  %v19278_v7 = vld [vmem:[%s23981_s2 + $0x370] ss:$8 sps:$4 sm:$0xff]  }
 0x84c   : > { %4675 = vmatpush1.bf16.msra.mxu0 %v19230_v0  ;;  %v19286_v0 = vld [vmem:[%s23981_s2 + $0x394] ss:$8 sps:$4 sm:$0xff]  }
 0x84d   : > { %4676 = vmatprep.subr.bf16.mxu0 %v19235_v10  ;;  %v19284_v10 = vld [vmem:[%s23981_s2 + $0x390] ss:$8 sps:$4 sm:$0xff]  }
 0x850   : > { %4677 = vmatpush1.bf16.msra.mxu0 %v19233_v14  ;;  %v19292_v14 = vld [vmem:[%s23981_s2 + $0x3b4] ss:$8 sps:$4 sm:$0xff]  }
 0x851   : > { %4678 = vmatprep.subr.bf16.mxu0 %v19238_v17  ;;  %v19290_v17 = vld [vmem:[%s23981_s2 + $0x3b0] ss:$8 sps:$4 sm:$0xff]  }
 0x854   : > { %4679 = vmatpush1.bf16.msra.mxu0 %v19236_v23  ;;  %v19298_v23 = vld [vmem:[%s23981_s2 + $0x3d4] ss:$8 sps:$4 sm:$0xff]  }
 0x855   : > { %4680 = vmatprep.subr.bf16.mxu0 %v19241_v32  ;;  %v19296_v32 = vld [vmem:[%s23981_s2 + $0x3d0] ss:$8 sps:$4 sm:$0xff]  }
 0x858   : > { %4681 = vmatpush1.bf16.msra.mxu0 %v19239_v43  ;;  %v19304_v43 = vld [vmem:[%s23981_s2 + $0x3f4] ss:$8 sps:$4 sm:$0xff]  }
 0x859   : > { %4682 = vmatprep.subr.bf16.mxu0 %v19244_v38  ;;  %v19302_v38 = vld [vmem:[%s23981_s2 + $0x3f0] ss:$8 sps:$4 sm:$0xff]  }
 0x85c   : > { %4683 = vmatpush1.bf16.msra.mxu0 %v19242_v46  ;;  %v19344_v46 = vld [vmem:[#allocation5 + $0xd0] ss:$8 sps:$4 sm:$0xff]  }
 0x85d   : > { %4684 = vmatprep.subr.bf16.mxu0 %v19247_v47  ;;  %5640 = vmatpush1.bf16.msra.mxu1 %v19344_v46  ;;  %v19349_v47 = vld [vmem:[#allocation5 + $0xe4] ss:$8 sps:$4 sm:$0xff]  }
 0x85e   : > { %5641 = vmatprep.subr.bf16.mxu1 %v19349_v47 }
 0x860   : > { %4685 = vmatpush1.bf16.msra.mxu0 %v19245_v51  ;;  %v19352_v51 = vld [vmem:[#allocation5 + $0xf4] ss:$8 sps:$4 sm:$0xff]  }
 0x861   : > { %4686 = vmatprep.subr.bf16.mxu0 %v19250_v58  ;;  %5642 = vmatpush1.bf16.msra.mxu1 %v19347_v49  ;;  %v19355_v58 = vld [vmem:[#allocation5 + $0x104] ss:$8 sps:$4 sm:$0xff]  }
 0x862   : > { %5643 = vmatprep.subr.bf16.mxu1 %v19352_v51 }
 0x864   : > { %4687 = vmatpush1.bf16.msra.mxu0 %v19248_v22  ;;  %v3931_v22 = vrot.slane %v3926_v60, %v22235_v30  ;;  %v19361_v60 = vld [vmem:[#allocation5 + $0x124] ss:$8 sps:$4 sm:$0xff]  }
 0x865   : > { %4688 = vmatprep.subr.bf16.mxu0 %v19253_v41  ;;  %5644 = vmatpush1.bf16.msra.mxu1 %v19350_v50  ;;  %v19356_v50 = vld [vmem:[#allocation5 + $0x110] ss:$8 sps:$4 sm:$0xff]  }
 0x866   : > { %5654 = vmatprep.subr.bf16.mxu1 %v19355_v58 }
 0x868   : > { %4689 = vmatpush1.bf16.msra.mxu0 %v19251_v37 }
 0x869   : > { %4690 = vmatprep.subr.bf16.mxu0 %v19256_v39 }
 0x86c   : > { %4691 = vmatpush1.bf16.msra.mxu0 %v19254_v20 }
 0x86d   : > { %4701 = vmatprep.subr.bf16.mxu0 %v19259_v40 }
 0x86f   : > { %4693 = vmatmul.mubr.bf16.vlgmr.msra.gmra.mrb[36].mxu0 %v3749_v54 }
 0x870   : > { %4702 = vmatpush1.bf16.msra.mxu0 %v19257_v59  ;;  %4733 = vmatprep.mubr.bf16.mxu0 %v3797_v52 }
 0x871   : > { %4703 = vmatprep.subr.bf16.mxu0 %v19262_v9 }
 0x874   : > { %4704 = vmatpush1.bf16.msra.mxu0 %v19260_v12 }
 0x875   : > { %4705 = vmatprep.subr.bf16.mxu0 %v19265_v56 }
 0x878   : > { %4706 = vmatpush1.bf16.msra.mxu0 %v19263_v24 }
 0x879   : > { %4707 = vmatprep.subr.bf16.mxu0 %v19268_v48 }
 0x87c   : > { %4708 = vmatpush1.bf16.msra.mxu0 %v19266_v62 }
 0x87d   : > { %4709 = vmatprep.subr.bf16.mxu0 %v19271_v25 }
 0x880   : > { %4710 = vmatpush1.bf16.msra.mxu0 %v19269_v35 }
 0x881   : > { %4711 = vmatprep.subr.bf16.mxu0 %v19274_v53 }
 0x884   : > { %4712 = vmatpush1.bf16.msra.mxu0 %v19272_v28 }
 0x885   : > { %4713 = vmatprep.subr.bf16.mxu0 %v19277_v29 }
 0x888   : > { %4714 = vmatpush1.bf16.msra.mxu0 %v19275_v6 }
 0x889   : > { %4715 = vmatprep.subr.bf16.mxu0 %v19280_v57 }
 0x88c   : > { %4716 = vmatpush1.bf16.msra.mxu0 %v19278_v7 }
 0x88d   : > { %4717 = vmatprep.subr.bf16.mxu0 %v19283_v61 }
 0x890   : > { %4718 = vmatpush1.bf16.msra.mxu0 %v19281_v63 }
 0x891   : > { %4719 = vmatprep.subr.bf16.mxu0 %v19286_v0 }
 0x894   : > { %4720 = vmatpush1.bf16.msra.mxu0 %v19284_v10  ;;  %v19353_v10 = vld [vmem:[#allocation5 + $0x100] ss:$8 sps:$4 sm:$0xff]  }
 0x895   : > { %4721 = vmatprep.subr.bf16.mxu0 %v19289_v11 }
 0x898   : > { %4722 = vmatpush1.bf16.msra.mxu0 %v19287_v13 }
 0x899   : > { %4723 = vmatprep.subr.bf16.mxu0 %v19292_v14 }
 0x89c   : > { %4724 = vmatpush1.bf16.msra.mxu0 %v19290_v17 }
 0x89d   : > { %4725 = vmatprep.subr.bf16.mxu0 %v19295_v18  ;;  %v19358_v18 = vld [vmem:[#allocation5 + $0x114] ss:$8 sps:$4 sm:$0xff]  }
 0x8a0   : > { %4726 = vmatpush1.bf16.msra.mxu0 %v19293_v21 }
 0x8a1   : > { %4727 = vmatprep.subr.bf16.mxu0 %v19298_v23 }
 0x8a4   : > { %4728 = vmatpush1.bf16.msra.mxu0 %v19296_v32 }
 0x8a5   : > { %4729 = vmatprep.subr.bf16.mxu0 %v19301_v36 }
 0x8a8   : > { %4730 = vmatpush1.bf16.msra.mxu0 %v19299_v34 }
 0x8a9   : > { %4731 = vmatprep.subr.bf16.mxu0 %v19304_v43 }
 0x8ac   : > { %4732 = vmatpush1.bf16.msra.mxu0 %v19302_v38 }
 0x8af   : > { %4734 = vmatmul.mubr.bf16.vlgmr.msra.gmra.mrb[36].mxu0 %v3796_v42 }
 0x982   : > { %v4735_v41 = vpop.f32.mrb[36].mxu0 }
 0x983   : > { %v18370_v37 = vadd.f32 %v4735_v41, %v3931_v22  ;;  %v4737_v39 = vpop.f32.mrb[37].mxu0 }
 0x984   : > { %v18371_v20 = vadd.f32 %v4737_v39, %v3935_v31  ;;  %v4739_v40 = vpop.f32.mrb[38].mxu0  ;;  %v19359_v39 = vld [vmem:[#allocation5 + $0x120] ss:$8 sps:$4 sm:$0xff]  }
 0x985   : > { %v4742_v54 = vmax.f32 %v18370_v37, 0.0  ;;  %v4740_v59 = vpop.f32.mrb[39].mxu0  ;;  %v19362_v40 = vld [vmem:[#allocation5 + $0x130] ss:$8 sps:$4 sm:$0xff]  }
 0x986   : > { %v4743_v52 = vmax.f32 %v18371_v20, 0.0  ;;  %v19364_v20 = vld [vmem:[#allocation5 + $0x134] ss:$8 sps:$4 sm:$0xff]   ;;  %v19365_v59 = vld [vmem:[#allocation5 + $0x140] ss:$8 sps:$4 sm:$0xff]  }
 0x987   : > { %v22634_v12 = vpack.c.bf16 %v4742_v54, %v4742_v54  ;;  %v19367_v54 = vld [vmem:[#allocation5 + $0x144] ss:$8 sps:$4 sm:$0xff]  }
 0x988   : > { %v22636_v56 = vpack.c.bf16 %v4743_v52, %v4743_v52  ;;  %v19370_v52 = vld [vmem:[#allocation5 + $0x154] ss:$8 sps:$4 sm:$0xff]  }
 0x989   : > { %v4747_v48 = vshrl.u32 %v22634_v12, 16  ;;  %v4754_v62 = vrot.slane %v22634_v12, 1  ;;  %v4761_v25 = vsel %vm22630_vm6, 0, %v22634_v12  ;;  %v4777_v35 = vshll.u32 %v22634_v12, 16 }
 0x98a   : > { %v4750_v53 = vshrl.u32 %v22636_v56, 16  ;;  %v4755_v28 = vrot.slane %v22636_v56, 1  ;;  %v4762_v29 = vsel %vm22630_vm6, 0, %v22636_v56  ;;  %v4780_v6 = vshll.u32 %v22636_v56, 16 }
 0x98b   : > { %v4766_v57 = vsel %vm4758_vm3, %v4761_v25, %v4747_v48  ;;  %v4779_v7 = vrot.slane %v4777_v35, 1  ;;  %v22656_v61 = vrot.slane %v4777_v35, 2  ;;  %v4806_v63 = vrot.slane %v22636_v56, 2  ;;  %v19373_v25 = vld [vmem:[#allocation5 + $0x164] ss:$8 sps:$4 sm:$0xff]  }
 0x98c   : > { %v4770_v0 = vsel %vm4758_vm3, %v4762_v29, %v4750_v53  ;;  %v4775_v11 = vsel %vm22639_vm9, %v4766_v57, %v4754_v62  ;;  %v4782_v13 = vrot.slane %v4780_v6, 1  ;;  %v4786_v14 = vrot.slane %v4780_v6, 2  ;;  %v19376_v35 = vld [vmem:[#allocation5 + $0x174] ss:$8 sps:$4 sm:$0xff]   ;;  %v19377_v29 = vld [vmem:[#allocation5 + $0x180] ss:$8 sps:$4 sm:$0xff]  }
 0x98d   : > { %v4776_v17 = vsel %vm22639_vm9, %v4770_v0, %v4755_v28  ;;  %v4789_v21 = vsel %vm22630_vm6, %v22634_v12, %v4779_v7  ;;  %v4804_v23 = vrot.slane %v4750_v53, 1  ;;  %v4810_v32 = vsel %vm22630_vm6, %v4750_v53, %v4755_v28  ;;  %v19374_v53 = vld [vmem:[#allocation5 + $0x170] ss:$8 sps:$4 sm:$0xff]   ;;  %v19382_v6 = vld [vmem:[#allocation5 + $0x194] ss:$8 sps:$4 sm:$0xff]  }
 0x98e   : > { %5645 = vmatprep.mubr.bf16.mxu1 %v4776_v17  ;;  %v4790_v36 = vsel %vm22630_vm6, %v22636_v56, %v4782_v13  ;;  %v22673_v34 = vsel %vm4758_vm3, %v4789_v21, %v4754_v62  ;;  %v4803_v43 = vrot.slane %v4747_v48, 1  ;;  %v4805_v38 = vrot.slane %v22634_v12, 2  ;;  %v19380_v57 = vld [vmem:[#allocation5 + $0x190] ss:$8 sps:$4 sm:$0xff]   ;;  %v19385_v7 = vld [vmem:[#allocation5 + $0x1a4] ss:$8 sps:$4 sm:$0xff]  }
 0x98f   : > { %5646 = vmatmul.mubr.bf16.vlgmr.msra.gmra.mrb[40].mxu1 %v4775_v11  ;;  %v4797_v42 = vsel %vm4758_vm3, %v4790_v36, %v4755_v28  ;;  %v4799_v44 = vsel %vm22639_vm9, %v22673_v34, %v22656_v61  ;;  %v22682_v46 = vsel %vm4758_vm3, %v4810_v32, %v4804_v23  ;;  %v4809_v47 = vsel %vm22630_vm6, %v4747_v48, %v4754_v62  ;;  %v19368_v48 = vld [vmem:[#allocation5 + $0x150] ss:$8 sps:$4 sm:$0xff]   ;;  %v19383_v0 = vld [vmem:[#allocation5 + $0x1a0] ss:$8 sps:$4 sm:$0xff]   ;;  %v19391_v13 = vld [vmem:[#allocation5 + $0x1c4] ss:$8 sps:$4 sm:$0xff]  }
 0x990   : > { %5655 = vmatpush1.bf16.msra.mxu1 %v19353_v10  ;;  %v4800_v49 = vsel %vm22639_vm9, %v4797_v42, %v4786_v14  ;;  %v4813_v51 = vsel %vm4758_vm3, %v4809_v47, %v4803_v43  ;;  %v4822_v58 = vsel %vm22630_vm6, %v4755_v28, %v4786_v14  ;;  %v4821_v41 = vsel %vm22630_vm6, %v4754_v62, %v22656_v61  ;;  %v19371_v62 = vld [vmem:[#allocation5 + $0x160] ss:$8 sps:$4 sm:$0xff]   ;;  %v19379_v28 = vld [vmem:[#allocation5 + $0x184] ss:$8 sps:$4 sm:$0xff]   ;;  %v19388_v10 = vld [vmem:[#allocation5 + $0x1b4] ss:$8 sps:$4 sm:$0xff]  }
 0x991   : > { %5686 = vmatprep.mubr.bf16.mxu1 %v4800_v49  ;;  %5656 = vmatprep.subr.bf16.mxu1 %v19358_v18  ;;  %v22693_v22 = vsel %vm22639_vm9, %v4813_v51, %v4805_v38  ;;  %v22698_v31 = vsel %vm4758_vm3, %v4822_v58, %v4806_v63  ;;  %v22704_v37 = vsel %vm4758_vm3, %v4821_v41, %v4805_v38  ;;  %v19386_v11 = vld [vmem:[#allocation5 + $0x1b0] ss:$8 sps:$4 sm:$0xff]   ;;  %v19389_v14 = vld [vmem:[#allocation5 + $0x1c0] ss:$8 sps:$4 sm:$0xff]   ;;  %v19394_v17 = vld [vmem:[#allocation5 + $0x1d4] ss:$8 sps:$4 sm:$0xff]  }
 0x992   : > { %v19392_v18 = vld [vmem:[#allocation5 + $0x1d0] ss:$8 sps:$4 sm:$0xff]   ;;  %v19397_v21 = vld [vmem:[#allocation5 + $0x1e4] ss:$8 sps:$4 sm:$0xff]   ;;  %v19395_v23 = vld [vmem:[#allocation5 + $0x1e0] ss:$8 sps:$4 sm:$0xff]   ;;  %v4820_v47 = vsel %vm22639_vm9, %v22682_v46, %v4806_v63 }
 0x993   : > { %v19400_v32 = vld [vmem:[#allocation5 + $0x1f4] ss:$8 sps:$4 sm:$0xff]   ;;  %v19398_v36 = vld [vmem:[#allocation5 + $0x1f0] ss:$8 sps:$4 sm:$0xff]   ;;  %v19403_v43 = vld [vmem:[#allocation5 + $0x204] ss:$8 sps:$4 sm:$0xff]  }
 0x994   : > { %5657 = vmatpush1.bf16.msra.mxu1 %v19356_v50  ;;  %v19401_v38 = vld [vmem:[#allocation5 + $0x200] ss:$8 sps:$4 sm:$0xff]   ;;  %v19406_v42 = vld [vmem:[#allocation5 + $0x214] ss:$8 sps:$4 sm:$0xff]   ;;  %v19404_v51 = vld [vmem:[#allocation5 + $0x210] ss:$8 sps:$4 sm:$0xff]  }
 0x995   : > { %5658 = vmatprep.subr.bf16.mxu1 %v19361_v60  ;;  %v19497_v49 = vld [vmem:[#allocation7 + $0x40] sm:$0xff]   ;;  %v19500_v58 = vld [vmem:[#allocation7 + $0x48] sm:$0xff]   ;;  %v19504_v61 = vld [vmem:[#allocation7 + $0x50] sm:$0xff]  }
 0x996   : > { %v19498_v50 = vld [vmem:[#allocation7] sm:$0xff]   ;;  %17993 = vmatprep.subr.bf16.mxu0 %v19497_v49  ;;  %v19502_v41 = vld [vmem:[#allocation7 + $0x8] sm:$0xff]   ;;  %v19508_v63 = vld [vmem:[#allocation7 + $0x58] sm:$0xff]  }
 0x997   : > { %v19409_v60 = vld [vmem:[#allocation5 + $0x224] ss:$8 sps:$4 sm:$0xff]   ;;  %17994 = vmatpush3.bf16.msra.mxu0 %v19498_v50  ;;  %v19407_v34 = vld [vmem:[#allocation5 + $0x220] ss:$8 sps:$4 sm:$0xff]   ;;  %v19410_v46 = vld [vmem:[#allocation5 + $0x230] ss:$8 sps:$4 sm:$0xff]  }
 0x998   : > { %5659 = vmatpush1.bf16.msra.mxu1 %v19359_v39  ;;  %17995 = vmatprep.subr.bf16.mxu0 %v19500_v58  ;;  %v19506_v39 = vld [vmem:[#allocation7 + $0x10] sm:$0xff]   ;;  %v19449_v49 = vld [vmem:[#allocation5 + $0x300] ss:$8 sps:$4 sm:$0xff]  }
 0x999   : > { %5660 = vmatprep.subr.bf16.mxu1 %v19364_v20  ;;  %v19415_v20 = vld [vmem:[#allocation5 + $0x244] ss:$8 sps:$4 sm:$0xff]   ;;  %v19454_v50 = vld [vmem:[#allocation5 + $0x314] ss:$8 sps:$4 sm:$0xff]   ;;  %v19452_v58 = vld [vmem:[#allocation5 + $0x310] ss:$8 sps:$4 sm:$0xff]  }
 0x99b   : > { %17996 = vmatpush3.bf16.msra.mxu0 %v19502_v41  ;;  %v19455_v41 = vld [vmem:[#allocation5 + $0x320] ss:$8 sps:$4 sm:$0xff]  }
 0x99c   : > { %5661 = vmatpush1.bf16.msra.mxu1 %v19362_v40  ;;  %17997 = vmatprep.subr.bf16.mxu0 %v19504_v61  ;;  %v19510_v40 = vld [vmem:[#allocation7 + $0x18] sm:$0xff]  }
 0x99d   : > { %5662 = vmatprep.subr.bf16.mxu1 %v19367_v54  ;;  %v19512_v54 = vld [vmem:[#allocation7 + $0x60] sm:$0xff]   ;;  %v19460_v61 = vld [vmem:[#allocation5 + $0x334] ss:$8 sps:$4 sm:$0xff]  }
 0x99f   : > { %17998 = vmatpush3.bf16.msra.mxu0 %v19506_v39  ;;  %v19461_v39 = vld [vmem:[#allocation5 + $0x340] ss:$8 sps:$4 sm:$0xff]  }
 0x9a0   : > { %5663 = vmatpush1.bf16.msra.mxu1 %v19365_v59  ;;  %17999 = vmatprep.subr.bf16.mxu0 %v19508_v63  ;;  %v19413_v59 = vld [vmem:[#allocation5 + $0x240] ss:$8 sps:$4 sm:$0xff]   ;;  %v19464_v63 = vld [vmem:[#allocation5 + $0x350] ss:$8 sps:$4 sm:$0xff]  }
 0x9a1   : > { %5664 = vmatprep.subr.bf16.mxu1 %v19370_v52  ;;  %v19418_v52 = vld [vmem:[#allocation5 + $0x254] ss:$8 sps:$4 sm:$0xff]  }
 0x9a3   : > { %18000 = vmatpush3.bf16.msra.mxu0 %v19510_v40  ;;  %v19470_v40 = vld [vmem:[#allocation5 + $0x370] ss:$8 sps:$4 sm:$0xff]  }
 0x9a4   : > { %5665 = vmatpush1.bf16.msra.mxu1 %v19368_v48  ;;  %v19514_v48 = vld [vmem:[#allocation7 + $0x20] sm:$0xff]   ;;  %18001 = vmatprep.subr.bf16.mxu0 %v19512_v54 }
 0x9a5   : > { %5666 = vmatprep.subr.bf16.mxu1 %v19373_v25  ;;  %v19516_v25 = vld [vmem:[#allocation7 + $0x68] sm:$0xff]  }
 0x9a6   : > { %v19475_v54 = vld [vmem:[#allocation5 + $0x384] ss:$8 sps:$4 sm:$0xff]  }
 0x9a7   : > { %18002 = vmatpush3.bf16.msra.mxu0 %v19514_v48  ;;  %v19476_v48 = vld [vmem:[#allocation5 + $0x390] ss:$8 sps:$4 sm:$0xff]  }
 0x9a8   : > { %5667 = vmatpush1.bf16.msra.mxu1 %v19371_v62  ;;  %v19416_v62 = vld [vmem:[#allocation5 + $0x250] ss:$8 sps:$4 sm:$0xff]   ;;  %18003 = vmatprep.subr.bf16.mxu0 %v19516_v25  ;;  %v19481_v25 = vld [vmem:[#allocation5 + $0x3a4] ss:$8 sps:$4 sm:$0xff]  }
 0x9a9   : > { %5668 = vmatprep.subr.bf16.mxu1 %v19376_v35  ;;  %v19421_v35 = vld [vmem:[#allocation5 + $0x264] ss:$8 sps:$4 sm:$0xff]  }
 0x9ac   : > { %5669 = vmatpush1.bf16.msra.mxu1 %v19374_v53  ;;  %v19518_v53 = vld [vmem:[#allocation7 + $0x28] sm:$0xff]  }
 0x9ad   : > { %5670 = vmatprep.subr.bf16.mxu1 %v19379_v28  ;;  %v19419_v28 = vld [vmem:[#allocation5 + $0x260] ss:$8 sps:$4 sm:$0xff]   ;;  %18004 = vmatpush3.bf16.msra.mxu0 %v19518_v53  ;;  %v19482_v53 = vld [vmem:[#allocation5 + $0x3b0] ss:$8 sps:$4 sm:$0xff]  }
 0x9b0   : > { %5671 = vmatpush1.bf16.msra.mxu1 %v19377_v29  ;;  %v19424_v29 = vld [vmem:[#allocation5 + $0x274] ss:$8 sps:$4 sm:$0xff]  }
 0x9b1   : > { %5672 = vmatprep.subr.bf16.mxu1 %v19382_v6  ;;  %v19422_v6 = vld [vmem:[#allocation5 + $0x270] ss:$8 sps:$4 sm:$0xff]  }
 0x9b4   : > { %5673 = vmatpush1.bf16.msra.mxu1 %v19380_v57  ;;  %v19427_v57 = vld [vmem:[#allocation5 + $0x284] ss:$8 sps:$4 sm:$0xff]  }
 0x9b5   : > { %5674 = vmatprep.subr.bf16.mxu1 %v19385_v7  ;;  %v19425_v7 = vld [vmem:[#allocation5 + $0x280] ss:$8 sps:$4 sm:$0xff]  }
 0x9b8   : > { %5675 = vmatpush1.bf16.msra.mxu1 %v19383_v0  ;;  %v19430_v0 = vld [vmem:[#allocation5 + $0x294] ss:$8 sps:$4 sm:$0xff]  }
 0x9b9   : > { %5676 = vmatprep.subr.bf16.mxu1 %v19388_v10  ;;  %v19428_v10 = vld [vmem:[#allocation5 + $0x290] ss:$8 sps:$4 sm:$0xff]  }
 0x9bc   : > { %5677 = vmatpush1.bf16.msra.mxu1 %v19386_v11  ;;  %v19433_v11 = vld [vmem:[#allocation5 + $0x2a4] ss:$8 sps:$4 sm:$0xff]  }
 0x9bd   : > { %5678 = vmatprep.subr.bf16.mxu1 %v19391_v13  ;;  %v19431_v13 = vld [vmem:[#allocation5 + $0x2a0] ss:$8 sps:$4 sm:$0xff]  }
 0x9c0   : > { %5679 = vmatpush1.bf16.msra.mxu1 %v19389_v14  ;;  %v19436_v14 = vld [vmem:[#allocation5 + $0x2b4] ss:$8 sps:$4 sm:$0xff]  }
 0x9c1   : > { %5680 = vmatprep.subr.bf16.mxu1 %v19394_v17  ;;  %v19434_v17 = vld [vmem:[#allocation5 + $0x2b0] ss:$8 sps:$4 sm:$0xff]  }
 0x9c4   : > { %5681 = vmatpush1.bf16.msra.mxu1 %v19392_v18  ;;  %v19439_v18 = vld [vmem:[#allocation5 + $0x2c4] ss:$8 sps:$4 sm:$0xff]  }
 0x9c5   : > { %5682 = vmatprep.subr.bf16.mxu1 %v19397_v21  ;;  %v19437_v21 = vld [vmem:[#allocation5 + $0x2c0] ss:$8 sps:$4 sm:$0xff]  }
 0x9c8   : > { %5683 = vmatpush1.bf16.msra.mxu1 %v19395_v23  ;;  %v19442_v23 = vld [vmem:[#allocation5 + $0x2d4] ss:$8 sps:$4 sm:$0xff]  }
 0x9c9   : > { %5684 = vmatprep.subr.bf16.mxu1 %v19400_v32  ;;  %v19440_v32 = vld [vmem:[#allocation5 + $0x2d0] ss:$8 sps:$4 sm:$0xff]  }
 0x9cc   : > { %5685 = vmatpush1.bf16.msra.mxu1 %v19398_v36  ;;  %v19445_v36 = vld [vmem:[#allocation5 + $0x2e4] ss:$8 sps:$4 sm:$0xff]  }
 0x9cd   : > { %5695 = vmatprep.subr.bf16.mxu1 %v19403_v43  ;;  %v19443_v43 = vld [vmem:[#allocation5 + $0x2e0] ss:$8 sps:$4 sm:$0xff]  }
 0x9cf   : > { %5687 = vmatmul.mubr.bf16.vlgmr.msra.gmra.mrb[40].mxu1 %v4799_v44  ;;  %v19412_v44 = vld [vmem:[#allocation5 + $0x234] ss:$8 sps:$4 sm:$0xff]  }
 0x9d0   : > { %5696 = vmatpush1.bf16.msra.mxu1 %v19401_v38  ;;  %5727 = vmatprep.mubr.bf16.mxu1 %v4820_v47  ;;  %v19448_v38 = vld [vmem:[#allocation5 + $0x2f4] ss:$8 sps:$4 sm:$0xff]   ;;  %v19451_v47 = vld [vmem:[#allocation5 + $0x304] ss:$8 sps:$4 sm:$0xff]  }
 0x9d1   : > { %5697 = vmatprep.subr.bf16.mxu1 %v19406_v42  ;;  %v19446_v42 = vld [vmem:[#allocation5 + $0x2f0] ss:$8 sps:$4 sm:$0xff]  }
 0x9d4   : > { %5698 = vmatpush1.bf16.msra.mxu1 %v19404_v51  ;;  %v4832_v51 = vsel %vm22639_vm9, %v22698_v31, 0  ;;  %v19469_v31 = vld [vmem:[#allocation5 + $0x364] ss:$8 sps:$4 sm:$0xff]  }
 0x9d5   : > { %5699 = vmatprep.subr.bf16.mxu1 %v19409_v60  ;;  %v19457_v60 = vld [vmem:[#allocation5 + $0x324] ss:$8 sps:$4 sm:$0xff]  }
 0x9d8   : > { %5700 = vmatpush1.bf16.msra.mxu1 %v19407_v34  ;;  %v19458_v34 = vld [vmem:[#allocation5 + $0x330] ss:$8 sps:$4 sm:$0xff]  }
 0x9d9   : > { %5701 = vmatprep.subr.bf16.mxu1 %v19412_v44  ;;  %v19463_v44 = vld [vmem:[#allocation5 + $0x344] ss:$8 sps:$4 sm:$0xff]  }
 0x9dc   : > { %5702 = vmatpush1.bf16.msra.mxu1 %v19410_v46  ;;  %v19467_v46 = vld [vmem:[#allocation5 + $0x360] ss:$8 sps:$4 sm:$0xff]  }
 0x9dd   : > { %5703 = vmatprep.subr.bf16.mxu1 %v19415_v20  ;;  %v19472_v20 = vld [vmem:[#allocation5 + $0x374] ss:$8 sps:$4 sm:$0xff]  }
 0x9e0   : > { %5704 = vmatpush1.bf16.msra.mxu1 %v19413_v59  ;;  %v19473_v59 = vld [vmem:[#allocation5 + $0x380] ss:$8 sps:$4 sm:$0xff]  }
 0x9e1   : > { %5705 = vmatprep.subr.bf16.mxu1 %v19418_v52  ;;  %v19478_v52 = vld [vmem:[#allocation5 + $0x394] ss:$8 sps:$4 sm:$0xff]  }
 0x9e4   : > { %5706 = vmatpush1.bf16.msra.mxu1 %v19416_v62  ;;  %v19479_v62 = vld [vmem:[#allocation5 + $0x3a0] ss:$8 sps:$4 sm:$0xff]  }
 0x9e5   : > { %5707 = vmatprep.subr.bf16.mxu1 %v19421_v35  ;;  %v19484_v35 = vld [vmem:[#allocation5 + $0x3b4] ss:$8 sps:$4 sm:$0xff]  }
 0x9e8   : > { %5708 = vmatpush1.bf16.msra.mxu1 %v19419_v28  ;;  %v19487_v28 = vld [vmem:[#allocation5 + $0x3c4] ss:$8 sps:$4 sm:$0xff]  }
 0x9e9   : > { %5709 = vmatprep.subr.bf16.mxu1 %v19424_v29  ;;  %v19485_v29 = vld [vmem:[#allocation5 + $0x3c0] ss:$8 sps:$4 sm:$0xff]  }
 0x9ec   : > { %5710 = vmatpush1.bf16.msra.mxu1 %v19422_v6  ;;  %v19490_v6 = vld [vmem:[#allocation5 + $0x3d4] ss:$8 sps:$4 sm:$0xff]  }
 0x9ed   : > { %5711 = vmatprep.subr.bf16.mxu1 %v19427_v57  ;;  %v19488_v57 = vld [vmem:[#allocation5 + $0x3d0] ss:$8 sps:$4 sm:$0xff]  }
 0x9f0   : > { %5712 = vmatpush1.bf16.msra.mxu1 %v19425_v7  ;;  %v19493_v7 = vld [vmem:[#allocation5 + $0x3e4] ss:$8 sps:$4 sm:$0xff]  }
 0x9f1   : > { %5713 = vmatprep.subr.bf16.mxu1 %v19430_v0  ;;  %v19491_v0 = vld [vmem:[#allocation5 + $0x3e0] ss:$8 sps:$4 sm:$0xff]  }
 0x9f4   : > { %5714 = vmatpush1.bf16.msra.mxu1 %v19428_v10  ;;  %v19496_v10 = vld [vmem:[#allocation5 + $0x3f4] ss:$8 sps:$4 sm:$0xff]  }
 0x9f5   : > { %5715 = vmatprep.subr.bf16.mxu1 %v19433_v11  ;;  %v19494_v11 = vld [vmem:[#allocation5 + $0x3f0] ss:$8 sps:$4 sm:$0xff]  }
 0x9f8   : > { %5716 = vmatpush1.bf16.msra.mxu1 %v19431_v13  ;;  %v19499_v13 = vld [vmem:[#allocation7 + $0x1c0] sm:$0xff]  }
 0x9f9   : > { %5717 = vmatprep.subr.bf16.mxu1 %v19436_v14  ;;  %v19501_v14 = vld [vmem:[#allocation7 + $0x180] sm:$0xff]  }
 0x9fc   : > { %5718 = vmatpush1.bf16.msra.mxu1 %v19434_v17  ;;  %v19503_v17 = vld [vmem:[#allocation7 + $0x1c8] sm:$0xff]  }
 0x9fd   : > { %5719 = vmatprep.subr.bf16.mxu1 %v19439_v18  ;;  %v4831_v18 = vsel %vm22639_vm9, %v22704_v37, 0  ;;  %v19521_v37 = vld [vmem:[#allocation7 + $0x1a8] sm:$0xff]  }
 0xa00   : > { %5720 = vmatpush1.bf16.msra.mxu1 %v19437_v21  ;;  %v19505_v21 = vld [vmem:[#allocation7 + $0x188] sm:$0xff]  }
 0xa01   : > { %5721 = vmatprep.subr.bf16.mxu1 %v19442_v23  ;;  %v19507_v23 = vld [vmem:[#allocation7 + $0x1d0] sm:$0xff]  }
 0xa04   : > { %5722 = vmatpush1.bf16.msra.mxu1 %v19440_v32  ;;  %v19509_v32 = vld [vmem:[#allocation7 + $0x190] sm:$0xff]  }
 0xa05   : > { %5723 = vmatprep.subr.bf16.mxu1 %v19445_v36  ;;  %v19511_v36 = vld [vmem:[#allocation7 + $0x1d8] sm:$0xff]  }
 0xa08   : > { %5724 = vmatpush1.bf16.msra.mxu1 %v19443_v43  ;;  %v19513_v43 = vld [vmem:[#allocation7 + $0x198] sm:$0xff]  }
 0xa09   : > { %5725 = vmatprep.subr.bf16.mxu1 %v19448_v38  ;;  %v19515_v38 = vld [vmem:[#allocation7 + $0x1e0] sm:$0xff]  }
 0xa0c   : > { %5726 = vmatpush1.bf16.msra.mxu1 %v19446_v42  ;;  %v19517_v42 = vld [vmem:[#allocation7 + $0x1a0] sm:$0xff]  }
 0xa0d   : > { %5736 = vmatprep.subr.bf16.mxu1 %v19451_v47  ;;  %v19519_v47 = vld [vmem:[#allocation7 + $0x1e8] sm:$0xff]  }
 0xa0f   : > { %5728 = vmatmul.mubr.bf16.vlgmr.msra.gmra.mrb[40].mxu1 %v22693_v22  ;;  %v19466_v22 = vld [vmem:[#allocation5 + $0x354] ss:$8 sps:$4 sm:$0xff]  }
 0xa10   : > { %5737 = vmatpush1.bf16.msra.mxu1 %v19449_v49  ;;  %5768 = vmatprep.mubr.bf16.mxu1 %v4832_v51  ;;  %v19520_v49 = vld [vmem:[#allocation7 + $0x70] sm:$0xff]  }
 0xa11   : > { %5738 = vmatprep.subr.bf16.mxu1 %v19454_v50  ;;  %v19522_v50 = vld [vmem:[#allocation7 + $0x30] sm:$0xff]   ;;  %18005 = vmatprep.subr.bf16.mxu0 %v19520_v49 }
 0xa12   : > { %18006 = vmatpush3.bf16.msra.mxu0 %v19522_v50  ;;  %v19523_v51 = vld [vmem:[#allocation7 + $0x1f0] sm:$0xff]  }
 0xa14   : > { %5739 = vmatpush1.bf16.msra.mxu1 %v19452_v58  ;;  %v19524_v58 = vld [vmem:[#allocation7 + $0x78] sm:$0xff]  }
 0xa15   : > { %5740 = vmatprep.subr.bf16.mxu1 %v19457_v60  ;;  %v19525_v60 = vld [vmem:[#allocation7 + $0x1b0] sm:$0xff]   ;;  %18007 = vmatprep.subr.bf16.mxu0 %v19524_v58 }
 0xa18   : > { %5741 = vmatpush1.bf16.msra.mxu1 %v19455_v41  ;;  %v19526_v41 = vld [vmem:[#allocation7 + $0x38] sm:$0xff]  }
 0xa19   : > { %5742 = vmatprep.subr.bf16.mxu1 %v19460_v61  ;;  %v19527_v61 = vld [vmem:[#allocation7 + $0x1f8] sm:$0xff]   ;;  %18008 = vmatpush3.bf16.msra.mxu0 %v19526_v41 }
 0xa1c   : > { %5743 = vmatpush1.bf16.msra.mxu1 %v19458_v34  ;;  %v19528_v34 = vld [vmem:[#allocation7 + $0xc0] sm:$0xff]  }
 0xa1d   : > { %5744 = vmatprep.subr.bf16.mxu1 %v19463_v44  ;;  %v19529_v44 = vld [vmem:[#allocation7 + $0x1b8] sm:$0xff]   ;;  %18015 = vmatprep.subr.bf16.mxu0 %v19528_v34 }
 0xa1e   : > { %v19535_v34 = vld [vmem:[#allocation7 + $0xd8] sm:$0xff]  }
 0xa20   : > { %5745 = vmatpush1.bf16.msra.mxu1 %v19461_v39  ;;  %v4961_v39 = vld [vmem:[%s23987_s8] sm:$0x3]  ;;  %s24022_s8 = sld [smem:[#allocation52_spill]] }
 0xa21   : > { %5746 = vmatprep.subr.bf16.mxu1 %v19466_v22  ;;  %v4966_v22 = vrot.slane %v4961_v39, %v22235_v30 }
 0xa24   : > { %5747 = vmatpush1.bf16.msra.mxu1 %v19464_v63  ;;  %v4970_v63 = vrot.slane %v4961_v39, %v22239_v33  ;;  %v19537_v39 = vld [vmem:[#allocation7 + $0xe0] sm:$0xff]  }
 0xa25   : > { %5748 = vmatprep.subr.bf16.mxu1 %v19469_v31 }
 0xa28   : > { %5749 = vmatpush1.bf16.msra.mxu1 %v19467_v46 }
 0xa29   : > { %5750 = vmatprep.subr.bf16.mxu1 %v19472_v20 }
 0xa2c   : > { %5751 = vmatpush1.bf16.msra.mxu1 %v19470_v40 }
 0xa2d   : > { %5752 = vmatprep.subr.bf16.mxu1 %v19475_v54 }
 0xa30   : > { %5753 = vmatpush1.bf16.msra.mxu1 %v19473_v59 }
 0xa31   : > { %5754 = vmatprep.subr.bf16.mxu1 %v19478_v52 }
 0xa34   : > { %5755 = vmatpush1.bf16.msra.mxu1 %v19476_v48 }
 0xa35   : > { %5756 = vmatprep.subr.bf16.mxu1 %v19481_v25 }
 0xa38   : > { %5757 = vmatpush1.bf16.msra.mxu1 %v19479_v62 }
 0xa39   : > { %5758 = vmatprep.subr.bf16.mxu1 %v19484_v35  ;;  %v19530_v35 = vld [vmem:[#allocation7 + $0x80] sm:$0xff]  }
 0xa3c   : > { %5759 = vmatpush1.bf16.msra.mxu1 %v19482_v53 }
 0xa3d   : > { %5760 = vmatprep.subr.bf16.mxu1 %v19487_v28 }
 0xa40   : > { %5761 = vmatpush1.bf16.msra.mxu1 %v19485_v29 }
 0xa41   : > { %5762 = vmatprep.subr.bf16.mxu1 %v19490_v6 }
 0xa44   : > { %5763 = vmatpush1.bf16.msra.mxu1 %v19488_v57 }
 0xa45   : > { %5764 = vmatprep.subr.bf16.mxu1 %v19493_v7  ;;  %v19531_v7 = vld [vmem:[#allocation7 + $0xc8] sm:$0xff]  }
 0xa48   : > { %5765 = vmatpush1.bf16.msra.mxu1 %v19491_v0 }
 0xa49   : > { %5766 = vmatprep.subr.bf16.mxu1 %v19496_v10 }
 0xa4c   : > { %5767 = vmatpush1.bf16.msra.mxu1 %v19494_v11 }
 0xa4d   : > { %18059 = vmatprep.subr.bf16.mxu1 %v19499_v13 }
 0xa4f   : > { %5769 = vmatmul.mubr.bf16.vlgmr.msra.gmra.mrb[40].mxu1 %v4831_v18 }
 0xa50   : > { %18060 = vmatpush3.bf16.msra.mxu1 %v19501_v14 }
 0xa51   : > { %18061 = vmatprep.subr.bf16.mxu1 %v19503_v17 }
 0xa54   : > { %18062 = vmatpush3.bf16.msra.mxu1 %v19505_v21 }
 0xa55   : > { %18063 = vmatprep.subr.bf16.mxu1 %v19507_v23 }
 0xa58   : > { %18064 = vmatpush3.bf16.msra.mxu1 %v19509_v32  ;;  %v19532_v32 = vld [vmem:[#allocation7 + $0x88] sm:$0xff]  }
 0xa59   : > { %18065 = vmatprep.subr.bf16.mxu1 %v19511_v36 }
 0xa5c   : > { %18066 = vmatpush3.bf16.msra.mxu1 %v19513_v43 }
 0xa5d   : > { %18067 = vmatprep.subr.bf16.mxu1 %v19515_v38 }
 0xa60   : > { %18068 = vmatpush3.bf16.msra.mxu1 %v19517_v42 }
 0xa61   : > { %18069 = vmatprep.subr.bf16.mxu1 %v19519_v47  ;;  %v19533_v47 = vld [vmem:[#allocation7 + $0xd0] sm:$0xff]  }
 0xa64   : > { %18070 = vmatpush3.bf16.msra.mxu1 %v19521_v37 }
 0xa65   : > { %18071 = vmatprep.subr.bf16.mxu1 %v19523_v51 }
 0xa68   : > { %18072 = vmatpush3.bf16.msra.mxu1 %v19525_v60 }
 0xa69   : > { %18073 = vmatprep.subr.bf16.mxu1 %v19527_v61  ;;  %v19534_v61 = vld [vmem:[#allocation7 + $0x90] sm:$0xff]  }
 0xa6c   : > { %18074 = vmatpush3.bf16.msra.mxu1 %v19529_v44  ;;  %v19536_v44 = vld [vmem:[#allocation7 + $0x98] sm:$0xff]  }
 0xb22   : > { %v5770_v31 = vpop.f32.mrb[40].mxu1 }
 0xb23   : > { %v18372_v46 = vadd.f32 %v5770_v31, %v4966_v22  ;;  %v5772_v20 = vpop.f32.mrb[41].mxu1  ;;  %v19538_v22 = vld [vmem:[#allocation7 + $0xa0] sm:$0xff]   ;;  %v19540_v31 = vld [vmem:[#allocation7 + $0xa8] sm:$0xff]  }
 0xb24   : > { %v18373_v40 = vadd.f32 %v5772_v20, %v4970_v63  ;;  %v5774_v54 = vpop.f32.mrb[42].mxu1  ;;  %v19539_v63 = vld [vmem:[#allocation7 + $0xe8] sm:$0xff]   ;;  %v19542_v20 = vld [vmem:[#allocation7 + $0xb0] sm:$0xff]  }
 0xb25   : > { %v5777_v59 = vmax.f32 %v18372_v46, 0.0  ;;  %v5775_v52 = vpop.f32.mrb[43].mxu1  ;;  %v19541_v46 = vld [vmem:[#allocation7 + $0xf0] sm:$0xff]   ;;  %v19544_v54 = vld [vmem:[#allocation7 + $0xb8] sm:$0xff]  }
 0xb26   : > { %v5778_v48 = vmax.f32 %v18373_v40, 0.0  ;;  %v19543_v40 = vld [vmem:[#allocation7 + $0xf8] sm:$0xff]   ;;  %v19546_v52 = vld [vmem:[#allocation7 + $0x100] sm:$0xff]  }
 0xb27   : > { %v22726_v25 = vpack.c.bf16 %v5777_v59, %v5777_v59  ;;  %v19545_v59 = vld [vmem:[#allocation7 + $0x140] sm:$0xff]  }
 0xb28   : > { %v22728_v62 = vpack.c.bf16 %v5778_v48, %v5778_v48  ;;  %v19547_v48 = vld [vmem:[#allocation7 + $0x148] sm:$0xff]  }
 0xb29   : > { %v5803_v53 = vrot.slane %v22726_v25, 1  ;;  %v22732_v28 = vshll.u32 %v22726_v25, 16  ;;  %v22735_v29 = vshrl.u32 %v22726_v25, 16  ;;  %v5781_v11 = vsel %vm22630_vm6, 0, %v22726_v25 }
 0xb2a   : > { %v5782_v6 = vsel %vm22630_vm6, 0, %v22728_v62  ;;  %v5804_v57 = vrot.slane %v22728_v62, 1  ;;  %v22742_v0 = vshll.u32 %v22728_v62, 16  ;;  %v5797_v10 = vshrl.u32 %v22728_v62, 16 }
 0xb2b   : > { %6362 = vmatprep.mubr.bf16.mxu0 %v5782_v6  ;;  %v5786_v13 = vrot.slane %v22732_v28, 1  ;;  %v7829_v14 = vrot.slane %v22735_v29, 7  ;;  %v5809_v23 = vsel %vm22630_vm6, %v5803_v53, 0  ;;  %v7831_v43 = vsel %vm22630_vm6, 0, %v22732_v28 }
 0xb2c   : > { %6363 = vmatmul.mubr.bf16.vlgmr.msra.gmra.mrb[40].mxu0 %v5781_v11  ;;  %v5810_v17 = vsel %vm22630_vm6, %v5804_v57, 0  ;;  %v5790_v18 = vrot.slane %v22742_v0, 1  ;;  %v7830_v21 = vrot.slane %v5797_v10, 7  ;;  %v7832_v36 = vsel %vm22630_vm6, 0, %v22742_v0  ;;  %v19549_v11 = vld [vmem:[#allocation7 + $0x150] sm:$0xff]  }
 0xb2d   : > { %18016 = vmatpush3.bf16.msra.mxu0 %v19530_v35  ;;  %6482 = vmatprep.mubr.bf16.mxu1 %v5810_v17  ;;  %v7847_v38 = vsel %vm22630_vm6, %v22735_v29, %v5786_v13  ;;  %v22775_v37 = vsel %vm4758_vm3, %v7831_v43, %v7829_v14  ;;  %v5793_v35 = vsel %vm22630_vm6, %v22726_v25, %v5786_v13  ;;  %v19550_v14 = vld [vmem:[#allocation7 + $0x110] sm:$0xff]   ;;  %v19551_v17 = vld [vmem:[#allocation7 + $0x158] sm:$0xff]   ;;  %v19554_v13 = vld [vmem:[#allocation7 + $0x120] sm:$0xff]  }
 0xb2e   : > { %6483 = vmatmul.mubr.bf16.vlgmr.msra.gmra.mrb[44].mxu1 %v5809_v23  ;;  %18017 = vmatprep.subr.bf16.mxu0 %v19531_v7  ;;  %v5794_v42 = vsel %vm22630_vm6, %v22728_v62, %v5790_v18  ;;  %v22772_v49 = vsel %vm4758_vm3, %v7832_v36, %v7830_v21  ;;  %v7841_v51 = vsel %vm22639_vm9, %v22775_v37, %v22732_v28  ;;  %v19548_v7 = vld [vmem:[#allocation7 + $0x108] sm:$0xff]   ;;  %v19553_v21 = vld [vmem:[#allocation7 + $0x160] sm:$0xff]   ;;  %v19559_v36 = vld [vmem:[#allocation7 + $0x178] sm:$0xff]  }
 0xb2f   : > { %6402 = vmatprep.mubr.bf16.mxu0 %v5794_v42  ;;  %6825 = vmatprep.mubr.bf16.mxu1 %v23916_v1  ;;  %v7842_v50 = vsel %vm22639_vm9, %v22772_v49, %v22742_v0  ;;  %v7848_v58 = vsel %vm22630_vm6, %v5797_v10, %v5790_v18  ;;  %v22793_v41 = vsel %vm4758_vm3, %v7847_v38, %v22735_v29  ;;  %v19552_v18 = vld [vmem:[#allocation7 + $0x118] sm:$0xff]   ;;  %v19555_v23 = vld [vmem:[#allocation7 + $0x168] sm:$0xff]   ;;  %v19561_v42 = vld [vmem:[%s23988_s26 + $0x40] sm:$0xff]   ;;  %s1273_s26 = sand.u32 1, %s21483_s23  }
 0xb30   : > { %v22789_v60 = vsel %vm4758_vm3, %v7848_v58, %v5797_v10  ;;  %v5808_v6 = vsel %vm22630_vm6, %v5797_v10, %v5804_v57  ;;  %v19556_v57 = vld [vmem:[#allocation7 + $0x128] sm:$0xff]   ;;  %v19557_v10 = vld [vmem:[#allocation7 + $0x170] sm:$0xff]   ;;  %v19560_v43 = vld [vmem:[#allocation7 + $0x138] sm:$0xff]   ;;  %v5807_v38 = vsel %vm22630_vm6, %v22735_v29, %v5803_v53 }
 0xb31   : > { %18018 = vmatpush3.bf16.msra.mxu0 %v19532_v32  ;;  %v19558_v32 = vld [vmem:[#allocation7 + $0x130] sm:$0xff]   ;;  %v19563_v58 = vld [vmem:[%s23989_s18] sm:$0xff]   ;;  %v19568_v53 = vld [vmem:[%s23989_s18 + $0x88] sm:$0xff]  }
 0xb32   : > { %18019 = vmatprep.subr.bf16.mxu0 %v19533_v47  ;;  %v19562_v47 = vld [vmem:[%s23989_s18 + $0xc0] sm:$0xff]   ;;  %v19569_v29 = vld [vmem:[%s23989_s18 + $0x50] sm:$0xff]  }
 0xb33   : > { %18103 = vmatprep.subr.bf16.mxu1 %v19562_v47  ;;  %v19642_v0 = vld [vmem:[#allocation25 + $0x30] ss:$8 sps:$4 sm:$0xff]   ;;  %v19647_v49 = vld [vmem:[#allocation25 + $0x44] ss:$8 sps:$4 sm:$0xff]  }
 0xb34   : > { %v19764_v28 = vld [vmem:[#allocation13 + $0xb4] ss:$8 sps:$4 sm:$0xff]  }
 0xb35   : > { %18020 = vmatpush3.bf16.msra.mxu0 %v19534_v61  ;;  %v19564_v61 = vld [vmem:[%s23989_s18 + $0x80] sm:$0xff]  }
 0xb36   : > { %18021 = vmatprep.subr.bf16.mxu0 %v19535_v34  ;;  %v19565_v34 = vld [vmem:[%s23989_s18 + $0x48] sm:$0xff]   ;;  %18104 = vmatpush3.bf16.msra.mxu1 %v19564_v61  ;;  %v19690_v37 = vld [vmem:[#allocation25 + $0x130] ss:$8 sps:$4 sm:$0xff]  }
 0xb39   : > { %18022 = vmatpush3.bf16.msra.mxu0 %v19536_v44  ;;  %v19566_v44 = vld [vmem:[%s23989_s18 + $0xc8] sm:$0xff]  }
 0xb3a   : > { %18023 = vmatprep.subr.bf16.mxu0 %v19537_v39  ;;  %v19567_v39 = vld [vmem:[%s23989_s18 + $0x8] sm:$0xff]   ;;  %18105 = vmatprep.subr.bf16.mxu1 %v19566_v44 }
 0xb3b   : > { %18106 = vmatpush3.bf16.msra.mxu1 %v19568_v53 }
 0xb3d   : > { %18024 = vmatpush3.bf16.msra.mxu0 %v19538_v22  ;;  %v19570_v22 = vld [vmem:[%s23989_s18 + $0xd0] sm:$0xff]  }
 0xb3e   : > { %18025 = vmatprep.subr.bf16.mxu0 %v19539_v63  ;;  %v19571_v63 = vld [vmem:[%s23989_s18 + $0x10] sm:$0xff]   ;;  %18107 = vmatprep.subr.bf16.mxu1 %v19570_v22 }
 0xb41   : > { %18026 = vmatpush3.bf16.msra.mxu0 %v19540_v31  ;;  %v19572_v31 = vld [vmem:[%s23989_s18 + $0x90] sm:$0xff]  }
 0xb42   : > { %18027 = vmatprep.subr.bf16.mxu0 %v19541_v46  ;;  %v19573_v46 = vld [vmem:[%s23989_s18 + $0x58] sm:$0xff]   ;;  %18108 = vmatpush3.bf16.msra.mxu1 %v19572_v31 }
 0xb45   : > { %18028 = vmatpush3.bf16.msra.mxu0 %v19542_v20  ;;  %v19574_v20 = vld [vmem:[%s23989_s18 + $0xd8] sm:$0xff]  }
 0xb46   : > { %18029 = vmatprep.subr.bf16.mxu0 %v19543_v40  ;;  %v19575_v40 = vld [vmem:[%s23989_s18 + $0x18] sm:$0xff]   ;;  %18109 = vmatprep.subr.bf16.mxu1 %v19574_v20 }
 0xb49   : > { %18030 = vmatpush3.bf16.msra.mxu0 %v19544_v54  ;;  %v19576_v54 = vld [vmem:[%s23989_s18 + $0x98] sm:$0xff]  }
 0xb4a   : > { %18037 = vmatprep.subr.bf16.mxu0 %v19545_v59  ;;  %v19577_v59 = vld [vmem:[%s23989_s18 + $0x60] sm:$0xff]   ;;  %18110 = vmatpush3.bf16.msra.mxu1 %v19576_v54 }
 0xb4c   : > { %6403 = vmatmul.mubr.bf16.vlgmr.msra.gmra.mrb[44].mxu0 %v5793_v35  ;;  %v19580_v35 = vld [vmem:[%s23989_s18 + $0xa0] sm:$0xff]  }
 0xb4d   : > { %18038 = vmatpush3.bf16.msra.mxu0 %v19546_v52  ;;  %6442 = vmatprep.mubr.bf16.mxu0 %v5808_v6  ;;  %v19578_v52 = vld [vmem:[%s23989_s18 + $0xe0] sm:$0xff]   ;;  %v19581_v6 = vld [vmem:[%s23989_s18 + $0x68] sm:$0xff]  }
 0xb4e   : > { %18039 = vmatprep.subr.bf16.mxu0 %v19547_v48  ;;  %v19579_v48 = vld [vmem:[%s23989_s18 + $0x20] sm:$0xff]   ;;  %18111 = vmatprep.subr.bf16.mxu1 %v19578_v52 }
 0xb4f   : > { %18112 = vmatpush3.bf16.msra.mxu1 %v19580_v35 }
 0xb51   : > { %18040 = vmatpush3.bf16.msra.mxu0 %v19548_v7  ;;  %v19582_v7 = vld [vmem:[%s23989_s18 + $0xe8] sm:$0xff]  }
 0xb52   : > { %18041 = vmatprep.subr.bf16.mxu0 %v19549_v11  ;;  %v19583_v11 = vld [vmem:[%s23989_s18 + $0x28] sm:$0xff]   ;;  %18113 = vmatprep.subr.bf16.mxu1 %v19582_v7 }
 0xb55   : > { %18042 = vmatpush3.bf16.msra.mxu0 %v19550_v14  ;;  %v19584_v14 = vld [vmem:[%s23989_s18 + $0xa8] sm:$0xff]  }
 0xb56   : > { %18043 = vmatprep.subr.bf16.mxu0 %v19551_v17  ;;  %18114 = vmatpush3.bf16.msra.mxu1 %v19584_v14  ;;  %v19585_v17 = vld [vmem:[%s23989_s18 + $0x70] sm:$0xff]  }
 0xb59   : > { %18044 = vmatpush3.bf16.msra.mxu0 %v19552_v18  ;;  %v19586_v18 = vld [vmem:[%s23989_s18 + $0xf0] sm:$0xff]  }
 0xb5a   : > { %18045 = vmatprep.subr.bf16.mxu0 %v19553_v21  ;;  %v19587_v21 = vld [vmem:[%s23989_s18 + $0x30] sm:$0xff]   ;;  %18115 = vmatprep.subr.bf16.mxu1 %v19586_v18  ;;  %v19594_v18 = vld [vmem:[%s21727_s5] sm:$0xff]  }
 0xb5d   : > { %18046 = vmatpush3.bf16.msra.mxu0 %v19554_v13  ;;  %v19588_v13 = vld [vmem:[%s23989_s18 + $0xb0] sm:$0xff]  }
 0xb5e   : > { %18047 = vmatprep.subr.bf16.mxu0 %v19555_v23  ;;  %18116 = vmatpush3.bf16.msra.mxu1 %v19588_v13  ;;  %v19589_v23 = vld [vmem:[%s23989_s18 + $0x78] sm:$0xff]   ;;  %v19595_v13 = vld [vmem:[%s21727_s5 + $0x48] sm:$0xff]  }
 0xb61   : > { %18048 = vmatpush3.bf16.msra.mxu0 %v19556_v57  ;;  %v19590_v57 = vld [vmem:[%s23989_s18 + $0xf8] sm:$0xff]  }
 0xb62   : > { %18049 = vmatprep.subr.bf16.mxu0 %v19557_v10  ;;  %v19591_v10 = vld [vmem:[%s23989_s18 + $0x38] sm:$0xff]   ;;  %18117 = vmatprep.subr.bf16.mxu1 %v19590_v57  ;;  %v19597_v57 = vld [vmem:[%s21727_s5 + $0x50] sm:$0xff]  }
 0xb65   : > { %18050 = vmatpush3.bf16.msra.mxu0 %v19558_v32  ;;  %v19592_v32 = vld [vmem:[%s23989_s18 + $0xb8] sm:$0xff]  }
 0xb66   : > { %18051 = vmatprep.subr.bf16.mxu0 %v19559_v36  ;;  %18118 = vmatpush3.bf16.msra.mxu1 %v19592_v32  ;;  %v19593_v36 = vld [vmem:[%s21727_s5 + $0x40] sm:$0xff]   ;;  %v19599_v32 = vld [vmem:[%s21727_s5 + $0x58] sm:$0xff]  }
 0xb67   : > { %18147 = vmatprep.subr.bf16.mxu1 %v19593_v36  ;;  %v19600_v36 = vld [vmem:[%s21727_s5 + $0x18] sm:$0xff]  }
 0xb69   : > { %18052 = vmatpush3.bf16.msra.mxu0 %v19560_v43 }
 0xb6a   : > { %18081 = vmatprep.subr.bf16.mxu0 %v19561_v42 }
 0xb6c   : > { %6443 = vmatmul.mubr.bf16.vlgmr.msra.gmra.mrb[48].mxu0 %v5807_v38 }
 0xb6d   : > { %18082 = vmatpush3.bf16.msra.mxu0 %v19563_v58 }
 0xb6e   : > { %18083 = vmatprep.subr.bf16.mxu0 %v19565_v34 }
 0xb71   : > { %18084 = vmatpush3.bf16.msra.mxu0 %v19567_v39 }
 0xb72   : > { %18085 = vmatprep.subr.bf16.mxu0 %v19569_v29  ;;  %v16882_v29 = vld [vmem:[%s23990_s10] ss:$0 sm:$0xff]  ;;  %s16363_s10 = sshll.u32 %s1273_s26, 6 }
 0xb75   : > { %18086 = vmatpush3.bf16.msra.mxu0 %v19571_v63 }
 0xb76   : > { %18087 = vmatprep.subr.bf16.mxu0 %v19573_v46 }
 0xb79   : > { %18088 = vmatpush3.bf16.msra.mxu0 %v19575_v40 }
 0xb7a   : > { %18089 = vmatprep.subr.bf16.mxu0 %v19577_v59 }
 0xb7d   : > { %18090 = vmatpush3.bf16.msra.mxu0 %v19579_v48 }
 0xb7e   : > { %18091 = vmatprep.subr.bf16.mxu0 %v19581_v6 }
 0xb81   : > { %18092 = vmatpush3.bf16.msra.mxu0 %v19583_v11 }
 0xb82   : > { %18093 = vmatprep.subr.bf16.mxu0 %v19585_v17 }
 0xb85   : > { %18094 = vmatpush3.bf16.msra.mxu0 %v19587_v21 }
 0xb86   : > { %18095 = vmatprep.subr.bf16.mxu0 %v19589_v23  ;;  %v19596_v23 = vld [vmem:[%s21727_s5 + $0x8] sm:$0xff]  }
 0xb89   : > { %18096 = vmatpush3.bf16.msra.mxu0 %v19591_v10  ;;  %v19598_v10 = vld [vmem:[%s21727_s5 + $0x10] sm:$0xff]  }
 0xbff   : > { %v18009_v43 = vpop.f32.mrb[40].mxu0 }
 0xc00   : > { %v18010_v38 = vpop.f32.mrb[41].mxu0 }
 0xc01   : > { %v18011_v42 = vadd.f32 %v18010_v38, %v18009_v43  ;;  %v18012_v47 = vpop.f32.mrb[42].mxu0  ;;  %v18075_v58 = vpop.f32.mrb[44].mxu1  ;;  %v19601_v43 = vld [vmem:[%s21727_s5 + $0x60] sm:$0xff]  }
 0xc02   : > { %v18013_v61 = vpop.f32.mrb[43].mxu0  ;;  %v18076_v34 = vpop.f32.mrb[45].mxu1  ;;  %v19602_v38 = vld [vmem:[%s21727_s5 + $0x20] sm:$0xff]   ;;  %v19604_v47 = vld [vmem:[%s21727_s5 + $0x28] sm:$0xff]  }
 0xc03   : > { %v18077_v44 = vadd.f32 %v18076_v34, %v18075_v58  ;;  %v18078_v39 = vpop.f32.mrb[46].mxu1  ;;  %v6365_v31 = vadd.f32 %v18011_v42, %v16882_v29  ;;  %v19603_v42 = vld [vmem:[%s21727_s5 + $0x68] sm:$0xff]   ;;  %v19605_v58 = vld [vmem:[%s21727_s5 + $0x70] sm:$0xff]   ;;  %v19607_v34 = vld [vmem:[%s21727_s5 + $0x78] sm:$0xff]  }
 0xc04   : > { %v18079_v53 = vpop.f32.mrb[47].mxu1  ;;  %v19606_v61 = vld [vmem:[%s21727_s5 + $0x30] sm:$0xff]   ;;  %v19609_v29 = vld [vmem:[#allocation10 + $0x40] sm:$0xff]  }
 0xc05   : > { %18125 = vmatprep.subr.bf16.mxu0 %v19609_v29  ;;  %v6846_v29 = vpop.permute.xlu0 %6845 }
 0xc1f   : > { %v18031_v22 = vpop.f32.mrb[44].mxu0 }
 0xc20   : > { %v18032_v63 = vpop.f32.mrb[45].mxu0 }
 0xc21   : > { %v18033_v46 = vadd.f32 %v18032_v63, %v18031_v22  ;;  %v18034_v20 = vpop.f32.mrb[46].mxu0  ;;  %v19610_v22 = vld [vmem:[#allocation10] sm:$0xff]   ;;  %v19611_v63 = vld [vmem:[#allocation10 + $0x48] sm:$0xff]  }
 0xc22   : > { %v18035_v40 = vpop.f32.mrb[47].mxu0  ;;  %v19614_v20 = vld [vmem:[#allocation10 + $0x10] sm:$0xff]  }
 0xc23   : > { %v6405_v54 = vadd.f32 %v18033_v46, %v6365_v31  ;;  %v19612_v31 = vld [vmem:[#allocation10 + $0x8] sm:$0xff]   ;;  %v19613_v46 = vld [vmem:[#allocation10 + $0x50] sm:$0xff]   ;;  %v19615_v40 = vld [vmem:[#allocation10 + $0x58] sm:$0xff]  }
 0xc3f   : > { %v18053_v59 = vpop.f32.mrb[48].mxu0 }
 0xc40   : > { %v18054_v52 = vpop.f32.mrb[49].mxu0 }
 0xc41   : > { %v18055_v48 = vadd.f32 %v18054_v52, %v18053_v59  ;;  %v18056_v35 = vpop.f32.mrb[50].mxu0  ;;  %v19617_v59 = vld [vmem:[#allocation10 + $0x60] sm:$0xff]  }
 0xc42   : > { %v18057_v6 = vpop.f32.mrb[51].mxu0  ;;  %v19618_v52 = vld [vmem:[#allocation10 + $0x20] sm:$0xff]   ;;  %v19620_v35 = vld [vmem:[#allocation10 + $0x28] sm:$0xff]  }
 0xc43   : > { %v6445_v7 = vadd.f32 %v18055_v48, %v6405_v54  ;;  %v19616_v54 = vld [vmem:[#allocation10 + $0x18] sm:$0xff]   ;;  %v19619_v48 = vld [vmem:[#allocation10 + $0x68] sm:$0xff]   ;;  %v19621_v6 = vld [vmem:[#allocation10 + $0x70] sm:$0xff]  }
 0xc45   : > { %v6485_v11 = vadd.f32 %v18077_v44, %v6445_v7  ;;  %v19608_v44 = vld [vmem:[%s21727_s5 + $0x38] sm:$0xff]  }
 0xc46   : > { %v19622_v7 = vld [vmem:[#allocation10 + $0x30] sm:$0xff]  }
 0xc47   : > { %v6490_v14 = vmax.f32 %v6485_v11, 0.0  ;;  %v19623_v11 = vld [vmem:[#allocation10 + $0x78] sm:$0xff]  }
 0xc49   : > { %v22841_v17 = vpack.c.bf16 %v6490_v14, %v6490_v14  ;;  %v19624_v14 = vld [vmem:[#allocation10 + $0x38] sm:$0xff]  }
 0xc4b   : > { %6785 = vmatprep.mubr.bf16.mxu0 %v22841_v17  ;;  %v6493_v21 = vshrl.u32 %v22841_v17, 16  ;;  %v7031_v39 = vshll.u32 %v22841_v17, 16 }
 0xc4c   : > { %6786 = vmatmul.mubr.bf16.vlgmr.msra.gmra.mrb[52].mxu0 %v23916_v1 }
 0xc4d   : > { %6826 = vmatmul.mubr.bf16.vlgmr.msra.gmra.mrb[48].mxu1 %v6493_v21  ;;  %v7034_v53 = vsel %vm22630_vm6, 0, %v7031_v39  ;;  %18126 = vmatpush3.bf16.msra.mxu0 %v19610_v22 }
 0xc4e   : > { %18148 = vmatpush3.bf16.msra.mxu1 %v19594_v18  ;;  %7267 = vmatprep.mubr.bf16.mxu1 %v22841_v17  ;;  %v19732_v17 = vld [vmem:[#allocation13 + $0x10] ss:$8 sps:$4 sm:$0xff]  }
 0xc4f   : > { %18149 = vmatprep.subr.bf16.mxu1 %v19595_v13  ;;  %18127 = vmatprep.subr.bf16.mxu0 %v19611_v63  ;;  %v6560_v13 = vld [vmem:[#allocation8] sm:$0x1] }
 0xc51   : > { %18128 = vmatpush3.bf16.msra.mxu0 %v19612_v31 }
 0xc52   : > { %18150 = vmatpush3.bf16.msra.mxu1 %v19596_v23  ;;  %18129 = vmatprep.subr.bf16.mxu0 %v19613_v46 }
 0xc53   : > { %18151 = vmatprep.subr.bf16.mxu1 %v19597_v57 }
 0xc55   : > { %18130 = vmatpush3.bf16.msra.mxu0 %v19614_v20 }
 0xc56   : > { %18152 = vmatpush3.bf16.msra.mxu1 %v19598_v10  ;;  %18131 = vmatprep.subr.bf16.mxu0 %v19615_v40 }
 0xc57   : > { %18153 = vmatprep.subr.bf16.mxu1 %v19599_v32 }
 0xc59   : > { %18132 = vmatpush3.bf16.msra.mxu0 %v19616_v54 }
 0xc5a   : > { %18154 = vmatpush3.bf16.msra.mxu1 %v19600_v36  ;;  %18133 = vmatprep.subr.bf16.mxu0 %v19617_v59  ;;  %v19625_v59 = vld [vmem:[%s21727_s5 + $0x80] sm:$0xff]  }
 0xc5b   : > { %18155 = vmatprep.subr.bf16.mxu1 %v19601_v43 }
 0xc5d   : > { %18134 = vmatpush3.bf16.msra.mxu0 %v19618_v52 }
 0xc5e   : > { %18156 = vmatpush3.bf16.msra.mxu1 %v19602_v38  ;;  %18135 = vmatprep.subr.bf16.mxu0 %v19619_v48  ;;  %v19626_v48 = vld [vmem:[%s21727_s5 + $0x88] sm:$0xff]  }
 0xc5f   : > { %18157 = vmatprep.subr.bf16.mxu1 %v19603_v42 }
 0xc61   : > { %18136 = vmatpush3.bf16.msra.mxu0 %v19620_v35  ;;  %v19627_v35 = vld [vmem:[%s21727_s5 + $0x90] sm:$0xff]  }
 0xc62   : > { %18158 = vmatpush3.bf16.msra.mxu1 %v19604_v47  ;;  %18137 = vmatprep.subr.bf16.mxu0 %v19621_v6  ;;  %v19628_v6 = vld [vmem:[%s21727_s5 + $0x98] sm:$0xff]  }
 0xc63   : > { %18159 = vmatprep.subr.bf16.mxu1 %v19605_v58 }
 0xc65   : > { %18138 = vmatpush3.bf16.msra.mxu0 %v19622_v7  ;;  %v19629_v7 = vld [vmem:[%s21727_s5 + $0xa0] sm:$0xff]  }
 0xc66   : > { %18160 = vmatpush3.bf16.msra.mxu1 %v19606_v61  ;;  %18139 = vmatprep.subr.bf16.mxu0 %v19623_v11  ;;  %v19630_v11 = vld [vmem:[%s21727_s5 + $0xa8] sm:$0xff]  }
 0xc67   : > { %18161 = vmatprep.subr.bf16.mxu1 %v19607_v34 }
 0xc69   : > { %18140 = vmatpush3.bf16.msra.mxu0 %v19624_v14  ;;  %v19631_v14 = vld [vmem:[%s21727_s5 + $0xb0] sm:$0xff]  }
 0xc6a   : > { %18162 = vmatpush3.bf16.msra.mxu1 %v19608_v44  ;;  %18338 = vmatprep.subr.bf16.mxu0 %v23914_v19 }
 0xc6d   : > { %7268 = vmatmul.mubr.bf16.vlgmr.msra.gmra.mrb[52].mxu1 %v7034_v53 }
 0xd1f   : > { %v18097_v18 = vpop.f32.mrb[52].mxu0 }
 0xd20   : > { %v18098_v23 = vpop.f32.mrb[53].mxu0  ;;  %v18119_v57 = vpop.f32.mrb[48].mxu1 }
 0xd21   : > { %v18099_v10 = vadd.f32 %v18098_v23, %v18097_v18  ;;  %v18100_v32 = vpop.f32.mrb[54].mxu0  ;;  %v18120_v36 = vpop.f32.mrb[49].mxu1  ;;  %v19632_v18 = vld [vmem:[%s21727_s5 + $0xb8] sm:$0xff]   ;;  %v19633_v23 = vld [vmem:[#allocation25] ss:$8 sps:$4 sm:$0xff]  }
 0xd22   : > { %v18121_v43 = vadd.f32 %v18120_v36, %v18119_v57  ;;  %v18101_v38 = vpop.f32.mrb[55].mxu0  ;;  %v18122_v42 = vpop.f32.mrb[50].mxu1  ;;  %v19638_v57 = vld [vmem:[#allocation25 + $0x14] ss:$8 sps:$4 sm:$0xff]   ;;  %v19731_v36 = vld [vmem:[#allocation13 + $0x4] ss:$8 sps:$4 sm:$0xff]  }
 0xd23   : > { %v6788_v47 = vadd.f32 %v18099_v10, %v6560_v13  ;;  %v18123_v58 = vpop.f32.mrb[51].mxu1  ;;  %v19635_v13 = vld [vmem:[#allocation25 + $0x4] ss:$8 sps:$4 sm:$0xff]   ;;  %v7035_v10 = vsel %vm22630_vm6, %v6493_v21, 0  ;;  %v19734_v38 = vld [vmem:[#allocation13 + $0x14] ss:$8 sps:$4 sm:$0xff]   ;;  %7743 = vmatprep.subr.bf16.mxu1 %v19731_v36 }
 0xd24   : > { %v19729_v32 = vld [vmem:[#allocation13] ss:$8 sps:$4 sm:$0xff]  }
 0xd25   : > { %v6828_v61 = vadd.f32 %v18121_v43, %v6788_v47  ;;  %v19636_v43 = vld [vmem:[#allocation25 + $0x10] ss:$8 sps:$4 sm:$0xff]   ;;  %v19641_v42 = vld [vmem:[#allocation25 + $0x24] ss:$8 sps:$4 sm:$0xff]   ;;  %7744 = vmatpush1.bf16.msra.mxu1 %v19729_v32  ;;  %v19639_v21 = vld [vmem:[#allocation25 + $0x20] ss:$8 sps:$4 sm:$0xff]  }
 0xd26   : > { %7745 = vmatprep.subr.bf16.mxu1 %v19734_v38  ;;  %v19737_v47 = vld [vmem:[#allocation13 + $0x24] ss:$8 sps:$4 sm:$0xff]   ;;  %v19644_v58 = vld [vmem:[#allocation25 + $0x34] ss:$8 sps:$4 sm:$0xff]  }
 0xd27   : > { %v6833_v34 = vmax.f32 %v6828_v61, 0.0  ;;  %v19735_v61 = vld [vmem:[#allocation13 + $0x20] ss:$8 sps:$4 sm:$0xff]   ;;  %v19746_v32 = vld [vmem:[#allocation13 + $0x54] ss:$8 sps:$4 sm:$0xff]  }
 0xd28   : > { %v19675_v36 = vld [vmem:[#allocation25 + $0xe0] ss:$8 sps:$4 sm:$0xff]  }
 0xd29   : > { %v6834_v44 = vpack.c.bf16 %v6833_v34, %v6833_v34  ;;  %7746 = vmatpush1.bf16.msra.mxu1 %v19732_v17  ;;  %v19740_v34 = vld [vmem:[#allocation13 + $0x34] ss:$8 sps:$4 sm:$0xff]   ;;  %v19749_v38 = vld [vmem:[#allocation13 + $0x64] ss:$8 sps:$4 sm:$0xff]   ;;  %v19747_v17 = vld [vmem:[#allocation13 + $0x60] ss:$8 sps:$4 sm:$0xff]  }
 0xd2a   : > { %7747 = vmatprep.subr.bf16.mxu1 %v19737_v47  ;;  %v19752_v47 = vld [vmem:[#allocation13 + $0x74] ss:$8 sps:$4 sm:$0xff]  }
 0xd2b   : > { %v6837_v39 = vshll.u32 %v6834_v44, 16  ;;  %v6835_v53 = vsel %vm22630_vm6, %v6834_v44, 0  ;;  %v19743_v44 = vld [vmem:[#allocation13 + $0x44] ss:$8 sps:$4 sm:$0xff]  }
 0xd2c   : > { %6842 = vrot.lane.b32.xlu1 %v6835_v53, %s21549_s7  ;;  %v19650_v53 = vld [vmem:[#allocation25 + $0x54] ss:$8 sps:$4 sm:$0xff]   ;;  %s23997_s7 = sld [smem:[#allocation48_spill]] }
 0xd2d   : > { %v6840_v22 = vsel %vm22630_vm6, 0, %v6837_v39  ;;  %7748 = vmatpush1.bf16.msra.mxu1 %v19735_v61  ;;  %v19645_v39 = vld [vmem:[#allocation25 + $0x40] ss:$8 sps:$4 sm:$0xff]  }
 0xd2e   : > { %v6853_v63 = vsel %vm1355_vm4, %v6840_v22, %v6846_v29  ;;  %7749 = vmatprep.subr.bf16.mxu1 %v19740_v34  ;;  %v19741_v29 = vld [vmem:[#allocation13 + $0x40] ss:$8 sps:$4 sm:$0xff]   ;;  %v19648_v22 = vld [vmem:[#allocation25 + $0x50] ss:$8 sps:$4 sm:$0xff]   ;;  %v19755_v61 = vld [vmem:[#allocation13 + $0x84] ss:$8 sps:$4 sm:$0xff]  }
 0xd2f   : > { %7022 = vmatprep.mubr.bf16.mxu0 %v6853_v63  ;;  %v19653_v63 = vld [vmem:[#allocation25 + $0x64] ss:$8 sps:$4 sm:$0xff]   ;;  %v19681_v34 = vld [vmem:[#allocation25 + $0x100] ss:$8 sps:$4 sm:$0xff]  }
 0xd40   : > { %v18163_v31 = vpop.f32.mrb[52].mxu1 }
 0xd41   : > { %v18164_v46 = vpop.f32.mrb[53].mxu1 }
 0xd42   : > { %v22874_v20 = vadd.f32 %v18164_v46, %v18163_v31  ;;  %v18166_v40 = vpop.f32.mrb[54].mxu1  ;;  %v19651_v31 = vld [vmem:[#allocation25 + $0x60] ss:$8 sps:$4 sm:$0xff]   ;;  %v19656_v46 = vld [vmem:[#allocation25 + $0x74] ss:$8 sps:$4 sm:$0xff]  }
 0xd43   : > { %v18167_v54 = vpop.f32.mrb[55].mxu1  ;;  %v19654_v40 = vld [vmem:[#allocation25 + $0x70] ss:$8 sps:$4 sm:$0xff]  }
 0xd44   : > { %v19659_v54 = vld [vmem:[#allocation25 + $0x84] ss:$8 sps:$4 sm:$0xff]  }
 0xd9e   : > { %v6843_v52 = vpop.permute.xlu1 %6842 }
 0xd9f   : > { %16997 = vmatmul.mubr.msk.bf16.vlgmr.msra.gmra.mrb[56].mxu0 %vm16996_vm10, %v6843_v52  ;;  %v19662_v52 = vld [vmem:[#allocation25 + $0x94] ss:$8 sps:$4 sm:$0xff]   ;;  %vm8618_vm10 = vsmask.f32 3328 }
 0xda0   : > { %18339 = vmatpush3.bf16.msra.mxu0 %v19625_v59  ;;  %18354 = vmatprep.mubr.msk.bf16.mxu0 %vm21550_vm11, %v23914_v19  ;;  %v19657_v59 = vld [vmem:[#allocation25 + $0x80] ss:$8 sps:$4 sm:$0xff]   ;;  %vm23011_vm11 = vmand %vm8605_vm5, %vm8606_vm8 }
 0xda1   : > { %18340 = vmatprep.subr.bf16.mxu0 %v23914_v19 }
 0xda4   : > { %18341 = vmatpush3.bf16.msra.mxu0 %v19626_v48  ;;  %v19660_v48 = vld [vmem:[#allocation25 + $0x90] ss:$8 sps:$4 sm:$0xff]  }
 0xda5   : > { %18342 = vmatprep.subr.bf16.mxu0 %v23914_v19 }
 0xda8   : > { %18343 = vmatpush3.bf16.msra.mxu0 %v19627_v35  ;;  %v19665_v35 = vld [vmem:[#allocation25 + $0xa4] ss:$8 sps:$4 sm:$0xff]  }
 0xda9   : > { %18344 = vmatprep.subr.bf16.mxu0 %v23914_v19 }
 0xdac   : > { %18345 = vmatpush3.bf16.msra.mxu0 %v19628_v6  ;;  %v19663_v6 = vld [vmem:[#allocation25 + $0xa0] ss:$8 sps:$4 sm:$0xff]  }
 0xdad   : > { %18346 = vmatprep.subr.bf16.mxu0 %v23914_v19 }
 0xdb0   : > { %18347 = vmatpush3.bf16.msra.mxu0 %v19629_v7  ;;  %v19668_v7 = vld [vmem:[#allocation25 + $0xb4] ss:$8 sps:$4 sm:$0xff]  }
 0xdb1   : > { %18348 = vmatprep.subr.bf16.mxu0 %v23914_v19 }
 0xdb4   : > { %18349 = vmatpush3.bf16.msra.mxu0 %v19630_v11  ;;  %v19666_v11 = vld [vmem:[#allocation25 + $0xb0] ss:$8 sps:$4 sm:$0xff]  }
 0xdb5   : > { %18350 = vmatprep.subr.bf16.mxu0 %v23914_v19 }
 0xdb8   : > { %18351 = vmatpush3.bf16.msra.mxu0 %v19631_v14  ;;  %v19671_v14 = vld [vmem:[#allocation25 + $0xc4] ss:$8 sps:$4 sm:$0xff]  }
 0xdb9   : > { %18352 = vmatprep.subr.bf16.mxu0 %v23914_v19 }
 0xdbc   : > { %18353 = vmatpush3.bf16.msra.mxu0 %v19632_v18  ;;  %v19669_v18 = vld [vmem:[#allocation25 + $0xc0] ss:$8 sps:$4 sm:$0xff]  }
 0xdbd   : > { %8447 = vmatprep.subr.bf16.mxu0 %v19635_v13  ;;  %v19674_v13 = vld [vmem:[#allocation25 + $0xd4] ss:$8 sps:$4 sm:$0xff]  }
 0xdbf   : > { %18355 = vmatmul.mubr.bf16.vlgmr.msra.gmra.mrb[60].mxu0 %v7035_v10  ;;  %v19744_v10 = vld [vmem:[#allocation13 + $0x50] ss:$8 sps:$4 sm:$0xff]  }
 0xdc0   : > { %8448 = vmatpush1.bf16.msra.mxu0 %v19633_v23  ;;  %8479 = vmatprep.mubr.bf16.mxu0 %v7842_v50  ;;  %v19738_v50 = vld [vmem:[#allocation13 + $0x30] ss:$8 sps:$4 sm:$0xff]  }
 0xdc1   : > { %8449 = vmatprep.subr.bf16.mxu0 %v19638_v57  ;;  %7750 = vmatpush1.bf16.msra.mxu1 %v19738_v50  ;;  %v19672_v23 = vld [vmem:[#allocation25 + $0xd0] ss:$8 sps:$4 sm:$0xff]   ;;  %v19677_v57 = vld [vmem:[#allocation25 + $0xe4] ss:$8 sps:$4 sm:$0xff]  }
 0xdc2   : > { %7751 = vmatprep.subr.bf16.mxu1 %v19743_v44  ;;  %v19758_v50 = vld [vmem:[#allocation13 + $0x94] ss:$8 sps:$4 sm:$0xff]  }
 0xdc3   : > { %v19684_v44 = vld [vmem:[#allocation25 + $0x110] ss:$8 sps:$4 sm:$0xff]  }
 0xdc4   : > { %8450 = vmatpush1.bf16.msra.mxu0 %v19636_v43  ;;  %v19680_v43 = vld [vmem:[#allocation25 + $0xf4] ss:$8 sps:$4 sm:$0xff]  }
 0xdc5   : > { %8451 = vmatprep.subr.bf16.mxu0 %v19641_v42  ;;  %7752 = vmatpush1.bf16.msra.mxu1 %v19741_v29  ;;  %v19678_v42 = vld [vmem:[#allocation25 + $0xf0] ss:$8 sps:$4 sm:$0xff]   ;;  %v19761_v29 = vld [vmem:[#allocation13 + $0xa4] ss:$8 sps:$4 sm:$0xff]  }
 0xdc6   : > { %7753 = vmatprep.subr.bf16.mxu1 %v19746_v32  ;;  %v19705_v32 = vld [vmem:[#allocation25 + $0x180] ss:$8 sps:$4 sm:$0xff]  }
 0xdc8   : > { %8452 = vmatpush1.bf16.msra.mxu0 %v19639_v21  ;;  %v19683_v21 = vld [vmem:[#allocation25 + $0x104] ss:$8 sps:$4 sm:$0xff]  }
 0xdc9   : > { %8453 = vmatprep.subr.bf16.mxu0 %v19644_v58  ;;  %7754 = vmatpush1.bf16.msra.mxu1 %v19744_v10  ;;  %v19750_v58 = vld [vmem:[#allocation13 + $0x70] ss:$8 sps:$4 sm:$0xff]  }
 0xdca   : > { %7755 = vmatprep.subr.bf16.mxu1 %v19749_v38  ;;  %v19774_v10 = vld [vmem:[#allocation13 + $0xf0] ss:$8 sps:$4 sm:$0xff]  }
 0xdcb   : > { %v19708_v38 = vld [vmem:[#allocation25 + $0x190] ss:$8 sps:$4 sm:$0xff]  }
 0xdcc   : > { %8454 = vmatpush1.bf16.msra.mxu0 %v19642_v0  ;;  %v19686_v0 = vld [vmem:[#allocation25 + $0x114] ss:$8 sps:$4 sm:$0xff]  }
 0xdcd   : > { %8455 = vmatprep.subr.bf16.mxu0 %v19647_v49  ;;  %7756 = vmatpush1.bf16.msra.mxu1 %v19747_v17  ;;  %v19753_v49 = vld [vmem:[#allocation13 + $0x80] ss:$8 sps:$4 sm:$0xff]  }
 0xdce   : > { %7757 = vmatprep.subr.bf16.mxu1 %v19752_v47  ;;  %v19711_v17 = vld [vmem:[#allocation25 + $0x1a0] ss:$8 sps:$4 sm:$0xff]   ;;  %v19716_v47 = vld [vmem:[#allocation25 + $0x1b4] ss:$8 sps:$4 sm:$0xff]  }
 0xdd0   : > { %8456 = vmatpush1.bf16.msra.mxu0 %v19645_v39  ;;  %v19689_v39 = vld [vmem:[#allocation25 + $0x124] ss:$8 sps:$4 sm:$0xff]  }
 0xdd1   : > { %8457 = vmatprep.subr.bf16.mxu0 %v19650_v53  ;;  %7758 = vmatpush1.bf16.msra.mxu1 %v19750_v58  ;;  %v19756_v53 = vld [vmem:[#allocation13 + $0x90] ss:$8 sps:$4 sm:$0xff]  }
 0xdd2   : > { %7759 = vmatprep.subr.bf16.mxu1 %v19755_v61  ;;  %v19719_v58 = vld [vmem:[#allocation25 + $0x1c4] ss:$8 sps:$4 sm:$0xff]   ;;  %v19717_v61 = vld [vmem:[#allocation25 + $0x1c0] ss:$8 sps:$4 sm:$0xff]  }
 0xdd4   : > { %8458 = vmatpush1.bf16.msra.mxu0 %v19648_v22  ;;  %v19687_v22 = vld [vmem:[#allocation25 + $0x120] ss:$8 sps:$4 sm:$0xff]  }
 0xdd5   : > { %8459 = vmatprep.subr.bf16.mxu0 %v19653_v63  ;;  %7760 = vmatpush1.bf16.msra.mxu1 %v19753_v49  ;;  %v19692_v63 = vld [vmem:[#allocation25 + $0x134] ss:$8 sps:$4 sm:$0xff]   ;;  %v19725_v49 = vld [vmem:[#allocation25 + $0x1e4] ss:$8 sps:$4 sm:$0xff]  }
 0xdd6   : > { %7761 = vmatprep.subr.bf16.mxu1 %v19758_v50  ;;  %v19723_v50 = vld [vmem:[#allocation25 + $0x1e0] ss:$8 sps:$4 sm:$0xff]  }
 0xdd8   : > { %8460 = vmatpush1.bf16.msra.mxu0 %v19651_v31  ;;  %v19759_v31 = vld [vmem:[#allocation13 + $0xa0] ss:$8 sps:$4 sm:$0xff]  }
 0xdd9   : > { %8461 = vmatprep.subr.bf16.mxu0 %v19656_v46  ;;  %7762 = vmatpush1.bf16.msra.mxu1 %v19756_v53  ;;  %v19767_v46 = vld [vmem:[#allocation13 + $0xc4] ss:$8 sps:$4 sm:$0xff]  }
 0xdda   : > { %7763 = vmatprep.subr.bf16.mxu1 %v19761_v29 }
 0xddc   : > { %8462 = vmatpush1.bf16.msra.mxu0 %v19654_v40  ;;  %v19693_v40 = vld [vmem:[#allocation25 + $0x140] ss:$8 sps:$4 sm:$0xff]  }
 0xddd   : > { %8463 = vmatprep.subr.bf16.mxu0 %v19659_v54  ;;  %7764 = vmatpush1.bf16.msra.mxu1 %v19759_v31  ;;  %v19698_v54 = vld [vmem:[#allocation25 + $0x154] ss:$8 sps:$4 sm:$0xff]  }
 0xdde   : > { %7765 = vmatprep.subr.bf16.mxu1 %v19764_v28  ;;  %v16979_v28 = vld [vmem:[#allocation11] ss:$0 sm:$0xff] }
 0xde0   : > { %8464 = vmatpush1.bf16.msra.mxu0 %v19657_v59  ;;  %v19765_v59 = vld [vmem:[#allocation13 + $0xc0] ss:$8 sps:$4 sm:$0xff]  }
 0xde1   : > { %8465 = vmatprep.subr.bf16.mxu0 %v19662_v52  ;;  %v19696_v52 = vld [vmem:[#allocation25 + $0x150] ss:$8 sps:$4 sm:$0xff]  }
 0xde4   : > { %8466 = vmatpush1.bf16.msra.mxu0 %v19660_v48  ;;  %v19701_v48 = vld [vmem:[#allocation25 + $0x164] ss:$8 sps:$4 sm:$0xff]  }
 0xde5   : > { %8467 = vmatprep.subr.bf16.mxu0 %v19665_v35  ;;  %v19770_v35 = vld [vmem:[#allocation13 + $0xd4] ss:$8 sps:$4 sm:$0xff]  }
 0xde8   : > { %8468 = vmatpush1.bf16.msra.mxu0 %v19663_v6  ;;  %v19699_v6 = vld [vmem:[#allocation25 + $0x160] ss:$8 sps:$4 sm:$0xff]  }
 0xde9   : > { %8469 = vmatprep.subr.bf16.mxu0 %v19668_v7  ;;  %v19768_v7 = vld [vmem:[#allocation13 + $0xd0] ss:$8 sps:$4 sm:$0xff]  }
 0xdec   : > { %8470 = vmatpush1.bf16.msra.mxu0 %v19666_v11  ;;  %v19704_v11 = vld [vmem:[#allocation25 + $0x174] ss:$8 sps:$4 sm:$0xff]  }
 0xded   : > { %8471 = vmatprep.subr.bf16.mxu0 %v19671_v14  ;;  %v19771_v14 = vld [vmem:[#allocation13 + $0xe0] ss:$8 sps:$4 sm:$0xff]  }
 0xdf0   : > { %8472 = vmatpush1.bf16.msra.mxu0 %v19669_v18  ;;  %v19773_v18 = vld [vmem:[#allocation13 + $0xe4] ss:$8 sps:$4 sm:$0xff]  }
 0xdf1   : > { %8473 = vmatprep.subr.bf16.mxu0 %v19674_v13  ;;  %v19702_v13 = vld [vmem:[#allocation25 + $0x170] ss:$8 sps:$4 sm:$0xff]  }
 0xdf4   : > { %8474 = vmatpush1.bf16.msra.mxu0 %v19672_v23  ;;  %v19776_v23 = vld [vmem:[#allocation13 + $0xf4] ss:$8 sps:$4 sm:$0xff]  }
 0xdf5   : > { %8475 = vmatprep.subr.bf16.mxu0 %v19677_v57  ;;  %v19707_v57 = vld [vmem:[#allocation25 + $0x184] ss:$8 sps:$4 sm:$0xff]  }
 0xdf8   : > { %8476 = vmatpush1.bf16.msra.mxu0 %v19675_v36  ;;  %v19710_v36 = vld [vmem:[#allocation25 + $0x194] ss:$8 sps:$4 sm:$0xff]  }
 0xdf9   : > { %8477 = vmatprep.subr.bf16.mxu0 %v19680_v43  ;;  %v19779_v43 = vld [vmem:[#allocation13 + $0x104] ss:$8 sps:$4 sm:$0xff]  }
 0xdfc   : > { %8478 = vmatpush1.bf16.msra.mxu0 %v19678_v42  ;;  %v19713_v42 = vld [vmem:[#allocation25 + $0x1a4] ss:$8 sps:$4 sm:$0xff]  }
 0xdfd   : > { %8488 = vmatprep.subr.bf16.mxu0 %v19683_v21  ;;  %v19714_v21 = vld [vmem:[#allocation25 + $0x1b0] ss:$8 sps:$4 sm:$0xff]  }
 0xdff   : > { %8480 = vmatmul.mubr.bf16.vlgmr.msra.gmra.mrb[64].mxu0 %v7841_v51  ;;  %v19695_v51 = vld [vmem:[#allocation25 + $0x144] ss:$8 sps:$4 sm:$0xff]  }
 0xe00   : > { %8489 = vmatpush1.bf16.msra.mxu0 %v19681_v34  ;;  %8520 = vmatprep.mubr.bf16.mxu0 %v22728_v62  ;;  %v19762_v62 = vld [vmem:[#allocation13 + $0xb0] ss:$8 sps:$4 sm:$0xff]  }
 0xe01   : > { %8490 = vmatprep.subr.bf16.mxu0 %v19686_v0  ;;  %7766 = vmatpush1.bf16.msra.mxu1 %v19762_v62  ;;  %v19722_v34 = vld [vmem:[#allocation25 + $0x1d4] ss:$8 sps:$4 sm:$0xff]   ;;  %v19720_v0 = vld [vmem:[#allocation25 + $0x1d0] ss:$8 sps:$4 sm:$0xff]  }
 0xe02   : > { %7767 = vmatprep.subr.bf16.mxu1 %v19767_v46 }
 0xe04   : > { %8491 = vmatpush1.bf16.msra.mxu0 %v19684_v44  ;;  %v19728_v44 = vld [vmem:[#allocation25 + $0x1f4] ss:$8 sps:$4 sm:$0xff]  }
 0xe05   : > { %8492 = vmatprep.subr.bf16.mxu0 %v19689_v39  ;;  %7768 = vmatpush1.bf16.msra.mxu1 %v19765_v59  ;;  %v19726_v39 = vld [vmem:[#allocation25 + $0x1f0] ss:$8 sps:$4 sm:$0xff]  }
 0xe06   : > { %7769 = vmatprep.subr.bf16.mxu1 %v19770_v35 }
 0xe08   : > { %8493 = vmatpush1.bf16.msra.mxu0 %v19687_v22 }
 0xe09   : > { %8494 = vmatprep.subr.bf16.mxu0 %v19692_v63  ;;  %7770 = vmatpush1.bf16.msra.mxu1 %v19768_v7 }
 0xe0a   : > { %7771 = vmatprep.subr.bf16.mxu1 %v19773_v18 }
 0xe0c   : > { %8495 = vmatpush1.bf16.msra.mxu0 %v19690_v37  ;;  %v16998_v37 = vld [vmem:[%s21732_s19] ss:$0 sm:$0xff] }
 0xe0d   : > { %8496 = vmatprep.subr.bf16.mxu0 %v19695_v51  ;;  %7772 = vmatpush1.bf16.msra.mxu1 %v19771_v14  ;;  %v7270_v62 = vadd.f32 %v22874_v20, %v16998_v37  ;;  %v19806_v37 = vld [vmem:[#allocation13 + $0x194] ss:$8 sps:$4 sm:$0xff]  }
 0xe0e   : > { %7773 = vmatprep.subr.bf16.mxu1 %v19776_v23 }
 0xe10   : > { %8497 = vmatpush1.bf16.msra.mxu0 %v19693_v40 }
 0xe11   : > { %8498 = vmatprep.subr.bf16.mxu0 %v19698_v54  ;;  %7774 = vmatpush1.bf16.msra.mxu1 %v19774_v10  ;;  %v19777_v10 = vld [vmem:[#allocation13 + $0x100] ss:$8 sps:$4 sm:$0xff]  }
 0xe12   : > { %7784 = vmatprep.subr.bf16.mxu1 %v19779_v43 }
 0xe14   : > { %8499 = vmatpush1.bf16.msra.mxu0 %v19696_v52 }
 0xe15   : > { %8500 = vmatprep.subr.bf16.mxu0 %v19701_v48 }
 0xe18   : > { %8501 = vmatpush1.bf16.msra.mxu0 %v19699_v6 }
 0xe19   : > { %8502 = vmatprep.subr.bf16.mxu0 %v19704_v11 }
 0xe1c   : > { %8503 = vmatpush1.bf16.msra.mxu0 %v19702_v13 }
 0xe1d   : > { %8504 = vmatprep.subr.bf16.mxu0 %v19707_v57 }
 0xe20   : > { %8505 = vmatpush1.bf16.msra.mxu0 %v19705_v32 }
 0xe21   : > { %8506 = vmatprep.subr.bf16.mxu0 %v19710_v36 }
 0xe24   : > { %8507 = vmatpush1.bf16.msra.mxu0 %v19708_v38  ;;  %v19782_v38 = vld [vmem:[#allocation13 + $0x114] ss:$8 sps:$4 sm:$0xff]  }
 0xe25   : > { %8508 = vmatprep.subr.bf16.mxu0 %v19713_v42 }
 0xe28   : > { %8509 = vmatpush1.bf16.msra.mxu0 %v19711_v17 }
 0xe29   : > { %8510 = vmatprep.subr.bf16.mxu0 %v19716_v47 }
 0xe2c   : > { %8511 = vmatpush1.bf16.msra.mxu0 %v19714_v21  ;;  %v19780_v21 = vld [vmem:[#allocation13 + $0x110] ss:$8 sps:$4 sm:$0xff]  }
 0xe2d   : > { %8512 = vmatprep.subr.bf16.mxu0 %v19719_v58  ;;  %v19785_v58 = vld [vmem:[#allocation13 + $0x124] ss:$8 sps:$4 sm:$0xff]  }
 0xe30   : > { %8513 = vmatpush1.bf16.msra.mxu0 %v19717_v61  ;;  %v19783_v61 = vld [vmem:[#allocation13 + $0x120] ss:$8 sps:$4 sm:$0xff]  }
 0xe31   : > { %8514 = vmatprep.subr.bf16.mxu0 %v19722_v34  ;;  %v19788_v34 = vld [vmem:[#allocation13 + $0x134] ss:$8 sps:$4 sm:$0xff]  }
 0xe34   : > { %8515 = vmatpush1.bf16.msra.mxu0 %v19720_v0  ;;  %v19786_v0 = vld [vmem:[#allocation13 + $0x130] ss:$8 sps:$4 sm:$0xff]  }
 0xe35   : > { %8516 = vmatprep.subr.bf16.mxu0 %v19725_v49  ;;  %v19791_v49 = vld [vmem:[#allocation13 + $0x144] ss:$8 sps:$4 sm:$0xff]  }
 0xe38   : > { %8517 = vmatpush1.bf16.msra.mxu0 %v19723_v50  ;;  %v19789_v50 = vld [vmem:[#allocation13 + $0x140] ss:$8 sps:$4 sm:$0xff]  }
 0xe39   : > { %8518 = vmatprep.subr.bf16.mxu0 %v19728_v44  ;;  %v19794_v44 = vld [vmem:[#allocation13 + $0x154] ss:$8 sps:$4 sm:$0xff]  }
 0xe3c   : > { %8519 = vmatpush1.bf16.msra.mxu0 %v19726_v39  ;;  %v19792_v39 = vld [vmem:[#allocation13 + $0x150] ss:$8 sps:$4 sm:$0xff]  }
 0xe3f   : > { %8521 = vmatmul.mubr.bf16.vlgmr.msra.gmra.mrb[68].mxu0 %v22726_v25 }
 0xe72   : > { %v18141_v53 = vpop.f32.mrb[56].mxu0 }
 0xe73   : > { %v18142_v29 = vpop.f32.mrb[57].mxu0 }
 0xe74   : > { %v18143_v22 = vadd.f32 %v18142_v29, %v18141_v53  ;;  %v18144_v63 = vpop.f32.mrb[58].mxu0  ;;  %v19797_v53 = vld [vmem:[#allocation13 + $0x164] ss:$8 sps:$4 sm:$0xff]   ;;  %v19795_v29 = vld [vmem:[#allocation13 + $0x160] ss:$8 sps:$4 sm:$0xff]  }
 0xe75   : > { %v18145_v31 = vpop.f32.mrb[59].mxu0  ;;  %v19798_v63 = vld [vmem:[#allocation13 + $0x170] ss:$8 sps:$4 sm:$0xff]  }
 0xe76   : > { %v7025_v51 = vadd.f32 %v18143_v22, %v16979_v28  ;;  %v19800_v22 = vld [vmem:[#allocation13 + $0x174] ss:$8 sps:$4 sm:$0xff]   ;;  %v19803_v31 = vld [vmem:[#allocation13 + $0x184] ss:$8 sps:$4 sm:$0xff]   ;;  %v19801_v28 = vld [vmem:[#allocation13 + $0x180] ss:$8 sps:$4 sm:$0xff]  }
 0xe78   : > { %v7030_v40 = vmax.f32 %v7025_v51, 0.0  ;;  %v19804_v51 = vld [vmem:[#allocation13 + $0x190] ss:$8 sps:$4 sm:$0xff]  }
 0xe92   : > { %v7309_v46 = vpop.f32.mrb[60].mxu0 }
 0xe93   : > { %v7310_v54 = vadd.f32 %v7309_v46, %v7270_v62  ;;  %v18356_v59 = vpop.f32.mrb[61].mxu0  ;;  %v19809_v62 = vld [vmem:[#allocation13 + $0x1a4] ss:$8 sps:$4 sm:$0xff]   ;;  %v19807_v46 = vld [vmem:[#allocation13 + $0x1a0] ss:$8 sps:$4 sm:$0xff]  }
 0xe94   : > { %v7312_v52 = vpop.f32.mrb[62].mxu0  ;;  %v19815_v59 = vld [vmem:[#allocation13 + $0x1c4] ss:$8 sps:$4 sm:$0xff]  }
 0xe95   : > { %v7315_v48 = vadd.f32 %v7310_v54, %v7030_v40  ;;  %v18357_v35 = vpop.f32.mrb[63].mxu0  ;;  %v19812_v40 = vld [vmem:[#allocation13 + $0x1b4] ss:$8 sps:$4 sm:$0xff]   ;;  %v19810_v54 = vld [vmem:[#allocation13 + $0x1b0] ss:$8 sps:$4 sm:$0xff]  }
 0xe96   : > { %v19813_v52 = vld [vmem:[#allocation13 + $0x1c0] ss:$8 sps:$4 sm:$0xff]   ;;  %v19816_v35 = vld [vmem:[#allocation13 + $0x1d0] ss:$8 sps:$4 sm:$0xff]  }
 0xe97   : > { %v7316_v6 = vpack.c.bf16 %v7315_v48, %v7315_v48  ;;  %v19818_v48 = vld [vmem:[#allocation13 + $0x1d4] ss:$8 sps:$4 sm:$0xff]  }
 0xe99   : > { %v7323_v7 = vshrl.u32 %v7316_v6, 16  ;;  %v7317_v25 = vsel %vm22630_vm6, 0, %v7316_v6  ;;  %v7336_v11 = vrot.slane %v7316_v6, 7  ;;  %v7332_v14 = vshll.u32 %v7316_v6, 16 }
 0xe9a   : > { %v7326_v13 = vsel %vm22630_vm6, %v7316_v6, 0  ;;  %v7319_v20 = vsel %vm4758_vm3, %v7317_v25, 0 }
 0xe9b   : > { %v7325_v18 = vrot.slane %v7323_v7, 7  ;;  %v7338_v23 = vsel %vm22630_vm6, 0, %v7332_v14  ;;  %v7344_v32 = vsel %vm4758_vm3, 0, %v7336_v11  ;;  %v7321_v17 = vsel %vm22639_vm9, %v7319_v20, 0  ;;  %v19821_v7 = vld [vmem:[#allocation13 + $0x1e4] ss:$8 sps:$4 sm:$0xff]  }
 0xe9c   : > { %v7340_v36 = vsel %vm4758_vm3, %v7338_v23, 0  ;;  %v7346_v47 = vsel %vm22639_vm9, %v7344_v32, 0  ;;  %v19822_v20 = vld [vmem:[#allocation13 + $0x1f0] ss:$8 sps:$4 sm:$0xff]   ;;  %v7858_v32 = vsel %vm22639_vm9, %v22789_v60, 0 }
 0xe9d   : > { %v7329_v57 = vsel %vm4758_vm3, %v7326_v13, %v7325_v18  ;;  %v22925_v42 = vsel %vm22639_vm9, %v7340_v36, %v7336_v11  ;;  %v19819_v18 = vld [vmem:[#allocation13 + $0x1e0] ss:$8 sps:$4 sm:$0xff]   ;;  %v19824_v13 = vld [vmem:[#allocation13 + $0x1f4] ss:$8 sps:$4 sm:$0xff]  }
 0xe9e   : > { %v7331_v43 = vsel %vm22639_vm9, %v7329_v57, 0  ;;  %v19827_v23 = vld [vmem:[#allocation25 + $0x204] ss:$8 sps:$4 sm:$0xff]   ;;  %v19825_v57 = vld [vmem:[#allocation25 + $0x200] ss:$8 sps:$4 sm:$0xff]  }
 0xe9f   : > { %7775 = vmatprep.mubr.bf16.mxu1 %v7331_v43  ;;  %v19828_v36 = vld [vmem:[#allocation25 + $0x210] ss:$8 sps:$4 sm:$0xff]   ;;  %v19833_v43 = vld [vmem:[#allocation25 + $0x224] ss:$8 sps:$4 sm:$0xff]  }
 0xea0   : > { %7776 = vmatmul.mubr.bf16.vlgmr.msra.gmra.mrb[56].mxu1 %v7321_v17  ;;  %v19836_v17 = vld [vmem:[#allocation25 + $0x234] ss:$8 sps:$4 sm:$0xff]   ;;  %v19845_v60 = vld [vmem:[#allocation25 + $0x264] ss:$8 sps:$4 sm:$0xff]  }
 0xea1   : > { %7785 = vmatpush1.bf16.msra.mxu1 %v19777_v10  ;;  %7816 = vmatprep.mubr.bf16.mxu1 %v7346_v47  ;;  %v19830_v10 = vld [vmem:[#allocation25 + $0x214] ss:$8 sps:$4 sm:$0xff]   ;;  %v19834_v47 = vld [vmem:[#allocation25 + $0x230] ss:$8 sps:$4 sm:$0xff]  }
 0xea2   : > { %7786 = vmatprep.subr.bf16.mxu1 %v19782_v38  ;;  %v19831_v38 = vld [vmem:[#allocation25 + $0x220] ss:$8 sps:$4 sm:$0xff]  }
 0xea5   : > { %7787 = vmatpush1.bf16.msra.mxu1 %v19780_v21  ;;  %v19839_v21 = vld [vmem:[#allocation25 + $0x244] ss:$8 sps:$4 sm:$0xff]  }
 0xea6   : > { %7788 = vmatprep.subr.bf16.mxu1 %v19785_v58  ;;  %v19837_v58 = vld [vmem:[#allocation25 + $0x240] ss:$8 sps:$4 sm:$0xff]  }
 0xea9   : > { %7789 = vmatpush1.bf16.msra.mxu1 %v19783_v61  ;;  %v19840_v61 = vld [vmem:[#allocation25 + $0x250] ss:$8 sps:$4 sm:$0xff]  }
 0xeaa   : > { %7790 = vmatprep.subr.bf16.mxu1 %v19788_v34  ;;  %v19843_v34 = vld [vmem:[#allocation25 + $0x260] ss:$8 sps:$4 sm:$0xff]  }
 0xead   : > { %7791 = vmatpush1.bf16.msra.mxu1 %v19786_v0  ;;  %v19848_v0 = vld [vmem:[#allocation25 + $0x274] ss:$8 sps:$4 sm:$0xff]  }
 0xeae   : > { %7792 = vmatprep.subr.bf16.mxu1 %v19791_v49  ;;  %v19846_v49 = vld [vmem:[#allocation25 + $0x270] ss:$8 sps:$4 sm:$0xff]  }
 0xeb1   : > { %7793 = vmatpush1.bf16.msra.mxu1 %v19789_v50  ;;  %v19851_v50 = vld [vmem:[#allocation25 + $0x284] ss:$8 sps:$4 sm:$0xff]  }
 0xeb2   : > { %7794 = vmatprep.subr.bf16.mxu1 %v19794_v44  ;;  %v19849_v44 = vld [vmem:[#allocation25 + $0x280] ss:$8 sps:$4 sm:$0xff]  }
 0xeb5   : > { %7795 = vmatpush1.bf16.msra.mxu1 %v19792_v39  ;;  %v19854_v39 = vld [vmem:[#allocation25 + $0x294] ss:$8 sps:$4 sm:$0xff]  }
 0xeb6   : > { %7796 = vmatprep.subr.bf16.mxu1 %v19797_v53  ;;  %v19852_v53 = vld [vmem:[#allocation25 + $0x290] ss:$8 sps:$4 sm:$0xff]  }
 0xeb9   : > { %7797 = vmatpush1.bf16.msra.mxu1 %v19795_v29  ;;  %v19857_v29 = vld [vmem:[#allocation25 + $0x2a4] ss:$8 sps:$4 sm:$0xff]  }
 0xeba   : > { %7798 = vmatprep.subr.bf16.mxu1 %v19800_v22  ;;  %v19855_v22 = vld [vmem:[#allocation25 + $0x2a0] ss:$8 sps:$4 sm:$0xff]  }
 0xebd   : > { %7799 = vmatpush1.bf16.msra.mxu1 %v19798_v63  ;;  %v19860_v63 = vld [vmem:[#allocation25 + $0x2b4] ss:$8 sps:$4 sm:$0xff]  }
 0xebe   : > { %7800 = vmatprep.subr.bf16.mxu1 %v19803_v31  ;;  %v19858_v31 = vld [vmem:[#allocation25 + $0x2b0] ss:$8 sps:$4 sm:$0xff]  }
 0xec1   : > { %7801 = vmatpush1.bf16.msra.mxu1 %v19801_v28  ;;  %v7955_v28 = vld [vmem:[%s21722_s21] sm:$0x3] }
 0xec2   : > { %7802 = vmatprep.subr.bf16.mxu1 %v19806_v37  ;;  %v19863_v37 = vld [vmem:[#allocation25 + $0x2c4] ss:$8 sps:$4 sm:$0xff]  }
 0xec5   : > { %7803 = vmatpush1.bf16.msra.mxu1 %v19804_v51  ;;  %v7960_v51 = vrot.slane %v7955_v28, %v22235_v30 }
 0xec6   : > { %7804 = vmatprep.subr.bf16.mxu1 %v19809_v62  ;;  %v19861_v62 = vld [vmem:[#allocation25 + $0x2c0] ss:$8 sps:$4 sm:$0xff]  }
 0xec9   : > { %7805 = vmatpush1.bf16.msra.mxu1 %v19807_v46  ;;  %v7964_v46 = vrot.slane %v7955_v28, %v22239_v33  ;;  %v19902_v28 = vld [vmem:[#allocation14 + $0x44] ss:$8 sps:$4 sm:$0xff]  }
 0xeca   : > { %7806 = vmatprep.subr.bf16.mxu1 %v19812_v40  ;;  %v19866_v40 = vld [vmem:[#allocation25 + $0x2d4] ss:$8 sps:$4 sm:$0xff]  }
 0xecd   : > { %7807 = vmatpush1.bf16.msra.mxu1 %v19810_v54 }
 0xece   : > { %7808 = vmatprep.subr.bf16.mxu1 %v19815_v59  ;;  %v19864_v59 = vld [vmem:[#allocation25 + $0x2d0] ss:$8 sps:$4 sm:$0xff]  }
 0xed1   : > { %7809 = vmatpush1.bf16.msra.mxu1 %v19813_v52 }
 0xed2   : > { %v22931_v6 = vpop.f32.mrb[64].mxu0  ;;  %7810 = vmatprep.subr.bf16.mxu1 %v19818_v48 }
 0xed3   : > { %v22933_v25 = vpop.f32.mrb[65].mxu0  ;;  %v8482_v54 = vadd.f32 %v22931_v6, %v7960_v51  ;;  %v19870_v6 = vld [vmem:[#allocation25 + $0x2f0] ss:$8 sps:$4 sm:$0xff]   ;;  %v19900_v51 = vld [vmem:[#allocation14 + $0x40] ss:$8 sps:$4 sm:$0xff]  }
 0xed4   : > { %v8485_v11 = vpop.f32.mrb[66].mxu0  ;;  %v8484_v52 = vadd.f32 %v22933_v25, %v7964_v46  ;;  %v7857_v25 = vsel %vm22639_vm9, %v22793_v41, 0  ;;  %v9771_v41 = vadd.s32 2, %v22042_v2  ;;  %v19908_v46 = vld [vmem:[#allocation14 + $0x54] ss:$8 sps:$4 sm:$0xff]  }
 0xed5   : > { %7811 = vmatpush1.bf16.msra.mxu1 %v19816_v35  ;;  %v8486_v14 = vpop.f32.mrb[67].mxu0  ;;  %v19869_v35 = vld [vmem:[#allocation25 + $0x2e4] ss:$8 sps:$4 sm:$0xff]  }
 0xed6   : > { %7812 = vmatprep.subr.bf16.mxu1 %v19821_v7 }
 0xed9   : > { %7813 = vmatpush1.bf16.msra.mxu1 %v19819_v18 }
 0xeda   : > { %7814 = vmatprep.subr.bf16.mxu1 %v19824_v13 }
 0xedd   : > { %7815 = vmatpush1.bf16.msra.mxu1 %v19822_v20  ;;  %v19867_v20 = vld [vmem:[#allocation25 + $0x2e0] ss:$8 sps:$4 sm:$0xff]  }
 0xede   : > { %8529 = vmatprep.subr.bf16.mxu1 %v19827_v23  ;;  %v19872_v23 = vld [vmem:[#allocation25 + $0x2f4] ss:$8 sps:$4 sm:$0xff]  }
 0xee0   : > { %7817 = vmatmul.mubr.bf16.vlgmr.msra.gmra.mrb[56].mxu1 %v22925_v42  ;;  %v19842_v42 = vld [vmem:[#allocation25 + $0x254] ss:$8 sps:$4 sm:$0xff]  }
 0xee1   : > { %8530 = vmatpush1.bf16.msra.mxu1 %v19825_v57  ;;  %8561 = vmatprep.mubr.bf16.mxu1 %v7858_v32  ;;  %v17311_v57 = vadd.s32 4294967295, %v22042_v2 }
 0xee2   : > { %8531 = vmatprep.subr.bf16.mxu1 %v19830_v10  ;;  %v9675_v10 = vsel %vm8617_vm12, %v22634_v12, 0  ;;  %v22971_v12 = vsel %vm9722_vm15, 1.0, %v23914_v19 }
 0xee3   : > { %vm9667_vm13 = vcmp.eq.s32.totalorder %v22055_v8, %v17311_v57  ;;  %v19921_v57 = vld [vmem:[#allocation23 + $0x80] ss:$8 sps:$4 sm:$0xff]  }
 0xee4   : > { %v22959_v32 = vsel %vm9667_vm13, 1.0, %v23914_v19  ;;  %vm23032_vm13 = vmand %vm8617_vm12, %vm8618_vm10  ;;  %vm11769_vm10 = vcmp.eq.s32.totalorder %v22055_v8, %v22046_v3 }
 0xee5   : > { %8532 = vmatpush1.bf16.msra.mxu1 %v19828_v36  ;;  %v9669_v36 = vpack.c.bf16 %v22959_v32, %v22959_v32 }
 0xee6   : > { %8533 = vmatprep.subr.bf16.mxu1 %v19833_v43  ;;  %v17316_v43 = vadd.s32 4294967295, %v9771_v41  ;;  %v19927_v41 = vld [vmem:[#allocation23 + $0x90] ss:$8 sps:$4 sm:$0xff]  }
 0xee8   : > { %vm9773_vm0 = vcmp.eq.s32.totalorder %v22055_v8, %v17316_v43  ;;  %v19930_v43 = vld [vmem:[#allocation14 + $0x90] ss:$8 sps:$4 sm:$0xff]  }
 0xee9   : > { %8534 = vmatpush1.bf16.msra.mxu1 %v19831_v38  ;;  %v9724_v38 = vpack.c.bf16 %v22971_v12, %v22971_v12 }
 0xeea   : > { %8535 = vmatprep.subr.bf16.mxu1 %v19836_v17  ;;  %v22981_v17 = vsel %vm9773_vm0, 1.0, %v23914_v19 }
 0xeed   : > { %8536 = vmatpush1.bf16.msra.mxu1 %v19834_v47  ;;  %v9775_v47 = vpack.c.bf16 %v22981_v17, %v22981_v17 }
 0xeee   : > { %8537 = vmatprep.subr.bf16.mxu1 %v19839_v21  ;;  %v19873_v21 = vld [vmem:[#allocation23] ss:$8 sps:$4 sm:$0xff]  }
 0xef1   : > { %8538 = vmatpush1.bf16.msra.mxu1 %v19837_v58  ;;  %v19875_v58 = vld [vmem:[#allocation23 + $0x4] ss:$8 sps:$4 sm:$0xff]  }
 0xef2   : > { %8539 = vmatprep.subr.bf16.mxu1 %v19842_v42  ;;  %v19878_v42 = vld [vmem:[#allocation14 + $0x4] ss:$8 sps:$4 sm:$0xff]  }
 0xef3   : > { %9500 = vmatprep.subr.bf16.mxu0 %v19878_v42  ;;  %v19944_v42 = vld [vmem:[#allocation14 + $0xb4] ss:$8 sps:$4 sm:$0xff]  }
 0xef5   : > { %8540 = vmatpush1.bf16.msra.mxu1 %v19840_v61  ;;  %v19881_v61 = vld [vmem:[#allocation23 + $0x14] ss:$8 sps:$4 sm:$0xff]  }
 0xef6   : > { %8541 = vmatprep.subr.bf16.mxu1 %v19845_v60  ;;  %v19884_v60 = vld [vmem:[#allocation14 + $0x14] ss:$8 sps:$4 sm:$0xff]  }
 0xef9   : > { %8542 = vmatpush1.bf16.msra.mxu1 %v19843_v34  ;;  %v19879_v34 = vld [vmem:[#allocation23 + $0x10] ss:$8 sps:$4 sm:$0xff]  }
 0xefa   : > { %8543 = vmatprep.subr.bf16.mxu1 %v19848_v0  ;;  %v19882_v0 = vld [vmem:[#allocation14 + $0x10] ss:$8 sps:$4 sm:$0xff]  }
 0xefd   : > { %8544 = vmatpush1.bf16.msra.mxu1 %v19846_v49  ;;  %v19887_v49 = vld [vmem:[#allocation23 + $0x24] ss:$8 sps:$4 sm:$0xff]  }
 0xefe   : > { %8545 = vmatprep.subr.bf16.mxu1 %v19851_v50  ;;  %v19890_v50 = vld [vmem:[#allocation14 + $0x24] ss:$8 sps:$4 sm:$0xff]  }
 0xf01   : > { %8546 = vmatpush1.bf16.msra.mxu1 %v19849_v44  ;;  %v19885_v44 = vld [vmem:[#allocation23 + $0x20] ss:$8 sps:$4 sm:$0xff]  }
 0xf02   : > { %8547 = vmatprep.subr.bf16.mxu1 %v19854_v39  ;;  %v19888_v39 = vld [vmem:[#allocation14 + $0x20] ss:$8 sps:$4 sm:$0xff]  }
 0xf05   : > { %8548 = vmatpush1.bf16.msra.mxu1 %v19852_v53  ;;  %v19893_v53 = vld [vmem:[#allocation23 + $0x34] ss:$8 sps:$4 sm:$0xff]  }
 0xf06   : > { %8549 = vmatprep.subr.bf16.mxu1 %v19857_v29  ;;  %v19896_v29 = vld [vmem:[#allocation14 + $0x34] ss:$8 sps:$4 sm:$0xff]  }
 0xf09   : > { %8550 = vmatpush1.bf16.msra.mxu1 %v19855_v22  ;;  %v19891_v22 = vld [vmem:[#allocation23 + $0x30] ss:$8 sps:$4 sm:$0xff]  }
 0xf0a   : > { %8551 = vmatprep.subr.bf16.mxu1 %v19860_v63  ;;  %v19894_v63 = vld [vmem:[#allocation14 + $0x30] ss:$8 sps:$4 sm:$0xff]  }
 0xf0d   : > { %8552 = vmatpush1.bf16.msra.mxu1 %v19858_v31  ;;  %v19899_v31 = vld [vmem:[#allocation23 + $0x44] ss:$8 sps:$4 sm:$0xff]  }
 0xf0e   : > { %8553 = vmatprep.subr.bf16.mxu1 %v19863_v37  ;;  %v19897_v37 = vld [vmem:[#allocation23 + $0x40] ss:$8 sps:$4 sm:$0xff]  }
 0xf11   : > { %8554 = vmatpush1.bf16.msra.mxu1 %v19861_v62  ;;  %v19905_v62 = vld [vmem:[#allocation23 + $0x54] ss:$8 sps:$4 sm:$0xff]  }
 0xf12   : > { %v8522_v48 = vpop.f32.mrb[68].mxu0  ;;  %8555 = vmatprep.subr.bf16.mxu1 %v19866_v40  ;;  %v19903_v40 = vld [vmem:[#allocation23 + $0x50] ss:$8 sps:$4 sm:$0xff]  }
 0xf13   : > { %v22944_v7 = vadd.f32 %v8522_v48, %v8482_v54  ;;  %v8524_v11 = vpop.f32.mrb[69].mxu0  ;;  %v19906_v54 = vld [vmem:[#allocation14 + $0x50] ss:$8 sps:$4 sm:$0xff]   ;;  %v19909_v48 = vld [vmem:[#allocation23 + $0x60] ss:$8 sps:$4 sm:$0xff]  }
 0xf14   : > { %v22946_v14 = vadd.f32 %v8524_v11, %v8484_v52  ;;  %v8526_v18 = vpop.f32.mrb[70].mxu0  ;;  %v19914_v52 = vld [vmem:[#allocation14 + $0x64] ss:$8 sps:$4 sm:$0xff]   ;;  %v19917_v11 = vld [vmem:[#allocation23 + $0x74] ss:$8 sps:$4 sm:$0xff]  }
 0xf15   : > { %8556 = vmatpush1.bf16.msra.mxu1 %v19864_v59  ;;  %v8527_v13 = vpop.f32.mrb[71].mxu0  ;;  %v19911_v59 = vld [vmem:[#allocation23 + $0x64] ss:$8 sps:$4 sm:$0xff]   ;;  %v19920_v18 = vld [vmem:[#allocation14 + $0x74] ss:$8 sps:$4 sm:$0xff]  }
 0xf16   : > { %8557 = vmatprep.subr.bf16.mxu1 %v19869_v35  ;;  %v19912_v35 = vld [vmem:[#allocation14 + $0x60] ss:$8 sps:$4 sm:$0xff]   ;;  %v19915_v13 = vld [vmem:[#allocation23 + $0x70] ss:$8 sps:$4 sm:$0xff]  }
 0xf19   : > { %8558 = vmatpush1.bf16.msra.mxu1 %v19867_v20  ;;  %v19918_v20 = vld [vmem:[#allocation14 + $0x70] ss:$8 sps:$4 sm:$0xff]  }
 0xf1a   : > { %8559 = vmatprep.subr.bf16.mxu1 %v19872_v23  ;;  %v19923_v23 = vld [vmem:[#allocation23 + $0x84] ss:$8 sps:$4 sm:$0xff]  }
 0xf1d   : > { %8560 = vmatpush1.bf16.msra.mxu1 %v19870_v6  ;;  %v19926_v6 = vld [vmem:[#allocation14 + $0x84] ss:$8 sps:$4 sm:$0xff]  }
 0xf1e   : > { %17312 = vmatprep.subr.msk.bf16.mxu1 %vm8617_vm12, %v22636_v56 }
 0xf20   : > { %8562 = vmatmul.mubr.bf16.vlgmr.msra.gmra.mrb[60].mxu1 %v7857_v25  ;;  %v19924_v25 = vld [vmem:[#allocation14 + $0x80] ss:$8 sps:$4 sm:$0xff]  }
 0xf21   : > { %9680 = vmatpush1.bf16.msra.mxu1 %v9675_v10  ;;  %9711 = vmatprep.mubr.bf16.mxu1 %v23916_v1 }
 0xf22   : > { %17314 = vmatprep.subr.msk.bf16.mxu1 %vm8617_vm12, %v22636_v56 }
 0xf28   : > { %17313 = vmatmul.mubr.msk.bf16.vlgmr.msra.gmra.mrb[64].mxu1 %vm9670_vm14, %v9669_v36  ;;  %v19932_v36 = vld [vmem:[#allocation14 + $0x94] ss:$8 sps:$4 sm:$0xff]  }
 0xf29   : > { %9729 = vmatpush1.bf16.msra.mxu1 %v9675_v10  ;;  %9760 = vmatprep.mubr.bf16.mxu1 %v23916_v1 }
 0xf2a   : > { %17317 = vmatprep.subr.msk.bf16.mxu1 %vm8617_vm12, %v22636_v56  ;;  %v19876_v56 = vld [vmem:[#allocation14] ss:$8 sps:$4 sm:$0xff]  }
 0xf2b   : > { %9501 = vmatpush1.bf16.msra.mxu0 %v19876_v56  ;;  %v19941_v56 = vld [vmem:[#allocation23 + $0xb4] ss:$8 sps:$4 sm:$0xff]  }
 0xf2c   : > { %9502 = vmatprep.subr.bf16.mxu0 %v19884_v60  ;;  %v19942_v60 = vld [vmem:[#allocation14 + $0xb0] ss:$8 sps:$4 sm:$0xff]  }
 0xf2f   : > { %9503 = vmatpush1.bf16.msra.mxu0 %v19882_v0  ;;  %v19950_v0 = vld [vmem:[#allocation14 + $0xc4] ss:$8 sps:$4 sm:$0xff]  }
 0xf30   : > { %17315 = vmatmul.mubr.msk.bf16.vlgmr.msra.gmra.mrb[68].mxu1 %vm9670_vm14, %v9724_v38  ;;  %9504 = vmatprep.subr.bf16.mxu0 %v19890_v50  ;;  %v19935_v38 = vld [vmem:[#allocation23 + $0xa4] ss:$8 sps:$4 sm:$0xff]  }
 0xf31   : > { %9780 = vmatpush1.bf16.msra.mxu1 %v9675_v10  ;;  %9811 = vmatprep.mubr.bf16.mxu1 %v23916_v1  ;;  %v19929_v10 = vld [vmem:[#allocation23 + $0x94] ss:$8 sps:$4 sm:$0xff]  }
 0xf32   : > { %10410 = vmatprep.subr.bf16.mxu1 %v19875_v58  ;;  %v19936_v58 = vld [vmem:[#allocation14 + $0xa0] ss:$8 sps:$4 sm:$0xff]  }
 0xf33   : > { %9505 = vmatpush1.bf16.msra.mxu0 %v19888_v39  ;;  %v19948_v50 = vld [vmem:[#allocation14 + $0xc0] ss:$8 sps:$4 sm:$0xff]   ;;  %v19951_v39 = vld [vmem:[#allocation23 + $0xd0] ss:$8 sps:$4 sm:$0xff]  }
 0xf34   : > { %9506 = vmatprep.subr.bf16.mxu0 %v19896_v29  ;;  %v19954_v29 = vld [vmem:[#allocation14 + $0xd0] ss:$8 sps:$4 sm:$0xff]  }
 0xf37   : > { %9507 = vmatpush1.bf16.msra.mxu0 %v19894_v63  ;;  %v19959_v63 = vld [vmem:[#allocation23 + $0xe4] ss:$8 sps:$4 sm:$0xff]  }
 0xf38   : > { %17318 = vmatmul.mubr.msk.bf16.vlgmr.msra.gmra.mrb[72].mxu1 %vm9670_vm14, %v9775_v47  ;;  %9508 = vmatprep.subr.bf16.mxu0 %v19902_v28  ;;  %v19938_v47 = vld [vmem:[#allocation14 + $0xa4] ss:$8 sps:$4 sm:$0xff]   ;;  %v19960_v28 = vld [vmem:[#allocation14 + $0xe0] ss:$8 sps:$4 sm:$0xff]  }
 0xf39   : > { %10411 = vmatpush1.bf16.msra.mxu1 %v19873_v21  ;;  %v19933_v21 = vld [vmem:[#allocation23 + $0xa0] ss:$8 sps:$4 sm:$0xff]  }
 0xf3a   : > { %10412 = vmatprep.subr.bf16.mxu1 %v19881_v61  ;;  %v19939_v61 = vld [vmem:[#allocation23 + $0xb0] ss:$8 sps:$4 sm:$0xff]  }
 0xf3b   : > { %9509 = vmatpush1.bf16.msra.mxu0 %v19900_v51  ;;  %v19965_v51 = vld [vmem:[#allocation23 + $0xf4] ss:$8 sps:$4 sm:$0xff]  }
 0xf3c   : > { %9510 = vmatprep.subr.bf16.mxu0 %v19908_v46  ;;  %v19966_v46 = vld [vmem:[#allocation14 + $0xf0] ss:$8 sps:$4 sm:$0xff]  }
 0xf3d   : > { %10413 = vmatpush1.bf16.msra.mxu1 %v19879_v34  ;;  %v19947_v34 = vld [vmem:[#allocation23 + $0xc4] ss:$8 sps:$4 sm:$0xff]  }
 0xf3e   : > { %10414 = vmatprep.subr.bf16.mxu1 %v19887_v49  ;;  %v19945_v49 = vld [vmem:[#allocation23 + $0xc0] ss:$8 sps:$4 sm:$0xff]  }
 0xf3f   : > { %9511 = vmatpush1.bf16.msra.mxu0 %v19906_v54  ;;  %v19974_v54 = vld [vmem:[#allocation14 + $0x104] ss:$8 sps:$4 sm:$0xff]  }
 0xf40   : > { %9512 = vmatprep.subr.bf16.mxu0 %v19914_v52 }
 0xf41   : > { %10415 = vmatpush1.bf16.msra.mxu1 %v19885_v44  ;;  %v19953_v44 = vld [vmem:[#allocation23 + $0xd4] ss:$8 sps:$4 sm:$0xff]  }
 0xf42   : > { %10416 = vmatprep.subr.bf16.mxu1 %v19893_v53  ;;  %v19956_v53 = vld [vmem:[#allocation14 + $0xd4] ss:$8 sps:$4 sm:$0xff]  }
 0xf43   : > { %9513 = vmatpush1.bf16.msra.mxu0 %v19912_v35 }
 0xf44   : > { %9514 = vmatprep.subr.bf16.mxu0 %v19920_v18 }
 0xf45   : > { %10417 = vmatpush1.bf16.msra.mxu1 %v19891_v22  ;;  %v19957_v22 = vld [vmem:[#allocation23 + $0xe0] ss:$8 sps:$4 sm:$0xff]  }
 0xf46   : > { %10418 = vmatprep.subr.bf16.mxu1 %v19899_v31  ;;  %v19962_v31 = vld [vmem:[#allocation14 + $0xe4] ss:$8 sps:$4 sm:$0xff]  }
 0xf47   : > { %9515 = vmatpush1.bf16.msra.mxu0 %v19918_v20 }
 0xf48   : > { %9516 = vmatprep.subr.bf16.mxu0 %v19926_v6 }
 0xf49   : > { %10419 = vmatpush1.bf16.msra.mxu1 %v19897_v37  ;;  %v19963_v37 = vld [vmem:[#allocation23 + $0xf0] ss:$8 sps:$4 sm:$0xff]  }
 0xf4a   : > { %10420 = vmatprep.subr.bf16.mxu1 %v19905_v62  ;;  %v19968_v62 = vld [vmem:[#allocation14 + $0xf4] ss:$8 sps:$4 sm:$0xff]  }
 0xf4b   : > { %9517 = vmatpush1.bf16.msra.mxu0 %v19924_v25 }
 0xf4c   : > { %9518 = vmatprep.subr.bf16.mxu0 %v19932_v36 }
 0xf4d   : > { %10421 = vmatpush1.bf16.msra.mxu1 %v19903_v40  ;;  %v19971_v40 = vld [vmem:[#allocation23 + $0x104] ss:$8 sps:$4 sm:$0xff]  }
 0xf4e   : > { %10422 = vmatprep.subr.bf16.mxu1 %v19911_v59 }
 0xf4f   : > { %9519 = vmatpush1.bf16.msra.mxu0 %v19930_v43 }
 0xf50   : > { %9520 = vmatprep.subr.bf16.mxu0 %v19938_v47 }
 0xf51   : > { %10423 = vmatpush1.bf16.msra.mxu1 %v19909_v48 }
 0xf52   : > { %10424 = vmatprep.subr.bf16.mxu1 %v19917_v11  ;;  %v7411_v11 = vld [vmem:[%s23991_s1] sm:$0x3]  ;;  %s23826_s1 = scalar_lea.vmem [#allocation26], %s16363_s10 }
 0xf53   : > { %9521 = vmatpush1.bf16.msra.mxu0 %v19936_v58  ;;  %v7416_v18 = vrot.slane %v7411_v11, %v22235_v30 }
 0xf54   : > { %9522 = vmatprep.subr.bf16.mxu0 %v19944_v42 }
 0xf55   : > { %10425 = vmatpush1.bf16.msra.mxu1 %v19915_v13  ;;  %v7420_v13 = vrot.slane %v7411_v11, %v22239_v33  ;;  %v19972_v11 = vld [vmem:[#allocation14 + $0x100] ss:$8 sps:$4 sm:$0xff]  }
 0xf56   : > { %10426 = vmatprep.subr.bf16.mxu1 %v19923_v23 }
 0xf57   : > { %9523 = vmatpush1.bf16.msra.mxu0 %v19942_v60 }
 0xf58   : > { %9524 = vmatprep.subr.bf16.mxu0 %v19950_v0 }
 0xf59   : > { %10427 = vmatpush1.bf16.msra.mxu1 %v19921_v57 }
 0xf5a   : > { %10428 = vmatprep.subr.bf16.mxu1 %v19929_v10 }
 0xf5b   : > { %9525 = vmatpush1.bf16.msra.mxu0 %v19948_v50 }
 0xf5c   : > { %9526 = vmatprep.subr.bf16.mxu0 %v19956_v53 }
 0xf5d   : > { %10429 = vmatpush1.bf16.msra.mxu1 %v19927_v41 }
 0xf5e   : > { %10430 = vmatprep.subr.bf16.mxu1 %v19935_v38 }
 0xf5f   : > { %9527 = vmatpush1.bf16.msra.mxu0 %v19954_v29 }
 0xf60   : > { %9528 = vmatprep.subr.bf16.mxu0 %v19962_v31  ;;  %v19969_v31 = vld [vmem:[#allocation23 + $0x100] ss:$8 sps:$4 sm:$0xff]  }
 0xf61   : > { %10431 = vmatpush1.bf16.msra.mxu1 %v19933_v21 }
 0xf62   : > { %10432 = vmatprep.subr.bf16.mxu1 %v19941_v56 }
 0xf63   : > { %9529 = vmatpush1.bf16.msra.mxu0 %v19960_v28 }
 0xf64   : > { %9530 = vmatprep.subr.bf16.mxu0 %v19968_v62 }
 0xf65   : > { %10433 = vmatpush1.bf16.msra.mxu1 %v19939_v61 }
 0xf66   : > { %10434 = vmatprep.subr.bf16.mxu1 %v19947_v34 }
 0xf67   : > { %9531 = vmatpush1.bf16.msra.mxu0 %v19966_v46 }
 0xf68   : > { %9541 = vmatprep.subr.bf16.mxu0 %v19974_v54 }
 0xf69   : > { %10435 = vmatpush1.bf16.msra.mxu1 %v19945_v49 }
 0xf6a   : > { %10436 = vmatprep.subr.bf16.mxu1 %v19953_v44 }
 0xf6d   : > { %10437 = vmatpush1.bf16.msra.mxu1 %v19951_v39 }
 0xf6e   : > { %10438 = vmatprep.subr.bf16.mxu1 %v19959_v63 }
 0xf71   : > { %10439 = vmatpush1.bf16.msra.mxu1 %v19957_v22 }
 0xf72   : > { %10440 = vmatprep.subr.bf16.mxu1 %v19965_v51 }
 0xf75   : > { %10441 = vmatpush1.bf16.msra.mxu1 %v19963_v37 }
 0xf76   : > { %10451 = vmatprep.subr.bf16.mxu1 %v19971_v40 }
 0xfb3   : > { %v7818_v59 = vpop.f32.mrb[56].mxu1 }
 0xfb4   : > { %v7820_v52 = vpop.f32.mrb[57].mxu1  ;;  %v18374_v20 = vadd.f32 %v7818_v59, %v7416_v18  ;;  %v19977_v59 = vld [vmem:[#allocation23 + $0x114] ss:$8 sps:$4 sm:$0xff]  }
 0xfb5   : > { %v7822_v48 = vpop.f32.mrb[58].mxu1  ;;  %v18375_v23 = vadd.f32 %v7820_v52, %v7420_v13 }
 0xfb6   : > { %v7823_v35 = vpop.f32.mrb[59].mxu1  ;;  %v7825_v57 = vmax.f32 %v18374_v20, 0.0 }
 0xfb7   : > { %v7826_v36 = vmax.f32 %v18375_v23, 0.0 }
 0xff3   : > { %v8563_v6 = vpop.f32.mrb[60].mxu1 }
 0xff4   : > { %v8564_v25 = vadd.f32 %v8563_v6, %v22944_v7  ;;  %v8565_v10 = vpop.f32.mrb[61].mxu1  ;;  %v19975_v6 = vld [vmem:[#allocation23 + $0x110] ss:$8 sps:$4 sm:$0xff]  }
 0xff5   : > { %v8566_v41 = vadd.f32 %v8565_v10, %v22946_v14  ;;  %v8567_v43 = vpop.f32.mrb[62].mxu1 }
 0xff6   : > { %v8570_v38 = vadd.f32 %v8564_v25, %v7825_v57  ;;  %v8568_v47 = vpop.f32.mrb[63].mxu1  ;;  %v19980_v43 = vld [vmem:[#allocation14 + $0x114] ss:$8 sps:$4 sm:$0xff]  }
 0xff7   : > { %v8571_v21 = vadd.f32 %v8566_v41, %v7826_v36 }
 0xff8   : > { %v22991_v58 = vpack.c.bf16 %v8570_v38, %v8570_v38 }
 0xff9   : > { %v22993_v56 = vpack.c.bf16 %v8571_v21, %v8571_v21 }
 0xffa   : > { %v22996_v42 = vshll.u32 %v22991_v58, 16  ;;  %v22999_v7 = vrot.slane %v22991_v58, 7  ;;  %v8588_v14 = vsel %vm22630_vm6, 0, %v22991_v58  ;;  %v8622_v50 = vshrl.u32 %v22991_v58, 16 }
 0xffb   : > { %v9713_v61 = vpop.f32.mrb[64].mxu1  ;;  %v23005_v60 = vshll.u32 %v22993_v56, 16  ;;  %v8589_v34 = vsel %vm22630_vm6, 0, %v22993_v56  ;;  %v8591_v49 = vsel %vm4758_vm3, %v8588_v14, 0  ;;  %v8625_v22 = vshrl.u32 %v22993_v56, 16 }
 0xffc   : > { %v9720_v44 = vpack.c.bf16 %v9713_v61, %v9713_v61  ;;  %v9715_v39 = vpop.f32.mrb[65].mxu1  ;;  %v8594_v53 = vsel %vm4758_vm3, %v8589_v34, 0  ;;  %v8596_v29 = vsel %vm22639_vm9, %v8591_v49, %v22996_v42  ;;  %v23023_v28 = vrot.slane %v22993_v56, 7  ;;  %v19983_v61 = vld [vmem:[#allocation23 + $0x124] ss:$8 sps:$4 sm:$0xff]  }
 0xffd   : > { %v9721_v63 = vpack.c.bf16 %v9715_v39, %v9715_v39  ;;  %v8597_v37 = vsel %vm22639_vm9, %v8594_v53, %v23005_v60  ;;  %v8600_v51 = vsel %vm4772_vm7, %v8596_v29, 0  ;;  %v9717_v62 = vpop.f32.mrb[66].mxu1  ;;  %v8627_v52 = vrot.slane %v8625_v22, 7 }
 0xffe   : > { %v8603_v46 = vsel %vm4772_vm7, %v8597_v37, 0  ;;  %v8608_v54 = vsel %vm23011_vm11, %v8600_v51, %v22999_v7  ;;  %v9718_v48 = vpop.f32.mrb[67].mxu1  ;;  %v8631_v13 = vsel %vm22630_vm6, %v22993_v56, 0  ;;  %v8624_v20 = vrot.slane %v8622_v50, 7 }
 0xfff   : > { %10442 = vmatprep.mubr.bf16.mxu1 %v9721_v63  ;;  %v8609_v35 = vsel %vm23011_vm11, %v8603_v46, %v23023_v28  ;;  %v8612_v18 = vsel %vm8605_vm5, %v8608_v54, 0  ;;  %v23047_v57 = vrot.slane %v8625_v22, 6  ;;  %v8638_v25 = vsel %vm4758_vm3, %v8631_v13, %v8627_v52  ;;  %v19986_v54 = vld [vmem:[#allocation14 + $0x124] ss:$8 sps:$4 sm:$0xff]  }
0x1000   : > { %10443 = vmatmul.mubr.bf16.vlgmr.msra.gmra.mrb[76].mxu1 %v9720_v44  ;;  %v8615_v23 = vsel %vm8605_vm5, %v8609_v35, 0  ;;  %v8630_v10 = vsel %vm22630_vm6, %v22991_v58, 0  ;;  %v8641_v41 = vsel %vm22639_vm9, %v8638_v25, 0  ;;  %v8628_v38 = vrot.slane %v8622_v50, 6  ;;  %v19978_v44 = vld [vmem:[#allocation14 + $0x110] ss:$8 sps:$4 sm:$0xff]  }
0x1001   : > { %10452 = vmatpush1.bf16.msra.mxu1 %v19969_v31  ;;  %v8621_v36 = vsel %vm23032_vm13, %v8615_v23, 0  ;;  %v8634_v47 = vsel %vm4758_vm3, %v8630_v10, %v8624_v20  ;;  %v8620_v21 = vsel %vm23032_vm13, %v8612_v18, 0  ;;  %v8648_v14 = vsel %vm4772_vm7, %v8641_v41, %v23023_v28  ;;  %v19981_v31 = vld [vmem:[#allocation23 + $0x120] ss:$8 sps:$4 sm:$0xff]  }
0x1002   : > { %9532 = vmatprep.mubr.bf16.mxu0 %v8621_v36  ;;  %10453 = vmatprep.subr.bf16.mxu1 %v19977_v59  ;;  %v8640_v34 = vsel %vm22639_vm9, %v8634_v47, 0  ;;  %v8671_v49 = vsel %vm22630_vm6, 0, %v23005_v60  ;;  %v8651_v50 = vsel %vm23011_vm11, %v8648_v14, 0  ;;  %v8663_v29 = vrot.slane %v23005_v60, 7  ;;  %v19984_v41 = vld [vmem:[#allocation14 + $0x120] ss:$8 sps:$4 sm:$0xff]  }
0x1003   : > { %9533 = vmatmul.mubr.bf16.vlgmr.msra.gmra.mrb[72].mxu0 %v8620_v21  ;;  %v23069_v39 = vpop.f32.mrb[68].mxu1  ;;  %v8644_v53 = vsel %vm4772_vm7, %v8640_v34, %v22999_v7  ;;  %v8676_v22 = vsel %vm4758_vm3, %v8671_v49, 0  ;;  %v8658_v63 = vsel %vm8605_vm5, %v8651_v50, %v23047_v57  ;;  %v8667_v62 = vrot.slane %v22993_v56, 6  ;;  %v19989_v56 = vld [vmem:[#allocation23 + $0x134] ss:$8 sps:$4 sm:$0xff]  }
0x1004   : > { %9542 = vmatpush1.bf16.msra.mxu0 %v19972_v11  ;;  %v9764_v37 = vpop.f32.mrb[69].mxu1  ;;  %v8650_v51 = vsel %vm23011_vm11, %v8644_v53, 0  ;;  %v8679_v46 = vsel %vm22639_vm9, %v8676_v22, %v23023_v28  ;;  %v8661_v60 = vsel %vm23032_vm13, %v8658_v63, 0  ;;  %v8662_v20 = vrot.slane %v22996_v42, 7  ;;  %v19992_v21 = vld [vmem:[#allocation14 + $0x134] ss:$8 sps:$4 sm:$0xff]  }
0x1005   : > { %10454 = vmatpush1.bf16.msra.mxu1 %v19975_v6  ;;  %9543 = vmatprep.subr.bf16.mxu0 %v19980_v43  ;;  %v9770_v59 = vpack.c.bf16 %v9764_v37, %v9764_v37  ;;  %v23086_v52 = vsel %vm8605_vm5, %v8650_v51, %v8628_v38  ;;  %v8684_v48 = vsel %vm4772_vm7, %v8679_v46, 0  ;;  %v9766_v35 = vpop.f32.mrb[70].mxu1  ;;  %v8670_v23 = vsel %vm22630_vm6, 0, %v22996_v42  ;;  %v19998_v37 = vld [vmem:[#allocation14 + $0x144] ss:$8 sps:$4 sm:$0xff]  }
0x1006   : > { %9573 = vmatprep.mubr.bf16.mxu0 %v8661_v60  ;;  %10455 = vmatprep.subr.bf16.mxu1 %v19983_v61  ;;  %v8660_v11 = vsel %vm23032_vm13, %v23086_v52, 0  ;;  %v8687_v18 = vsel %vm23011_vm11, %v8684_v48, %v8663_v29  ;;  %v9767_v13 = vpop.f32.mrb[71].mxu1  ;;  %v8673_v25 = vsel %vm4758_vm3, %v8670_v23, 0  ;;  %v8698_v10 = vsel %vm4758_vm3, 0, %v23023_v28  ;;  %v19987_v28 = vld [vmem:[#allocation23 + $0x130] ss:$8 sps:$4 sm:$0xff]  }
0x1007   : > { %10483 = vmatprep.mubr.bf16.mxu1 %v9770_v59  ;;  %v8692_v6 = vsel %vm8605_vm5, %v8687_v18, 0  ;;  %v8696_v36 = vsel %vm4758_vm3, 0, %v22999_v7  ;;  %v8678_v9 = vsel %vm22639_vm9, %v8673_v25, %v22999_v7  ;;  %v8701_v42 = vsel %vm22639_vm9, %v8698_v10, 0  ;;  %v19995_v7 = vld [vmem:[#allocation23 + $0x144] ss:$8 sps:$4 sm:$0xff]  }
0x1008   : > { %9544 = vmatpush1.bf16.msra.mxu0 %v19978_v44  ;;  %v23106_v43 = vsel %vm23032_vm13, %v8692_v6, %v8667_v62  ;;  %v8700_v47 = vsel %vm22639_vm9, %v8696_v36, 0  ;;  %v8666_v14 = vrot.slane %v22991_v58, 6  ;;  %v8681_v61 = vsel %vm4772_vm7, %v8678_v9, 0  ;;  %v20001_v46 = vld [vmem:[#allocation23 + $0x154] ss:$8 sps:$4 sm:$0xff]  }
0x1009   : > { %10456 = vmatpush1.bf16.msra.mxu1 %v19981_v31  ;;  %9545 = vmatprep.subr.bf16.mxu0 %v19986_v54  ;;  %v8706_v34 = vsel %vm4772_vm7, %v8701_v42, %v23047_v57  ;;  %v8703_v49 = vsel %vm4772_vm7, %v8700_v47, %v8628_v38  ;;  %v8686_v50 = vsel %vm23011_vm11, %v8681_v61, %v8662_v20  ;;  %v19990_v38 = vld [vmem:[#allocation14 + $0x130] ss:$8 sps:$4 sm:$0xff]   ;;  %v19993_v31 = vld [vmem:[#allocation23 + $0x140] ss:$8 sps:$4 sm:$0xff]   ;;  %v20004_v48 = vld [vmem:[#allocation14 + $0x154] ss:$8 sps:$4 sm:$0xff]  }
0x100a   : > { %10457 = vmatprep.subr.bf16.mxu1 %v19989_v56  ;;  %v8709_v24 = vsel %vm23011_vm11, %v8706_v34, 0  ;;  %v8708_v44 = vsel %vm23011_vm11, %v8703_v49, 0  ;;  %v8689_v58 = vsel %vm8605_vm5, %v8686_v50, 0  ;;  %v19996_v54 = vld [vmem:[#allocation14 + $0x140] ss:$8 sps:$4 sm:$0xff]  }
0x100b   : > { %v23126_v53 = vpop.f32.mrb[72].mxu1  ;;  %v23130_v29 = vsel %vm8605_vm5, %v8709_v24, %v8667_v62  ;;  %v23133_v57 = vsel %vm8605_vm5, %v8708_v44, %v8666_v14  ;;  %v23139_v63 = vsel %vm23032_vm13, %v8689_v58, %v8666_v14  ;;  %v19999_v59 = vld [vmem:[#allocation23 + $0x150] ss:$8 sps:$4 sm:$0xff]   ;;  %v20007_v35 = vld [vmem:[#allocation23 + $0x164] ss:$8 sps:$4 sm:$0xff]  }
0x100c   : > { %9546 = vmatpush1.bf16.msra.mxu0 %v19984_v41  ;;  %v23135_v22 = vpop.f32.mrb[73].mxu1  ;;  %v8719_v0 = vsel %vm23032_vm13, %v23130_v29, 0  ;;  %v8718_v62 = vsel %vm23032_vm13, %v23133_v57, 0  ;;  %v20002_v56 = vld [vmem:[#allocation14 + $0x150] ss:$8 sps:$4 sm:$0xff]  }
0x100d   : > { %10458 = vmatpush1.bf16.msra.mxu1 %v19987_v28  ;;  %9547 = vmatprep.subr.bf16.mxu0 %v19992_v21  ;;  %v9817_v51 = vpop.f32.mrb[74].mxu1  ;;  %v20005_v18 = vld [vmem:[#allocation23 + $0x160] ss:$8 sps:$4 sm:$0xff]   ;;  %v20013_v20 = vld [vmem:[#allocation23 + $0x174] ss:$8 sps:$4 sm:$0xff]  }
0x100e   : > { %10459 = vmatprep.subr.bf16.mxu1 %v19995_v7  ;;  %v9818_v60 = vpop.f32.mrb[75].mxu1  ;;  %v20010_v13 = vld [vmem:[#allocation14 + $0x164] ss:$8 sps:$4 sm:$0xff]   ;;  %v20008_v23 = vld [vmem:[#allocation14 + $0x160] ss:$8 sps:$4 sm:$0xff]  }
0x100f   : > { %v20011_v6 = vld [vmem:[#allocation23 + $0x170] ss:$8 sps:$4 sm:$0xff]   ;;  %v20019_v10 = vld [vmem:[#allocation23 + $0x184] ss:$8 sps:$4 sm:$0xff]   ;;  %v20017_v41 = vld [vmem:[#allocation23 + $0x180] ss:$8 sps:$4 sm:$0xff]  }
0x1010   : > { %9548 = vmatpush1.bf16.msra.mxu0 %v19990_v38  ;;  %v20016_v25 = vld [vmem:[#allocation14 + $0x174] ss:$8 sps:$4 sm:$0xff]   ;;  %v20014_v36 = vld [vmem:[#allocation14 + $0x170] ss:$8 sps:$4 sm:$0xff]   ;;  %v20022_v9 = vld [vmem:[#allocation14 + $0x184] ss:$8 sps:$4 sm:$0xff]  }
0x1011   : > { %10460 = vmatpush1.bf16.msra.mxu1 %v19993_v31  ;;  %9549 = vmatprep.subr.bf16.mxu0 %v19998_v37  ;;  %v20025_v42 = vld [vmem:[#allocation23 + $0x194] ss:$8 sps:$4 sm:$0xff]   ;;  %v20023_v28 = vld [vmem:[#allocation23 + $0x190] ss:$8 sps:$4 sm:$0xff]   ;;  %v20031_v14 = vld [vmem:[#allocation23 + $0x1a4] ss:$8 sps:$4 sm:$0xff]  }
0x1012   : > { %10461 = vmatprep.subr.bf16.mxu1 %v20001_v46  ;;  %v20020_v47 = vld [vmem:[#allocation14 + $0x180] ss:$8 sps:$4 sm:$0xff]   ;;  %v20028_v21 = vld [vmem:[#allocation14 + $0x194] ss:$8 sps:$4 sm:$0xff]   ;;  %v20026_v61 = vld [vmem:[#allocation14 + $0x190] ss:$8 sps:$4 sm:$0xff]  }
0x1013   : > { %v20029_v34 = vld [vmem:[#allocation23 + $0x1a0] ss:$8 sps:$4 sm:$0xff]   ;;  %v20037_v7 = vld [vmem:[#allocation23 + $0x1b4] ss:$8 sps:$4 sm:$0xff]   ;;  %v20035_v24 = vld [vmem:[#allocation23 + $0x1b0] ss:$8 sps:$4 sm:$0xff]  }
0x1014   : > { %9550 = vmatpush1.bf16.msra.mxu0 %v19996_v54  ;;  %v20034_v49 = vld [vmem:[#allocation14 + $0x1a4] ss:$8 sps:$4 sm:$0xff]   ;;  %v20032_v50 = vld [vmem:[#allocation14 + $0x1a0] ss:$8 sps:$4 sm:$0xff]   ;;  %v20040_v44 = vld [vmem:[#allocation14 + $0x1b4] ss:$8 sps:$4 sm:$0xff]  }
0x1015   : > { %10462 = vmatpush1.bf16.msra.mxu1 %v19999_v59  ;;  %9551 = vmatprep.subr.bf16.mxu0 %v20004_v48  ;;  %v20043_v58 = vld [vmem:[#allocation23 + $0x1c4] ss:$8 sps:$4 sm:$0xff]   ;;  %v20041_v31 = vld [vmem:[#allocation23 + $0x1c0] ss:$8 sps:$4 sm:$0xff]   ;;  %v20049_v51 = vld [vmem:[#allocation23 + $0x1d4] ss:$8 sps:$4 sm:$0xff]  }
0x1016   : > { %10463 = vmatprep.subr.bf16.mxu1 %v20007_v35  ;;  %v20038_v38 = vld [vmem:[#allocation14 + $0x1b0] ss:$8 sps:$4 sm:$0xff]   ;;  %v20046_v37 = vld [vmem:[#allocation14 + $0x1c4] ss:$8 sps:$4 sm:$0xff]   ;;  %v20044_v46 = vld [vmem:[#allocation14 + $0x1c0] ss:$8 sps:$4 sm:$0xff]  }
0x1017   : > { %v20047_v60 = vld [vmem:[#allocation23 + $0x1d0] ss:$8 sps:$4 sm:$0xff]   ;;  %v20055_v59 = vld [vmem:[#allocation23 + $0x1e4] ss:$8 sps:$4 sm:$0xff]   ;;  %v20053_v35 = vld [vmem:[#allocation23 + $0x1e0] ss:$8 sps:$4 sm:$0xff]  }
0x1018   : > { %9552 = vmatpush1.bf16.msra.mxu0 %v20002_v56  ;;  %v20052_v54 = vld [vmem:[#allocation14 + $0x1d4] ss:$8 sps:$4 sm:$0xff]   ;;  %v20050_v48 = vld [vmem:[#allocation14 + $0x1d0] ss:$8 sps:$4 sm:$0xff]   ;;  %v20058_v56 = vld [vmem:[#allocation14 + $0x1e4] ss:$8 sps:$4 sm:$0xff]  }
0x1019   : > { %10464 = vmatpush1.bf16.msra.mxu1 %v20005_v18  ;;  %9553 = vmatprep.subr.bf16.mxu0 %v20010_v13  ;;  %v20061_v18 = vld [vmem:[#allocation23 + $0x1f4] ss:$8 sps:$4 sm:$0xff]   ;;  %v20181_v29 = vld [vmem:[#allocation14 + $0x364] ss:$8 sps:$4 sm:$0xff]  }
0x101a   : > { %10465 = vmatprep.subr.bf16.mxu1 %v20013_v20  ;;  %v20056_v13 = vld [vmem:[#allocation14 + $0x1e0] ss:$8 sps:$4 sm:$0xff]   ;;  %v20059_v20 = vld [vmem:[#allocation23 + $0x1f0] ss:$8 sps:$4 sm:$0xff]  }
0x101b   : > { %v20086_v52 = vld [vmem:[#allocation14 + $0x230] ss:$8 sps:$4 sm:$0xff]  }
0x101c   : > { %9554 = vmatpush1.bf16.msra.mxu0 %v20008_v23  ;;  %v20064_v23 = vld [vmem:[#allocation14 + $0x1f4] ss:$8 sps:$4 sm:$0xff]  }
0x101d   : > { %10466 = vmatpush1.bf16.msra.mxu1 %v20011_v6  ;;  %9555 = vmatprep.subr.bf16.mxu0 %v20016_v25  ;;  %v20067_v6 = vld [vmem:[#allocation23 + $0x204] ss:$8 sps:$4 sm:$0xff]   ;;  %v9769_v25 = vpack.c.bf16 %v23069_v39, %v23069_v39 }
0x101e   : > { %10467 = vmatprep.subr.bf16.mxu1 %v20019_v10  ;;  %v20062_v10 = vld [vmem:[#allocation14 + $0x1f0] ss:$8 sps:$4 sm:$0xff]  }
0x101f   : > { %v20074_v39 = vld [vmem:[#allocation14 + $0x210] ss:$8 sps:$4 sm:$0xff]  }
0x1020   : > { %9556 = vmatpush1.bf16.msra.mxu0 %v20014_v36  ;;  %v20065_v36 = vld [vmem:[#allocation23 + $0x200] ss:$8 sps:$4 sm:$0xff]  }
0x1021   : > { %10468 = vmatpush1.bf16.msra.mxu1 %v20017_v41  ;;  %9557 = vmatprep.subr.bf16.mxu0 %v20022_v9  ;;  %v20070_v41 = vld [vmem:[#allocation14 + $0x204] ss:$8 sps:$4 sm:$0xff]   ;;  %v20073_v9 = vld [vmem:[#allocation23 + $0x214] ss:$8 sps:$4 sm:$0xff]  }
0x1022   : > { %10469 = vmatprep.subr.bf16.mxu1 %v20025_v42  ;;  %v9821_v42 = vpack.c.bf16 %v23135_v22, %v23135_v22  ;;  %v20077_v22 = vld [vmem:[#allocation23 + $0x220] ss:$8 sps:$4 sm:$0xff]  }
0x1024   : > { %9558 = vmatpush1.bf16.msra.mxu0 %v20020_v47  ;;  %v20068_v47 = vld [vmem:[#allocation14 + $0x200] ss:$8 sps:$4 sm:$0xff]  }
0x1025   : > { %10470 = vmatpush1.bf16.msra.mxu1 %v20023_v28  ;;  %9559 = vmatprep.subr.bf16.mxu0 %v20028_v21  ;;  %v20071_v28 = vld [vmem:[#allocation23 + $0x210] ss:$8 sps:$4 sm:$0xff]  }
0x1026   : > { %10471 = vmatprep.subr.bf16.mxu1 %v20031_v14  ;;  %v20076_v21 = vld [vmem:[#allocation14 + $0x214] ss:$8 sps:$4 sm:$0xff]   ;;  %v20079_v14 = vld [vmem:[#allocation23 + $0x224] ss:$8 sps:$4 sm:$0xff]  }
0x1028   : > { %9560 = vmatpush1.bf16.msra.mxu0 %v20026_v61  ;;  %v20082_v61 = vld [vmem:[#allocation14 + $0x224] ss:$8 sps:$4 sm:$0xff]  }
0x1029   : > { %10472 = vmatpush1.bf16.msra.mxu1 %v20029_v34  ;;  %9561 = vmatprep.subr.bf16.mxu0 %v20034_v49  ;;  %v20085_v34 = vld [vmem:[#allocation23 + $0x234] ss:$8 sps:$4 sm:$0xff]  }
0x102a   : > { %10473 = vmatprep.subr.bf16.mxu1 %v20037_v7  ;;  %v20080_v49 = vld [vmem:[#allocation14 + $0x220] ss:$8 sps:$4 sm:$0xff]   ;;  %v20083_v7 = vld [vmem:[#allocation23 + $0x230] ss:$8 sps:$4 sm:$0xff]  }
0x102c   : > { %9562 = vmatpush1.bf16.msra.mxu0 %v20032_v50  ;;  %v20088_v50 = vld [vmem:[#allocation14 + $0x234] ss:$8 sps:$4 sm:$0xff]  }
0x102d   : > { %10474 = vmatpush1.bf16.msra.mxu1 %v20035_v24  ;;  %9563 = vmatprep.subr.bf16.mxu0 %v20040_v44  ;;  %v20091_v24 = vld [vmem:[#allocation23 + $0x244] ss:$8 sps:$4 sm:$0xff]   ;;  %v20097_v44 = vld [vmem:[#allocation23 + $0x254] ss:$8 sps:$4 sm:$0xff]  }
0x102e   : > { %10475 = vmatprep.subr.bf16.mxu1 %v20043_v58  ;;  %v20092_v58 = vld [vmem:[#allocation14 + $0x240] ss:$8 sps:$4 sm:$0xff]  }
0x1030   : > { %9564 = vmatpush1.bf16.msra.mxu0 %v20038_v38  ;;  %v20095_v38 = vld [vmem:[#allocation23 + $0x250] ss:$8 sps:$4 sm:$0xff]  }
0x1031   : > { %10476 = vmatpush1.bf16.msra.mxu1 %v20041_v31  ;;  %9565 = vmatprep.subr.bf16.mxu0 %v20046_v37  ;;  %v20100_v31 = vld [vmem:[#allocation14 + $0x254] ss:$8 sps:$4 sm:$0xff]   ;;  %v20103_v37 = vld [vmem:[#allocation23 + $0x264] ss:$8 sps:$4 sm:$0xff]  }
0x1032   : > { %10477 = vmatprep.subr.bf16.mxu1 %v20049_v51  ;;  %v20098_v51 = vld [vmem:[#allocation14 + $0x250] ss:$8 sps:$4 sm:$0xff]  }
0x1034   : > { %9566 = vmatpush1.bf16.msra.mxu0 %v20044_v46  ;;  %v20101_v46 = vld [vmem:[#allocation23 + $0x260] ss:$8 sps:$4 sm:$0xff]  }
0x1035   : > { %10478 = vmatpush1.bf16.msra.mxu1 %v20047_v60  ;;  %9567 = vmatprep.subr.bf16.mxu0 %v20052_v54  ;;  %v20106_v60 = vld [vmem:[#allocation14 + $0x264] ss:$8 sps:$4 sm:$0xff]   ;;  %v20109_v54 = vld [vmem:[#allocation23 + $0x274] ss:$8 sps:$4 sm:$0xff]  }
0x1036   : > { %10479 = vmatprep.subr.bf16.mxu1 %v20055_v59  ;;  %v20104_v59 = vld [vmem:[#allocation14 + $0x260] ss:$8 sps:$4 sm:$0xff]  }
0x1038   : > { %9568 = vmatpush1.bf16.msra.mxu0 %v20050_v48  ;;  %v20107_v48 = vld [vmem:[#allocation23 + $0x270] ss:$8 sps:$4 sm:$0xff]  }
0x1039   : > { %10480 = vmatpush1.bf16.msra.mxu1 %v20053_v35  ;;  %9569 = vmatprep.subr.bf16.mxu0 %v20058_v56  ;;  %v20112_v35 = vld [vmem:[#allocation14 + $0x274] ss:$8 sps:$4 sm:$0xff]   ;;  %v20115_v56 = vld [vmem:[#allocation23 + $0x284] ss:$8 sps:$4 sm:$0xff]  }
0x103a   : > { %10481 = vmatprep.subr.bf16.mxu1 %v20061_v18  ;;  %v20110_v18 = vld [vmem:[#allocation14 + $0x270] ss:$8 sps:$4 sm:$0xff]  }
0x103c   : > { %9570 = vmatpush1.bf16.msra.mxu0 %v20056_v13  ;;  %v20113_v13 = vld [vmem:[#allocation23 + $0x280] ss:$8 sps:$4 sm:$0xff]  }
0x103d   : > { %10482 = vmatpush1.bf16.msra.mxu1 %v20059_v20  ;;  %9571 = vmatprep.subr.bf16.mxu0 %v20064_v23  ;;  %v20118_v20 = vld [vmem:[#allocation14 + $0x284] ss:$8 sps:$4 sm:$0xff]   ;;  %v20121_v23 = vld [vmem:[#allocation23 + $0x294] ss:$8 sps:$4 sm:$0xff]  }
0x103e   : > { %10492 = vmatprep.subr.bf16.mxu1 %v20067_v6  ;;  %v20116_v6 = vld [vmem:[#allocation14 + $0x280] ss:$8 sps:$4 sm:$0xff]  }
0x1040   : > { %9572 = vmatpush1.bf16.msra.mxu0 %v20062_v10  ;;  %10484 = vmatmul.mubr.bf16.vlgmr.msra.gmra.mrb[80].mxu1 %v9769_v25  ;;  %v20119_v25 = vld [vmem:[#allocation23 + $0x290] ss:$8 sps:$4 sm:$0xff]  }
0x1041   : > { %10493 = vmatpush1.bf16.msra.mxu1 %v20065_v36  ;;  %9582 = vmatprep.subr.bf16.mxu0 %v20070_v41  ;;  %v20124_v10 = vld [vmem:[#allocation14 + $0x294] ss:$8 sps:$4 sm:$0xff]   ;;  %v20127_v36 = vld [vmem:[#allocation23 + $0x2a4] ss:$8 sps:$4 sm:$0xff]  }
0x1042   : > { %10494 = vmatprep.subr.bf16.mxu1 %v20073_v9  ;;  %10524 = vmatprep.mubr.bf16.mxu1 %v9821_v42  ;;  %v20122_v41 = vld [vmem:[#allocation14 + $0x290] ss:$8 sps:$4 sm:$0xff]   ;;  %v20125_v9 = vld [vmem:[#allocation23 + $0x2a0] ss:$8 sps:$4 sm:$0xff]  }
0x1043   : > { %9574 = vmatmul.mubr.bf16.vlgmr.msra.gmra.mrb[72].mxu0 %v8660_v11  ;;  %v20089_v11 = vld [vmem:[#allocation23 + $0x240] ss:$8 sps:$4 sm:$0xff]  }
0x1044   : > { %9583 = vmatpush1.bf16.msra.mxu0 %v20068_v47  ;;  %9614 = vmatprep.mubr.bf16.mxu0 %v23106_v43  ;;  %v20094_v43 = vld [vmem:[#allocation14 + $0x244] ss:$8 sps:$4 sm:$0xff]   ;;  %v20133_v47 = vld [vmem:[#allocation23 + $0x2b4] ss:$8 sps:$4 sm:$0xff]  }
0x1045   : > { %10495 = vmatpush1.bf16.msra.mxu1 %v20071_v28  ;;  %9584 = vmatprep.subr.bf16.mxu0 %v20076_v21  ;;  %v20130_v42 = vld [vmem:[#allocation14 + $0x2a4] ss:$8 sps:$4 sm:$0xff]   ;;  %v20128_v28 = vld [vmem:[#allocation14 + $0x2a0] ss:$8 sps:$4 sm:$0xff]   ;;  %v20131_v21 = vld [vmem:[#allocation23 + $0x2b0] ss:$8 sps:$4 sm:$0xff]  }
0x1046   : > { %10496 = vmatprep.subr.bf16.mxu1 %v20079_v14  ;;  %v20136_v14 = vld [vmem:[#allocation14 + $0x2b4] ss:$8 sps:$4 sm:$0xff]  }
0x1048   : > { %9585 = vmatpush1.bf16.msra.mxu0 %v20074_v39  ;;  %v20139_v39 = vld [vmem:[#allocation23 + $0x2c4] ss:$8 sps:$4 sm:$0xff]  }
0x1049   : > { %10497 = vmatpush1.bf16.msra.mxu1 %v20077_v22  ;;  %9586 = vmatprep.subr.bf16.mxu0 %v20082_v61  ;;  %v20134_v22 = vld [vmem:[#allocation14 + $0x2b0] ss:$8 sps:$4 sm:$0xff]   ;;  %v20137_v61 = vld [vmem:[#allocation23 + $0x2c0] ss:$8 sps:$4 sm:$0xff]  }
0x104a   : > { %10498 = vmatprep.subr.bf16.mxu1 %v20085_v34  ;;  %v20142_v34 = vld [vmem:[#allocation14 + $0x2c4] ss:$8 sps:$4 sm:$0xff]  }
0x104c   : > { %9587 = vmatpush1.bf16.msra.mxu0 %v20080_v49  ;;  %v20145_v49 = vld [vmem:[#allocation23 + $0x2d4] ss:$8 sps:$4 sm:$0xff]  }
0x104d   : > { %10499 = vmatpush1.bf16.msra.mxu1 %v20083_v7  ;;  %9588 = vmatprep.subr.bf16.mxu0 %v20088_v50  ;;  %v20140_v7 = vld [vmem:[#allocation14 + $0x2c0] ss:$8 sps:$4 sm:$0xff]   ;;  %v20143_v50 = vld [vmem:[#allocation23 + $0x2d0] ss:$8 sps:$4 sm:$0xff]  }
0x104e   : > { %10500 = vmatprep.subr.bf16.mxu1 %v20091_v24  ;;  %v20148_v24 = vld [vmem:[#allocation14 + $0x2d4] ss:$8 sps:$4 sm:$0xff]  }
0x1050   : > { %9589 = vmatpush1.bf16.msra.mxu0 %v20086_v52  ;;  %v20151_v52 = vld [vmem:[#allocation23 + $0x2e4] ss:$8 sps:$4 sm:$0xff]  }
0x1051   : > { %10501 = vmatpush1.bf16.msra.mxu1 %v20089_v11  ;;  %9590 = vmatprep.subr.bf16.mxu0 %v20094_v43  ;;  %v20146_v11 = vld [vmem:[#allocation14 + $0x2d0] ss:$8 sps:$4 sm:$0xff]   ;;  %v20149_v43 = vld [vmem:[#allocation23 + $0x2e0] ss:$8 sps:$4 sm:$0xff]  }
0x1052   : > { %10502 = vmatprep.subr.bf16.mxu1 %v20097_v44  ;;  %v20154_v44 = vld [vmem:[#allocation14 + $0x2e4] ss:$8 sps:$4 sm:$0xff]  }
0x1054   : > { %9591 = vmatpush1.bf16.msra.mxu0 %v20092_v58  ;;  %v20157_v58 = vld [vmem:[#allocation23 + $0x2f4] ss:$8 sps:$4 sm:$0xff]  }
0x1055   : > { %10503 = vmatpush1.bf16.msra.mxu1 %v20095_v38  ;;  %9592 = vmatprep.subr.bf16.mxu0 %v20100_v31  ;;  %v20152_v38 = vld [vmem:[#allocation14 + $0x2e0] ss:$8 sps:$4 sm:$0xff]   ;;  %v20155_v31 = vld [vmem:[#allocation23 + $0x2f0] ss:$8 sps:$4 sm:$0xff]  }
0x1056   : > { %10504 = vmatprep.subr.bf16.mxu1 %v20103_v37  ;;  %v20160_v37 = vld [vmem:[#allocation14 + $0x2f4] ss:$8 sps:$4 sm:$0xff]  }
0x1058   : > { %9593 = vmatpush1.bf16.msra.mxu0 %v20098_v51  ;;  %v9820_v51 = vpack.c.bf16 %v23126_v53, %v23126_v53  ;;  %v20164_v53 = vld [vmem:[#allocation14 + $0x310] ss:$8 sps:$4 sm:$0xff]  }
0x1059   : > { %10505 = vmatpush1.bf16.msra.mxu1 %v20101_v46  ;;  %9594 = vmatprep.subr.bf16.mxu0 %v20106_v60  ;;  %v20158_v46 = vld [vmem:[#allocation14 + $0x2f0] ss:$8 sps:$4 sm:$0xff]   ;;  %v20163_v60 = vld [vmem:[#allocation14 + $0x304] ss:$8 sps:$4 sm:$0xff]  }
0x105a   : > { %10506 = vmatprep.subr.bf16.mxu1 %v20109_v54  ;;  %v20161_v54 = vld [vmem:[#allocation14 + $0x300] ss:$8 sps:$4 sm:$0xff]  }
0x105c   : > { %9595 = vmatpush1.bf16.msra.mxu0 %v20104_v59  ;;  %v20166_v59 = vld [vmem:[#allocation14 + $0x314] ss:$8 sps:$4 sm:$0xff]  }
0x105d   : > { %10507 = vmatpush1.bf16.msra.mxu1 %v20107_v48  ;;  %9596 = vmatprep.subr.bf16.mxu0 %v20112_v35  ;;  %v20169_v48 = vld [vmem:[#allocation14 + $0x324] ss:$8 sps:$4 sm:$0xff]   ;;  %v20167_v35 = vld [vmem:[#allocation14 + $0x320] ss:$8 sps:$4 sm:$0xff]  }
0x105e   : > { %10508 = vmatprep.subr.bf16.mxu1 %v20115_v56  ;;  %v20172_v56 = vld [vmem:[#allocation14 + $0x334] ss:$8 sps:$4 sm:$0xff]  }
0x1060   : > { %9597 = vmatpush1.bf16.msra.mxu0 %v20110_v18  ;;  %v20170_v18 = vld [vmem:[#allocation14 + $0x330] ss:$8 sps:$4 sm:$0xff]  }
0x1061   : > { %10509 = vmatpush1.bf16.msra.mxu1 %v20113_v13  ;;  %9598 = vmatprep.subr.bf16.mxu0 %v20118_v20  ;;  %v20175_v13 = vld [vmem:[#allocation14 + $0x344] ss:$8 sps:$4 sm:$0xff]   ;;  %v20173_v20 = vld [vmem:[#allocation14 + $0x340] ss:$8 sps:$4 sm:$0xff]  }
0x1062   : > { %10510 = vmatprep.subr.bf16.mxu1 %v20121_v23  ;;  %v20176_v23 = vld [vmem:[#allocation14 + $0x350] ss:$8 sps:$4 sm:$0xff]  }
0x1064   : > { %9599 = vmatpush1.bf16.msra.mxu0 %v20116_v6  ;;  %v20184_v6 = vld [vmem:[#allocation14 + $0x374] ss:$8 sps:$4 sm:$0xff]  }
0x1065   : > { %10511 = vmatpush1.bf16.msra.mxu1 %v20119_v25  ;;  %9600 = vmatprep.subr.bf16.mxu0 %v20124_v10  ;;  %v20182_v25 = vld [vmem:[#allocation14 + $0x370] ss:$8 sps:$4 sm:$0xff]   ;;  %v20187_v10 = vld [vmem:[#allocation14 + $0x384] ss:$8 sps:$4 sm:$0xff]  }
0x1066   : > { %10512 = vmatprep.subr.bf16.mxu1 %v20127_v36  ;;  %v20185_v36 = vld [vmem:[#allocation14 + $0x380] ss:$8 sps:$4 sm:$0xff]  }
0x1068   : > { %9601 = vmatpush1.bf16.msra.mxu0 %v20122_v41  ;;  %v20190_v41 = vld [vmem:[#allocation14 + $0x394] ss:$8 sps:$4 sm:$0xff]  }
0x1069   : > { %10513 = vmatpush1.bf16.msra.mxu1 %v20125_v9  ;;  %9602 = vmatprep.subr.bf16.mxu0 %v20130_v42  ;;  %v20188_v9 = vld [vmem:[#allocation14 + $0x390] ss:$8 sps:$4 sm:$0xff]   ;;  %v20193_v42 = vld [vmem:[#allocation14 + $0x3a4] ss:$8 sps:$4 sm:$0xff]  }
0x106a   : > { %10514 = vmatprep.subr.bf16.mxu1 %v20133_v47  ;;  %v20191_v47 = vld [vmem:[#allocation14 + $0x3a0] ss:$8 sps:$4 sm:$0xff]  }
0x106c   : > { %9603 = vmatpush1.bf16.msra.mxu0 %v20128_v28  ;;  %v20196_v28 = vld [vmem:[#allocation14 + $0x3b4] ss:$8 sps:$4 sm:$0xff]  }
0x106d   : > { %10515 = vmatpush1.bf16.msra.mxu1 %v20131_v21  ;;  %9604 = vmatprep.subr.bf16.mxu0 %v20136_v14  ;;  %v20194_v21 = vld [vmem:[#allocation14 + $0x3b0] ss:$8 sps:$4 sm:$0xff]   ;;  %v20199_v14 = vld [vmem:[#allocation14 + $0x3c4] ss:$8 sps:$4 sm:$0xff]  }
0x106e   : > { %10516 = vmatprep.subr.bf16.mxu1 %v20139_v39  ;;  %v20197_v39 = vld [vmem:[#allocation14 + $0x3c0] ss:$8 sps:$4 sm:$0xff]  }
0x1070   : > { %9605 = vmatpush1.bf16.msra.mxu0 %v20134_v22  ;;  %v20202_v22 = vld [vmem:[#allocation14 + $0x3d4] ss:$8 sps:$4 sm:$0xff]  }
0x1071   : > { %10517 = vmatpush1.bf16.msra.mxu1 %v20137_v61  ;;  %9606 = vmatprep.subr.bf16.mxu0 %v20142_v34  ;;  %v20200_v61 = vld [vmem:[#allocation14 + $0x3d0] ss:$8 sps:$4 sm:$0xff]   ;;  %v20205_v34 = vld [vmem:[#allocation14 + $0x3e4] ss:$8 sps:$4 sm:$0xff]  }
0x1072   : > { %10518 = vmatprep.subr.bf16.mxu1 %v20145_v49  ;;  %v20203_v49 = vld [vmem:[#allocation14 + $0x3e0] ss:$8 sps:$4 sm:$0xff]  }
0x1074   : > { %9607 = vmatpush1.bf16.msra.mxu0 %v20140_v7  ;;  %v20208_v7 = vld [vmem:[#allocation14 + $0x3f4] ss:$8 sps:$4 sm:$0xff]  }
0x1075   : > { %10519 = vmatpush1.bf16.msra.mxu1 %v20143_v50  ;;  %9608 = vmatprep.subr.bf16.mxu0 %v20148_v24  ;;  %v20206_v50 = vld [vmem:[#allocation14 + $0x3f0] ss:$8 sps:$4 sm:$0xff]  }
0x1076   : > { %10520 = vmatprep.subr.bf16.mxu1 %v20151_v52 }
0x1078   : > { %9609 = vmatpush1.bf16.msra.mxu0 %v20146_v11 }
0x1079   : > { %10521 = vmatpush1.bf16.msra.mxu1 %v20149_v43  ;;  %9610 = vmatprep.subr.bf16.mxu0 %v20154_v44  ;;  %v9918_v44 = vld [vmem:[%s23996_s16] sm:$0x3]  ;;  %s24025_s16 = sld [smem:[#allocation62_spill]] }
0x107a   : > { %10522 = vmatprep.subr.bf16.mxu1 %v20157_v58  ;;  %v9923_v58 = vrot.slane %v9918_v44, %v22235_v30 }
0x107c   : > { %9611 = vmatpush1.bf16.msra.mxu0 %v20152_v38  ;;  %v9927_v38 = vrot.slane %v9918_v44, %v22239_v33 }
0x107d   : > { %10523 = vmatpush1.bf16.msra.mxu1 %v20155_v31  ;;  %9612 = vmatprep.subr.bf16.mxu0 %v20160_v37 }
0x107f   : > { %p24026_p10 = scmp.ne.s32.totalorder %s24025_s16, 0 }
0x1080   : > { %9613 = vmatpush1.bf16.msra.mxu0 %v20158_v46  ;;  %10525 = vmatmul.mubr.bf16.vlgmr.msra.gmra.mrb[84].mxu1 %v9820_v51 }
0x1081   : > { %9623 = vmatprep.subr.bf16.mxu0 %v20163_v60  ;;  %10585 = vmatprep.mubr.bf16.mxu1 %v23916_v1 }
0x1083   : > { %9615 = vmatmul.mubr.bf16.vlgmr.msra.gmra.mrb[72].mxu0 %v23139_v63  ;;  %v20178_v63 = vld [vmem:[#allocation14 + $0x354] ss:$8 sps:$4 sm:$0xff]  }
0x1084   : > { %9624 = vmatpush1.bf16.msra.mxu0 %v20161_v54  ;;  %9655 = vmatprep.mubr.bf16.mxu0 %v8719_v0  ;;  %v20179_v0 = vld [vmem:[#allocation14 + $0x360] ss:$8 sps:$4 sm:$0xff]  }
0x1085   : > { %9625 = vmatprep.subr.bf16.mxu0 %v20166_v59 }
0x1088   : > { %9626 = vmatpush1.bf16.msra.mxu0 %v20164_v53 }
0x1089   : > { %9627 = vmatprep.subr.bf16.mxu0 %v20169_v48 }
0x108c   : > { %9628 = vmatpush1.bf16.msra.mxu0 %v20167_v35 }
0x108d   : > { %9629 = vmatprep.subr.bf16.mxu0 %v20172_v56 }
0x1090   : > { %9630 = vmatpush1.bf16.msra.mxu0 %v20170_v18  ;;  %v8848_v18 = vld [vmem:[%s23997_s7] sm:$0x3]  ;;  %s17992_s7 = sshll.u32 %s21760_s0, 10  ;;  %s21551_s0 = smov [#allocation26]  }
0x1091   : > { %9631 = vmatprep.subr.bf16.mxu0 %v20175_v13  ;;  %v23174_v13 = vmul.u32 2, %v22055_v8  ;;  %s21401_s10 = sshll.u32 %s21551_s0, 4  ;;  %s21402_s10 = int_to_ptr.vmem [resolvable:$false] %s21401_s10 }
0x1093   : > { %vm10598_vm3 = vcmp.eq.s32.totalorder %v23174_v13, %v22042_v2  ;;  %vm10599_vm6 = vcmp.eq.s32.totalorder %v23174_v13, %v22046_v3 }
0x1094   : > { %9632 = vmatpush1.bf16.msra.mxu0 %v20173_v20  ;;  %v8853_v20 = vrot.slane %v8848_v18, %v22235_v30 }
0x1095   : > { %9633 = vmatprep.subr.bf16.mxu0 %v20178_v63  ;;  %v8857_v63 = vrot.slane %v8848_v18, %v22239_v33  ;;  %v20218_v18 = vld [vmem:[#allocation16 + $0x30] ss:$8 sps:$4 sm:$0xff]  }
0x1098   : > { %9634 = vmatpush1.bf16.msra.mxu0 %v20176_v23 }
0x1099   : > { %9635 = vmatprep.subr.bf16.mxu0 %v20181_v29  ;;  %v23179_v29 = vadd.s32 4294967295, %v23174_v13 }
0x109b   : > { %vm10539_vm7 = vcmp.eq.s32.totalorder %v23179_v29, %v22042_v2  ;;  %vm10540_vm9 = vcmp.eq.s32.totalorder %v23179_v29, %v22046_v3  ;;  %vm12596_vm11 = vcmp.eq.s32.totalorder %v23179_v29, %v22067_v15  ;;  %vm12597_vm13 = vcmp.eq.s32.totalorder %v23179_v29, %v22070_v16 }
0x109c   : > { %9636 = vmatpush1.bf16.msra.mxu0 %v20179_v0 }
0x109d   : > { %9637 = vmatprep.subr.bf16.mxu0 %v20184_v6 }
0x10a0   : > { %9638 = vmatpush1.bf16.msra.mxu0 %v20182_v25 }
0x10a1   : > { %9639 = vmatprep.subr.bf16.mxu0 %v20187_v10 }
0x10a4   : > { %9640 = vmatpush1.bf16.msra.mxu0 %v20185_v36 }
0x10a5   : > { %9641 = vmatprep.subr.bf16.mxu0 %v20190_v41 }
0x10a8   : > { %9642 = vmatpush1.bf16.msra.mxu0 %v20188_v9  ;;  %v10706_v9 = vadd.s32 3, %v23174_v13 }
0x10a9   : > { %9643 = vmatprep.subr.bf16.mxu0 %v20193_v42 }
0x10ac   : > { %9644 = vmatpush1.bf16.msra.mxu0 %v20191_v47  ;;  %v10651_v47 = vadd.s32 2, %v23174_v13 }
0x10ad   : > { %9645 = vmatprep.subr.bf16.mxu0 %v20196_v28 }
0x10b0   : > { %9646 = vmatpush1.bf16.msra.mxu0 %v20194_v21 }
0x10b1   : > { %9647 = vmatprep.subr.bf16.mxu0 %v20199_v14  ;;  %v10600_v14 = vsel %vm10598_vm3, 1.0, %v23914_v19 }
0x10b4   : > { %9648 = vmatpush1.bf16.msra.mxu0 %v20197_v39  ;;  %v10601_v39 = vsel %vm10599_vm6, 1.0, %v23914_v19 }
0x10b5   : > { %9649 = vmatprep.subr.bf16.mxu0 %v20202_v22 }
0x10b8   : > { %9650 = vmatpush1.bf16.msra.mxu0 %v20200_v61  ;;  %v10541_v61 = vsel %vm10539_vm7, 1.0, %v23914_v19 }
0x10b9   : > { %9651 = vmatprep.subr.bf16.mxu0 %v20205_v34  ;;  %v10542_v34 = vsel %vm10540_vm9, 1.0, %v23914_v19 }
0x10bc   : > { %9652 = vmatpush1.bf16.msra.mxu0 %v20203_v49  ;;  %v23195_v49 = vadd.s32 4294967295, %v10706_v9  ;;  %v20241_v9 = vld [vmem:[#allocation16 + $0x74] ss:$8 sps:$4 sm:$0xff]  }
0x10bd   : > { %9653 = vmatprep.subr.bf16.mxu0 %v20208_v7 }
0x10be   : > { %vm10708_vm15 = vcmp.eq.s32.totalorder %v23195_v49, %v22042_v2  ;;  %vm10709_vm0 = vcmp.eq.s32.totalorder %v23195_v49, %v22046_v3  ;;  %vm12797_vm3 = vcmp.eq.s32.totalorder %v23195_v49, %v22067_v15  ;;  %vm12798_vm6 = vcmp.eq.s32.totalorder %v23195_v49, %v22070_v16 }
0x10bf   : > { %v10710_v44 = vsel %vm10708_vm15, 1.0, %v23914_v19  ;;  %vm12663_vm15 = vcmp.eq.s32.totalorder %v23174_v13, %v22067_v15 }
0x10c0   : > { %9654 = vmatpush1.bf16.msra.mxu0 %v20206_v50  ;;  %v23197_v50 = vadd.s32 4294967295, %v10651_v47  ;;  %v20239_v47 = vld [vmem:[#allocation16 + $0x70] ss:$8 sps:$4 sm:$0xff]  }
0x10c2   : > { %vm10653_vm5 = vcmp.eq.s32.totalorder %v23197_v50, %v22042_v2  ;;  %vm10654_vm8 = vcmp.eq.s32.totalorder %v23197_v50, %v22046_v3 }
0x10c3   : > { %9656 = vmatmul.mubr.bf16.vlgmr.msra.gmra.mrb[72].mxu0 %v8718_v62 }
0x10c4   : > { %10638 = vmatprep.mubr.bf16.mxu0 %v23916_v1 }
0x10d3   : > { %v10444_v24 = vpop.f32.mrb[76].mxu1 }
0x10d4   : > { %v10446_v52 = vpop.f32.mrb[77].mxu1  ;;  %v10445_v31 = vadd.f32 %v10444_v24, %v9923_v58  ;;  %v10711_v58 = vsel %vm10709_vm0, 1.0, %v23914_v19  ;;  %vm12664_vm0 = vcmp.eq.s32.totalorder %v23174_v13, %v22070_v16 }
0x10d5   : > { %v10448_v11 = vpop.f32.mrb[78].mxu1  ;;  %v10447_v37 = vadd.f32 %v10446_v52, %v9927_v38  ;;  %v23202_v52 = vpack.c.bf16 %v10542_v34, %v10541_v61  ;;  %v10655_v38 = vsel %vm10653_vm5, 1.0, %v23914_v19  ;;  %v20250_v61 = vld [vmem:[#allocation22 + $0x44] ss:$8 sps:$4 sm:$0xff]   ;;  %vm12730_vm5 = vcmp.eq.s32.totalorder %v23197_v50, %v22067_v15 }
0x10d6   : > { %v10449_v43 = vpop.f32.mrb[79].mxu1  ;;  %v23204_v11 = vpack.c.bf16 %v10601_v39, %v10600_v14  ;;  %v20245_v14 = vld [vmem:[#allocation16 + $0x80] ss:$8 sps:$4 sm:$0xff]   ;;  %v20253_v39 = vld [vmem:[#allocation16 + $0x94] ss:$8 sps:$4 sm:$0xff]  }
0x10d7   : > { %v20211_v43 = vld [vmem:[#allocation16 + $0x4] ss:$8 sps:$4 sm:$0xff]   ;;  %v20251_v34 = vld [vmem:[#allocation16 + $0x90] ss:$8 sps:$4 sm:$0xff]  }
0x1113   : > { %v10485_v51 = vpop.f32.mrb[80].mxu1 }
0x1114   : > { %v10486_v46 = vadd.f32 %v10485_v51, %v10445_v31  ;;  %v10487_v40 = vpop.f32.mrb[81].mxu1  ;;  %v10656_v31 = vsel %vm10654_vm8, 1.0, %v23914_v19  ;;  %v23228_v51 = vpack.c.bf16 %v10711_v58, %v10710_v44  ;;  %v20257_v44 = vld [vmem:[#allocation16 + $0xa0] ss:$8 sps:$4 sm:$0xff]   ;;  %v20265_v58 = vld [vmem:[#allocation16 + $0xb4] ss:$8 sps:$4 sm:$0xff]   ;;  %vm12731_vm8 = vcmp.eq.s32.totalorder %v23197_v50, %v22070_v16 }
0x1115   : > { %v10488_v60 = vadd.f32 %v10487_v40, %v10447_v37  ;;  %v10489_v57 = vpop.f32.mrb[82].mxu1  ;;  %v17554_v37 = vadd.s32 4294967295, %v22046_v3  ;;  %v20209_v40 = vld [vmem:[#allocation16] ss:$8 sps:$4 sm:$0xff]  }
0x1116   : > { %v10490_v62 = vpop.f32.mrb[83].mxu1 }
0x1117   : > { %v20212_v62 = vld [vmem:[#allocation16 + $0x10] ss:$8 sps:$4 sm:$0xff]  }
0x1153   : > { %v10526_v54 = vpop.f32.mrb[84].mxu1 }
0x1154   : > { %v10527_v59 = vadd.f32 %v10526_v54, %v10486_v46  ;;  %v10528_v53 = vpop.f32.mrb[85].mxu1  ;;  %v23230_v46 = vpack.c.bf16 %v10656_v31, %v10655_v38  ;;  %v20217_v54 = vld [vmem:[#allocation16 + $0x24] ss:$8 sps:$4 sm:$0xff]   ;;  %v20254_v38 = vld [vmem:[#allocation22 + $0x50] ss:$8 sps:$4 sm:$0xff]  }
0x1155   : > { %v10529_v48 = vadd.f32 %v10528_v53, %v10488_v60  ;;  %v10530_v35 = vpop.f32.mrb[86].mxu1  ;;  %v20214_v60 = vld [vmem:[#allocation16 + $0x14] ss:$8 sps:$4 sm:$0xff]   ;;  %v11820_v53 = vadd.s32 2, %v22046_v3  ;;  %v20223_v3 = vld [vmem:[#allocation16 + $0x44] ss:$8 sps:$4 sm:$0xff]  }
0x1156   : > { %v10531_v56 = vpop.f32.mrb[87].mxu1  ;;  %v20220_v35 = vld [vmem:[#allocation16 + $0x34] ss:$8 sps:$4 sm:$0xff]   ;;  %v20262_v31 = vld [vmem:[#allocation22 + $0x64] ss:$8 sps:$4 sm:$0xff]  }
0x1157   : > { %v11770_v56 = vsel %vm11769_vm10, 1.0, %v23914_v19  ;;  %vm13934_vm10 = vcmp.eq.s32.totalorder %v22055_v8, %v22070_v16 }
0x1196   : > { %v9657_v23 = vpop.f32.mrb[72].mxu0 }
0x1197   : > { %v18376_v0 = vadd.f32 %v9657_v23, %v8853_v20  ;;  %v9659_v6 = vpop.f32.mrb[73].mxu0  ;;  %v23254_v20 = vpack.c.bf16 %v11770_v56, %v22971_v12  ;;  %v20226_v23 = vld [vmem:[#allocation22 + $0x4] ss:$8 sps:$4 sm:$0xff]  }
0x1198   : > { %v18377_v25 = vadd.f32 %v9659_v6, %v8857_v63  ;;  %v9661_v10 = vpop.f32.mrb[74].mxu0  ;;  %v20221_v63 = vld [vmem:[#allocation16 + $0x40] ss:$8 sps:$4 sm:$0xff]   ;;  %v20227_v12 = vld [vmem:[#allocation16 + $0x50] ss:$8 sps:$4 sm:$0xff]  }
0x1199   : > { %v9664_v36 = vmax.f32 %v18376_v0, 0.0  ;;  %v9662_v41 = vpop.f32.mrb[75].mxu0  ;;  %v20229_v0 = vld [vmem:[#allocation16 + $0x54] ss:$8 sps:$4 sm:$0xff]   ;;  %v20235_v6 = vld [vmem:[#allocation16 + $0x64] ss:$8 sps:$4 sm:$0xff]  }
0x119a   : > { %v9665_v42 = vmax.f32 %v18377_v25, 0.0  ;;  %v20224_v10 = vld [vmem:[#allocation22] ss:$8 sps:$4 sm:$0xff]  }
0x119b   : > { %v10533_v28 = vadd.f32 %v10527_v59, %v9664_v36  ;;  %v20232_v36 = vld [vmem:[#allocation22 + $0x14] ss:$8 sps:$4 sm:$0xff]   ;;  %v20283_v56 = vld [vmem:[#allocation16 + $0xe4] ss:$8 sps:$4 sm:$0xff]  }
0x119c   : > { %v10534_v21 = vadd.f32 %v10529_v48, %v9665_v42  ;;  %v20215_v48 = vld [vmem:[#allocation16 + $0x20] ss:$8 sps:$4 sm:$0xff]  }
0x119d   : > { %v10535_v22 = vpack.c.bf16 %v10533_v28, %v10533_v28  ;;  %v20233_v41 = vld [vmem:[#allocation16 + $0x60] ss:$8 sps:$4 sm:$0xff]   ;;  %v20247_v28 = vld [vmem:[#allocation16 + $0x84] ss:$8 sps:$4 sm:$0xff]  }
0x119e   : > { %v10536_v7 = vpack.c.bf16 %v10534_v21, %v10534_v21  ;;  %v20238_v42 = vld [vmem:[#allocation22 + $0x24] ss:$8 sps:$4 sm:$0xff]   ;;  %v20244_v21 = vld [vmem:[#allocation22 + $0x34] ss:$8 sps:$4 sm:$0xff]  }
0x119f   : > { %v10548_v24 = vsel %vm8617_vm12, %v10535_v22, 0  ;;  %v20242_v22 = vld [vmem:[#allocation22 + $0x30] ss:$8 sps:$4 sm:$0xff]  }
0x11a0   : > { %17416 = vmatprep.subr.msk.bf16.mxu1 %vm8617_vm12, %v10536_v7  ;;  %17418 = vmatprep.subr.msk.bf16.mxu0 %vm8617_vm12, %v10536_v7 }
0x11a1   : > { %10554 = vmatpush1.bf16.msra.mxu1 %v10548_v24  ;;  %10607 = vmatpush1.bf16.msra.mxu0 %v10548_v24 }
0x11a2   : > { %17421 = vmatprep.subr.msk.bf16.mxu1 %vm8617_vm12, %v10536_v7  ;;  %17424 = vmatprep.subr.msk.bf16.mxu0 %vm8617_vm12, %v10536_v7  ;;  %vm11718_vm12 = vcmp.eq.s32.totalorder %v22055_v8, %v17554_v37  ;;  %v20259_v7 = vld [vmem:[#allocation16 + $0xa4] ss:$8 sps:$4 sm:$0xff]   ;;  %v20263_v37 = vld [vmem:[#allocation16 + $0xb0] ss:$8 sps:$4 sm:$0xff]  }
0x11a3   : > { %v11719_v57 = vsel %vm11718_vm12, 1.0, %v23914_v19  ;;  %vm13933_vm12 = vcmp.eq.s32.totalorder %v22055_v8, %v22067_v15 }
0x11a4   : > { %17417 = vmatmul.mubr.msk.bf16.vlgmr.msra.gmra.mrb[88].mxu1 %vm9670_vm14, %v23202_v52  ;;  %17419 = vmatmul.mubr.msk.bf16.vlgmr.msra.gmra.mrb[76].mxu0 %vm9670_vm14, %v23204_v11  ;;  %v23242_v59 = vpack.c.bf16 %v11719_v57, %v22959_v32  ;;  %v17557_v32 = vadd.s32 4294967295, %v11820_v53  ;;  %v20268_v57 = vld [vmem:[#allocation22 + $0x74] ss:$8 sps:$4 sm:$0xff]   ;;  %v20266_v53 = vld [vmem:[#allocation22 + $0x70] ss:$8 sps:$4 sm:$0xff]  }
0x11a5   : > { %10662 = vmatpush1.bf16.msra.mxu1 %v10548_v24  ;;  %10717 = vmatpush1.bf16.msra.mxu0 %v10548_v24  ;;  %v20248_v24 = vld [vmem:[#allocation22 + $0x40] ss:$8 sps:$4 sm:$0xff]  }
0x11a6   : > { %11724 = vmatprep.subr.bf16.mxu0 %v22454_v27  ;;  %10748 = vmatprep.mubr.bf16.mxu0 %v23916_v1 }
0x11a7   : > { %10693 = vmatprep.mubr.bf16.mxu1 %v23916_v1  ;;  %11541 = vmatprep.subr.bf16.mxu1 %v20211_v43  ;;  %v20256_v43 = vld [vmem:[#allocation22 + $0x54] ss:$8 sps:$4 sm:$0xff]  }
0x11ac   : > { %17425 = vmatmul.mubr.msk.bf16.vlgmr.msra.gmra.mrb[80].mxu0 %vm9670_vm14, %v23228_v51  ;;  %17422 = vmatmul.mubr.msk.bf16.vlgmr.msra.gmra.mrb[92].mxu1 %vm9670_vm14, %v23230_v46  ;;  %vm11822_vm14 = vcmp.eq.s32.totalorder %v22055_v8, %v17557_v32  ;;  %v20272_v32 = vld [vmem:[#allocation22 + $0x80] ss:$8 sps:$4 sm:$0xff]  }
0x11ad   : > { %11725 = vmatpush1.bf16.msra.mxu0 %v22452_v26  ;;  %11756 = vmatprep.mubr.bf16.mxu0 %v23916_v1 }
0x11ae   : > { %11775 = vmatprep.subr.bf16.mxu0 %v22454_v27  ;;  %11542 = vmatpush1.bf16.msra.mxu1 %v20209_v40  ;;  %v20271_v40 = vld [vmem:[#allocation16 + $0xc4] ss:$8 sps:$4 sm:$0xff]  }
0x11af   : > { %11543 = vmatprep.subr.bf16.mxu1 %v20214_v60  ;;  %v20260_v60 = vld [vmem:[#allocation22 + $0x60] ss:$8 sps:$4 sm:$0xff]  }
0x11b2   : > { %11544 = vmatpush1.bf16.msra.mxu1 %v20212_v62  ;;  %v20269_v62 = vld [vmem:[#allocation16 + $0xc0] ss:$8 sps:$4 sm:$0xff]  }
0x11b3   : > { %11545 = vmatprep.subr.bf16.mxu1 %v20217_v54  ;;  %v20277_v54 = vld [vmem:[#allocation16 + $0xd4] ss:$8 sps:$4 sm:$0xff]  }
0x11b4   : > { %17555 = vmatmul.mubr.msk.bf16.vlgmr.msra.gmra.mrb[84].mxu0 %vm3610_vm2, %v23242_v59 }
0x11b5   : > { %11776 = vmatpush1.bf16.msra.mxu0 %v22452_v26  ;;  %11807 = vmatprep.mubr.bf16.mxu0 %v23916_v1 }
0x11b6   : > { %11828 = vmatprep.subr.bf16.mxu0 %v22454_v27  ;;  %11546 = vmatpush1.bf16.msra.mxu1 %v20215_v48  ;;  %v11823_v27 = vsel %vm11822_vm14, 1.0, %v23914_v19  ;;  %v20274_v48 = vld [vmem:[#allocation22 + $0x84] ss:$8 sps:$4 sm:$0xff]  }
0x11b7   : > { %11547 = vmatprep.subr.bf16.mxu1 %v20220_v35  ;;  %v23263_v25 = vpack.c.bf16 %v11823_v27, %v22981_v17  ;;  %v20236_v17 = vld [vmem:[#allocation22 + $0x20] ss:$8 sps:$4 sm:$0xff]   ;;  %v20275_v35 = vld [vmem:[#allocation16 + $0xd0] ss:$8 sps:$4 sm:$0xff]  }
0x11b8   : > { %v20287_v27 = vld [vmem:[#allocation16 + $0xf0] ss:$8 sps:$4 sm:$0xff]  }
0x11ba   : > { %11548 = vmatpush1.bf16.msra.mxu1 %v20218_v18  ;;  %v20280_v18 = vld [vmem:[#allocation22 + $0x94] ss:$8 sps:$4 sm:$0xff]  }
0x11bb   : > { %11549 = vmatprep.subr.bf16.mxu1 %v20223_v3  ;;  %v20281_v3 = vld [vmem:[#allocation16 + $0xe0] ss:$8 sps:$4 sm:$0xff]  }
0x11bc   : > { %17556 = vmatmul.mubr.msk.bf16.vlgmr.msra.gmra.mrb[88].mxu0 %vm3610_vm2, %v23254_v20 }
0x11bd   : > { %11829 = vmatpush1.bf16.msra.mxu0 %v22452_v26  ;;  %11860 = vmatprep.mubr.bf16.mxu0 %v23916_v1  ;;  %v20230_v26 = vld [vmem:[#allocation22 + $0x10] ss:$8 sps:$4 sm:$0xff]  }
0x11be   : > { %12461 = vmatprep.subr.bf16.mxu0 %v20226_v23  ;;  %11550 = vmatpush1.bf16.msra.mxu1 %v20221_v63  ;;  %v20278_v63 = vld [vmem:[#allocation22 + $0x90] ss:$8 sps:$4 sm:$0xff]   ;;  %v20286_v23 = vld [vmem:[#allocation22 + $0xa4] ss:$8 sps:$4 sm:$0xff]  }
0x11bf   : > { %11551 = vmatprep.subr.bf16.mxu1 %v20229_v0  ;;  %v20284_v0 = vld [vmem:[#allocation22 + $0xa0] ss:$8 sps:$4 sm:$0xff]  }
0x11c2   : > { %11552 = vmatpush1.bf16.msra.mxu1 %v20227_v12  ;;  %v20289_v12 = vld [vmem:[#allocation16 + $0xf4] ss:$8 sps:$4 sm:$0xff]  }
0x11c3   : > { %11553 = vmatprep.subr.bf16.mxu1 %v20235_v6  ;;  %v20290_v6 = vld [vmem:[#allocation22 + $0xb0] ss:$8 sps:$4 sm:$0xff]  }
0x11c4   : > { %17558 = vmatmul.mubr.msk.bf16.vlgmr.msra.gmra.mrb[92].mxu0 %vm3610_vm2, %v23263_v25 }
0x11c5   : > { %12462 = vmatpush1.bf16.msra.mxu0 %v20224_v10  ;;  %v20292_v10 = vld [vmem:[#allocation22 + $0xb4] ss:$8 sps:$4 sm:$0xff]  }
0x11c6   : > { %12463 = vmatprep.subr.bf16.mxu0 %v20232_v36  ;;  %11554 = vmatpush1.bf16.msra.mxu1 %v20233_v41  ;;  %v20295_v36 = vld [vmem:[#allocation16 + $0x104] ss:$8 sps:$4 sm:$0xff]  }
0x11c7   : > { %11555 = vmatprep.subr.bf16.mxu1 %v20241_v9  ;;  %v20296_v41 = vld [vmem:[#allocation22 + $0xc0] ss:$8 sps:$4 sm:$0xff]   ;;  %v20298_v9 = vld [vmem:[#allocation22 + $0xc4] ss:$8 sps:$4 sm:$0xff]  }
0x11c9   : > { %12464 = vmatpush1.bf16.msra.mxu0 %v20230_v26  ;;  %v20304_v26 = vld [vmem:[#allocation22 + $0xd4] ss:$8 sps:$4 sm:$0xff]  }
0x11ca   : > { %12465 = vmatprep.subr.bf16.mxu0 %v20238_v42  ;;  %11556 = vmatpush1.bf16.msra.mxu1 %v20239_v47  ;;  %v20302_v42 = vld [vmem:[#allocation22 + $0xd0] ss:$8 sps:$4 sm:$0xff]   ;;  %v20310_v47 = vld [vmem:[#allocation22 + $0xe4] ss:$8 sps:$4 sm:$0xff]  }
0x11cb   : > { %11557 = vmatprep.subr.bf16.mxu1 %v20247_v28  ;;  %v20308_v28 = vld [vmem:[#allocation22 + $0xe0] ss:$8 sps:$4 sm:$0xff]  }
0x11cd   : > { %12466 = vmatpush1.bf16.msra.mxu0 %v20236_v17  ;;  %v20314_v17 = vld [vmem:[#allocation22 + $0xf0] ss:$8 sps:$4 sm:$0xff]  }
0x11ce   : > { %12467 = vmatprep.subr.bf16.mxu0 %v20244_v21  ;;  %11558 = vmatpush1.bf16.msra.mxu1 %v20245_v14  ;;  %v20316_v21 = vld [vmem:[#allocation22 + $0xf4] ss:$8 sps:$4 sm:$0xff]   ;;  %v20322_v14 = vld [vmem:[#allocation22 + $0x104] ss:$8 sps:$4 sm:$0xff]  }
0x11cf   : > { %11559 = vmatprep.subr.bf16.mxu1 %v20253_v39 }
0x11d1   : > { %12468 = vmatpush1.bf16.msra.mxu0 %v20242_v22 }
0x11d2   : > { %12469 = vmatprep.subr.bf16.mxu0 %v20250_v61  ;;  %11560 = vmatpush1.bf16.msra.mxu1 %v20251_v34 }
0x11d3   : > { %11561 = vmatprep.subr.bf16.mxu1 %v20259_v7 }
0x11d5   : > { %12470 = vmatpush1.bf16.msra.mxu0 %v20248_v24 }
0x11d6   : > { %12471 = vmatprep.subr.bf16.mxu0 %v20256_v43  ;;  %11562 = vmatpush1.bf16.msra.mxu1 %v20257_v44 }
0x11d7   : > { %11563 = vmatprep.subr.bf16.mxu1 %v20265_v58 }
0x11d9   : > { %12472 = vmatpush1.bf16.msra.mxu0 %v20254_v38 }
0x11da   : > { %12473 = vmatprep.subr.bf16.mxu0 %v20262_v31  ;;  %11564 = vmatpush1.bf16.msra.mxu1 %v20263_v37  ;;  %v20293_v37 = vld [vmem:[#allocation16 + $0x100] ss:$8 sps:$4 sm:$0xff]  }
0x11db   : > { %11565 = vmatprep.subr.bf16.mxu1 %v20271_v40 }
0x11dd   : > { %12474 = vmatpush1.bf16.msra.mxu0 %v20260_v60  ;;  %v20301_v60 = vld [vmem:[#allocation16 + $0x114] ss:$8 sps:$4 sm:$0xff]  }
0x11de   : > { %12475 = vmatprep.subr.bf16.mxu0 %v20268_v57  ;;  %11566 = vmatpush1.bf16.msra.mxu1 %v20269_v62  ;;  %v20299_v57 = vld [vmem:[#allocation16 + $0x110] ss:$8 sps:$4 sm:$0xff]  }
0x11df   : > { %11567 = vmatprep.subr.bf16.mxu1 %v20277_v54 }
0x11e1   : > { %12476 = vmatpush1.bf16.msra.mxu0 %v20266_v53 }
0x11e2   : > { %12477 = vmatprep.subr.bf16.mxu0 %v20274_v48  ;;  %11568 = vmatpush1.bf16.msra.mxu1 %v20275_v35  ;;  %v20307_v48 = vld [vmem:[#allocation16 + $0x124] ss:$8 sps:$4 sm:$0xff]  }
0x11e3   : > { %11569 = vmatprep.subr.bf16.mxu1 %v20283_v56 }
0x11e5   : > { %12478 = vmatpush1.bf16.msra.mxu0 %v20272_v32 }
0x11e6   : > { %12479 = vmatprep.subr.bf16.mxu0 %v20280_v18  ;;  %11570 = vmatpush1.bf16.msra.mxu1 %v20281_v3 }
0x11e7   : > { %11571 = vmatprep.subr.bf16.mxu1 %v20289_v12 }
0x11e9   : > { %12480 = vmatpush1.bf16.msra.mxu0 %v20278_v63 }
0x11ea   : > { %12481 = vmatprep.subr.bf16.mxu0 %v20286_v23  ;;  %11572 = vmatpush1.bf16.msra.mxu1 %v20287_v27 }
0x11eb   : > { %11584 = vmatprep.subr.bf16.mxu1 %v20295_v36  ;;  %v20311_v36 = vld [vmem:[#allocation16 + $0x130] ss:$8 sps:$4 sm:$0xff]  }
0x11ed   : > { %12482 = vmatpush1.bf16.msra.mxu0 %v20284_v0  ;;  %v20305_v0 = vld [vmem:[#allocation16 + $0x120] ss:$8 sps:$4 sm:$0xff]  }
0x11ee   : > { %12483 = vmatprep.subr.bf16.mxu0 %v20292_v10 }
0x11f1   : > { %12484 = vmatpush1.bf16.msra.mxu0 %v20290_v6  ;;  %v20313_v6 = vld [vmem:[#allocation16 + $0x134] ss:$8 sps:$4 sm:$0xff]  }
0x11f2   : > { %12485 = vmatprep.subr.bf16.mxu0 %v20298_v9  ;;  %v20319_v9 = vld [vmem:[#allocation16 + $0x144] ss:$8 sps:$4 sm:$0xff]  }
0x11f5   : > { %12486 = vmatpush1.bf16.msra.mxu0 %v20296_v41 }
0x11f6   : > { %12487 = vmatprep.subr.bf16.mxu0 %v20304_v26 }
0x11f9   : > { %12488 = vmatpush1.bf16.msra.mxu0 %v20302_v42 }
0x11fa   : > { %12489 = vmatprep.subr.bf16.mxu0 %v20310_v47 }
0x11fd   : > { %12490 = vmatpush1.bf16.msra.mxu0 %v20308_v28 }
0x11fe   : > { %12491 = vmatprep.subr.bf16.mxu0 %v20316_v21  ;;  %v20320_v21 = vld [vmem:[#allocation22 + $0x100] ss:$8 sps:$4 sm:$0xff]  }
0x1201   : > { %12492 = vmatpush1.bf16.msra.mxu0 %v20314_v17  ;;  %v20317_v17 = vld [vmem:[#allocation16 + $0x140] ss:$8 sps:$4 sm:$0xff]  }
0x1202   : > { %12504 = vmatprep.subr.bf16.mxu0 %v20322_v14  ;;  %v20325_v14 = vld [vmem:[#allocation16 + $0x154] ss:$8 sps:$4 sm:$0xff]  }
0x1277   : > { %v10587_v39 = vpop.f32.mrb[88].mxu1  ;;  %v23267_v22 = vpop.f32.mrb[76].mxu0 }
0x1278   : > { %v10589_v61 = vpop.f32.mrb[89].mxu1  ;;  %v10642_v34 = vpop.f32.mrb[77].mxu0 }
0x1279   : > { %v10591_v7 = vpop.f32.mrb[90].mxu1  ;;  %v23269_v24 = vpop.f32.mrb[78].mxu0 }
0x127a   : > { %v10596_v43 = vpack.c.bf16 %v10591_v7, %v10587_v39  ;;  %v10593_v44 = vpop.f32.mrb[91].mxu1  ;;  %v10649_v58 = vpack.c.bf16 %v23269_v24, %v23267_v22  ;;  %v10646_v38 = vpop.f32.mrb[79].mxu0  ;;  %v20328_v39 = vld [vmem:[#allocation22 + $0x114] ss:$8 sps:$4 sm:$0xff]  }
0x127b   : > { %v10597_v31 = vpack.c.bf16 %v10593_v44, %v10589_v61  ;;  %v10650_v40 = vpack.c.bf16 %v10646_v38, %v10642_v34  ;;  %v20323_v61 = vld [vmem:[#allocation16 + $0x150] ss:$8 sps:$4 sm:$0xff]   ;;  %v20409_v22 = vld [vmem:[#allocation16 + $0x234] ss:$8 sps:$4 sm:$0xff]  }
0x127c   : > { %v20326_v34 = vld [vmem:[#allocation22 + $0x110] ss:$8 sps:$4 sm:$0xff]   ;;  %v20334_v44 = vld [vmem:[#allocation22 + $0x124] ss:$8 sps:$4 sm:$0xff]   ;;  %v20412_v24 = vld [vmem:[#allocation22 + $0x1f4] ss:$8 sps:$4 sm:$0xff]  }
0x127d   : > { %11573 = vmatprep.mubr.bf16.mxu1 %v10597_v31 }
0x127e   : > { %11574 = vmatmul.mubr.bf16.vlgmr.msra.gmra.mrb[96].mxu1 %v10596_v43  ;;  %v20331_v43 = vld [vmem:[#allocation16 + $0x164] ss:$8 sps:$4 sm:$0xff]  }
0x127f   : > { %11585 = vmatpush1.bf16.msra.mxu1 %v20293_v37  ;;  %v23273_v62 = vpop.f32.mrb[80].mxu0  ;;  %11616 = vmatprep.mubr.bf16.mxu1 %v10650_v40  ;;  %v23275_v54 = vpop.f32.mrb[92].mxu1 }
0x1280   : > { %11586 = vmatprep.subr.bf16.mxu1 %v20301_v60  ;;  %v23277_v53 = vpop.f32.mrb[81].mxu0  ;;  %v23279_v35 = vpop.f32.mrb[93].mxu1  ;;  %v20329_v60 = vld [vmem:[#allocation16 + $0x160] ss:$8 sps:$4 sm:$0xff]  }
0x1281   : > { %v23281_v56 = vpop.f32.mrb[82].mxu0  ;;  %v23283_v32 = vpop.f32.mrb[94].mxu1 }
0x1282   : > { %v10759_v18 = vpack.c.bf16 %v23281_v56, %v23273_v62  ;;  %v23287_v3 = vpop.f32.mrb[83].mxu0  ;;  %v10704_v63 = vpack.c.bf16 %v23283_v32, %v23275_v54  ;;  %v23291_v23 = vpop.f32.mrb[95].mxu1  ;;  %v20508_v54 = vld [vmem:[#allocation22 + $0x2f4] ss:$8 sps:$4 sm:$0xff]  }
0x1283   : > { %11587 = vmatpush1.bf16.msra.mxu1 %v20299_v57  ;;  %v10760_v27 = vpack.c.bf16 %v23287_v3, %v23277_v53  ;;  %v10705_v12 = vpack.c.bf16 %v23291_v23, %v23279_v35  ;;  %v20332_v57 = vld [vmem:[#allocation22 + $0x120] ss:$8 sps:$4 sm:$0xff]   ;;  %v20503_v32 = vld [vmem:[#allocation16 + $0x330] ss:$8 sps:$4 sm:$0xff]  }
0x1284   : > { %11588 = vmatprep.subr.bf16.mxu1 %v20307_v48  ;;  %v20413_v35 = vld [vmem:[#allocation16 + $0x240] ss:$8 sps:$4 sm:$0xff]   ;;  %v20506_v53 = vld [vmem:[#allocation22 + $0x2f0] ss:$8 sps:$4 sm:$0xff]   ;;  %v20511_v3 = vld [vmem:[#allocation16 + $0x344] ss:$8 sps:$4 sm:$0xff]  }
0x1285   : > { %v20416_v23 = vld [vmem:[#allocation22 + $0x200] ss:$8 sps:$4 sm:$0xff]  }
0x1287   : > { %11589 = vmatpush1.bf16.msra.mxu1 %v20305_v0  ;;  %v11758_v10 = vpop.f32.mrb[84].mxu0  ;;  %v20337_v0 = vld [vmem:[#allocation16 + $0x174] ss:$8 sps:$4 sm:$0xff]  }
0x1288   : > { %v11760_v41 = vpop.f32.mrb[85].mxu0  ;;  %11590 = vmatprep.subr.bf16.mxu1 %v20313_v6  ;;  %v20340_v6 = vld [vmem:[#allocation22 + $0x134] ss:$8 sps:$4 sm:$0xff]  }
0x1289   : > { %v11762_v26 = vpop.f32.mrb[86].mxu0 }
0x128a   : > { %v11767_v42 = vpack.c.bf16 %v11762_v26, %v11758_v10  ;;  %v11764_v47 = vpop.f32.mrb[87].mxu0  ;;  %v20335_v10 = vld [vmem:[#allocation16 + $0x170] ss:$8 sps:$4 sm:$0xff]  }
0x128b   : > { %11591 = vmatpush1.bf16.msra.mxu1 %v20311_v36  ;;  %v11768_v28 = vpack.c.bf16 %v11764_v47, %v11760_v41  ;;  %v20338_v36 = vld [vmem:[#allocation22 + $0x130] ss:$8 sps:$4 sm:$0xff]   ;;  %v20346_v26 = vld [vmem:[#allocation22 + $0x144] ss:$8 sps:$4 sm:$0xff]  }
0x128c   : > { %11592 = vmatprep.subr.bf16.mxu1 %v20319_v9  ;;  %v20343_v9 = vld [vmem:[#allocation16 + $0x184] ss:$8 sps:$4 sm:$0xff]  }
0x128d   : > { %12493 = vmatprep.mubr.bf16.mxu0 %v11768_v28 }
0x128e   : > { %12494 = vmatmul.mubr.bf16.vlgmr.msra.gmra.mrb[96].mxu0 %v11767_v42 }
0x128f   : > { %11593 = vmatpush1.bf16.msra.mxu1 %v20317_v17  ;;  %12505 = vmatpush1.bf16.msra.mxu0 %v20320_v21  ;;  %v23297_v7 = vpop.f32.mrb[88].mxu0  ;;  %v20341_v21 = vld [vmem:[#allocation16 + $0x180] ss:$8 sps:$4 sm:$0xff]  }
0x1290   : > { %11594 = vmatprep.subr.bf16.mxu1 %v20325_v14  ;;  %12506 = vmatprep.subr.bf16.mxu0 %v20328_v39  ;;  %v11811_v38 = vpop.f32.mrb[89].mxu0  ;;  %v20344_v14 = vld [vmem:[#allocation22 + $0x140] ss:$8 sps:$4 sm:$0xff]  }
0x1291   : > { %v23299_v31 = vpop.f32.mrb[90].mxu0 }
0x1292   : > { %v11818_v37 = vpack.c.bf16 %v23299_v31, %v23297_v7  ;;  %v11815_v40 = vpop.f32.mrb[91].mxu0  ;;  %v20433_v7 = vld [vmem:[#allocation16 + $0x274] ss:$8 sps:$4 sm:$0xff]  }
0x1293   : > { %11595 = vmatpush1.bf16.msra.mxu1 %v20323_v61  ;;  %12507 = vmatpush1.bf16.msra.mxu0 %v20326_v34  ;;  %v11819_v48 = vpack.c.bf16 %v11815_v40, %v11811_v38  ;;  %v20349_v61 = vld [vmem:[#allocation16 + $0x194] ss:$8 sps:$4 sm:$0xff]   ;;  %v20355_v38 = vld [vmem:[#allocation16 + $0x1a4] ss:$8 sps:$4 sm:$0xff]  }
0x1294   : > { %11596 = vmatprep.subr.bf16.mxu1 %v20331_v43  ;;  %12508 = vmatprep.subr.bf16.mxu0 %v20334_v44  ;;  %v20352_v34 = vld [vmem:[#allocation22 + $0x154] ss:$8 sps:$4 sm:$0xff]   ;;  %v20350_v44 = vld [vmem:[#allocation22 + $0x150] ss:$8 sps:$4 sm:$0xff]   ;;  %v20358_v40 = vld [vmem:[#allocation22 + $0x164] ss:$8 sps:$4 sm:$0xff]  }
0x1295   : > { %12536 = vmatprep.mubr.bf16.mxu0 %v11819_v48  ;;  %v20347_v43 = vld [vmem:[#allocation16 + $0x190] ss:$8 sps:$4 sm:$0xff]   ;;  %v20361_v48 = vld [vmem:[#allocation16 + $0x1b4] ss:$8 sps:$4 sm:$0xff]  }
0x1296   : > { %v20436_v31 = vld [vmem:[#allocation22 + $0x234] ss:$8 sps:$4 sm:$0xff]  }
0x1297   : > { %11597 = vmatpush1.bf16.msra.mxu1 %v20329_v60  ;;  %12509 = vmatpush1.bf16.msra.mxu0 %v20332_v57  ;;  %v23303_v41 = vpop.f32.mrb[92].mxu0  ;;  %v20353_v60 = vld [vmem:[#allocation16 + $0x1a0] ss:$8 sps:$4 sm:$0xff]  }
0x1298   : > { %11598 = vmatprep.subr.bf16.mxu1 %v20337_v0  ;;  %12510 = vmatprep.subr.bf16.mxu0 %v20340_v6  ;;  %v23305_v42 = vpop.f32.mrb[93].mxu0  ;;  %v20356_v57 = vld [vmem:[#allocation22 + $0x160] ss:$8 sps:$4 sm:$0xff]   ;;  %v20364_v0 = vld [vmem:[#allocation22 + $0x174] ss:$8 sps:$4 sm:$0xff]  }
0x1299   : > { %v23307_v47 = vpop.f32.mrb[94].mxu0  ;;  %v20359_v6 = vld [vmem:[#allocation16 + $0x1b0] ss:$8 sps:$4 sm:$0xff]  }
0x129a   : > { %v11871_v28 = vpack.c.bf16 %v23307_v47, %v23303_v41  ;;  %v23311_v17 = vpop.f32.mrb[95].mxu0  ;;  %v20524_v41 = vld [vmem:[#allocation16 + $0x390] ss:$8 sps:$4 sm:$0xff]   ;;  %v20529_v47 = vld [vmem:[#allocation16 + $0x3a4] ss:$8 sps:$4 sm:$0xff]  }
0x129b   : > { %11599 = vmatpush1.bf16.msra.mxu1 %v20335_v10  ;;  %12511 = vmatpush1.bf16.msra.mxu0 %v20338_v36  ;;  %v11872_v39 = vpack.c.bf16 %v23311_v17, %v23305_v42  ;;  %v20362_v10 = vld [vmem:[#allocation22 + $0x170] ss:$8 sps:$4 sm:$0xff]   ;;  %v20367_v36 = vld [vmem:[#allocation16 + $0x1c4] ss:$8 sps:$4 sm:$0xff]   ;;  %v20437_v42 = vld [vmem:[#allocation16 + $0x280] ss:$8 sps:$4 sm:$0xff]  }
0x129c   : > { %11600 = vmatprep.subr.bf16.mxu1 %v20343_v9  ;;  %12512 = vmatprep.subr.bf16.mxu0 %v20346_v26  ;;  %v20370_v9 = vld [vmem:[#allocation22 + $0x184] ss:$8 sps:$4 sm:$0xff]   ;;  %v20440_v17 = vld [vmem:[#allocation22 + $0x240] ss:$8 sps:$4 sm:$0xff]  }
0x129d   : > { %v20365_v26 = vld [vmem:[#allocation16 + $0x1c0] ss:$8 sps:$4 sm:$0xff]  }
0x129f   : > { %11601 = vmatpush1.bf16.msra.mxu1 %v20341_v21  ;;  %12513 = vmatpush1.bf16.msra.mxu0 %v20344_v14  ;;  %v20368_v21 = vld [vmem:[#allocation22 + $0x180] ss:$8 sps:$4 sm:$0xff]   ;;  %v20373_v14 = vld [vmem:[#allocation16 + $0x1d4] ss:$8 sps:$4 sm:$0xff]  }
0x12a0   : > { %11602 = vmatprep.subr.bf16.mxu1 %v20349_v61  ;;  %12514 = vmatprep.subr.bf16.mxu0 %v20352_v34  ;;  %v20376_v61 = vld [vmem:[#allocation22 + $0x194] ss:$8 sps:$4 sm:$0xff]  }
0x12a1   : > { %v20371_v34 = vld [vmem:[#allocation16 + $0x1d0] ss:$8 sps:$4 sm:$0xff]  }
0x12a3   : > { %11603 = vmatpush1.bf16.msra.mxu1 %v20347_v43  ;;  %12515 = vmatpush1.bf16.msra.mxu0 %v20350_v44  ;;  %v20374_v43 = vld [vmem:[#allocation22 + $0x190] ss:$8 sps:$4 sm:$0xff]   ;;  %v20379_v44 = vld [vmem:[#allocation16 + $0x1e4] ss:$8 sps:$4 sm:$0xff]  }
0x12a4   : > { %11604 = vmatprep.subr.bf16.mxu1 %v20355_v38  ;;  %12516 = vmatprep.subr.bf16.mxu0 %v20358_v40  ;;  %v20382_v38 = vld [vmem:[#allocation22 + $0x1a4] ss:$8 sps:$4 sm:$0xff]  }
0x12a5   : > { %v20377_v40 = vld [vmem:[#allocation16 + $0x1e0] ss:$8 sps:$4 sm:$0xff]  }
0x12a7   : > { %11605 = vmatpush1.bf16.msra.mxu1 %v20353_v60  ;;  %12517 = vmatpush1.bf16.msra.mxu0 %v20356_v57  ;;  %v20380_v60 = vld [vmem:[#allocation22 + $0x1a0] ss:$8 sps:$4 sm:$0xff]   ;;  %v20385_v57 = vld [vmem:[#allocation16 + $0x1f4] ss:$8 sps:$4 sm:$0xff]  }
0x12a8   : > { %11606 = vmatprep.subr.bf16.mxu1 %v20361_v48  ;;  %12518 = vmatprep.subr.bf16.mxu0 %v20364_v0  ;;  %v20388_v48 = vld [vmem:[#allocation22 + $0x1b4] ss:$8 sps:$4 sm:$0xff]  }
0x12a9   : > { %v20383_v0 = vld [vmem:[#allocation16 + $0x1f0] ss:$8 sps:$4 sm:$0xff]  }
0x12ab   : > { %11607 = vmatpush1.bf16.msra.mxu1 %v20359_v6  ;;  %12519 = vmatpush1.bf16.msra.mxu0 %v20362_v10  ;;  %v20386_v6 = vld [vmem:[#allocation22 + $0x1b0] ss:$8 sps:$4 sm:$0xff]   ;;  %v20391_v10 = vld [vmem:[#allocation16 + $0x204] ss:$8 sps:$4 sm:$0xff]  }
0x12ac   : > { %11608 = vmatprep.subr.bf16.mxu1 %v20367_v36  ;;  %12520 = vmatprep.subr.bf16.mxu0 %v20370_v9  ;;  %v20394_v36 = vld [vmem:[#allocation22 + $0x1c4] ss:$8 sps:$4 sm:$0xff]  }
0x12ad   : > { %v20389_v9 = vld [vmem:[#allocation16 + $0x200] ss:$8 sps:$4 sm:$0xff]  }
0x12af   : > { %11609 = vmatpush1.bf16.msra.mxu1 %v20365_v26  ;;  %12521 = vmatpush1.bf16.msra.mxu0 %v20368_v21  ;;  %v20392_v26 = vld [vmem:[#allocation22 + $0x1c0] ss:$8 sps:$4 sm:$0xff]   ;;  %v20397_v21 = vld [vmem:[#allocation16 + $0x214] ss:$8 sps:$4 sm:$0xff]  }
0x12b0   : > { %11610 = vmatprep.subr.bf16.mxu1 %v20373_v14  ;;  %12522 = vmatprep.subr.bf16.mxu0 %v20376_v61  ;;  %v20400_v14 = vld [vmem:[#allocation22 + $0x1d4] ss:$8 sps:$4 sm:$0xff]  }
0x12b1   : > { %v20395_v61 = vld [vmem:[#allocation16 + $0x210] ss:$8 sps:$4 sm:$0xff]  }
0x12b3   : > { %11611 = vmatpush1.bf16.msra.mxu1 %v20371_v34  ;;  %12523 = vmatpush1.bf16.msra.mxu0 %v20374_v43  ;;  %v20398_v34 = vld [vmem:[#allocation22 + $0x1d0] ss:$8 sps:$4 sm:$0xff]   ;;  %v20403_v43 = vld [vmem:[#allocation16 + $0x224] ss:$8 sps:$4 sm:$0xff]  }
0x12b4   : > { %11612 = vmatprep.subr.bf16.mxu1 %v20379_v44  ;;  %12524 = vmatprep.subr.bf16.mxu0 %v20382_v38  ;;  %v20406_v44 = vld [vmem:[#allocation22 + $0x1e4] ss:$8 sps:$4 sm:$0xff]  }
0x12b5   : > { %v20401_v38 = vld [vmem:[#allocation16 + $0x220] ss:$8 sps:$4 sm:$0xff]  }
0x12b7   : > { %11613 = vmatpush1.bf16.msra.mxu1 %v20377_v40  ;;  %12525 = vmatpush1.bf16.msra.mxu0 %v20380_v60  ;;  %v20404_v40 = vld [vmem:[#allocation22 + $0x1e0] ss:$8 sps:$4 sm:$0xff]   ;;  %v20410_v60 = vld [vmem:[#allocation22 + $0x1f0] ss:$8 sps:$4 sm:$0xff]  }
0x12b8   : > { %11614 = vmatprep.subr.bf16.mxu1 %v20385_v57  ;;  %12526 = vmatprep.subr.bf16.mxu0 %v20388_v48  ;;  %v20415_v57 = vld [vmem:[#allocation16 + $0x244] ss:$8 sps:$4 sm:$0xff]  }
0x12b9   : > { %v20418_v48 = vld [vmem:[#allocation22 + $0x204] ss:$8 sps:$4 sm:$0xff]  }
0x12bb   : > { %11615 = vmatpush1.bf16.msra.mxu1 %v20383_v0  ;;  %12527 = vmatpush1.bf16.msra.mxu0 %v20386_v6  ;;  %v20424_v0 = vld [vmem:[#allocation22 + $0x214] ss:$8 sps:$4 sm:$0xff]  }
0x12bc   : > { %11627 = vmatprep.subr.bf16.mxu1 %v20391_v10  ;;  %12528 = vmatprep.subr.bf16.mxu0 %v20394_v36  ;;  %v20419_v6 = vld [vmem:[#allocation16 + $0x250] ss:$8 sps:$4 sm:$0xff]   ;;  %v20427_v36 = vld [vmem:[#allocation16 + $0x264] ss:$8 sps:$4 sm:$0xff]  }
0x12bd   : > { %v20422_v10 = vld [vmem:[#allocation22 + $0x210] ss:$8 sps:$4 sm:$0xff]  }
0x12be   : > { %11617 = vmatmul.mubr.bf16.vlgmr.msra.gmra.mrb[96].mxu1 %v10649_v58  ;;  %v20407_v58 = vld [vmem:[#allocation16 + $0x230] ss:$8 sps:$4 sm:$0xff]  }
0x12bf   : > { %11628 = vmatpush1.bf16.msra.mxu1 %v20389_v9  ;;  %12529 = vmatpush1.bf16.msra.mxu0 %v20392_v26  ;;  %v20430_v9 = vld [vmem:[#allocation22 + $0x224] ss:$8 sps:$4 sm:$0xff]  }
0x12c0   : > { %11629 = vmatprep.subr.bf16.mxu1 %v20397_v21  ;;  %12530 = vmatprep.subr.bf16.mxu0 %v20400_v14  ;;  %v20425_v26 = vld [vmem:[#allocation16 + $0x260] ss:$8 sps:$4 sm:$0xff]   ;;  %v20434_v14 = vld [vmem:[#allocation22 + $0x230] ss:$8 sps:$4 sm:$0xff]  }
0x12c1   : > { %11659 = vmatprep.mubr.bf16.mxu1 %v10705_v12  ;;  %v20421_v12 = vld [vmem:[#allocation16 + $0x254] ss:$8 sps:$4 sm:$0xff]   ;;  %v20428_v21 = vld [vmem:[#allocation22 + $0x220] ss:$8 sps:$4 sm:$0xff]  }
0x12c3   : > { %11630 = vmatpush1.bf16.msra.mxu1 %v20395_v61  ;;  %12531 = vmatpush1.bf16.msra.mxu0 %v20398_v34  ;;  %v20439_v61 = vld [vmem:[#allocation16 + $0x284] ss:$8 sps:$4 sm:$0xff]  }
0x12c4   : > { %11631 = vmatprep.subr.bf16.mxu1 %v20403_v43  ;;  %12532 = vmatprep.subr.bf16.mxu0 %v20406_v44  ;;  %v20442_v34 = vld [vmem:[#allocation22 + $0x244] ss:$8 sps:$4 sm:$0xff]   ;;  %v20448_v43 = vld [vmem:[#allocation22 + $0x254] ss:$8 sps:$4 sm:$0xff]  }
0x12c5   : > { %v20443_v44 = vld [vmem:[#allocation16 + $0x290] ss:$8 sps:$4 sm:$0xff]  }
0x12c7   : > { %11632 = vmatpush1.bf16.msra.mxu1 %v20401_v38  ;;  %12533 = vmatpush1.bf16.msra.mxu0 %v20404_v40  ;;  %v20446_v38 = vld [vmem:[#allocation22 + $0x250] ss:$8 sps:$4 sm:$0xff]   ;;  %v20451_v40 = vld [vmem:[#allocation16 + $0x2a4] ss:$8 sps:$4 sm:$0xff]  }
0x12c8   : > { %11633 = vmatprep.subr.bf16.mxu1 %v20409_v22  ;;  %12534 = vmatprep.subr.bf16.mxu0 %v20412_v24  ;;  %v20454_v22 = vld [vmem:[#allocation22 + $0x264] ss:$8 sps:$4 sm:$0xff]  }
0x12c9   : > { %v20449_v24 = vld [vmem:[#allocation16 + $0x2a0] ss:$8 sps:$4 sm:$0xff]  }
0x12cb   : > { %11634 = vmatpush1.bf16.msra.mxu1 %v20407_v58  ;;  %12535 = vmatpush1.bf16.msra.mxu0 %v20410_v60  ;;  %v20452_v58 = vld [vmem:[#allocation22 + $0x260] ss:$8 sps:$4 sm:$0xff]   ;;  %v20457_v60 = vld [vmem:[#allocation16 + $0x2b4] ss:$8 sps:$4 sm:$0xff]  }
0x12cc   : > { %11635 = vmatprep.subr.bf16.mxu1 %v20415_v57  ;;  %12547 = vmatprep.subr.bf16.mxu0 %v20418_v48  ;;  %v20460_v57 = vld [vmem:[#allocation22 + $0x274] ss:$8 sps:$4 sm:$0xff]  }
0x12cd   : > { %v20455_v48 = vld [vmem:[#allocation16 + $0x2b0] ss:$8 sps:$4 sm:$0xff]  }
0x12ce   : > { %12537 = vmatmul.mubr.bf16.vlgmr.msra.gmra.mrb[96].mxu0 %v11818_v37  ;;  %v20431_v37 = vld [vmem:[#allocation16 + $0x270] ss:$8 sps:$4 sm:$0xff]  }
0x12cf   : > { %11636 = vmatpush1.bf16.msra.mxu1 %v20413_v35  ;;  %12548 = vmatpush1.bf16.msra.mxu0 %v20416_v23  ;;  %v20458_v35 = vld [vmem:[#allocation22 + $0x270] ss:$8 sps:$4 sm:$0xff]   ;;  %v20463_v23 = vld [vmem:[#allocation16 + $0x2c4] ss:$8 sps:$4 sm:$0xff]  }
0x12d0   : > { %11637 = vmatprep.subr.bf16.mxu1 %v20421_v12  ;;  %12549 = vmatprep.subr.bf16.mxu0 %v20424_v0  ;;  %v20466_v12 = vld [vmem:[#allocation22 + $0x284] ss:$8 sps:$4 sm:$0xff]  }
0x12d1   : > { %12579 = vmatprep.mubr.bf16.mxu0 %v11872_v39  ;;  %v20445_v39 = vld [vmem:[#allocation16 + $0x294] ss:$8 sps:$4 sm:$0xff]   ;;  %v20461_v0 = vld [vmem:[#allocation16 + $0x2c0] ss:$8 sps:$4 sm:$0xff]  }
0x12d3   : > { %11638 = vmatpush1.bf16.msra.mxu1 %v20419_v6  ;;  %12550 = vmatpush1.bf16.msra.mxu0 %v20422_v10  ;;  %v20464_v6 = vld [vmem:[#allocation22 + $0x280] ss:$8 sps:$4 sm:$0xff]   ;;  %v20469_v10 = vld [vmem:[#allocation16 + $0x2d4] ss:$8 sps:$4 sm:$0xff]  }
0x12d4   : > { %11639 = vmatprep.subr.bf16.mxu1 %v20427_v36  ;;  %12551 = vmatprep.subr.bf16.mxu0 %v20430_v9  ;;  %v20472_v36 = vld [vmem:[#allocation22 + $0x294] ss:$8 sps:$4 sm:$0xff]  }
0x12d5   : > { %v20467_v9 = vld [vmem:[#allocation16 + $0x2d0] ss:$8 sps:$4 sm:$0xff]  }
0x12d7   : > { %11640 = vmatpush1.bf16.msra.mxu1 %v20425_v26  ;;  %12552 = vmatpush1.bf16.msra.mxu0 %v20428_v21  ;;  %v20470_v26 = vld [vmem:[#allocation22 + $0x290] ss:$8 sps:$4 sm:$0xff]   ;;  %v20475_v21 = vld [vmem:[#allocation16 + $0x2e4] ss:$8 sps:$4 sm:$0xff]  }
0x12d8   : > { %11641 = vmatprep.subr.bf16.mxu1 %v20433_v7  ;;  %12553 = vmatprep.subr.bf16.mxu0 %v20436_v31  ;;  %v20478_v7 = vld [vmem:[#allocation22 + $0x2a4] ss:$8 sps:$4 sm:$0xff]  }
0x12d9   : > { %v20473_v31 = vld [vmem:[#allocation16 + $0x2e0] ss:$8 sps:$4 sm:$0xff]  }
0x12db   : > { %11642 = vmatpush1.bf16.msra.mxu1 %v20431_v37  ;;  %12554 = vmatpush1.bf16.msra.mxu0 %v20434_v14  ;;  %v20476_v37 = vld [vmem:[#allocation22 + $0x2a0] ss:$8 sps:$4 sm:$0xff]   ;;  %v20481_v14 = vld [vmem:[#allocation16 + $0x2f4] ss:$8 sps:$4 sm:$0xff]  }
0x12dc   : > { %11643 = vmatprep.subr.bf16.mxu1 %v20439_v61  ;;  %12555 = vmatprep.subr.bf16.mxu0 %v20442_v34  ;;  %v20484_v61 = vld [vmem:[#allocation22 + $0x2b4] ss:$8 sps:$4 sm:$0xff]  }
0x12dd   : > { %v20479_v34 = vld [vmem:[#allocation16 + $0x2f0] ss:$8 sps:$4 sm:$0xff]  }
0x12df   : > { %11644 = vmatpush1.bf16.msra.mxu1 %v20437_v42  ;;  %12556 = vmatpush1.bf16.msra.mxu0 %v20440_v17  ;;  %v20482_v42 = vld [vmem:[#allocation22 + $0x2b0] ss:$8 sps:$4 sm:$0xff]   ;;  %v20487_v17 = vld [vmem:[#allocation16 + $0x304] ss:$8 sps:$4 sm:$0xff]  }
0x12e0   : > { %11645 = vmatprep.subr.bf16.mxu1 %v20445_v39  ;;  %12557 = vmatprep.subr.bf16.mxu0 %v20448_v43  ;;  %v20490_v39 = vld [vmem:[#allocation22 + $0x2c4] ss:$8 sps:$4 sm:$0xff]  }
0x12e1   : > { %v20485_v43 = vld [vmem:[#allocation16 + $0x300] ss:$8 sps:$4 sm:$0xff]  }
0x12e3   : > { %11646 = vmatpush1.bf16.msra.mxu1 %v20443_v44  ;;  %12558 = vmatpush1.bf16.msra.mxu0 %v20446_v38  ;;  %v20488_v44 = vld [vmem:[#allocation22 + $0x2c0] ss:$8 sps:$4 sm:$0xff]   ;;  %v20493_v38 = vld [vmem:[#allocation16 + $0x314] ss:$8 sps:$4 sm:$0xff]  }
0x12e4   : > { %11647 = vmatprep.subr.bf16.mxu1 %v20451_v40  ;;  %12559 = vmatprep.subr.bf16.mxu0 %v20454_v22  ;;  %v20496_v40 = vld [vmem:[#allocation22 + $0x2d4] ss:$8 sps:$4 sm:$0xff]  }
0x12e5   : > { %v20491_v22 = vld [vmem:[#allocation16 + $0x310] ss:$8 sps:$4 sm:$0xff]  }
0x12e7   : > { %11648 = vmatpush1.bf16.msra.mxu1 %v20449_v24  ;;  %12560 = vmatpush1.bf16.msra.mxu0 %v20452_v58  ;;  %v20494_v24 = vld [vmem:[#allocation22 + $0x2d0] ss:$8 sps:$4 sm:$0xff]   ;;  %v20499_v58 = vld [vmem:[#allocation16 + $0x324] ss:$8 sps:$4 sm:$0xff]  }
0x12e8   : > { %11649 = vmatprep.subr.bf16.mxu1 %v20457_v60  ;;  %12561 = vmatprep.subr.bf16.mxu0 %v20460_v57  ;;  %v20502_v60 = vld [vmem:[#allocation22 + $0x2e4] ss:$8 sps:$4 sm:$0xff]  }
0x12e9   : > { %v20497_v57 = vld [vmem:[#allocation16 + $0x320] ss:$8 sps:$4 sm:$0xff]  }
0x12eb   : > { %11650 = vmatpush1.bf16.msra.mxu1 %v20455_v48  ;;  %12562 = vmatpush1.bf16.msra.mxu0 %v20458_v35  ;;  %v20500_v48 = vld [vmem:[#allocation22 + $0x2e0] ss:$8 sps:$4 sm:$0xff]   ;;  %v20505_v35 = vld [vmem:[#allocation16 + $0x334] ss:$8 sps:$4 sm:$0xff]  }
0x12ec   : > { %11651 = vmatprep.subr.bf16.mxu1 %v20463_v23  ;;  %12563 = vmatprep.subr.bf16.mxu0 %v20466_v12  ;;  %v20512_v23 = vld [vmem:[#allocation16 + $0x350] ss:$8 sps:$4 sm:$0xff]   ;;  %v20517_v12 = vld [vmem:[#allocation16 + $0x364] ss:$8 sps:$4 sm:$0xff]  }
0x12ef   : > { %11652 = vmatpush1.bf16.msra.mxu1 %v20461_v0  ;;  %12564 = vmatpush1.bf16.msra.mxu0 %v20464_v6  ;;  %v20515_v0 = vld [vmem:[#allocation16 + $0x360] ss:$8 sps:$4 sm:$0xff]   ;;  %v20520_v6 = vld [vmem:[#allocation16 + $0x374] ss:$8 sps:$4 sm:$0xff]  }
0x12f0   : > { %11653 = vmatprep.subr.bf16.mxu1 %v20469_v10  ;;  %12565 = vmatprep.subr.bf16.mxu0 %v20472_v36  ;;  %v20518_v10 = vld [vmem:[#allocation16 + $0x370] ss:$8 sps:$4 sm:$0xff]   ;;  %v20523_v36 = vld [vmem:[#allocation16 + $0x384] ss:$8 sps:$4 sm:$0xff]  }
0x12f3   : > { %11654 = vmatpush1.bf16.msra.mxu1 %v20467_v9  ;;  %12566 = vmatpush1.bf16.msra.mxu0 %v20470_v26  ;;  %v20521_v9 = vld [vmem:[#allocation16 + $0x380] ss:$8 sps:$4 sm:$0xff]   ;;  %v20526_v26 = vld [vmem:[#allocation16 + $0x394] ss:$8 sps:$4 sm:$0xff]  }
0x12f4   : > { %11655 = vmatprep.subr.bf16.mxu1 %v20475_v21  ;;  %12567 = vmatprep.subr.bf16.mxu0 %v20478_v7  ;;  %v20532_v21 = vld [vmem:[#allocation16 + $0x3b4] ss:$8 sps:$4 sm:$0xff]   ;;  %v20530_v7 = vld [vmem:[#allocation16 + $0x3b0] ss:$8 sps:$4 sm:$0xff]  }
0x12f7   : > { %11656 = vmatpush1.bf16.msra.mxu1 %v20473_v31  ;;  %12568 = vmatpush1.bf16.msra.mxu0 %v20476_v37  ;;  %v20535_v31 = vld [vmem:[#allocation16 + $0x3c4] ss:$8 sps:$4 sm:$0xff]   ;;  %v20533_v37 = vld [vmem:[#allocation16 + $0x3c0] ss:$8 sps:$4 sm:$0xff]  }
0x12f8   : > { %11657 = vmatprep.subr.bf16.mxu1 %v20481_v14  ;;  %12569 = vmatprep.subr.bf16.mxu0 %v20484_v61  ;;  %v20538_v14 = vld [vmem:[#allocation16 + $0x3d4] ss:$8 sps:$4 sm:$0xff]   ;;  %v20536_v61 = vld [vmem:[#allocation16 + $0x3d0] ss:$8 sps:$4 sm:$0xff]  }
0x12fb   : > { %11658 = vmatpush1.bf16.msra.mxu1 %v20479_v34  ;;  %12570 = vmatpush1.bf16.msra.mxu0 %v20482_v42  ;;  %v20541_v34 = vld [vmem:[#allocation16 + $0x3e4] ss:$8 sps:$4 sm:$0xff]   ;;  %v20539_v42 = vld [vmem:[#allocation16 + $0x3e0] ss:$8 sps:$4 sm:$0xff]  }
0x12fc   : > { %11670 = vmatprep.subr.bf16.mxu1 %v20487_v17  ;;  %12571 = vmatprep.subr.bf16.mxu0 %v20490_v39  ;;  %v20544_v17 = vld [vmem:[#allocation16 + $0x3f4] ss:$8 sps:$4 sm:$0xff]   ;;  %v20542_v39 = vld [vmem:[#allocation16 + $0x3f0] ss:$8 sps:$4 sm:$0xff]  }
0x12fe   : > { %11660 = vmatmul.mubr.bf16.vlgmr.msra.gmra.mrb[96].mxu1 %v10704_v63  ;;  %v20509_v63 = vld [vmem:[#allocation16 + $0x340] ss:$8 sps:$4 sm:$0xff]  }
0x12ff   : > { %11671 = vmatpush1.bf16.msra.mxu1 %v20485_v43  ;;  %11702 = vmatprep.mubr.bf16.mxu1 %v10760_v27  ;;  %v20514_v27 = vld [vmem:[#allocation16 + $0x354] ss:$8 sps:$4 sm:$0xff]  }
0x1300   : > { %12572 = vmatpush1.bf16.msra.mxu0 %v20488_v44  ;;  %11672 = vmatprep.subr.bf16.mxu1 %v20493_v38 }
0x1301   : > { %12573 = vmatprep.subr.bf16.mxu0 %v20496_v40 }
0x1303   : > { %11673 = vmatpush1.bf16.msra.mxu1 %v20491_v22  ;;  %v10889_v22 = vld [vmem:[%s23998_s28] sm:$0x3]  ;;  %s16087_s28 = sshll.u32 %s23826_s1, 4  ;;  %s23845_s28 = int_to_ptr.vmem [resolvable:$true] %s16087_s28 }
0x1304   : > { %12574 = vmatpush1.bf16.msra.mxu0 %v20494_v24  ;;  %11674 = vmatprep.subr.bf16.mxu1 %v20499_v58  ;;  %v11969_v24 = vld [vmem:[%s23999_s11] sm:$0x3]  ;;  %v10894_v58 = vrot.slane %v10889_v22, %v22235_v30  ;;  %s23843_s11 = scalar_lea.hbm %s21737_s13, %s17992_s7  ;;  %s21403_s7 = scalar_lea.vmem %s21402_s10, 2048 }
0x1305   : > { %12575 = vmatprep.subr.bf16.mxu0 %v20502_v60  ;;  %v10898_v60 = vrot.slane %v10889_v22, %v22239_v33  ;;  %p21404_p2 = scmp.lt.s32.totalorder %s23845_s28, %s21402_s10 }
0x1307   : > { %11675 = vmatpush1.bf16.msra.mxu1 %v20497_v57  ;;  %v11974_v57 = vrot.slane %v11969_v24, %v22235_v30 }
0x1308   : > { %12576 = vmatpush1.bf16.msra.mxu0 %v20500_v48  ;;  %11676 = vmatprep.subr.bf16.mxu1 %v20505_v35  ;;  %v11978_v48 = vrot.slane %v11969_v24, %v22239_v33  ;;  %v20550_v24 = vld [vmem:[#allocation17 + $0x14] ss:$8 sps:$4 sm:$0xff]  }
0x1309   : > { %12577 = vmatprep.subr.bf16.mxu0 %v20508_v54 }
0x130b   : > { %11677 = vmatpush1.bf16.msra.mxu1 %v20503_v32 }
0x130c   : > { %12578 = vmatpush1.bf16.msra.mxu0 %v20506_v53  ;;  %11678 = vmatprep.subr.bf16.mxu1 %v20511_v3 }
0x130f   : > { %12580 = vmatmul.mubr.bf16.vlgmr.msra.gmra.mrb[96].mxu0 %v11871_v28  ;;  %11679 = vmatpush1.bf16.msra.mxu1 %v20509_v63  ;;  %v20527_v28 = vld [vmem:[#allocation16 + $0x3a0] ss:$8 sps:$4 sm:$0xff]  }
0x1310   : > { %11680 = vmatprep.subr.bf16.mxu1 %v20514_v27  ;;  %12638 = vmatprep.mubr.bf16.mxu0 %v23916_v1 }
0x1313   : > { %11681 = vmatpush1.bf16.msra.mxu1 %v20512_v23 }
0x1314   : > { %11682 = vmatprep.subr.bf16.mxu1 %v20517_v12 }
0x1317   : > { %11683 = vmatpush1.bf16.msra.mxu1 %v20515_v0 }
0x1318   : > { %11684 = vmatprep.subr.bf16.mxu1 %v20520_v6 }
0x131b   : > { %11685 = vmatpush1.bf16.msra.mxu1 %v20518_v10 }
0x131c   : > { %11686 = vmatprep.subr.bf16.mxu1 %v20523_v36 }
0x131f   : > { %11687 = vmatpush1.bf16.msra.mxu1 %v20521_v9 }
0x1320   : > { %11688 = vmatprep.subr.bf16.mxu1 %v20526_v26 }
0x1323   : > { %11689 = vmatpush1.bf16.msra.mxu1 %v20524_v41 }
0x1324   : > { %11690 = vmatprep.subr.bf16.mxu1 %v20529_v47 }
0x1327   : > { %11691 = vmatpush1.bf16.msra.mxu1 %v20527_v28 }
0x1328   : > { %11692 = vmatprep.subr.bf16.mxu1 %v20532_v21 }
0x132b   : > { %11693 = vmatpush1.bf16.msra.mxu1 %v20530_v7  ;;  %v12598_v7 = vsel %vm12596_vm11, 1.0, %v23914_v19 }
0x132c   : > { %11694 = vmatprep.subr.bf16.mxu1 %v20535_v31  ;;  %v12599_v31 = vsel %vm12597_vm13, 1.0, %v23914_v19 }
0x132f   : > { %11695 = vmatpush1.bf16.msra.mxu1 %v20533_v37  ;;  %v12799_v37 = vsel %vm12797_vm3, 1.0, %v23914_v19 }
0x1330   : > { %11696 = vmatprep.subr.bf16.mxu1 %v20538_v14  ;;  %v12800_v14 = vsel %vm12798_vm6, 1.0, %v23914_v19 }
0x1333   : > { %11697 = vmatpush1.bf16.msra.mxu1 %v20536_v61  ;;  %v23368_v61 = vpack.c.bf16 %v12599_v31, %v12598_v7  ;;  %v20575_v7 = vld [vmem:[#allocation17 + $0x70] ss:$8 sps:$4 sm:$0xff]   ;;  %v20583_v31 = vld [vmem:[#allocation17 + $0x84] ss:$8 sps:$4 sm:$0xff]  }
0x1334   : > { %11698 = vmatprep.subr.bf16.mxu1 %v20541_v34  ;;  %v23370_v34 = vpack.c.bf16 %v12800_v14, %v12799_v37  ;;  %v20584_v37 = vld [vmem:[#allocation20 + $0x40] ss:$8 sps:$4 sm:$0xff]   ;;  %v20592_v14 = vld [vmem:[#allocation20 + $0x54] ss:$8 sps:$4 sm:$0xff]  }
0x1336   : > { %24000 = vst [vmem:[#allocation64_spill] sm:$0xff] %v23370_v34 }
0x1337   : > { %11699 = vmatpush1.bf16.msra.mxu1 %v20539_v42  ;;  %v17791_v42 = vadd.s32 4294967295, %v22067_v15 }
0x1338   : > { %11700 = vmatprep.subr.bf16.mxu1 %v20544_v17  ;;  %v17792_v17 = vadd.s32 4294967295, %v22070_v16 }
0x1339   : > { %vm13866_vm7 = vcmp.eq.s32.totalorder %v22055_v8, %v17791_v42  ;;  %v20581_v42 = vld [vmem:[#allocation17 + $0x80] ss:$8 sps:$4 sm:$0xff]  }
0x133a   : > { %vm13867_vm9 = vcmp.eq.s32.totalorder %v22055_v8, %v17792_v17  ;;  %v20589_v17 = vld [vmem:[#allocation17 + $0x94] ss:$8 sps:$4 sm:$0xff]  }
0x133b   : > { %11701 = vmatpush1.bf16.msra.mxu1 %v20542_v39  ;;  %v20547_v39 = vld [vmem:[#allocation17 + $0x4] ss:$8 sps:$4 sm:$0xff]  }
0x133e   : > { %11703 = vmatmul.mubr.bf16.vlgmr.msra.gmra.mrb[96].mxu1 %v10759_v18 }
0x133f   : > { %12839 = vmatprep.mubr.bf16.mxu1 %v23916_v1 }
0x13e2   : > { %v12581_v43 = vpop.f32.mrb[96].mxu0 }
0x13e3   : > { %v12583_v44 = vpop.f32.mrb[97].mxu0  ;;  %v18382_v32 = vadd.f32 %v12581_v43, %v11974_v57  ;;  %v13868_v43 = vsel %vm13866_vm7, 1.0, %v23914_v19 }
0x13e4   : > { %v12585_v38 = vpop.f32.mrb[98].mxu0  ;;  %v18383_v27 = vadd.f32 %v12583_v44, %v11978_v48  ;;  %v13869_v44 = vsel %vm13867_vm9, 1.0, %v23914_v19 }
0x13e5   : > { %v12587_v40 = vpop.f32.mrb[99].mxu0  ;;  %v18384_v0 = vadd.f32 %v12585_v38, %v11974_v57  ;;  %v12665_v38 = vsel %vm12663_vm15, 1.0, %v23914_v19  ;;  %v13870_v22 = vpack.c.bf16 %v13869_v44, %v13868_v43  ;;  %v13935_v57 = vsel %vm13933_vm12, 1.0, %v23914_v19  ;;  %v20598_v43 = vld [vmem:[#allocation20 + $0x64] ss:$8 sps:$4 sm:$0xff]  }
0x13e6   : > { %v18385_v36 = vadd.f32 %v12587_v40, %v11978_v48  ;;  %v12666_v40 = vsel %vm12664_vm0, 1.0, %v23914_v19  ;;  %v13936_v48 = vsel %vm13934_vm10, 1.0, %v23914_v19  ;;  %v20587_v44 = vld [vmem:[#allocation17 + $0x90] ss:$8 sps:$4 sm:$0xff]  }
0x1411   : > { %v11704_v35 = vpop.f32.mrb[96].mxu1 }
0x1412   : > { %v18378_v54 = vadd.f32 %v11704_v35, %v10894_v58  ;;  %v11706_v62 = vpop.f32.mrb[97].mxu1  ;;  %v20548_v35 = vld [vmem:[#allocation17 + $0x10] ss:$8 sps:$4 sm:$0xff]  }
0x1413   : > { %v18379_v56 = vadd.f32 %v11706_v62, %v10898_v60  ;;  %v11708_v18 = vpop.f32.mrb[98].mxu1  ;;  %v20553_v62 = vld [vmem:[#allocation17 + $0x24] ss:$8 sps:$4 sm:$0xff]  }
0x1414   : > { %v11713_v53 = vmax.f32 %v18378_v54, 0.0  ;;  %v18380_v3 = vadd.f32 %v11708_v18, %v10894_v58  ;;  %v11710_v63 = vpop.f32.mrb[99].mxu1  ;;  %v12732_v58 = vsel %vm12730_vm5, 1.0, %v23914_v19  ;;  %v14001_v18 = vadd.s32 2, %v22070_v16  ;;  %v20568_v16 = vld [vmem:[#allocation20 + $0x14] ss:$8 sps:$4 sm:$0xff]  }
0x1415   : > { %v11714_v23 = vmax.f32 %v18379_v56, 0.0  ;;  %v18381_v12 = vadd.f32 %v11710_v63, %v10898_v60  ;;  %v12733_v60 = vsel %vm12731_vm8, 1.0, %v23914_v19  ;;  %v14000_v56 = vadd.s32 2, %v22067_v15  ;;  %v20559_v15 = vld [vmem:[#allocation17 + $0x44] ss:$8 sps:$4 sm:$0xff]  }
0x1416   : > { %v12590_v6 = vadd.f32 %v18382_v32, %v11713_v53  ;;  %v11715_v10 = vmax.f32 %v18380_v3, 0.0  ;;  %v23429_v54 = vpack.c.bf16 %v12733_v60, %v12732_v58  ;;  %v20551_v32 = vld [vmem:[#allocation17 + $0x20] ss:$8 sps:$4 sm:$0xff]   ;;  %v17798_v3 = vadd.s32 4294967295, %v14001_v18  ;;  %v20602_v58 = vld [vmem:[#allocation20 + $0x70] ss:$8 sps:$4 sm:$0xff]  }
0x1417   : > { %v12591_v9 = vadd.f32 %v18383_v27, %v11714_v23  ;;  %v11716_v26 = vmax.f32 %v18381_v12, 0.0  ;;  %v17797_v53 = vadd.s32 4294967295, %v14000_v56  ;;  %v20560_v63 = vld [vmem:[#allocation20] ss:$8 sps:$4 sm:$0xff]   ;;  %v20565_v23 = vld [vmem:[#allocation17 + $0x54] ss:$8 sps:$4 sm:$0xff]  }
0x1418   : > { %v12592_v41 = vadd.f32 %v18384_v0, %v11715_v10  ;;  %vm14005_vm11 = vcmp.eq.s32.totalorder %v22055_v8, %v17798_v3  ;;  %v20557_v27 = vld [vmem:[#allocation17 + $0x40] ss:$8 sps:$4 sm:$0xff]   ;;  %v20614_v56 = vld [vmem:[#allocation20 + $0x90] ss:$8 sps:$4 sm:$0xff]  }
0x1419   : > { %v12593_v47 = vadd.f32 %v18385_v36, %v11716_v26  ;;  %vm14004_vm14 = vcmp.eq.s32.totalorder %v22055_v8, %v17797_v53  ;;  %v14007_v0 = vsel %vm14005_vm11, 1.0, %v23914_v19  ;;  %v20574_v10 = vld [vmem:[#allocation20 + $0x24] ss:$8 sps:$4 sm:$0xff]   ;;  %v20572_v26 = vld [vmem:[#allocation20 + $0x20] ss:$8 sps:$4 sm:$0xff]  }
0x141a   : > { %v12594_v28 = vpack.c.bf16 %v12592_v41, %v12590_v6  ;;  %v14006_v12 = vsel %vm14004_vm14, 1.0, %v23914_v19  ;;  %v20566_v6 = vld [vmem:[#allocation20 + $0x10] ss:$8 sps:$4 sm:$0xff]   ;;  %v20569_v41 = vld [vmem:[#allocation17 + $0x60] ss:$8 sps:$4 sm:$0xff]  }
0x141b   : > { %v12595_v21 = vpack.c.bf16 %v12593_v47, %v12591_v9  ;;  %v20563_v8 = vld [vmem:[#allocation17 + $0x50] ss:$8 sps:$4 sm:$0xff]   ;;  %v14008_v36 = vpack.c.bf16 %v14007_v0, %v14006_v12  ;;  %v20571_v9 = vld [vmem:[#allocation17 + $0x64] ss:$8 sps:$4 sm:$0xff]   ;;  %v20577_v47 = vld [vmem:[#allocation17 + $0x74] ss:$8 sps:$4 sm:$0xff]  }
0x141c   : > { %v20610_v60 = vld [vmem:[#allocation20 + $0x84] ss:$8 sps:$4 sm:$0xff]   ;;  %v20620_v53 = vld [vmem:[#allocation20 + $0xa0] ss:$8 sps:$4 sm:$0xff]   ;;  %v20640_v0 = vld [vmem:[#allocation20 + $0xd4] ss:$8 sps:$4 sm:$0xff]  }
0x141d   : > { %12606 = vmatprep.subr.bf16.mxu0 %v12595_v21  ;;  %12807 = vmatprep.subr.bf16.mxu1 %v12595_v21  ;;  %v20622_v18 = vld [vmem:[#allocation20 + $0xa4] ss:$8 sps:$4 sm:$0xff]   ;;  %v20632_v12 = vld [vmem:[#allocation20 + $0xc0] ss:$8 sps:$4 sm:$0xff]   ;;  %v20710_v19 = vld [vmem:[#allocation20 + $0x190] ss:$8 sps:$4 sm:$0xff]  }
0x141e   : > { %12607 = vmatpush1.bf16.msra.mxu0 %v12594_v28  ;;  %12808 = vmatpush1.bf16.msra.mxu1 %v12594_v28  ;;  %v20617_v3 = vld [vmem:[#allocation17 + $0xe0] ss:$8 sps:$4 sm:$0xff]  }
0x141f   : > { %12673 = vmatprep.subr.bf16.mxu0 %v12595_v21  ;;  %13876 = vmatprep.subr.bf16.mxu1 %v22245_v55 }
0x1421   : > { %17655 = vmatmul.mubr.msk.bf16.vlgmr.msra.gmra.mrb[100].mxu0 %vm3610_vm2, %v23202_v52  ;;  %17661 = vmatmul.mubr.msk.bf16.vlgmr.msra.gmra.mrb[100].mxu1 %vm3610_vm2, %v23228_v51 }
0x1422   : > { %12674 = vmatpush1.bf16.msra.mxu0 %v12594_v28  ;;  %13877 = vmatpush1.bf16.msra.mxu1 %v22243_v45 }
0x1423   : > { %12740 = vmatprep.subr.bf16.mxu0 %v12595_v21  ;;  %13878 = vmatprep.subr.bf16.mxu1 %v22251_v5  ;;  %v20586_v21 = vld [vmem:[#allocation20 + $0x44] ss:$8 sps:$4 sm:$0xff]  }
0x1424   : > { %12648 = vmatprep.mubr.bf16.mxu0 %v23916_v1  ;;  %12849 = vmatprep.mubr.bf16.mxu1 %v23916_v1 }
0x1426   : > { %13879 = vmatpush1.bf16.msra.mxu1 %v22249_v4 }
0x1427   : > { %13943 = vmatprep.subr.bf16.mxu1 %v22245_v55 }
0x1429   : > { %17656 = vmatmul.mubr.msk.bf16.gmra.mrb[104].mxu0 %vm3610_vm2, %v23368_v61  ;;  %17662 = vmatmul.mubr.msk.bf16.gmra.mrb[104].mxu1 %vm3610_vm2, %v23370_v34  ;;  %v20733_v34 = vld [vmem:[#allocation17 + $0x214] ss:$8 sps:$4 sm:$0xff]  }
0x142a   : > { %12705 = vmatprep.mubr.bf16.mxu0 %v23916_v1  ;;  %13908 = vmatprep.mubr.bf16.mxu1 %v23916_v1 }
0x1431   : > { %17657 = vmatmul.mubr.msk.bf16.vlgmr.msra.gmra.mrb[108].mxu0 %vm3610_vm2, %v23204_v11  ;;  %17793 = vmatmul.mubr.msk.bf16.vlgmr.msra.gmra.mrb[108].mxu1 %vm2462_vm1, %v23242_v59  ;;  %v23400_v59 = vpack.c.bf16 %v12666_v40, %v12665_v38  ;;  %v20595_v38 = vld [vmem:[#allocation17 + $0xa4] ss:$8 sps:$4 sm:$0xff]  }
0x1432   : > { %12741 = vmatpush1.bf16.msra.mxu0 %v12594_v28  ;;  %13944 = vmatpush1.bf16.msra.mxu1 %v22243_v45  ;;  %v20578_v28 = vld [vmem:[#allocation20 + $0x30] ss:$8 sps:$4 sm:$0xff]   ;;  %v20596_v40 = vld [vmem:[#allocation20 + $0x60] ss:$8 sps:$4 sm:$0xff]  }
0x1433   : > { %13945 = vmatprep.subr.bf16.mxu1 %v22251_v5  ;;  %13918 = vmatprep.mubr.bf16.mxu1 %v23916_v1 }
0x1434   : > { %12715 = vmatprep.mubr.bf16.mxu0 %v23916_v1  ;;  %13644 = vmatprep.subr.bf16.mxu0 %v20547_v39  ;;  %v20590_v39 = vld [vmem:[#allocation20 + $0x50] ss:$8 sps:$4 sm:$0xff]  }
0x1436   : > { %13946 = vmatpush1.bf16.msra.mxu1 %v22249_v4 }
0x1437   : > { %14014 = vmatprep.subr.bf16.mxu1 %v22245_v55  ;;  %v20545_v55 = vld [vmem:[#allocation17] ss:$8 sps:$4 sm:$0xff]  }
0x1439   : > { %17794 = vmatmul.mubr.msk.bf16.gmra.mrb[112].mxu1 %vm2462_vm1, %v13870_v22  ;;  %17658 = vmatmul.mubr.msk.bf16.gmra.mrb[112].mxu0 %vm3610_vm2, %v23400_v59  ;;  %v20604_v22 = vld [vmem:[#allocation20 + $0x74] ss:$8 sps:$4 sm:$0xff]  }
0x143a   : > { %13975 = vmatprep.mubr.bf16.mxu1 %v23916_v1  ;;  %12772 = vmatprep.mubr.bf16.mxu0 %v23916_v1 }
0x1441   : > { %17795 = vmatmul.mubr.msk.bf16.vlgmr.msra.gmra.mrb[116].mxu1 %vm2462_vm1, %v23254_v20  ;;  %17659 = vmatmul.mubr.msk.bf16.vlgmr.msra.gmra.mrb[116].mxu0 %vm3610_vm2, %v23230_v46  ;;  %v20562_v20 = vld [vmem:[#allocation20 + $0x4] ss:$8 sps:$4 sm:$0xff]  }
0x1442   : > { %14015 = vmatpush1.bf16.msra.mxu1 %v22243_v45  ;;  %12782 = vmatprep.mubr.bf16.mxu0 %v23916_v1  ;;  %v13937_v45 = vpack.c.bf16 %v13936_v48, %v13935_v57  ;;  %v20599_v57 = vld [vmem:[#allocation17 + $0xb0] ss:$8 sps:$4 sm:$0xff]   ;;  %v20607_v48 = vld [vmem:[#allocation17 + $0xc4] ss:$8 sps:$4 sm:$0xff]  }
0x1443   : > { %14016 = vmatprep.subr.bf16.mxu1 %v22251_v5  ;;  %13985 = vmatprep.mubr.bf16.mxu1 %v23916_v1  ;;  %v20556_v5 = vld [vmem:[#allocation17 + $0x34] ss:$8 sps:$4 sm:$0xff]  }
0x1444   : > { %13645 = vmatpush1.bf16.msra.mxu0 %v20545_v55  ;;  %v20593_v55 = vld [vmem:[#allocation17 + $0xa0] ss:$8 sps:$4 sm:$0xff]  }
0x1445   : > { %13646 = vmatprep.subr.bf16.mxu0 %v20550_v24  ;;  %v20601_v24 = vld [vmem:[#allocation17 + $0xb4] ss:$8 sps:$4 sm:$0xff]  }
0x1446   : > { %14017 = vmatpush1.bf16.msra.mxu1 %v22249_v4  ;;  %v20554_v4 = vld [vmem:[#allocation17 + $0x30] ss:$8 sps:$4 sm:$0xff]  }
0x1447   : > { %14659 = vmatprep.subr.bf16.mxu1 %v20562_v20  ;;  %v20608_v20 = vld [vmem:[#allocation20 + $0x80] ss:$8 sps:$4 sm:$0xff]  }
0x1448   : > { %13647 = vmatpush1.bf16.msra.mxu0 %v20548_v35  ;;  %v20616_v35 = vld [vmem:[#allocation20 + $0x94] ss:$8 sps:$4 sm:$0xff]  }
0x1449   : > { %17660 = vmatmul.mubr.msk.bf16.gmra.mrb[120].mxu0 %vm3610_vm2, %v23429_v54  ;;  %17796 = vmatmul.mubr.msk.bf16.gmra.mrb[120].mxu1 %vm2462_vm1, %v13937_v45  ;;  %v20605_v45 = vld [vmem:[#allocation17 + $0xc0] ss:$8 sps:$4 sm:$0xff]  }
0x144a   : > { %14046 = vmatprep.mubr.bf16.mxu1 %v23916_v1  ;;  %13648 = vmatprep.subr.bf16.mxu0 %v20553_v62  ;;  %v20613_v62 = vld [vmem:[#allocation17 + $0xd4] ss:$8 sps:$4 sm:$0xff]  }
0x144c   : > { %13649 = vmatpush1.bf16.msra.mxu0 %v20551_v32  ;;  %v20611_v32 = vld [vmem:[#allocation17 + $0xd0] ss:$8 sps:$4 sm:$0xff]  }
0x144d   : > { %13650 = vmatprep.subr.bf16.mxu0 %v20556_v5  ;;  %v20619_v5 = vld [vmem:[#allocation17 + $0xe4] ss:$8 sps:$4 sm:$0xff]  }
0x1450   : > { %13651 = vmatpush1.bf16.msra.mxu0 %v20554_v4  ;;  %v20628_v4 = vld [vmem:[#allocation20 + $0xb4] ss:$8 sps:$4 sm:$0xff]  }
0x1451   : > { %17799 = vmatmul.mubr.msk.bf16.vlgmr.msra.gmra.mrb[124].mxu1 %vm2462_vm1, %v23263_v25  ;;  %13652 = vmatprep.subr.bf16.mxu0 %v20559_v15  ;;  %v20580_v25 = vld [vmem:[#allocation20 + $0x34] ss:$8 sps:$4 sm:$0xff]  }
0x1452   : > { %14056 = vmatprep.mubr.bf16.mxu1 %v23916_v1  ;;  %14660 = vmatpush1.bf16.msra.mxu1 %v20560_v63  ;;  %v20625_v15 = vld [vmem:[#allocation17 + $0xf4] ss:$8 sps:$4 sm:$0xff]  }
0x1453   : > { %14661 = vmatprep.subr.bf16.mxu1 %v20568_v16  ;;  %v20626_v63 = vld [vmem:[#allocation20 + $0xb0] ss:$8 sps:$4 sm:$0xff]   ;;  %v20634_v16 = vld [vmem:[#allocation20 + $0xc4] ss:$8 sps:$4 sm:$0xff]  }
0x1454   : > { %13653 = vmatpush1.bf16.msra.mxu0 %v20557_v27  ;;  %v20623_v27 = vld [vmem:[#allocation17 + $0xf0] ss:$8 sps:$4 sm:$0xff]  }
0x1455   : > { %13654 = vmatprep.subr.bf16.mxu0 %v20565_v23  ;;  %v20631_v23 = vld [vmem:[#allocation17 + $0x104] ss:$8 sps:$4 sm:$0xff]   ;;  %v20698_v1 = vld [vmem:[#allocation20 + $0x170] ss:$8 sps:$4 sm:$0xff]  }
0x1456   : > { %14662 = vmatpush1.bf16.msra.mxu1 %v20566_v6  ;;  %v20638_v6 = vld [vmem:[#allocation20 + $0xd0] ss:$8 sps:$4 sm:$0xff]  }
0x1457   : > { %14663 = vmatprep.subr.bf16.mxu1 %v20574_v10  ;;  %v20646_v10 = vld [vmem:[#allocation20 + $0xe4] ss:$8 sps:$4 sm:$0xff]  }
0x1458   : > { %13655 = vmatpush1.bf16.msra.mxu0 %v20563_v8  ;;  %v20644_v8 = vld [vmem:[#allocation20 + $0xe0] ss:$8 sps:$4 sm:$0xff]  }
0x1459   : > { %17800 = vmatmul.mubr.msk.bf16.gmra.mrb[128].mxu1 %vm2462_vm1, %v14008_v36  ;;  %13656 = vmatprep.subr.bf16.mxu0 %v20571_v9  ;;  %v20652_v36 = vld [vmem:[#allocation20 + $0xf4] ss:$8 sps:$4 sm:$0xff]   ;;  %v20650_v9 = vld [vmem:[#allocation20 + $0xf0] ss:$8 sps:$4 sm:$0xff]  }
0x145a   : > { %14664 = vmatpush1.bf16.msra.mxu1 %v20572_v26  ;;  %v20658_v26 = vld [vmem:[#allocation20 + $0x104] ss:$8 sps:$4 sm:$0xff]  }
0x145b   : > { %14665 = vmatprep.subr.bf16.mxu1 %v20580_v25 }
0x145c   : > { %13657 = vmatpush1.bf16.msra.mxu0 %v20569_v41 }
0x145d   : > { %13658 = vmatprep.subr.bf16.mxu0 %v20577_v47 }
0x145e   : > { %14666 = vmatpush1.bf16.msra.mxu1 %v20578_v28 }
0x145f   : > { %14667 = vmatprep.subr.bf16.mxu1 %v20586_v21 }
0x1460   : > { %13659 = vmatpush1.bf16.msra.mxu0 %v20575_v7 }
0x1461   : > { %13660 = vmatprep.subr.bf16.mxu0 %v20583_v31 }
0x1462   : > { %14668 = vmatpush1.bf16.msra.mxu1 %v20584_v37 }
0x1463   : > { %14669 = vmatprep.subr.bf16.mxu1 %v20592_v14  ;;  %v20695_v14 = vld [vmem:[#allocation17 + $0x1b0] ss:$8 sps:$4 sm:$0xff]  }
0x1464   : > { %13661 = vmatpush1.bf16.msra.mxu0 %v20581_v42 }
0x1465   : > { %13662 = vmatprep.subr.bf16.mxu0 %v20589_v17 }
0x1466   : > { %14670 = vmatpush1.bf16.msra.mxu1 %v20590_v39  ;;  %v20629_v39 = vld [vmem:[#allocation17 + $0x100] ss:$8 sps:$4 sm:$0xff]  }
0x1467   : > { %14671 = vmatprep.subr.bf16.mxu1 %v20598_v43 }
0x1468   : > { %13663 = vmatpush1.bf16.msra.mxu0 %v20587_v44  ;;  %v20637_v44 = vld [vmem:[#allocation17 + $0x114] ss:$8 sps:$4 sm:$0xff]  }
0x1469   : > { %13664 = vmatprep.subr.bf16.mxu0 %v20595_v38  ;;  %v20635_v38 = vld [vmem:[#allocation17 + $0x110] ss:$8 sps:$4 sm:$0xff]  }
0x146a   : > { %14672 = vmatpush1.bf16.msra.mxu1 %v20596_v40 }
0x146b   : > { %14673 = vmatprep.subr.bf16.mxu1 %v20604_v22 }
0x146c   : > { %13665 = vmatpush1.bf16.msra.mxu0 %v20593_v55 }
0x146d   : > { %13666 = vmatprep.subr.bf16.mxu0 %v20601_v24  ;;  %v20643_v24 = vld [vmem:[#allocation17 + $0x124] ss:$8 sps:$4 sm:$0xff]  }
0x146e   : > { %14674 = vmatpush1.bf16.msra.mxu1 %v20602_v58 }
0x146f   : > { %14675 = vmatprep.subr.bf16.mxu1 %v20610_v60 }
0x1470   : > { %13667 = vmatpush1.bf16.msra.mxu0 %v20599_v57 }
0x1471   : > { %13668 = vmatprep.subr.bf16.mxu0 %v20607_v48  ;;  %v20697_v48 = vld [vmem:[#allocation17 + $0x1b4] ss:$8 sps:$4 sm:$0xff]  }
0x1472   : > { %14676 = vmatpush1.bf16.msra.mxu1 %v20608_v20 }
0x1473   : > { %14677 = vmatprep.subr.bf16.mxu1 %v20616_v35 }
0x1474   : > { %13669 = vmatpush1.bf16.msra.mxu0 %v20605_v45 }
0x1475   : > { %13670 = vmatprep.subr.bf16.mxu0 %v20613_v62  ;;  %v20641_v62 = vld [vmem:[#allocation17 + $0x120] ss:$8 sps:$4 sm:$0xff]  }
0x1476   : > { %14678 = vmatpush1.bf16.msra.mxu1 %v20614_v56  ;;  %v20700_v56 = vld [vmem:[#allocation20 + $0x174] ss:$8 sps:$4 sm:$0xff]  }
0x1477   : > { %14679 = vmatprep.subr.bf16.mxu1 %v20622_v18 }
0x1478   : > { %13671 = vmatpush1.bf16.msra.mxu0 %v20611_v32  ;;  %v20649_v32 = vld [vmem:[#allocation17 + $0x134] ss:$8 sps:$4 sm:$0xff]  }
0x1479   : > { %13672 = vmatprep.subr.bf16.mxu0 %v20619_v5 }
0x147a   : > { %14680 = vmatpush1.bf16.msra.mxu1 %v20620_v53  ;;  %v20647_v53 = vld [vmem:[#allocation17 + $0x130] ss:$8 sps:$4 sm:$0xff]  }
0x147b   : > { %14681 = vmatprep.subr.bf16.mxu1 %v20628_v4 }
0x147c   : > { %13673 = vmatpush1.bf16.msra.mxu0 %v20617_v3 }
0x147d   : > { %13674 = vmatprep.subr.bf16.mxu0 %v20625_v15  ;;  %v20655_v15 = vld [vmem:[#allocation17 + $0x144] ss:$8 sps:$4 sm:$0xff]  }
0x147e   : > { %14682 = vmatpush1.bf16.msra.mxu1 %v20626_v63 }
0x147f   : > { %14683 = vmatprep.subr.bf16.mxu1 %v20634_v16 }
0x1480   : > { %13675 = vmatpush1.bf16.msra.mxu0 %v20623_v27 }
0x1481   : > { %13697 = vmatprep.subr.bf16.mxu0 %v20631_v23 }
0x1482   : > { %14684 = vmatpush1.bf16.msra.mxu1 %v20632_v12 }
0x1483   : > { %14685 = vmatprep.subr.bf16.mxu1 %v20640_v0  ;;  %v20730_v0 = vld [vmem:[#allocation20 + $0x1c4] ss:$8 sps:$4 sm:$0xff]  }
0x1486   : > { %14686 = vmatpush1.bf16.msra.mxu1 %v20638_v6 }
0x1487   : > { %14687 = vmatprep.subr.bf16.mxu1 %v20646_v10 }
0x148a   : > { %14688 = vmatpush1.bf16.msra.mxu1 %v20644_v8  ;;  %v20653_v8 = vld [vmem:[#allocation17 + $0x140] ss:$8 sps:$4 sm:$0xff]  }
0x148b   : > { %14689 = vmatprep.subr.bf16.mxu1 %v20652_v36  ;;  %v20656_v36 = vld [vmem:[#allocation20 + $0x100] ss:$8 sps:$4 sm:$0xff]  }
0x148e   : > { %14690 = vmatpush1.bf16.msra.mxu1 %v20650_v9 }
0x148f   : > { %14712 = vmatprep.subr.bf16.mxu1 %v20658_v26  ;;  %v20661_v26 = vld [vmem:[#allocation17 + $0x154] ss:$8 sps:$4 sm:$0xff]  }
0x14f4   : > { %v12640_v25 = vpop.f32.mrb[100].mxu0  ;;  %v23446_v41 = vpop.f32.mrb[100].mxu1 }
0x14f5   : > { %v12642_v47 = vpop.f32.mrb[101].mxu0  ;;  %v23448_v28 = vpop.f32.mrb[101].mxu1 }
0x14f6   : > { %v12644_v21 = vpop.f32.mrb[102].mxu0  ;;  %v23450_v7 = vpop.f32.mrb[102].mxu1 }
0x14f7   : > { %v12659_v31 = vpack.c.bf16 %v12644_v21, %v12640_v25  ;;  %v12646_v37 = vpop.f32.mrb[103].mxu0  ;;  %v23454_v42 = vpop.f32.mrb[103].mxu1  ;;  %v20664_v25 = vld [vmem:[#allocation20 + $0x114] ss:$8 sps:$4 sm:$0xff]   ;;  %v20662_v21 = vld [vmem:[#allocation20 + $0x110] ss:$8 sps:$4 sm:$0xff]  }
0x14f8   : > { %v12660_v17 = vpack.c.bf16 %v12646_v37, %v12642_v47  ;;  %v20659_v47 = vld [vmem:[#allocation17 + $0x150] ss:$8 sps:$4 sm:$0xff]  }
0x14fa   : > { %13676 = vmatprep.mubr.bf16.mxu0 %v12660_v17  ;;  %v20667_v17 = vld [vmem:[#allocation17 + $0x164] ss:$8 sps:$4 sm:$0xff]  }
0x14fb   : > { %13677 = vmatmul.mubr.bf16.vlgmr.msra.gmra.mrb[124].mxu0 %v12659_v31 }
0x14fc   : > { %13698 = vmatpush1.bf16.msra.mxu0 %v20629_v39  ;;  %v23458_v40 = vpop.f32.mrb[104].mxu1  ;;  %v12650_v22 = vpop.f32.mrb[104].mxu0  ;;  %v20670_v39 = vld [vmem:[#allocation20 + $0x124] ss:$8 sps:$4 sm:$0xff]  }
0x14fd   : > { %13699 = vmatprep.subr.bf16.mxu0 %v20637_v44  ;;  %v23460_v55 = vpop.f32.mrb[105].mxu1  ;;  %v12652_v58 = vpop.f32.mrb[105].mxu0 }
0x14fe   : > { %v23462_v60 = vpop.f32.mrb[106].mxu1  ;;  %v12654_v57 = vpop.f32.mrb[106].mxu0 }
0x14ff   : > { %v23466_v20 = vpop.f32.mrb[107].mxu1  ;;  %v12661_v35 = vpack.c.bf16 %v12654_v57, %v12650_v22  ;;  %v12656_v45 = vpop.f32.mrb[107].mxu0 }
0x1500   : > { %13700 = vmatpush1.bf16.msra.mxu0 %v20635_v38  ;;  %v12662_v18 = vpack.c.bf16 %v12656_v45, %v12652_v58 }
0x1501   : > { %13701 = vmatprep.subr.bf16.mxu0 %v20643_v24 }
0x1502   : > { %13686 = vmatprep.mubr.bf16.mxu0 %v12662_v18  ;;  %v20668_v18 = vld [vmem:[#allocation20 + $0x120] ss:$8 sps:$4 sm:$0xff]  }
0x1503   : > { %13687 = vmatmul.mubr.bf16.gmra.mrb[128].mxu0 %v12661_v35  ;;  %v20719_v35 = vld [vmem:[#allocation17 + $0x1f0] ss:$8 sps:$4 sm:$0xff]  }
0x1504   : > { %13702 = vmatpush1.bf16.msra.mxu0 %v20641_v62  ;;  %v13910_v5 = vpop.f32.mrb[108].mxu1  ;;  %v23470_v3 = vpop.f32.mrb[108].mxu0  ;;  %v20665_v62 = vld [vmem:[#allocation17 + $0x160] ss:$8 sps:$4 sm:$0xff]  }
0x1505   : > { %v13912_v4 = vpop.f32.mrb[109].mxu1  ;;  %13703 = vmatprep.subr.bf16.mxu0 %v20649_v32  ;;  %v12709_v63 = vpop.f32.mrb[109].mxu0 }
0x1506   : > { %v13914_v16 = vpop.f32.mrb[110].mxu1  ;;  %v23472_v27 = vpop.f32.mrb[110].mxu0 }
0x1507   : > { %v13929_v23 = vpack.c.bf16 %v13914_v16, %v13910_v5  ;;  %v13916_v12 = vpop.f32.mrb[111].mxu1  ;;  %v12713_v6 = vpop.f32.mrb[111].mxu0  ;;  %v20722_v5 = vld [vmem:[#allocation20 + $0x1b0] ss:$8 sps:$4 sm:$0xff]  }
0x1508   : > { %13704 = vmatpush1.bf16.msra.mxu0 %v20647_v53  ;;  %v13930_v10 = vpack.c.bf16 %v13916_v12, %v13912_v4  ;;  %v12727_v9 = vpack.c.bf16 %v12713_v6, %v12709_v63  ;;  %v20673_v53 = vld [vmem:[#allocation17 + $0x174] ss:$8 sps:$4 sm:$0xff]   ;;  %v20679_v12 = vld [vmem:[#allocation17 + $0x184] ss:$8 sps:$4 sm:$0xff]  }
0x1509   : > { %13705 = vmatprep.subr.bf16.mxu0 %v20655_v15  ;;  %v20676_v4 = vld [vmem:[#allocation20 + $0x134] ss:$8 sps:$4 sm:$0xff]   ;;  %v20674_v63 = vld [vmem:[#allocation20 + $0x130] ss:$8 sps:$4 sm:$0xff]   ;;  %v20682_v6 = vld [vmem:[#allocation20 + $0x144] ss:$8 sps:$4 sm:$0xff]  }
0x150a   : > { %14691 = vmatprep.mubr.bf16.mxu1 %v13930_v10  ;;  %13729 = vmatprep.mubr.bf16.mxu0 %v12727_v9  ;;  %v20671_v15 = vld [vmem:[#allocation17 + $0x170] ss:$8 sps:$4 sm:$0xff]  }
0x150b   : > { %14692 = vmatmul.mubr.bf16.vlgmr.msra.gmra.mrb[132].mxu1 %v13929_v23 }
0x150c   : > { %13706 = vmatpush1.bf16.msra.mxu0 %v20653_v8  ;;  %14713 = vmatpush1.bf16.msra.mxu1 %v20656_v36  ;;  %v13920_v31 = vpop.f32.mrb[112].mxu1  ;;  %v23476_v37 = vpop.f32.mrb[112].mxu0 }
0x150d   : > { %13707 = vmatprep.subr.bf16.mxu0 %v20661_v26  ;;  %14714 = vmatprep.subr.bf16.mxu1 %v20664_v25  ;;  %v13922_v44 = vpop.f32.mrb[113].mxu1  ;;  %v23478_v38 = vpop.f32.mrb[113].mxu0 }
0x150e   : > { %v13924_v22 = vpop.f32.mrb[114].mxu1  ;;  %v23480_v24 = vpop.f32.mrb[114].mxu0 }
0x150f   : > { %v13931_v58 = vpack.c.bf16 %v13924_v22, %v13920_v31  ;;  %v13926_v57 = vpop.f32.mrb[115].mxu1  ;;  %v23484_v45 = vpop.f32.mrb[115].mxu0  ;;  %v20677_v31 = vld [vmem:[#allocation17 + $0x180] ss:$8 sps:$4 sm:$0xff]   ;;  %v20685_v22 = vld [vmem:[#allocation17 + $0x194] ss:$8 sps:$4 sm:$0xff]  }
0x1510   : > { %13708 = vmatpush1.bf16.msra.mxu0 %v20659_v47  ;;  %14715 = vmatpush1.bf16.msra.mxu1 %v20662_v21  ;;  %v13932_v32 = vpack.c.bf16 %v13926_v57, %v13922_v44  ;;  %v20683_v57 = vld [vmem:[#allocation17 + $0x190] ss:$8 sps:$4 sm:$0xff]  }
0x1511   : > { %13709 = vmatprep.subr.bf16.mxu0 %v20667_v17  ;;  %14716 = vmatprep.subr.bf16.mxu1 %v20670_v39  ;;  %v20680_v17 = vld [vmem:[#allocation20 + $0x140] ss:$8 sps:$4 sm:$0xff]   ;;  %v20736_v47 = vld [vmem:[#allocation20 + $0x1d4] ss:$8 sps:$4 sm:$0xff]  }
0x1512   : > { %14701 = vmatprep.mubr.bf16.mxu1 %v13932_v32 }
0x1513   : > { %14702 = vmatmul.mubr.bf16.gmra.mrb[136].mxu1 %v13931_v58  ;;  %v20688_v58 = vld [vmem:[#allocation20 + $0x154] ss:$8 sps:$4 sm:$0xff]  }
0x1514   : > { %13710 = vmatpush1.bf16.msra.mxu0 %v20665_v62  ;;  %14717 = vmatpush1.bf16.msra.mxu1 %v20668_v18  ;;  %v23488_v16 = vpop.f32.mrb[116].mxu1  ;;  %v23490_v23 = vpop.f32.mrb[116].mxu0  ;;  %v20686_v62 = vld [vmem:[#allocation20 + $0x150] ss:$8 sps:$4 sm:$0xff]  }
0x1515   : > { %13711 = vmatprep.subr.bf16.mxu0 %v20673_v53  ;;  %14718 = vmatprep.subr.bf16.mxu1 %v20676_v4  ;;  %v13979_v10 = vpop.f32.mrb[117].mxu1  ;;  %v23492_v8 = vpop.f32.mrb[117].mxu0  ;;  %v20691_v53 = vld [vmem:[#allocation17 + $0x1a4] ss:$8 sps:$4 sm:$0xff]  }
0x1516   : > { %v23494_v36 = vpop.f32.mrb[118].mxu1  ;;  %v23496_v9 = vpop.f32.mrb[118].mxu0  ;;  %v20694_v4 = vld [vmem:[#allocation20 + $0x164] ss:$8 sps:$4 sm:$0xff]  }
0x1517   : > { %v13983_v25 = vpop.f32.mrb[119].mxu1  ;;  %v23502_v21 = vpop.f32.mrb[119].mxu0 }
0x1518   : > { %13712 = vmatpush1.bf16.msra.mxu0 %v20671_v15  ;;  %14719 = vmatpush1.bf16.msra.mxu1 %v20674_v63  ;;  %v13997_v39 = vpack.c.bf16 %v13983_v25, %v13979_v10  ;;  %v20707_v25 = vld [vmem:[#allocation17 + $0x1d0] ss:$8 sps:$4 sm:$0xff]  }
0x1519   : > { %13713 = vmatprep.subr.bf16.mxu0 %v20679_v12  ;;  %14720 = vmatprep.subr.bf16.mxu1 %v20682_v6 }
0x151a   : > { %14744 = vmatprep.mubr.bf16.mxu1 %v13997_v39  ;;  %v20689_v39 = vld [vmem:[#allocation17 + $0x1a0] ss:$8 sps:$4 sm:$0xff]  }
0x151c   : > { %13714 = vmatpush1.bf16.msra.mxu0 %v20677_v31  ;;  %14721 = vmatpush1.bf16.msra.mxu1 %v20680_v17  ;;  %v23506_v18 = vpop.f32.mrb[120].mxu0  ;;  %v23508_v32 = vpop.f32.mrb[120].mxu1 }
0x151d   : > { %13715 = vmatprep.subr.bf16.mxu0 %v20685_v22  ;;  %14722 = vmatprep.subr.bf16.mxu1 %v20688_v58  ;;  %v23510_v15 = vpop.f32.mrb[121].mxu0  ;;  %v23512_v63 = vpop.f32.mrb[121].mxu1  ;;  %v20692_v22 = vld [vmem:[#allocation20 + $0x160] ss:$8 sps:$4 sm:$0xff]  }
0x151e   : > { %v23514_v12 = vpop.f32.mrb[122].mxu0  ;;  %v23516_v6 = vpop.f32.mrb[122].mxu1 }
0x151f   : > { %v23522_v31 = vpop.f32.mrb[123].mxu0  ;;  %v23524_v17 = vpop.f32.mrb[123].mxu1 }
0x1520   : > { %13716 = vmatpush1.bf16.msra.mxu0 %v20683_v57  ;;  %14723 = vmatpush1.bf16.msra.mxu1 %v20686_v62  ;;  %v20703_v57 = vld [vmem:[#allocation17 + $0x1c4] ss:$8 sps:$4 sm:$0xff]  }
0x1521   : > { %13717 = vmatprep.subr.bf16.mxu0 %v20691_v53  ;;  %14724 = vmatprep.subr.bf16.mxu1 %v20694_v4  ;;  %v20706_v62 = vld [vmem:[#allocation20 + $0x184] ss:$8 sps:$4 sm:$0xff]  }
0x1522   : > { %v20715_v53 = vld [vmem:[#allocation17 + $0x1e4] ss:$8 sps:$4 sm:$0xff]  }
0x1524   : > { %13718 = vmatpush1.bf16.msra.mxu0 %v20689_v39  ;;  %14725 = vmatpush1.bf16.msra.mxu1 %v20692_v22  ;;  %v23530_v43 = vpop.f32.mrb[124].mxu1  ;;  %v20701_v39 = vld [vmem:[#allocation17 + $0x1c0] ss:$8 sps:$4 sm:$0xff]  }
0x1525   : > { %13719 = vmatprep.subr.bf16.mxu0 %v20697_v48  ;;  %14726 = vmatprep.subr.bf16.mxu1 %v20700_v56  ;;  %v23532_v10 = vpop.f32.mrb[125].mxu1  ;;  %v20704_v22 = vld [vmem:[#allocation20 + $0x180] ss:$8 sps:$4 sm:$0xff]   ;;  %v20709_v48 = vld [vmem:[#allocation17 + $0x1d4] ss:$8 sps:$4 sm:$0xff]  }
0x1526   : > { %v23534_v58 = vpop.f32.mrb[126].mxu1  ;;  %v20712_v56 = vld [vmem:[#allocation20 + $0x194] ss:$8 sps:$4 sm:$0xff]  }
0x1527   : > { %v23538_v4 = vpop.f32.mrb[127].mxu1 }
0x1528   : > { %13720 = vmatpush1.bf16.msra.mxu0 %v20695_v14  ;;  %14727 = vmatpush1.bf16.msra.mxu1 %v20698_v1  ;;  %v20718_v14 = vld [vmem:[#allocation20 + $0x1a4] ss:$8 sps:$4 sm:$0xff]  }
0x1529   : > { %13721 = vmatprep.subr.bf16.mxu0 %v20703_v57  ;;  %14728 = vmatprep.subr.bf16.mxu1 %v20706_v62  ;;  %v20727_v57 = vld [vmem:[#allocation17 + $0x204] ss:$8 sps:$4 sm:$0xff]  }
0x152c   : > { %13722 = vmatpush1.bf16.msra.mxu0 %v20701_v39  ;;  %14729 = vmatpush1.bf16.msra.mxu1 %v20704_v22  ;;  %v23542_v26 = vpop.f32.mrb[128].mxu1  ;;  %v20713_v39 = vld [vmem:[#allocation17 + $0x1e0] ss:$8 sps:$4 sm:$0xff]  }
0x152d   : > { %13723 = vmatprep.subr.bf16.mxu0 %v20709_v48  ;;  %14730 = vmatprep.subr.bf16.mxu1 %v20712_v56  ;;  %v23544_v1 = vpop.f32.mrb[129].mxu1  ;;  %v20716_v22 = vld [vmem:[#allocation20 + $0x1a0] ss:$8 sps:$4 sm:$0xff]   ;;  %v20721_v48 = vld [vmem:[#allocation17 + $0x1f4] ss:$8 sps:$4 sm:$0xff]  }
0x152e   : > { %v23546_v44 = vpop.f32.mrb[130].mxu1  ;;  %v20724_v56 = vld [vmem:[#allocation20 + $0x1b4] ss:$8 sps:$4 sm:$0xff]  }
0x152f   : > { %v23550_v62 = vpop.f32.mrb[131].mxu1 }
0x1530   : > { %13724 = vmatpush1.bf16.msra.mxu0 %v20707_v25  ;;  %14731 = vmatpush1.bf16.msra.mxu1 %v20710_v19  ;;  %v20725_v19 = vld [vmem:[#allocation17 + $0x200] ss:$8 sps:$4 sm:$0xff]  }
0x1531   : > { %13725 = vmatprep.subr.bf16.mxu0 %v20715_v53  ;;  %14732 = vmatprep.subr.bf16.mxu1 %v20718_v14  ;;  %v20728_v25 = vld [vmem:[#allocation20 + $0x1c0] ss:$8 sps:$4 sm:$0xff]   ;;  %v24001_v53 = vpack.c.bf16 %v23472_v27, %v23470_v3  ;;  %v20731_v14 = vld [vmem:[#allocation17 + $0x210] ss:$8 sps:$4 sm:$0xff]   ;;  %v20745_v3 = vld [vmem:[#allocation17 + $0x234] ss:$8 sps:$4 sm:$0xff]  }
0x1532   : > { %v20748_v27 = vld [vmem:[#allocation20 + $0x1f4] ss:$8 sps:$4 sm:$0xff]  }
0x1534   : > { %13726 = vmatpush1.bf16.msra.mxu0 %v20713_v39  ;;  %14733 = vmatpush1.bf16.msra.mxu1 %v20716_v22  ;;  %v20734_v39 = vld [vmem:[#allocation20 + $0x1d0] ss:$8 sps:$4 sm:$0xff]   ;;  %v20739_v22 = vld [vmem:[#allocation17 + $0x224] ss:$8 sps:$4 sm:$0xff]  }
0x1535   : > { %13727 = vmatprep.subr.bf16.mxu0 %v20721_v48  ;;  %14734 = vmatprep.subr.bf16.mxu1 %v20724_v56  ;;  %v20742_v48 = vld [vmem:[#allocation20 + $0x1e4] ss:$8 sps:$4 sm:$0xff]   ;;  %v24004_v56 = vpack.c.bf16 %v23502_v21, %v23492_v8 }
0x1536   : > { %v20763_v8 = vld [vmem:[#allocation17 + $0x264] ss:$8 sps:$4 sm:$0xff]  }
0x1537   : > { %v20766_v21 = vld [vmem:[#allocation20 + $0x224] ss:$8 sps:$4 sm:$0xff]  }
0x1538   : > { %13728 = vmatpush1.bf16.msra.mxu0 %v20719_v35  ;;  %14735 = vmatpush1.bf16.msra.mxu1 %v20722_v5  ;;  %v24002_v35 = vpack.c.bf16 %v23484_v45, %v23478_v38  ;;  %v20740_v5 = vld [vmem:[#allocation20 + $0x1e0] ss:$8 sps:$4 sm:$0xff]   ;;  %v20754_v45 = vld [vmem:[#allocation20 + $0x204] ss:$8 sps:$4 sm:$0xff]  }
0x1539   : > { %13750 = vmatprep.subr.bf16.mxu0 %v20727_v57  ;;  %14736 = vmatprep.subr.bf16.mxu1 %v20730_v0  ;;  %v20737_v0 = vld [vmem:[#allocation17 + $0x220] ss:$8 sps:$4 sm:$0xff]   ;;  %v24003_v57 = vpack.c.bf16 %v23480_v24, %v23476_v37  ;;  %v20751_v38 = vld [vmem:[#allocation17 + $0x244] ss:$8 sps:$4 sm:$0xff]   ;;  %v20757_v37 = vld [vmem:[#allocation17 + $0x254] ss:$8 sps:$4 sm:$0xff]  }
0x153a   : > { %v20760_v24 = vld [vmem:[#allocation20 + $0x214] ss:$8 sps:$4 sm:$0xff]  }
0x153b   : > { %13730 = vmatmul.mubr.bf16.vlgmr.msra.gmra.mrb[124].mxu0 %v24001_v53  ;;  %v24005_v53 = vpack.c.bf16 %v23494_v36, %v23488_v16  ;;  %v20769_v16 = vld [vmem:[#allocation17 + $0x274] ss:$8 sps:$4 sm:$0xff]  }
0x153c   : > { %13751 = vmatpush1.bf16.msra.mxu0 %v20725_v19  ;;  %14737 = vmatpush1.bf16.msra.mxu1 %v20728_v25  ;;  %v20749_v19 = vld [vmem:[#allocation17 + $0x240] ss:$8 sps:$4 sm:$0xff]  }
0x153d   : > { %13752 = vmatprep.subr.bf16.mxu0 %v20733_v34  ;;  %14738 = vmatprep.subr.bf16.mxu1 %v20736_v47  ;;  %v20743_v34 = vld [vmem:[#allocation17 + $0x230] ss:$8 sps:$4 sm:$0xff]   ;;  %v20752_v25 = vld [vmem:[#allocation20 + $0x200] ss:$8 sps:$4 sm:$0xff]  }
0x153e   : > { %13739 = vmatprep.mubr.bf16.mxu0 %v24002_v35  ;;  %v20746_v47 = vld [vmem:[#allocation20 + $0x1f0] ss:$8 sps:$4 sm:$0xff]   ;;  %v20764_v35 = vld [vmem:[#allocation20 + $0x220] ss:$8 sps:$4 sm:$0xff]   ;;  %v20772_v36 = vld [vmem:[#allocation20 + $0x234] ss:$8 sps:$4 sm:$0xff]  }
0x1540   : > { %13753 = vmatpush1.bf16.msra.mxu0 %v20731_v14  ;;  %14739 = vmatpush1.bf16.msra.mxu1 %v20734_v39  ;;  %v20755_v14 = vld [vmem:[#allocation17 + $0x250] ss:$8 sps:$4 sm:$0xff]  }
0x1541   : > { %13754 = vmatprep.subr.bf16.mxu0 %v20739_v22  ;;  %14740 = vmatprep.subr.bf16.mxu1 %v20742_v48  ;;  %v20758_v39 = vld [vmem:[#allocation20 + $0x210] ss:$8 sps:$4 sm:$0xff]   ;;  %v24006_v22 = vpack.c.bf16 %v23524_v17, %v23512_v63  ;;  %v20761_v48 = vld [vmem:[#allocation17 + $0x260] ss:$8 sps:$4 sm:$0xff]   ;;  %v20775_v63 = vld [vmem:[#allocation17 + $0x284] ss:$8 sps:$4 sm:$0xff]  }
0x1542   : > { %v20778_v17 = vld [vmem:[#allocation20 + $0x244] ss:$8 sps:$4 sm:$0xff]  }
0x1543   : > { %13740 = vmatmul.mubr.bf16.gmra.mrb[128].mxu0 %v24003_v57  ;;  %v20773_v57 = vld [vmem:[#allocation17 + $0x280] ss:$8 sps:$4 sm:$0xff]  }
0x1544   : > { %13755 = vmatpush1.bf16.msra.mxu0 %v20737_v0  ;;  %14741 = vmatpush1.bf16.msra.mxu1 %v20740_v5  ;;  %v24007_v0 = vpack.c.bf16 %v23516_v6, %v23508_v32  ;;  %v20767_v5 = vld [vmem:[#allocation17 + $0x270] ss:$8 sps:$4 sm:$0xff]   ;;  %v20781_v32 = vld [vmem:[#allocation17 + $0x294] ss:$8 sps:$4 sm:$0xff]  }
0x1545   : > { %13756 = vmatprep.subr.bf16.mxu0 %v20745_v3  ;;  %14742 = vmatprep.subr.bf16.mxu1 %v20748_v27  ;;  %v20770_v3 = vld [vmem:[#allocation20 + $0x230] ss:$8 sps:$4 sm:$0xff]   ;;  %v24008_v27 = vpack.c.bf16 %v23538_v4, %v23532_v10  ;;  %v20784_v6 = vld [vmem:[#allocation20 + $0x254] ss:$8 sps:$4 sm:$0xff]   ;;  %v20788_v4 = vld [vmem:[#allocation20 + $0x260] ss:$8 sps:$4 sm:$0xff]  }
0x1546   : > { %13782 = vmatprep.mubr.bf16.mxu0 %v24004_v56  ;;  %v20790_v56 = vld [vmem:[#allocation20 + $0x264] ss:$8 sps:$4 sm:$0xff]  }
0x1547   : > { %v20785_v10 = vld [vmem:[#allocation17 + $0x2a0] ss:$8 sps:$4 sm:$0xff]  }
0x1548   : > { %13757 = vmatpush1.bf16.msra.mxu0 %v20743_v34  ;;  %14743 = vmatpush1.bf16.msra.mxu1 %v20746_v47  ;;  %v20776_v34 = vld [vmem:[#allocation20 + $0x240] ss:$8 sps:$4 sm:$0xff]   ;;  %v20779_v47 = vld [vmem:[#allocation17 + $0x290] ss:$8 sps:$4 sm:$0xff]  }
0x1549   : > { %13758 = vmatprep.subr.bf16.mxu0 %v20751_v38  ;;  %14765 = vmatprep.subr.bf16.mxu1 %v20754_v45  ;;  %v20782_v38 = vld [vmem:[#allocation20 + $0x250] ss:$8 sps:$4 sm:$0xff]   ;;  %v20787_v45 = vld [vmem:[#allocation17 + $0x2a4] ss:$8 sps:$4 sm:$0xff]  }
0x154b   : > { %14745 = vmatmul.mubr.bf16.vlgmr.msra.gmra.mrb[132].mxu1 %v24005_v53  ;;  %v20799_v53 = vld [vmem:[#allocation17 + $0x2c4] ss:$8 sps:$4 sm:$0xff]  }
0x154c   : > { %13759 = vmatpush1.bf16.msra.mxu0 %v20749_v19  ;;  %14766 = vmatpush1.bf16.msra.mxu1 %v20752_v25  ;;  %v20793_v19 = vld [vmem:[#allocation17 + $0x2b4] ss:$8 sps:$4 sm:$0xff]  }
0x154d   : > { %13760 = vmatprep.subr.bf16.mxu0 %v20757_v37  ;;  %14767 = vmatprep.subr.bf16.mxu1 %v20760_v24  ;;  %v20796_v25 = vld [vmem:[#allocation20 + $0x274] ss:$8 sps:$4 sm:$0xff]   ;;  %v20794_v24 = vld [vmem:[#allocation20 + $0x270] ss:$8 sps:$4 sm:$0xff]  }
0x154e   : > { %14754 = vmatprep.mubr.bf16.mxu1 %v24006_v22  ;;  %v20791_v37 = vld [vmem:[#allocation17 + $0x2b0] ss:$8 sps:$4 sm:$0xff]  }
0x154f   : > { %v20808_v22 = vld [vmem:[#allocation20 + $0x294] ss:$8 sps:$4 sm:$0xff]  }
0x1550   : > { %13761 = vmatpush1.bf16.msra.mxu0 %v20755_v14  ;;  %14768 = vmatpush1.bf16.msra.mxu1 %v20758_v39  ;;  %v20802_v14 = vld [vmem:[#allocation20 + $0x284] ss:$8 sps:$4 sm:$0xff]  }
0x1551   : > { %13762 = vmatprep.subr.bf16.mxu0 %v20763_v8  ;;  %14769 = vmatprep.subr.bf16.mxu1 %v20766_v21  ;;  %v20797_v39 = vld [vmem:[#allocation17 + $0x2c0] ss:$8 sps:$4 sm:$0xff]   ;;  %v20805_v21 = vld [vmem:[#allocation17 + $0x2d4] ss:$8 sps:$4 sm:$0xff]  }
0x1552   : > { %v20800_v8 = vld [vmem:[#allocation20 + $0x280] ss:$8 sps:$4 sm:$0xff]  }
0x1553   : > { %14755 = vmatmul.mubr.bf16.gmra.mrb[136].mxu1 %v24007_v0  ;;  %v20809_v0 = vld [vmem:[#allocation17 + $0x2e0] ss:$8 sps:$4 sm:$0xff]  }
0x1554   : > { %13763 = vmatpush1.bf16.msra.mxu0 %v20761_v48  ;;  %14770 = vmatpush1.bf16.msra.mxu1 %v20764_v35  ;;  %v20803_v48 = vld [vmem:[#allocation17 + $0x2d0] ss:$8 sps:$4 sm:$0xff]  }
0x1555   : > { %13764 = vmatprep.subr.bf16.mxu0 %v20769_v16  ;;  %14771 = vmatprep.subr.bf16.mxu1 %v20772_v36  ;;  %v20806_v35 = vld [vmem:[#allocation20 + $0x290] ss:$8 sps:$4 sm:$0xff]   ;;  %v20811_v16 = vld [vmem:[#allocation17 + $0x2e4] ss:$8 sps:$4 sm:$0xff]  }
0x1556   : > { %14797 = vmatprep.mubr.bf16.mxu1 %v24008_v27  ;;  %v20814_v36 = vld [vmem:[#allocation20 + $0x2a4] ss:$8 sps:$4 sm:$0xff]   ;;  %v20818_v27 = vld [vmem:[#allocation20 + $0x2b0] ss:$8 sps:$4 sm:$0xff]  }
0x1558   : > { %13765 = vmatpush1.bf16.msra.mxu0 %v20767_v5  ;;  %14772 = vmatpush1.bf16.msra.mxu1 %v20770_v3  ;;  %v20812_v5 = vld [vmem:[#allocation20 + $0x2a0] ss:$8 sps:$4 sm:$0xff]   ;;  %v20817_v3 = vld [vmem:[#allocation17 + $0x2f4] ss:$8 sps:$4 sm:$0xff]  }
0x1559   : > { %13766 = vmatprep.subr.bf16.mxu0 %v20775_v63  ;;  %14773 = vmatprep.subr.bf16.mxu1 %v20778_v17  ;;  %v20820_v63 = vld [vmem:[#allocation20 + $0x2b4] ss:$8 sps:$4 sm:$0xff]  }
0x155a   : > { %v20815_v17 = vld [vmem:[#allocation17 + $0x2f0] ss:$8 sps:$4 sm:$0xff]  }
0x155c   : > { %13767 = vmatpush1.bf16.msra.mxu0 %v20773_v57  ;;  %14774 = vmatpush1.bf16.msra.mxu1 %v20776_v34  ;;  %v20823_v57 = vld [vmem:[#allocation17 + $0x304] ss:$8 sps:$4 sm:$0xff]  }
0x155d   : > { %13768 = vmatprep.subr.bf16.mxu0 %v20781_v32  ;;  %14775 = vmatprep.subr.bf16.mxu1 %v20784_v6  ;;  %v20826_v34 = vld [vmem:[#allocation20 + $0x2c4] ss:$8 sps:$4 sm:$0xff]   ;;  %v20824_v6 = vld [vmem:[#allocation20 + $0x2c0] ss:$8 sps:$4 sm:$0xff]  }
0x155e   : > { %v20821_v32 = vld [vmem:[#allocation17 + $0x300] ss:$8 sps:$4 sm:$0xff]  }
0x1560   : > { %13769 = vmatpush1.bf16.msra.mxu0 %v20779_v47  ;;  %14776 = vmatpush1.bf16.msra.mxu1 %v20782_v38  ;;  %v20829_v47 = vld [vmem:[#allocation17 + $0x314] ss:$8 sps:$4 sm:$0xff]  }
0x1561   : > { %13770 = vmatprep.subr.bf16.mxu0 %v20787_v45  ;;  %14777 = vmatprep.subr.bf16.mxu1 %v20790_v56  ;;  %v20832_v38 = vld [vmem:[#allocation20 + $0x2d4] ss:$8 sps:$4 sm:$0xff]   ;;  %v24009_v45 = vpack.c.bf16 %v23496_v9, %v23490_v23 }
0x1562   : > { %v20827_v56 = vld [vmem:[#allocation17 + $0x310] ss:$8 sps:$4 sm:$0xff]   ;;  %v20841_v23 = vld [vmem:[#allocation17 + $0x334] ss:$8 sps:$4 sm:$0xff]  }
0x1563   : > { %v20844_v9 = vld [vmem:[#allocation20 + $0x2f4] ss:$8 sps:$4 sm:$0xff]  }
0x1564   : > { %13771 = vmatpush1.bf16.msra.mxu0 %v20785_v10  ;;  %14778 = vmatpush1.bf16.msra.mxu1 %v20788_v4  ;;  %v20830_v10 = vld [vmem:[#allocation20 + $0x2d0] ss:$8 sps:$4 sm:$0xff]   ;;  %v20835_v4 = vld [vmem:[#allocation17 + $0x324] ss:$8 sps:$4 sm:$0xff]  }
0x1565   : > { %13772 = vmatprep.subr.bf16.mxu0 %v20793_v19  ;;  %14779 = vmatprep.subr.bf16.mxu1 %v20796_v25  ;;  %v20838_v19 = vld [vmem:[#allocation20 + $0x2e4] ss:$8 sps:$4 sm:$0xff]   ;;  %v24010_v25 = vpack.c.bf16 %v23522_v31, %v23510_v15  ;;  %v20842_v15 = vld [vmem:[#allocation20 + $0x2f0] ss:$8 sps:$4 sm:$0xff]  }
0x1566   : > { %v20847_v31 = vld [vmem:[#allocation17 + $0x344] ss:$8 sps:$4 sm:$0xff]  }
0x1568   : > { %13773 = vmatpush1.bf16.msra.mxu0 %v20791_v37  ;;  %14780 = vmatpush1.bf16.msra.mxu1 %v20794_v24  ;;  %v20833_v37 = vld [vmem:[#allocation17 + $0x320] ss:$8 sps:$4 sm:$0xff]  }
0x1569   : > { %13774 = vmatprep.subr.bf16.mxu0 %v20799_v53  ;;  %14781 = vmatprep.subr.bf16.mxu1 %v20802_v14  ;;  %v20836_v24 = vld [vmem:[#allocation20 + $0x2e0] ss:$8 sps:$4 sm:$0xff]   ;;  %v24011_v53 = vpack.c.bf16 %v23514_v12, %v23506_v18  ;;  %v24012_v14 = vpack.c.bf16 %v23454_v42, %v23448_v28  ;;  %v24013_v18 = vpack.c.bf16 %v23534_v58, %v23530_v43  ;;  %v20848_v12 = vld [vmem:[#allocation17 + $0x350] ss:$8 sps:$4 sm:$0xff]   ;;  %v24016_v58 = vmov 0  }
0x156a   : > { %v24014_v28 = vpack.c.bf16 %v23550_v62, %v23544_v1  ;;  %v20853_v42 = vld [vmem:[#allocation17 + $0x364] ss:$8 sps:$4 sm:$0xff]   ;;  %v20862_v1 = vld [vmem:[#allocation17 + $0x394] ss:$8 sps:$4 sm:$0xff]   ;;  %v20860_v62 = vld [vmem:[#allocation17 + $0x390] ss:$8 sps:$4 sm:$0xff]  }
0x156b   : > { %v20859_v43 = vld [vmem:[#allocation17 + $0x384] ss:$8 sps:$4 sm:$0xff]  }
0x156c   : > { %13775 = vmatpush1.bf16.msra.mxu0 %v20797_v39  ;;  %14782 = vmatpush1.bf16.msra.mxu1 %v20800_v8  ;;  %v20839_v39 = vld [vmem:[#allocation17 + $0x330] ss:$8 sps:$4 sm:$0xff]   ;;  %v20845_v8 = vld [vmem:[#allocation17 + $0x340] ss:$8 sps:$4 sm:$0xff]  }
0x156d   : > { %13776 = vmatprep.subr.bf16.mxu0 %v20805_v21  ;;  %14783 = vmatprep.subr.bf16.mxu1 %v20808_v22  ;;  %v20850_v21 = vld [vmem:[#allocation17 + $0x354] ss:$8 sps:$4 sm:$0xff]   ;;  %v20851_v22 = vld [vmem:[#allocation17 + $0x360] ss:$8 sps:$4 sm:$0xff]  }
0x1570   : > { %13777 = vmatpush1.bf16.msra.mxu0 %v20803_v48  ;;  %14784 = vmatpush1.bf16.msra.mxu1 %v20806_v35  ;;  %v20856_v48 = vld [vmem:[#allocation17 + $0x374] ss:$8 sps:$4 sm:$0xff]   ;;  %v24015_v35 = vpack.c.bf16 %v23546_v44, %v23542_v26  ;;  %v20866_v26 = vld [vmem:[#allocation17 + $0x3b0] ss:$8 sps:$4 sm:$0xff]   ;;  %v20871_v44 = vld [vmem:[#allocation17 + $0x3c4] ss:$8 sps:$4 sm:$0xff]  }
0x1571   : > { %13778 = vmatprep.subr.bf16.mxu0 %v20811_v16  ;;  %14785 = vmatprep.subr.bf16.mxu1 %v20814_v36  ;;  %v20854_v16 = vld [vmem:[#allocation17 + $0x370] ss:$8 sps:$4 sm:$0xff]   ;;  %v20857_v36 = vld [vmem:[#allocation17 + $0x380] ss:$8 sps:$4 sm:$0xff]  }
0x1574   : > { %13779 = vmatpush1.bf16.msra.mxu0 %v20809_v0  ;;  %14786 = vmatpush1.bf16.msra.mxu1 %v20812_v5  ;;  %v20865_v0 = vld [vmem:[#allocation17 + $0x3a4] ss:$8 sps:$4 sm:$0xff]   ;;  %v20863_v5 = vld [vmem:[#allocation17 + $0x3a0] ss:$8 sps:$4 sm:$0xff]  }
0x1575   : > { %13780 = vmatprep.subr.bf16.mxu0 %v20817_v3  ;;  %14787 = vmatprep.subr.bf16.mxu1 %v20820_v63  ;;  %v20868_v3 = vld [vmem:[#allocation17 + $0x3b4] ss:$8 sps:$4 sm:$0xff]   ;;  %v20869_v63 = vld [vmem:[#allocation17 + $0x3c0] ss:$8 sps:$4 sm:$0xff]  }
0x1578   : > { %13781 = vmatpush1.bf16.msra.mxu0 %v20815_v17  ;;  %14788 = vmatpush1.bf16.msra.mxu1 %v20818_v27  ;;  %v20874_v17 = vld [vmem:[#allocation17 + $0x3d4] ss:$8 sps:$4 sm:$0xff]   ;;  %v20872_v27 = vld [vmem:[#allocation17 + $0x3d0] ss:$8 sps:$4 sm:$0xff]  }
0x1579   : > { %13803 = vmatprep.subr.bf16.mxu0 %v20823_v57  ;;  %14789 = vmatprep.subr.bf16.mxu1 %v20826_v34  ;;  %v20877_v57 = vld [vmem:[#allocation17 + $0x3e4] ss:$8 sps:$4 sm:$0xff]   ;;  %v20875_v34 = vld [vmem:[#allocation17 + $0x3e0] ss:$8 sps:$4 sm:$0xff]  }
0x157b   : > { %13783 = vmatmul.mubr.bf16.vlgmr.msra.gmra.mrb[124].mxu0 %v24009_v45  ;;  %v24021_v45 = vpack.c.bf16 %v23462_v60, %v23458_v40 }
0x157c   : > { %13804 = vmatpush1.bf16.msra.mxu0 %v20821_v32  ;;  %14790 = vmatpush1.bf16.msra.mxu1 %v20824_v6  ;;  %v20880_v32 = vld [vmem:[#allocation17 + $0x3f4] ss:$8 sps:$4 sm:$0xff]   ;;  %v20878_v6 = vld [vmem:[#allocation17 + $0x3f0] ss:$8 sps:$4 sm:$0xff]  }
0x157d   : > { %13805 = vmatprep.subr.bf16.mxu0 %v20829_v47  ;;  %14791 = vmatprep.subr.bf16.mxu1 %v20832_v38  ;;  %v24019_v47 = vpack.c.bf16 %v23450_v7, %v23446_v41  ;;  %v24020_v38 = vpack.c.bf16 %v23466_v20, %v23460_v55  ;;  %v12992_v41 = vld [vmem:[%s24017_s22] sm:$0x3]  ;;  %s23853_s22 = scalar_lea.sflag [#allocation4], %s1273_s26 }
0x157e   : > { %13792 = vmatprep.mubr.bf16.mxu0 %v24010_v25  ;;  %v14167_v7 = vld [vmem:[%s24018_s4] sm:$0x3]  ;;  %v13001_v55 = vrot.slane %v12992_v41, %v22239_v33  ;;  %s21397_s4 = scalar_lea.vmem %s23845_s28, 1024 }
0x157f   : > { %v14172_v20 = vrot.slane %v14167_v7, %v22235_v30  ;;  %v14176_v40 = vrot.slane %v14167_v7, %v22239_v33  ;;  %p21398_p9 = scmp.ne.s32.totalorder %s23845_s28, %s21397_s4  ;;  %p21405_p3 = scmp.lt.s32.totalorder %s21403_s7, %s21397_s4 }
0x1580   : > { %13806 = vmatpush1.bf16.msra.mxu0 %v20827_v56  ;;  %14792 = vmatpush1.bf16.msra.mxu1 %v20830_v10 }
0x1581   : > { %13807 = vmatprep.subr.bf16.mxu0 %v20835_v4  ;;  %14793 = vmatprep.subr.bf16.mxu1 %v20838_v19  ;;  %p21399_p12 = pnand %p21398_p9, %p24026_p10  ;;  %p21406_p4 = por %p21405_p3, %p21404_p2 }
0x1583   : > { %13793 = vmatmul.mubr.bf16.gmra.mrb[128].mxu0 %v24011_v53  ;;  %p21400_p1 = pneg %p21399_p12 }
0x1584   : > { %13808 = vmatpush1.bf16.msra.mxu0 %v20833_v37  ;;  %13835 = vmatprep.mubr.bf16.mxu0 %v24012_v14 }
0x1585   : > { %14794 = vmatpush1.bf16.msra.mxu1 %v20836_v24  ;;  %13809 = vmatprep.subr.bf16.mxu0 %v20841_v23  ;;  %p21407_p7 = pnand %p21406_p4, %p21400_p1 }
0x1586   : > { %14795 = vmatprep.subr.bf16.mxu1 %v20844_v9  ;;  %v12997_v9 = vrot.slane %v12992_v41, %v22235_v30 }
0x1588   : > { %13810 = vmatpush1.bf16.msra.mxu0 %v20839_v39 }
0x1589   : > { %14796 = vmatpush1.bf16.msra.mxu1 %v20842_v15  ;;  %13811 = vmatprep.subr.bf16.mxu0 %v20847_v31 }
0x158c   : > { %14798 = vmatmul.mubr.bf16.vlgmr.msra.gmra.mrb[132].mxu1 %v24013_v18  ;;  %13812 = vmatpush1.bf16.msra.mxu0 %v20845_v8 }
0x158d   : > { %13813 = vmatprep.subr.bf16.mxu0 %v20850_v21  ;;  %14807 = vmatprep.mubr.bf16.mxu1 %v24014_v28 }
0x1590   : > { %13814 = vmatpush1.bf16.msra.mxu0 %v20848_v12 }
0x1591   : > { %13815 = vmatprep.subr.bf16.mxu0 %v20853_v42 }
0x1594   : > { %14808 = vmatmul.mubr.bf16.gmra.mrb[136].mxu1 %v24015_v35  ;;  %13816 = vmatpush1.bf16.msra.mxu0 %v20851_v22 }
0x1595   : > { %13817 = vmatprep.subr.bf16.mxu0 %v20856_v48  ;;  %14886 = vmatprep.mubr.bf16.mxu1 %v24016_v58 }
0x1598   : > { %13818 = vmatpush1.bf16.msra.mxu0 %v20854_v16 }
0x1599   : > { %13819 = vmatprep.subr.bf16.mxu0 %v20859_v43 }
0x159c   : > { %13820 = vmatpush1.bf16.msra.mxu0 %v20857_v36 }
0x159d   : > { %13821 = vmatprep.subr.bf16.mxu0 %v20862_v1 }
0x15a0   : > { %13822 = vmatpush1.bf16.msra.mxu0 %v20860_v62 }
0x15a1   : > { %13823 = vmatprep.subr.bf16.mxu0 %v20865_v0 }
0x15a4   : > { %13824 = vmatpush1.bf16.msra.mxu0 %v20863_v5 }
0x15a5   : > { %13825 = vmatprep.subr.bf16.mxu0 %v20868_v3 }
0x15a8   : > { %13826 = vmatpush1.bf16.msra.mxu0 %v20866_v26 }
0x15a9   : > { %13827 = vmatprep.subr.bf16.mxu0 %v20871_v44 }
0x15ac   : > { %13828 = vmatpush1.bf16.msra.mxu0 %v20869_v63 }
0x15ad   : > { %13829 = vmatprep.subr.bf16.mxu0 %v20874_v17 }
0x15b0   : > { %13830 = vmatpush1.bf16.msra.mxu0 %v20872_v27 }
0x15b1   : > { %13831 = vmatprep.subr.bf16.mxu0 %v20877_v57 }
0x15b4   : > { %13832 = vmatpush1.bf16.msra.mxu0 %v20875_v34 }
0x15b5   : > { %13833 = vmatprep.subr.bf16.mxu0 %v20880_v32 }
0x15b8   : > { %13834 = vmatpush1.bf16.msra.mxu0 %v20878_v6 }
0x15bb   : > { %13836 = vmatmul.mubr.bf16.vlgmr.msra.gmra.mrb[124].mxu0 %v24019_v47 }
0x15bc   : > { %13845 = vmatprep.mubr.bf16.mxu0 %v24020_v38 }
0x15c3   : > { %13846 = vmatmul.mubr.bf16.gmra.mrb[128].mxu0 %v24021_v45 }
0x15c4   : > { %14987 = vmatprep.mubr.bf16.mxu0 %v24016_v58 }
0x165f   : > { %v14799_v56 = vpop.f32.mrb[132].mxu1 }
0x1660   : > { %v14801_v10 = vpop.f32.mrb[133].mxu1  ;;  %v18394_v31 = vadd.f32 %v14799_v56, %v14172_v20 }
0x1661   : > { %v14803_v4 = vpop.f32.mrb[134].mxu1  ;;  %v18395_v12 = vadd.f32 %v14801_v10, %v14176_v40 }
0x1662   : > { %v14805_v19 = vpop.f32.mrb[135].mxu1  ;;  %v18396_v22 = vadd.f32 %v14803_v4, %v14172_v20 }
0x1663   : > { %v18397_v16 = vadd.f32 %v14805_v19, %v14176_v40 }
0x1667   : > { %v14809_v25 = vpop.f32.mrb[136].mxu1 }
0x1668   : > { %v14811_v37 = vpop.f32.mrb[137].mxu1  ;;  %v18398_v63 = vadd.f32 %v14809_v25, %v14172_v20 }
0x1669   : > { %v14813_v24 = vpop.f32.mrb[138].mxu1  ;;  %v18399_v34 = vadd.f32 %v14811_v37, %v14176_v40  ;;  %v23621_v37 = vadd.s32 32, %v22042_v2 }
0x166a   : > { %v14815_v23 = vpop.f32.mrb[139].mxu1  ;;  %v18400_v47 = vadd.f32 %v14813_v24, %v14172_v20  ;;  %v23624_v24 = vadd.s32 40, %v22042_v2 }
0x166b   : > { %v18401_v56 = vadd.f32 %v14815_v23, %v14176_v40  ;;  %v20881_v23 = vld [vmem:[%s24022_s8 + $0x40] sm:$0xff]   ;;  %vm14834_vm2 = vcmp.eq.s32.totalorder %v23179_v29, %v23621_v37  ;;  %vm14935_vm3 = vcmp.eq.s32.totalorder %v23174_v13, %v23621_v37  ;;  %vm15036_vm5 = vcmp.eq.s32.totalorder %v23197_v50, %v23621_v37 }
0x166c   : > { %vm14835_vm13 = vcmp.eq.s32.totalorder %v23179_v29, %v23624_v24  ;;  %vm14936_vm6 = vcmp.eq.s32.totalorder %v23174_v13, %v23624_v24  ;;  %vm15037_vm8 = vcmp.eq.s32.totalorder %v23197_v50, %v23624_v24  ;;  %vm15137_vm12 = vcmp.eq.s32.totalorder %v23195_v49, %v23621_v37 }
0x166d   : > { %vm15138_vm10 = vcmp.eq.s32.totalorder %v23195_v49, %v23624_v24 }
0x168e   : > { %v13837_v60 = vpop.f32.mrb[124].mxu0 }
0x168f   : > { %v18386_v53 = vadd.f32 %v13837_v60, %v12997_v9  ;;  %v13839_v14 = vpop.f32.mrb[125].mxu0  ;;  %v23649_v60 = vadd.s32 48, %v22042_v2 }
0x1690   : > { %v18387_v39 = vadd.f32 %v13839_v14, %v13001_v55  ;;  %v13841_v15 = vpop.f32.mrb[126].mxu0 }
0x1691   : > { %v13856_v8 = vmax.f32 %v18386_v53, 0.0  ;;  %v18388_v21 = vadd.f32 %v13841_v15, %v12997_v9  ;;  %v13843_v18 = vpop.f32.mrb[127].mxu0  ;;  %vm14836_vm7 = vcmp.eq.s32.totalorder %v23179_v29, %v23649_v60  ;;  %vm14937_vm15 = vcmp.eq.s32.totalorder %v23174_v13, %v23649_v60 }
0x1692   : > { %v13857_v28 = vmax.f32 %v18387_v39, 0.0  ;;  %v18389_v42 = vadd.f32 %v13843_v18, %v13001_v55  ;;  %v20886_v18 = vld [vmem:[%s24022_s8 + $0xc8] sm:$0xff]   ;;  %vm15038_vm14 = vcmp.eq.s32.totalorder %v23197_v50, %v23649_v60 }
0x1693   : > { %v14818_v48 = vadd.f32 %v18394_v31, %v13856_v8  ;;  %v13858_v35 = vmax.f32 %v18388_v21, 0.0  ;;  %v20883_v31 = vld [vmem:[%s24022_s8] sm:$0xff]   ;;  %v20885_v21 = vld [vmem:[%s24022_s8 + $0x48] sm:$0xff]  }
0x1694   : > { %v14819_v43 = vadd.f32 %v18395_v12, %v13857_v28  ;;  %v13859_v30 = vmax.f32 %v18389_v42, 0.0  ;;  %v20884_v8 = vld [vmem:[%s24022_s8 + $0x80] sm:$0xff]   ;;  %v20887_v12 = vld [vmem:[%s24022_s8 + $0x8] sm:$0xff]   ;;  %v20889_v42 = vld [vmem:[%s24022_s8 + $0x50] sm:$0xff]  }
0x1695   : > { %v14820_v36 = vadd.f32 %v18396_v22, %v13858_v35  ;;  %v20888_v28 = vld [vmem:[%s24022_s8 + $0x88] sm:$0xff]   ;;  %v20890_v22 = vld [vmem:[%s24022_s8 + $0xd0] sm:$0xff]   ;;  %v20894_v35 = vld [vmem:[%s24022_s8 + $0xd8] sm:$0xff]  }
0x1696   : > { %v14821_v33 = vadd.f32 %v18397_v16, %v13859_v30  ;;  %v13847_v1 = vpop.f32.mrb[128].mxu0  ;;  %v24024_v16 = vld [vmem:[#allocation64_spill] sm:$0xff] }
0x1697   : > { %v14826_v62 = vpack.c.bf16 %v14820_v36, %v14818_v48  ;;  %v18390_v0 = vadd.f32 %v13847_v1, %v12997_v9  ;;  %v13849_v5 = vpop.f32.mrb[129].mxu0  ;;  %v20893_v48 = vld [vmem:[%s24022_s8 + $0x58] sm:$0xff]  }
0x1698   : > { %v14827_v3 = vpack.c.bf16 %v14821_v33, %v14819_v43  ;;  %v18391_v26 = vadd.f32 %v13849_v5, %v13001_v55  ;;  %v13851_v44 = vpop.f32.mrb[130].mxu0  ;;  %v20895_v33 = vld [vmem:[%s24022_s8 + $0x18] sm:$0xff]  }
0x1699   : > { %v13860_v17 = vmax.f32 %v18390_v0, 0.0  ;;  %v18392_v27 = vadd.f32 %v13851_v44, %v12997_v9  ;;  %v13853_v57 = vpop.f32.mrb[131].mxu0  ;;  %v20882_v9 = vld [vmem:[%s24022_s8 + $0xc0] sm:$0xff]   ;;  %v20896_v1 = vld [vmem:[%s24022_s8 + $0x98] sm:$0xff]  }
0x169a   : > { %v13861_v32 = vmax.f32 %v18391_v26, 0.0  ;;  %v18393_v6 = vadd.f32 %v13853_v57, %v13001_v55  ;;  %14854 = vmatprep.subr.bf16.mxu1 %v14827_v3  ;;  %14955 = vmatprep.subr.bf16.mxu0 %v14827_v3  ;;  %v20898_v0 = vld [vmem:[%s24022_s8 + $0xe0] sm:$0xff]  }
0x169b   : > { %v14822_v38 = vadd.f32 %v18398_v63, %v13860_v17  ;;  %v13862_v45 = vmax.f32 %v18392_v27, 0.0  ;;  %14855 = vmatpush1.bf16.msra.mxu1 %v14826_v62  ;;  %14956 = vmatpush1.bf16.msra.mxu0 %v14826_v62  ;;  %v20899_v26 = vld [vmem:[%s24022_s8 + $0x20] sm:$0xff]   ;;  %v20901_v63 = vld [vmem:[%s24022_s8 + $0x68] sm:$0xff]  }
0x169c   : > { %v14823_v10 = vadd.f32 %v18399_v34, %v13861_v32  ;;  %v13863_v4 = vmax.f32 %v18393_v6, 0.0  ;;  %v20900_v44 = vld [vmem:[%s24022_s8 + $0xa0] sm:$0xff]   ;;  %v20902_v17 = vld [vmem:[%s24022_s8 + $0xe8] sm:$0xff]  }
0x169d   : > { %v14824_v19 = vadd.f32 %v18400_v47, %v13862_v45  ;;  %v20903_v32 = vld [vmem:[%s24022_s8 + $0x28] sm:$0xff]   ;;  %v20906_v47 = vld [vmem:[%s24022_s8 + $0xf0] sm:$0xff]  }
0x169e   : > { %v14825_v41 = vadd.f32 %v18401_v56, %v13863_v4  ;;  %v20904_v6 = vld [vmem:[%s24022_s8 + $0xa8] sm:$0xff]   ;;  %v20908_v56 = vld [vmem:[%s24022_s8 + $0xb0] sm:$0xff]   ;;  %v20910_v4 = vld [vmem:[%s24022_s8 + $0xf8] sm:$0xff]  }
0x169f   : > { %v14828_v7 = vpack.c.bf16 %v14824_v19, %v14822_v38  ;;  %v20911_v19 = vld [vmem:[%s24022_s8 + $0x38] sm:$0xff]  }
0x16a0   : > { %v14829_v25 = vpack.c.bf16 %v14825_v41, %v14823_v10  ;;  %v20909_v10 = vld [vmem:[%s24022_s8 + $0x78] sm:$0xff]  }
0x16a1   : > { %v20912_v41 = vld [vmem:[%s24022_s8 + $0xb8] sm:$0xff]  }
0x16a2   : > { %14856 = vmatprep.subr.bf16.mxu1 %v14829_v25  ;;  %14957 = vmatprep.subr.bf16.mxu0 %v14829_v25 }
0x16a3   : > { %14857 = vmatpush1.bf16.msra.mxu1 %v14828_v7  ;;  %14958 = vmatpush1.bf16.msra.mxu0 %v14828_v7 }
0x16a4   : > { %15056 = vmatprep.subr.bf16.mxu1 %v14827_v3  ;;  %15157 = vmatprep.subr.bf16.mxu0 %v14827_v3 }
0x16a6   : > { %17897 = vmatmul.mubr.msk.bf16.vlgmr.msra.gmra.mrb[140].mxu1 %vm2462_vm1, %v23202_v52  ;;  %17901 = vmatmul.mubr.msk.bf16.vlgmr.msra.gmra.mrb[132].mxu0 %vm2462_vm1, %v23204_v11  ;;  %v24023_v52 = vmov 0.0  }
0x16a7   : > { %15057 = vmatpush1.bf16.msra.mxu1 %v14826_v62  ;;  %15158 = vmatpush1.bf16.msra.mxu0 %v14826_v62  ;;  %v14838_v11 = vsel %vm14834_vm2, 1.0, %v24023_v52  ;;  %v14839_v55 = vsel %vm14835_vm13, 1.0, %v24023_v52  ;;  %v14939_v20 = vsel %vm14935_vm3, 1.0, %v24023_v52  ;;  %v14940_v40 = vsel %vm14936_vm6, 1.0, %v24023_v52  ;;  %v20897_v62 = vld [vmem:[%s24022_s8 + $0x60] sm:$0xff]  }
0x16a8   : > { %15058 = vmatprep.subr.bf16.mxu1 %v14829_v25  ;;  %15159 = vmatprep.subr.bf16.mxu0 %v14829_v25  ;;  %v14842_v53 = vpack.c.bf16 %v14839_v55, %v14838_v11  ;;  %v14941_v14 = vsel %vm14937_vm15, 1.0, %v24023_v52  ;;  %v15040_v43 = vsel %vm15036_vm5, 1.0, %v24023_v52  ;;  %v15041_v30 = vsel %vm15037_vm8, 1.0, %v24023_v52  ;;  %v20914_v25 = vld [vmem:[%s24022_s8 + $0x1c0] sm:$0xff]  }
0x16a9   : > { %14896 = vmatprep.mubr.bf16.mxu1 %v24016_v58  ;;  %14997 = vmatprep.mubr.bf16.mxu0 %v24016_v58  ;;  %v15142_v36 = vsel %vm15138_vm10, 1.0, %v24023_v52  ;;  %v15044_v5 = vpack.c.bf16 %v15041_v30, %v15040_v43  ;;  %vm15139_vm2 = vcmp.eq.s32.totalorder %v23195_v49, %v23649_v60  ;;  %v15042_v27 = vsel %vm15038_vm14, 1.0, %v24023_v52  ;;  %v20923_v43 = vld [vmem:[%s24022_s8 + $0x110] sm:$0xff]  }
0x16aa   : > { %v15143_v34 = vsel %vm15139_vm2, 1.0, %v24023_v52  ;;  %v20924_v30 = vld [vmem:[%s24022_s8 + $0x190] sm:$0xff]  }
0x16ab   : > { %15059 = vmatpush1.bf16.msra.mxu1 %v14828_v7  ;;  %15160 = vmatpush1.bf16.msra.mxu0 %v14828_v7  ;;  %v20913_v7 = vld [vmem:[%s24022_s8 + $0x140] sm:$0xff]  }
0x16ac   : > { %18178 = vmatprep.subr.bf16.mxu1 %v20881_v23  ;;  %18218 = vmatprep.subr.bf16.mxu0 %v20882_v9 }
0x16ae   : > { %17898 = vmatmul.mubr.msk.bf16.gmra.mrb[144].mxu1 %vm2462_vm1, %v23368_v61  ;;  %17902 = vmatmul.mubr.msk.bf16.gmra.mrb[136].mxu0 %vm2462_vm1, %v23400_v59  ;;  %v23652_v61 = vadd.s32 56, %v22042_v2  ;;  %v14943_v59 = vpack.c.bf16 %v14940_v40, %v14939_v20  ;;  %v14840_v2 = vsel %vm14836_vm7, 1.0, %v24023_v52 }
0x16af   : > { %14906 = vmatprep.mubr.bf16.mxu1 %v24016_v58  ;;  %15007 = vmatprep.mubr.bf16.mxu0 %v24016_v58 }
0x16b0   : > { %vm14837_vm9 = vcmp.eq.s32.totalorder %v23179_v29, %v23652_v61  ;;  %vm14938_vm0 = vcmp.eq.s32.totalorder %v23174_v13, %v23652_v61  ;;  %vm15039_vm11 = vcmp.eq.s32.totalorder %v23197_v50, %v23652_v61  ;;  %vm15140_vm13 = vcmp.eq.s32.totalorder %v23195_v49, %v23652_v61  ;;  %v20905_v50 = vld [vmem:[%s24022_s8 + $0x70] sm:$0xff]  }
0x16b1   : > { %v14841_v29 = vsel %vm14837_vm9, 1.0, %v24023_v52  ;;  %v14942_v39 = vsel %vm14938_vm0, 1.0, %v24023_v52  ;;  %v15043_v57 = vsel %vm15039_vm11, 1.0, %v24023_v52  ;;  %v20907_v49 = vld [vmem:[%s24022_s8 + $0x30] sm:$0xff]  }
0x16b2   : > { %v14843_v13 = vpack.c.bf16 %v14841_v29, %v14840_v2  ;;  %v14944_v15 = vpack.c.bf16 %v14942_v39, %v14941_v14  ;;  %v15045_v38 = vpack.c.bf16 %v15043_v57, %v15042_v27  ;;  %v20916_v2 = vld [vmem:[%s24022_s8 + $0x180] sm:$0xff]   ;;  %v20917_v29 = vld [vmem:[%s24022_s8 + $0x148] sm:$0xff]  }
0x16b3   : > { %v20918_v14 = vld [vmem:[%s24022_s8 + $0x1c8] sm:$0xff]  }
0x16b6   : > { %17899 = vmatmul.mubr.msk.bf16.gmra.mrb[148].mxu1 %vm2462_vm1, %v14842_v53  ;;  %17903 = vmatmul.mubr.msk.bf16.gmra.mrb[140].mxu0 %vm2462_vm1, %v14943_v59  ;;  %v20915_v59 = vld [vmem:[%s24022_s8 + $0x100] sm:$0xff]  }
0x16b7   : > { %14916 = vmatprep.mubr.bf16.mxu1 %v24016_v58  ;;  %15017 = vmatprep.mubr.bf16.mxu0 %v24016_v58 }
0x16be   : > { %17900 = vmatmul.mubr.msk.bf16.gmra.mrb[152].mxu1 %vm2462_vm1, %v14843_v13  ;;  %17904 = vmatmul.mubr.msk.bf16.gmra.mrb[144].mxu0 %vm2462_vm1, %v14944_v15  ;;  %v20919_v15 = vld [vmem:[%s24022_s8 + $0x108] sm:$0xff]  }
0x16bf   : > { %15088 = vmatprep.mubr.bf16.mxu1 %v24016_v58  ;;  %15189 = vmatprep.mubr.bf16.mxu0 %v24016_v58 }
0x16c6   : > { %17905 = vmatmul.mubr.msk.bf16.vlgmr.msra.gmra.mrb[156].mxu1 %vm2462_vm1, %v23230_v46  ;;  %17909 = vmatmul.mubr.msk.bf16.vlgmr.msra.gmra.mrb[148].mxu0 %vm2462_vm1, %v23228_v51  ;;  %v20891_v51 = vld [vmem:[%s24022_s8 + $0x10] sm:$0xff]  }
0x16c7   : > { %15098 = vmatprep.mubr.bf16.mxu1 %v24016_v58  ;;  %15199 = vmatprep.mubr.bf16.mxu0 %v24016_v58  ;;  %v20892_v46 = vld [vmem:[%s24022_s8 + $0x90] sm:$0xff]  }
0x16c8   : > { %18179 = vmatpush3.bf16.msra.mxu1 %v20883_v31  ;;  %18219 = vmatpush3.bf16.msra.mxu0 %v20884_v8  ;;  %v20920_v31 = vld [vmem:[%s24022_s8 + $0x188] sm:$0xff]  }
0x16c9   : > { %18180 = vmatprep.subr.bf16.mxu1 %v20885_v21  ;;  %18220 = vmatprep.subr.bf16.mxu0 %v20886_v18  ;;  %v20921_v18 = vld [vmem:[%s24022_s8 + $0x150] sm:$0xff]  }
0x16cc   : > { %18181 = vmatpush3.bf16.msra.mxu1 %v20887_v12  ;;  %18221 = vmatpush3.bf16.msra.mxu0 %v20888_v28  ;;  %v20922_v12 = vld [vmem:[%s24022_s8 + $0x1d0] sm:$0xff]  }
0x16cd   : > { %18182 = vmatprep.subr.bf16.mxu1 %v20889_v42  ;;  %18222 = vmatprep.subr.bf16.mxu0 %v20890_v22 }
0x16ce   : > { %17906 = vmatmul.mubr.msk.bf16.gmra.mrb[160].mxu1 %vm2462_vm1, %v23429_v54  ;;  %17910 = vmatmul.mubr.msk.bf16.gmra.mrb[152].mxu0 %vm2462_vm1, %v24024_v16  ;;  %v15141_v54 = vsel %vm15137_vm12, 1.0, %v24023_v52 }
0x16cf   : > { %15108 = vmatprep.mubr.bf16.mxu1 %v24016_v58  ;;  %15209 = vmatprep.mubr.bf16.mxu0 %v24016_v58  ;;  %v15145_v3 = vpack.c.bf16 %v15142_v36, %v15141_v54  ;;  %v20925_v54 = vld [vmem:[%s24022_s8 + $0x158] sm:$0xff]  }
0x16d0   : > { %18183 = vmatpush3.bf16.msra.mxu1 %v20891_v51  ;;  %18223 = vmatpush3.bf16.msra.mxu0 %v20892_v46  ;;  %v20926_v36 = vld [vmem:[%s24022_s8 + $0x1d8] sm:$0xff]  }
0x16d1   : > { %18184 = vmatprep.subr.bf16.mxu1 %v20893_v48  ;;  %18224 = vmatprep.subr.bf16.mxu0 %v20894_v35 }
0x16d4   : > { %18185 = vmatpush3.bf16.msra.mxu1 %v20895_v33  ;;  %18225 = vmatpush3.bf16.msra.mxu0 %v20896_v1 }
0x16d5   : > { %18186 = vmatprep.subr.bf16.mxu1 %v20897_v62  ;;  %18226 = vmatprep.subr.bf16.mxu0 %v20898_v0  ;;  %v20927_v62 = vld [vmem:[%s24022_s8 + $0x118] sm:$0xff]  }
0x16d6   : > { %17907 = vmatmul.mubr.msk.bf16.gmra.mrb[164].mxu1 %vm2462_vm1, %v15044_v5  ;;  %17911 = vmatmul.mubr.msk.bf16.gmra.mrb[156].mxu0 %vm2462_vm1, %v15145_v3  ;;  %v20928_v0 = vld [vmem:[%s24022_s8 + $0x198] sm:$0xff]  }
0x16d7   : > { %15118 = vmatprep.mubr.bf16.mxu1 %v24016_v58  ;;  %15219 = vmatprep.mubr.bf16.mxu0 %v24016_v58  ;;  %v15144_v58 = vsel %vm15140_vm13, 1.0, %v24023_v52 }
0x16d8   : > { %18187 = vmatpush3.bf16.msra.mxu1 %v20899_v26  ;;  %18227 = vmatpush3.bf16.msra.mxu0 %v20900_v44  ;;  %v15146_v45 = vpack.c.bf16 %v15144_v58, %v15143_v34  ;;  %v20929_v26 = vld [vmem:[%s24022_s8 + $0x160] sm:$0xff]  }
0x16d9   : > { %18188 = vmatprep.subr.bf16.mxu1 %v20901_v63  ;;  %18228 = vmatprep.subr.bf16.mxu0 %v20902_v17  ;;  %v20930_v44 = vld [vmem:[%s24022_s8 + $0x1e0] sm:$0xff]  }
0x16dc   : > { %18189 = vmatpush3.bf16.msra.mxu1 %v20903_v32  ;;  %18229 = vmatpush3.bf16.msra.mxu0 %v20904_v6 }
0x16dd   : > { %18190 = vmatprep.subr.bf16.mxu1 %v20905_v50  ;;  %18230 = vmatprep.subr.bf16.mxu0 %v20906_v47  ;;  %v20931_v50 = vld [vmem:[%s24022_s8 + $0x120] sm:$0xff]  }
0x16de   : > { %17908 = vmatmul.mubr.msk.bf16.gmra.mrb[168].mxu1 %vm2462_vm1, %v15045_v38  ;;  %17912 = vmatmul.mubr.msk.bf16.gmra.mrb[160].mxu0 %vm2462_vm1, %v15146_v45  ;;  %v20932_v47 = vld [vmem:[%s24022_s8 + $0x1a0] sm:$0xff]   ;;  %v20933_v38 = vld [vmem:[%s24022_s8 + $0x168] sm:$0xff]  }
0x16df   : > { %v20934_v45 = vld [vmem:[%s24022_s8 + $0x1e8] sm:$0xff]  }
0x16e0   : > { %18191 = vmatpush3.bf16.msra.mxu1 %v20907_v49  ;;  %18231 = vmatpush3.bf16.msra.mxu0 %v20908_v56 }
0x16e1   : > { %18192 = vmatprep.subr.bf16.mxu1 %v20909_v10  ;;  %18232 = vmatprep.subr.bf16.mxu0 %v20910_v4  ;;  %v20935_v10 = vld [vmem:[%s24022_s8 + $0x128] sm:$0xff]  }
0x16e2   : > { %v20936_v4 = vld [vmem:[%s24022_s8 + $0x1a8] sm:$0xff]  }
0x16e4   : > { %18193 = vmatpush3.bf16.msra.mxu1 %v20911_v19  ;;  %18233 = vmatpush3.bf16.msra.mxu0 %v20912_v41 }
0x16e5   : > { %18258 = vmatprep.subr.bf16.mxu1 %v20913_v7  ;;  %18298 = vmatprep.subr.bf16.mxu0 %v20914_v25  ;;  %v20937_v7 = vld [vmem:[%s24022_s8 + $0x170] sm:$0xff]  }
0x16e6   : > { %v20938_v25 = vld [vmem:[%s24022_s8 + $0x1f0] sm:$0xff]  }
0x1779   : > { %v14888_v37 = vpop.f32.mrb[140].mxu1  ;;  %v14989_v24 = vpop.f32.mrb[132].mxu0 }
0x177a   : > { %v14890_v23 = vpop.f32.mrb[141].mxu1  ;;  %v14991_v9 = vpop.f32.mrb[133].mxu0 }
0x177b   : > { %v14892_v52 = vpop.f32.mrb[142].mxu1  ;;  %v14993_v11 = vpop.f32.mrb[134].mxu0 }
0x177c   : > { %v14927_v55 = vpack.c.bf16 %v14892_v52, %v14888_v37  ;;  %v15028_v20 = vpack.c.bf16 %v14993_v11, %v14989_v24  ;;  %v14894_v40 = vpop.f32.mrb[143].mxu1  ;;  %v14995_v60 = vpop.f32.mrb[135].mxu0 }
0x177d   : > { %v14928_v61 = vpack.c.bf16 %v14894_v40, %v14890_v23  ;;  %v15029_v53 = vpack.c.bf16 %v14995_v60, %v14991_v9  ;;  %v20939_v40 = vld [vmem:[%s24022_s8 + $0x130] sm:$0xff]  }
0x177e   : > { %v20940_v60 = vld [vmem:[%s24022_s8 + $0x1b0] sm:$0xff]  }
0x177f   : > { %15789 = vmatprep.mubr.bf16.mxu1 %v14928_v61  ;;  %15854 = vmatprep.mubr.bf16.mxu0 %v15029_v53  ;;  %v20941_v61 = vld [vmem:[%s24022_s8 + $0x178] sm:$0xff]  }
0x1780   : > { %15790 = vmatmul.mubr.bf16.vlgmr.msra.gmra.mrb[172].mxu1 %v14927_v55  ;;  %15855 = vmatmul.mubr.bf16.vlgmr.msra.gmra.mrb[164].mxu0 %v15028_v20  ;;  %v20942_v53 = vld [vmem:[%s24022_s8 + $0x1f8] sm:$0xff]  }
0x1781   : > { %v14898_v39 = vpop.f32.mrb[144].mxu1  ;;  %v14999_v13 = vpop.f32.mrb[136].mxu0  ;;  %18259 = vmatpush3.bf16.msra.mxu1 %v20915_v59  ;;  %18299 = vmatpush3.bf16.msra.mxu0 %v20916_v2 }
0x1782   : > { %v14900_v8 = vpop.f32.mrb[145].mxu1  ;;  %v15001_v21 = vpop.f32.mrb[137].mxu0  ;;  %18260 = vmatprep.subr.bf16.mxu1 %v20917_v29  ;;  %18300 = vmatprep.subr.bf16.mxu0 %v20918_v14  ;;  %v20943_v29 = vld [vmem:[%s24022_s8 + $0x138] sm:$0xff]  }
0x1783   : > { %v14902_v28 = vpop.f32.mrb[146].mxu1  ;;  %v15003_v42 = vpop.f32.mrb[138].mxu0  ;;  %v20944_v14 = vld [vmem:[%s24022_s8 + $0x1b8] sm:$0xff]  }
0x1784   : > { %v14929_v22 = vpack.c.bf16 %v14902_v28, %v14898_v39  ;;  %v15030_v51 = vpack.c.bf16 %v15003_v42, %v14999_v13  ;;  %v14904_v46 = vpop.f32.mrb[147].mxu1  ;;  %v15005_v48 = vpop.f32.mrb[139].mxu0 }
0x1785   : > { %v14930_v35 = vpack.c.bf16 %v14904_v46, %v14900_v8  ;;  %v15031_v16 = vpack.c.bf16 %v15005_v48, %v15001_v21  ;;  %18261 = vmatpush3.bf16.msra.mxu1 %v20919_v15  ;;  %18301 = vmatpush3.bf16.msra.mxu0 %v20920_v31 }
0x1786   : > { %18262 = vmatprep.subr.bf16.mxu1 %v20921_v18  ;;  %18302 = vmatprep.subr.bf16.mxu0 %v20922_v12 }
0x1787   : > { %15797 = vmatprep.mubr.bf16.mxu1 %v14930_v35  ;;  %15862 = vmatprep.mubr.bf16.mxu0 %v15031_v16 }
0x1788   : > { %15798 = vmatmul.mubr.bf16.gmra.mrb[176].mxu1 %v14929_v22  ;;  %15863 = vmatmul.mubr.bf16.gmra.mrb[168].mxu0 %v15030_v51 }
0x1789   : > { %v14908_v33 = vpop.f32.mrb[148].mxu1  ;;  %v15009_v1 = vpop.f32.mrb[140].mxu0  ;;  %18263 = vmatpush3.bf16.msra.mxu1 %v20923_v43  ;;  %18303 = vmatpush3.bf16.msra.mxu0 %v20924_v30 }
0x178a   : > { %v14910_v5 = vpop.f32.mrb[149].mxu1  ;;  %v15011_v3 = vpop.f32.mrb[141].mxu0  ;;  %18264 = vmatprep.subr.bf16.mxu1 %v20925_v54  ;;  %18304 = vmatprep.subr.bf16.mxu0 %v20926_v36 }
0x178b   : > { %v14912_v63 = vpop.f32.mrb[150].mxu1  ;;  %v15013_v17 = vpop.f32.mrb[142].mxu0 }
0x178c   : > { %v14931_v27 = vpack.c.bf16 %v14912_v63, %v14908_v33  ;;  %v15032_v57 = vpack.c.bf16 %v15013_v17, %v15009_v1  ;;  %v14914_v34 = vpop.f32.mrb[151].mxu1  ;;  %v15015_v58 = vpop.f32.mrb[143].mxu0 }
0x178d   : > { %v14932_v32 = vpack.c.bf16 %v14914_v34, %v14910_v5  ;;  %v15033_v6 = vpack.c.bf16 %v15015_v58, %v15011_v3  ;;  %18265 = vmatpush3.bf16.msra.mxu1 %v20927_v62  ;;  %18305 = vmatpush3.bf16.msra.mxu0 %v20928_v0 }
0x178e   : > { %18266 = vmatprep.subr.bf16.mxu1 %v20929_v26  ;;  %18306 = vmatprep.subr.bf16.mxu0 %v20930_v44 }
0x178f   : > { %15805 = vmatprep.mubr.bf16.mxu1 %v14932_v32  ;;  %15870 = vmatprep.mubr.bf16.mxu0 %v15033_v6 }
0x1790   : > { %15806 = vmatmul.mubr.bf16.gmra.mrb[180].mxu1 %v14931_v27  ;;  %15871 = vmatmul.mubr.bf16.gmra.mrb[172].mxu0 %v15032_v57 }
0x1791   : > { %v14918_v49 = vpop.f32.mrb[152].mxu1  ;;  %v15019_v56 = vpop.f32.mrb[144].mxu0  ;;  %18267 = vmatpush3.bf16.msra.mxu1 %v20931_v50  ;;  %18307 = vmatpush3.bf16.msra.mxu0 %v20932_v47 }
0x1792   : > { %v14920_v19 = vpop.f32.mrb[153].mxu1  ;;  %v15021_v41 = vpop.f32.mrb[145].mxu0  ;;  %18268 = vmatprep.subr.bf16.mxu1 %v20933_v38  ;;  %18308 = vmatprep.subr.bf16.mxu0 %v20934_v45 }
0x1793   : > { %v14922_v37 = vpop.f32.mrb[154].mxu1  ;;  %v15023_v24 = vpop.f32.mrb[146].mxu0 }
0x1794   : > { %v14933_v23 = vpack.c.bf16 %v14922_v37, %v14918_v49  ;;  %v15034_v9 = vpack.c.bf16 %v15023_v24, %v15019_v56  ;;  %v14924_v52 = vpop.f32.mrb[155].mxu1  ;;  %v15025_v11 = vpop.f32.mrb[147].mxu0  ;;  %v17913_v37 = vld [vmem:[#allocation19] ss:$0 sm:$0xff] }
0x1795   : > { %v14934_v55 = vpack.c.bf16 %v14924_v52, %v14920_v19  ;;  %v15035_v20 = vpack.c.bf16 %v15025_v11, %v15021_v41  ;;  %18269 = vmatpush3.bf16.msra.mxu1 %v20935_v10  ;;  %18309 = vmatpush3.bf16.msra.mxu0 %v20936_v4 }
0x1796   : > { %18270 = vmatprep.subr.bf16.mxu1 %v20937_v7  ;;  %18310 = vmatprep.subr.bf16.mxu0 %v20938_v25 }
0x1797   : > { %15813 = vmatprep.mubr.bf16.mxu1 %v14934_v55  ;;  %15878 = vmatprep.mubr.bf16.mxu0 %v15035_v20 }
0x1798   : > { %15814 = vmatmul.mubr.bf16.gmra.mrb[184].mxu1 %v14933_v23  ;;  %15879 = vmatmul.mubr.bf16.gmra.mrb[176].mxu0 %v15034_v9 }
0x1799   : > { %v15090_v59 = vpop.f32.mrb[156].mxu1  ;;  %v15191_v2 = vpop.f32.mrb[148].mxu0  ;;  %18271 = vmatpush3.bf16.msra.mxu1 %v20939_v40  ;;  %18311 = vmatpush3.bf16.msra.mxu0 %v20940_v60 }
0x179a   : > { %v15092_v39 = vpop.f32.mrb[157].mxu1  ;;  %v15193_v13 = vpop.f32.mrb[149].mxu0  ;;  %18272 = vmatprep.subr.bf16.mxu1 %v20941_v61  ;;  %18312 = vmatprep.subr.bf16.mxu0 %v20942_v53 }
0x179b   : > { %v15094_v15 = vpop.f32.mrb[158].mxu1  ;;  %v15195_v31 = vpop.f32.mrb[150].mxu0 }
0x179c   : > { %v15129_v8 = vpack.c.bf16 %v15094_v15, %v15090_v59  ;;  %v15230_v21 = vpack.c.bf16 %v15195_v31, %v15191_v2  ;;  %v15096_v18 = vpop.f32.mrb[159].mxu1  ;;  %v15197_v12 = vpop.f32.mrb[151].mxu0 }
0x179d   : > { %v15130_v28 = vpack.c.bf16 %v15096_v18, %v15092_v39  ;;  %v15231_v42 = vpack.c.bf16 %v15197_v12, %v15193_v13  ;;  %18273 = vmatpush3.bf16.msra.mxu1 %v20943_v29  ;;  %18313 = vmatpush3.bf16.msra.mxu0 %v20944_v14 }
0x179f   : > { %15919 = vmatprep.mubr.bf16.mxu1 %v15130_v28  ;;  %15984 = vmatprep.mubr.bf16.mxu0 %v15231_v42 }
0x17a0   : > { %15920 = vmatmul.mubr.bf16.vlgmr.msra.gmra.mrb[188].mxu1 %v15129_v8  ;;  %15985 = vmatmul.mubr.bf16.vlgmr.msra.gmra.mrb[180].mxu0 %v15230_v21 }
0x17a1   : > { %v15100_v22 = vpop.f32.mrb[160].mxu1  ;;  %v15201_v51 = vpop.f32.mrb[152].mxu0 }
0x17a2   : > { %v15102_v46 = vpop.f32.mrb[161].mxu1  ;;  %v15203_v48 = vpop.f32.mrb[153].mxu0 }
0x17a3   : > { %v15104_v35 = vpop.f32.mrb[162].mxu1  ;;  %v15205_v16 = vpop.f32.mrb[154].mxu0 }
0x17a4   : > { %v15131_v43 = vpack.c.bf16 %v15104_v35, %v15100_v22  ;;  %v15232_v30 = vpack.c.bf16 %v15205_v16, %v15201_v51  ;;  %v15106_v54 = vpop.f32.mrb[163].mxu1  ;;  %v15207_v36 = vpop.f32.mrb[155].mxu0 }
0x17a5   : > { %v15132_v33 = vpack.c.bf16 %v15106_v54, %v15102_v46  ;;  %v15233_v1 = vpack.c.bf16 %v15207_v36, %v15203_v48 }
0x17a7   : > { %15927 = vmatprep.mubr.bf16.mxu1 %v15132_v33  ;;  %15992 = vmatprep.mubr.bf16.mxu0 %v15233_v1 }
0x17a8   : > { %15928 = vmatmul.mubr.bf16.gmra.mrb[192].mxu1 %v15131_v43  ;;  %15993 = vmatmul.mubr.bf16.gmra.mrb[184].mxu0 %v15232_v30 }
0x17a9   : > { %v15110_v62 = vpop.f32.mrb[164].mxu1  ;;  %v15211_v0 = vpop.f32.mrb[156].mxu0 }
0x17aa   : > { %v15112_v5 = vpop.f32.mrb[165].mxu1  ;;  %v15213_v3 = vpop.f32.mrb[157].mxu0 }
0x17ab   : > { %v15114_v26 = vpop.f32.mrb[166].mxu1  ;;  %v15215_v44 = vpop.f32.mrb[158].mxu0 }
0x17ac   : > { %v15133_v63 = vpack.c.bf16 %v15114_v26, %v15110_v62  ;;  %v15234_v17 = vpack.c.bf16 %v15215_v44, %v15211_v0  ;;  %v15116_v27 = vpop.f32.mrb[167].mxu1  ;;  %v15217_v57 = vpop.f32.mrb[159].mxu0 }
0x17ad   : > { %v15134_v34 = vpack.c.bf16 %v15116_v27, %v15112_v5  ;;  %v15235_v58 = vpack.c.bf16 %v15217_v57, %v15213_v3 }
0x17af   : > { %15935 = vmatprep.mubr.bf16.mxu1 %v15134_v34  ;;  %16000 = vmatprep.mubr.bf16.mxu0 %v15235_v58 }
0x17b0   : > { %15936 = vmatmul.mubr.bf16.gmra.mrb[196].mxu1 %v15133_v63  ;;  %16001 = vmatmul.mubr.bf16.gmra.mrb[188].mxu0 %v15234_v17 }
0x17b1   : > { %v15120_v32 = vpop.f32.mrb[168].mxu1  ;;  %v15221_v6 = vpop.f32.mrb[160].mxu0 }
0x17b2   : > { %v15122_v50 = vpop.f32.mrb[169].mxu1  ;;  %v15223_v47 = vpop.f32.mrb[161].mxu0 }
0x17b3   : > { %v15124_v38 = vpop.f32.mrb[170].mxu1  ;;  %v15225_v45 = vpop.f32.mrb[162].mxu0 }
0x17b4   : > { %v15135_v49 = vpack.c.bf16 %v15124_v38, %v15120_v32  ;;  %v15236_v56 = vpack.c.bf16 %v15225_v45, %v15221_v6  ;;  %v15126_v10 = vpop.f32.mrb[171].mxu1  ;;  %v15227_v4 = vpop.f32.mrb[163].mxu0 }
0x17b5   : > { %v15136_v19 = vpack.c.bf16 %v15126_v10, %v15122_v50  ;;  %v15237_v41 = vpack.c.bf16 %v15227_v4, %v15223_v47 }
0x17b7   : > { %15943 = vmatprep.mubr.bf16.mxu1 %v15136_v19  ;;  %16008 = vmatprep.mubr.bf16.mxu0 %v15237_v41 }
0x17b8   : > { %15944 = vmatmul.mubr.bf16.gmra.mrb[200].mxu1 %v15135_v49  ;;  %16009 = vmatmul.mubr.bf16.gmra.mrb[192].mxu0 %v15236_v56 }
0x1853   : > { %v18194_v7 = vpop.f32.mrb[172].mxu1  ;;  %v18234_v25 = vpop.f32.mrb[164].mxu0 }
0x1854   : > { %v18195_v24 = vpop.f32.mrb[173].mxu1  ;;  %v18235_v23 = vpop.f32.mrb[165].mxu0 }
0x1855   : > { %v18196_v9 = vadd.f32 %v18195_v24, %v18194_v7  ;;  %v18236_v52 = vadd.f32 %v18235_v23, %v18234_v25  ;;  %v18197_v11 = vpop.f32.mrb[174].mxu1  ;;  %v18237_v55 = vpop.f32.mrb[166].mxu0 }
0x1856   : > { %v18198_v20 = vpop.f32.mrb[175].mxu1  ;;  %v18238_v40 = vpop.f32.mrb[167].mxu0 }
0x1857   : > { %v15792_v60 = vadd.f32 %v18196_v9, %v17913_v37  ;;  %v18199_v61 = vadd.f32 %v18198_v20, %v18197_v11  ;;  %v18239_v53 = vadd.f32 %v18238_v40, %v18237_v55 }
0x1859   : > { %v15857_v59 = vadd.f32 %v18236_v52, %v15792_v60  ;;  %v15795_v2 = vadd.f32 %v18199_v61, %v17913_v37 }
0x185b   : > { %v23802_v29 = vadd.f32 %v18239_v53, %v15795_v2  ;;  %v18200_v14 = vpop.f32.mrb[176].mxu1  ;;  %v18240_v39 = vpop.f32.mrb[168].mxu0 }
0x185c   : > { %v18201_v13 = vpop.f32.mrb[177].mxu1  ;;  %v18241_v15 = vpop.f32.mrb[169].mxu0 }
0x185d   : > { %v18202_v31 = vadd.f32 %v18201_v13, %v18200_v14  ;;  %v18242_v8 = vadd.f32 %v18241_v15, %v18240_v39  ;;  %v18203_v21 = vpop.f32.mrb[178].mxu1  ;;  %v18243_v18 = vpop.f32.mrb[170].mxu0 }
0x185e   : > { %v18204_v12 = vpop.f32.mrb[179].mxu1  ;;  %v18244_v28 = vpop.f32.mrb[171].mxu0 }
0x185f   : > { %v15800_v42 = vadd.f32 %v18202_v31, %v17913_v37  ;;  %v18205_v22 = vadd.f32 %v18204_v12, %v18203_v21  ;;  %v18245_v51 = vadd.f32 %v18244_v28, %v18243_v18 }
0x1861   : > { %v23804_v46 = vadd.f32 %v18242_v8, %v15800_v42  ;;  %v15803_v48 = vadd.f32 %v18205_v22, %v17913_v37 }
0x1863   : > { %v23806_v35 = vadd.f32 %v18245_v51, %v15803_v48  ;;  %v18206_v16 = vpop.f32.mrb[180].mxu1  ;;  %v18246_v43 = vpop.f32.mrb[172].mxu0 }
0x1864   : > { %v18207_v30 = vpop.f32.mrb[181].mxu1  ;;  %v18247_v54 = vpop.f32.mrb[173].mxu0 }
0x1865   : > { %v18208_v36 = vadd.f32 %v18207_v30, %v18206_v16  ;;  %v18248_v33 = vadd.f32 %v18247_v54, %v18246_v43  ;;  %v18209_v1 = vpop.f32.mrb[182].mxu1  ;;  %v18249_v62 = vpop.f32.mrb[174].mxu0 }
0x1866   : > { %v18210_v0 = vpop.f32.mrb[183].mxu1  ;;  %v18250_v5 = vpop.f32.mrb[175].mxu0 }
0x1867   : > { %v15808_v3 = vadd.f32 %v18208_v36, %v17913_v37  ;;  %v18211_v26 = vadd.f32 %v18210_v0, %v18209_v1  ;;  %v18251_v44 = vadd.f32 %v18250_v5, %v18249_v62 }
0x1869   : > { %v23808_v63 = vadd.f32 %v18248_v33, %v15808_v3  ;;  %v15811_v17 = vadd.f32 %v18211_v26, %v17913_v37 }
0x186b   : > { %v23810_v27 = vadd.f32 %v18251_v44, %v15811_v17  ;;  %v18212_v57 = vpop.f32.mrb[184].mxu1  ;;  %v18252_v34 = vpop.f32.mrb[176].mxu0 }
0x186c   : > { %v18213_v58 = vpop.f32.mrb[185].mxu1  ;;  %v18253_v32 = vpop.f32.mrb[177].mxu0 }
0x186d   : > { %v18214_v6 = vadd.f32 %v18213_v58, %v18212_v57  ;;  %v18254_v50 = vadd.f32 %v18253_v32, %v18252_v34  ;;  %v18215_v47 = vpop.f32.mrb[186].mxu1  ;;  %v18255_v38 = vpop.f32.mrb[178].mxu0 }
0x186e   : > { %v18216_v45 = vpop.f32.mrb[187].mxu1  ;;  %v18256_v49 = vpop.f32.mrb[179].mxu0 }
0x186f   : > { %v15816_v56 = vadd.f32 %v18214_v6, %v17913_v37  ;;  %v18217_v10 = vadd.f32 %v18216_v45, %v18215_v47  ;;  %v18257_v4 = vadd.f32 %v18256_v49, %v18255_v38 }
0x1871   : > { %v23812_v19 = vadd.f32 %v18254_v50, %v15816_v56  ;;  %v15819_v41 = vadd.f32 %v18217_v10, %v17913_v37 }
0x1873   : > { %v23814_v7 = vadd.f32 %v18257_v4, %v15819_v41  ;;  %v18274_v25 = vpop.f32.mrb[188].mxu1  ;;  %v18314_v24 = vpop.f32.mrb[180].mxu0 }
0x1874   : > { %v18275_v23 = vpop.f32.mrb[189].mxu1  ;;  %v18315_v9 = vpop.f32.mrb[181].mxu0 }
0x1875   : > { %v18276_v52 = vadd.f32 %v18275_v23, %v18274_v25  ;;  %v18316_v11 = vadd.f32 %v18315_v9, %v18314_v24  ;;  %v18277_v55 = vpop.f32.mrb[190].mxu1  ;;  %v18317_v20 = vpop.f32.mrb[182].mxu0 }
0x1876   : > { %v18278_v40 = vpop.f32.mrb[191].mxu1  ;;  %v18318_v60 = vpop.f32.mrb[183].mxu0 }
0x1877   : > { %v15922_v61 = vadd.f32 %v18276_v52, %v15857_v59  ;;  %v18279_v53 = vadd.f32 %v18278_v40, %v18277_v55  ;;  %v18319_v2 = vadd.f32 %v18318_v60, %v18317_v20 }
0x1879   : > { %v15987_v14 = vadd.f32 %v18316_v11, %v15922_v61  ;;  %v15925_v39 = vadd.f32 %v18279_v53, %v23802_v29 }
0x187b   : > { %v17978_v13 = vmul.f32 -1.442695, %v15987_v14  ;;  %v15990_v37 = vadd.f32 %v18319_v2, %v15925_v39  ;;  %v18280_v15 = vpop.f32.mrb[192].mxu1  ;;  %v18320_v31 = vpop.f32.mrb[184].mxu0 }
0x187c   : > { %v18281_v8 = vpop.f32.mrb[193].mxu1  ;;  %v18321_v21 = vpop.f32.mrb[185].mxu0 }
0x187d   : > { %20945 = vpow2.f32 %v17978_v13  ;;  %v17979_v18 = vmul.f32 -1.442695, %v15990_v37  ;;  %v18282_v12 = vadd.f32 %v18281_v8, %v18280_v15  ;;  %v18322_v28 = vadd.f32 %v18321_v21, %v18320_v31  ;;  %v18283_v42 = vpop.f32.mrb[194].mxu1  ;;  %v18323_v22 = vpop.f32.mrb[186].mxu0 }
0x187e   : > { %v18284_v51 = vpop.f32.mrb[195].mxu1  ;;  %v18324_v48 = vpop.f32.mrb[187].mxu0 }
0x187f   : > { %20947 = vpow2.f32 %v17979_v18  ;;  %v15930_v59 = vadd.f32 %v18282_v12, %v23804_v46  ;;  %v18285_v16 = vadd.f32 %v18284_v51, %v18283_v42  ;;  %v18325_v43 = vadd.f32 %v18324_v48, %v18323_v22 }
0x1881   : > { %v15995_v29 = vadd.f32 %v18322_v28, %v15930_v59  ;;  %v15933_v30 = vadd.f32 %v18285_v16, %v23806_v35 }
0x1883   : > { %v17980_v54 = vmul.f32 -1.442695, %v15995_v29  ;;  %v15998_v36 = vadd.f32 %v18325_v43, %v15933_v30  ;;  %v18286_v33 = vpop.f32.mrb[196].mxu1  ;;  %v18326_v1 = vpop.f32.mrb[188].mxu0 }
0x1884   : > { %v18287_v62 = vpop.f32.mrb[197].mxu1  ;;  %v18327_v0 = vpop.f32.mrb[189].mxu0 }
0x1885   : > { %20949 = vpow2.f32 %v17980_v54  ;;  %v17981_v5 = vmul.f32 -1.442695, %v15998_v36  ;;  %v18288_v3 = vadd.f32 %v18287_v62, %v18286_v33  ;;  %v18328_v26 = vadd.f32 %v18327_v0, %v18326_v1  ;;  %v18289_v44 = vpop.f32.mrb[198].mxu1  ;;  %v18329_v17 = vpop.f32.mrb[190].mxu0 }
0x1886   : > { %v18290_v57 = vpop.f32.mrb[199].mxu1  ;;  %v18330_v34 = vpop.f32.mrb[191].mxu0 }
0x1887   : > { %v20946_v46 = vpop.eup %20945  ;;  %20951 = vpow2.f32 %v17981_v5  ;;  %v15938_v58 = vadd.f32 %v18288_v3, %v23808_v63  ;;  %v18291_v35 = vadd.f32 %v18290_v57, %v18289_v44  ;;  %v18331_v32 = vadd.f32 %v18330_v34, %v18329_v17 }
0x1888   : > { %v16041_v6 = vadd.f32 1.0, %v20946_v46 }
0x1889   : > { %v20948_v50 = vpop.eup %20947  ;;  %v16003_v47 = vadd.f32 %v18328_v26, %v15938_v58  ;;  %v15941_v38 = vadd.f32 %v18291_v35, %v23810_v27 }
0x188a   : > { %20953 = vrcp.f32 %v16041_v6  ;;  %v16042_v45 = vadd.f32 1.0, %v20948_v50 }
0x188b   : > { %v17982_v49 = vmul.f32 -1.442695, %v16003_v47  ;;  %v16006_v56 = vadd.f32 %v18331_v32, %v15941_v38  ;;  %v18292_v10 = vpop.f32.mrb[200].mxu1  ;;  %v18332_v4 = vpop.f32.mrb[192].mxu0 }
0x188c   : > { %20955 = vrcp.f32 %v16042_v45  ;;  %v18293_v41 = vpop.f32.mrb[201].mxu1  ;;  %v18333_v25 = vpop.f32.mrb[193].mxu0 }
0x188d   : > { %20957 = vpow2.f32 %v17982_v49  ;;  %v17983_v63 = vmul.f32 -1.442695, %v16006_v56  ;;  %v18294_v24 = vadd.f32 %v18293_v41, %v18292_v10  ;;  %v18334_v23 = vadd.f32 %v18333_v25, %v18332_v4  ;;  %v18295_v9 = vpop.f32.mrb[202].mxu1  ;;  %v18335_v52 = vpop.f32.mrb[194].mxu0 }
0x188e   : > { %v18296_v11 = vpop.f32.mrb[203].mxu1  ;;  %v18336_v55 = vpop.f32.mrb[195].mxu0 }
0x188f   : > { %v20950_v27 = vpop.eup %20949  ;;  %20959 = vpow2.f32 %v17983_v63  ;;  %v15946_v20 = vadd.f32 %v18294_v24, %v23812_v19  ;;  %v18297_v40 = vadd.f32 %v18296_v11, %v18295_v9  ;;  %v18337_v60 = vadd.f32 %v18336_v55, %v18335_v52 }
0x1890   : > { %v16043_v61 = vadd.f32 1.0, %v20950_v27 }
0x1891   : > { %v20952_v53 = vpop.eup %20951  ;;  %v16011_v2 = vadd.f32 %v18334_v23, %v15946_v20  ;;  %v15949_v14 = vadd.f32 %v18297_v40, %v23814_v7 }
0x1892   : > { %20961 = vrcp.f32 %v16043_v61  ;;  %v16044_v39 = vadd.f32 1.0, %v20952_v53 }
0x1893   : > { %v17984_v13 = vmul.f32 -1.442695, %v16011_v2  ;;  %v16014_v37 = vadd.f32 %v18337_v60, %v15949_v14 }
0x1894   : > { %v20954_v15 = vpop.eup %20953  ;;  %20963 = vrcp.f32 %v16044_v39 }
0x1895   : > { %20965 = vpow2.f32 %v17984_v13  ;;  %v17985_v31 = vmul.f32 -1.442695, %v16014_v37  ;;  %16065 = vst.msk [vmem:[%s23826_s1] sm:$0xff] %vm1355_vm4, %v20954_v15 }
0x1896   : > { %v20956_v19 = vpop.eup %20955 }
0x1897   : > { %v20958_v8 = vpop.eup %20957  ;;  %20967 = vpow2.f32 %v17985_v31  ;;  %16066 = vst.msk [vmem:[%s23826_s1 + $0x8] sm:$0xff] %vm1355_vm4, %v20956_v19 }
0x1898   : > { %v16045_v7 = vadd.f32 1.0, %v20958_v8 }
0x1899   : > { %v20960_v21 = vpop.eup %20959 }
0x189a   : > { %20969 = vrcp.f32 %v16045_v7  ;;  %v16046_v18 = vadd.f32 1.0, %v20960_v21 }
0x189c   : > { %v20962_v12 = vpop.eup %20961  ;;  %20971 = vrcp.f32 %v16046_v18 }
0x189d   : > { %16067 = vst.msk [vmem:[%s23826_s1 + $0x10] sm:$0xff] %vm1355_vm4, %v20962_v12 }
0x189e   : > { %v20964_v28 = vpop.eup %20963 }
0x189f   : > { %v20966_v42 = vpop.eup %20965  ;;  %16068 = vst.msk [vmem:[%s23826_s1 + $0x18] sm:$0xff] %vm1355_vm4, %v20964_v28 }
0x18a0   : > { %v16047_v22 = vadd.f32 1.0, %v20966_v42 }
0x18a1   : > { %v20968_v51 = vpop.eup %20967 }
0x18a2   : > { %20973 = vrcp.f32 %v16047_v22  ;;  %v16048_v48 = vadd.f32 1.0, %v20968_v51 }
0x18a4   : > { %v20970_v59 = vpop.eup %20969  ;;  %20975 = vrcp.f32 %v16048_v48 }
0x18a5   : > { %16069 = vst.msk [vmem:[%s23826_s1 + $0x20] sm:$0xff] %vm1355_vm4, %v20970_v59 }
0x18a6   : > { %v20972_v16 = vpop.eup %20971 }
0x18a7   : > { %16070 = vst.msk [vmem:[%s23826_s1 + $0x28] sm:$0xff] %vm1355_vm4, %v20972_v16 }
0x18ac   : > { %v20974_v43 = vpop.eup %20973 }
0x18ad   : > { %16071 = vst.msk [vmem:[%s23826_s1 + $0x30] sm:$0xff] %vm1355_vm4, %v20974_v43 }
0x18ae   : > { %v20976_v29 = vpop.eup %20975 }
0x18af   : > { %16072 = vst.msk [vmem:[%s23826_s1 + $0x38] sm:$0xff] %vm1355_vm4, %v20976_v29 }
0x18b0   : > { %21410 = shalt.err (!%p21407_p7)
}
0x18b1   : > { %s21411_s26 = scalar_lea.hbm %s23843_s11, 1024  ;;  %s21415_s1 = scalar_lea.hbm %s21737_s13, 2048 }
0x18b2   : > { %p21412_p8 = scmp.ne.s32.totalorder %s23843_s11, %s21411_s26  ;;  %p21416_p6 = scmp.lt.u32.totalorder %s23843_s11, %s21737_s13 }
0x18b3   : > { %p21417_p0 = scmp.lt.u32.totalorder %s21415_s1, %s21411_s26  ;;  %p21419_p9 = scmp.lt.u32.totalorder %s21411_s26, %s23843_s11 }
0x18b4   : > { %p21413_p11 = pnand %p21412_p8, %p24026_p10 }
0x18b5   : > { %p21418_p5 = por %p21417_p0, %p21416_p6 }
0x18b6   : > { %p21414_p13 = pneg %p21413_p11 }
0x18b7   : > { %p21420_p12 = por %p21419_p9, %p21418_p5 }
0x18b9   : > { %p21421_p1 = pnand %p21420_p12, %p21414_p13 }
0x18bb   : > { %21424 = shalt.err (!%p21421_p1)
}
0x18bc   : > { %s21552_s4 = smov 128   ;;  %s21553_s0 = smov 8  }
0x18bd   : > { %18590 = dma.vmem_to_hbm [thread:$0]  (%p24026_p10), %s23845_s28, 1024, %s23843_s11, %s23853_s22, %s21552_s4, %s21552_s4, %s21553_s0  }
0x18be PF: > { %s24027_s10 = sld [smem:[#allocation59_spill]]  ;;  %s24028_s7 = sld [smem:[#allocation57_spill]] }
0x18bf   : > { %s24029_s2 = sld [smem:[#allocation63_spill]] }
0x18c4   : > { %p18672_p2 = scmp.ge.s32.totalorder %s24027_s10, 2  ;;  %s16102_s3 = sand.u32 1, %s24028_s7  }
0x18c5   : > { %p24030_p3 = scmp.ne.s32.totalorder %s24029_s2, 0  ;;  %s16103_s26 = scalar_lea.sflag [#allocation4], %s16102_s3 }
0x18c7   : > { %p18639_p4 = pnand %p18672_p2, %p24030_p3 }
0x18c9   : > { %21474 = dma.done.wait (!%p18639_p4), %s16103_s26, 1024  }
0x18ca   : > { %21476 = vsyncadd (!%p18639_p4), %s16103_s26, 4294966272  ;;  %s24031_s28 = sld [smem:[#allocation60_spill]]  ;;  %s24032_s1 = sld [smem:[#allocation58_spill]] }
0x18cb   : > { %s24033_s26 = sld [smem:[#allocation61_spill]]  ;;  %s24034_s22 = smov %s21483_s23 }
0x18d0   : > { %p89_p7 = scmp.ge.s32.totalorder %s24031_s28, 4   ;;  %s24035_s23 = smov %s24032_s1 }
0x18d2   :  { %91 = sbr.rel (!%p89_p7) target bundleno = 72 (0x48), region = 291 }
0x18d9   :  { %16108 = vsyncpa [#allocation3], 1 }
0x18da   :  { %16110 = vsyncpa [#allocation3 + $0x1], 1 }
0x18db   :  { %16111 = vsyncpa [#allocation6], 1 }
0x18dc   :  { %16112 = vsyncpa [#allocation9], 1 }
0x18dd   :  { %16113 = vsyncpa [#allocation12], 1 }
0x18de   :  { %16114 = vsyncpa [#allocation15], 1 }
0x18df   :  { %16115 = vsyncpa [#allocation18], 1 }
0x18e0   :  { %16116 = vsyncpa [#allocation21], 1 }
0x18e1   :  { %16117 = vsyncpa [#allocation24], 1 }
0x18e2   :  { %16118 = vsyncpa [#allocation4], 1 }
0x18e3   :  { %16120 = vsyncpa [#allocation4 + $0x1], 1 }

</bundles_post_ra>
